<compile_context>
chip_gen: v7x
topology: tpu7x:2x2x1
jax: 0.10.0
libtpu: 0.0.40
codegen_flags: <defaults>
</compile_context>

<pallas_src>
import functools

import jax
import jax.numpy as jnp
import numpy as np
from jax.experimental import pallas as pl
from jax.experimental.pallas import tpu as pltpu


def _conv3x3_bias_relu(pad_ref, s_ref, w_ref, b_ref, n, *, H, W, C):
    """One 3x3 conv + bias + ReLU on the padded activation of image `n`.

    pad_ref: (NB, H+2, W+16, C) f32   zero-padded activation, interior at cols [8, W+8)
    s_ref  : (H+2, W, 3*C)      bf16  width-im2col staging (kw folded into K)
    w_ref  : (3, 3*C, C)        bf16  weights, (kh, kw*Cin, Cout)
    b_ref  : (1, C)             f32   bias
    returns: (H, W, C)          f32
    """
    f32 = jnp.float32
    bf16 = jnp.bfloat16

    # Stage the width-im2col operand in VMEM (bf16):
    #   s[r, w, kw*C + c] = pad[n, r, w + kw + 7, c]
    s_ref[:, :, 0:C] = pad_ref[n, :, 7:W + 7, :].astype(bf16)
    s_ref[:, :, C:2 * C] = pad_ref[n, :, 8:W + 8, :].astype(bf16)
    s_ref[:, :, 2 * C:3 * C] = pad_ref[n, :, 9:W + 9, :].astype(bf16)

    # 3 MXU matmuls (bf16 x bf16 -> f32), K = 3*C:
    #   y[h, w, :] = sum_kh  s[h + kh, :, :] @ w_ref[kh]
    acc = jnp.dot(s_ref[0:H, :, :].reshape(H * W, 3 * C), w_ref[0],
                  preferred_element_type=f32)
    acc = acc + jnp.dot(s_ref[1:H + 1, :, :].reshape(H * W, 3 * C), w_ref[1],
                        preferred_element_type=f32)
    acc = acc + jnp.dot(s_ref[2:H + 2, :, :].reshape(H * W, 3 * C), w_ref[2],
                        preferred_element_type=f32)

    y = acc + b_ref[...]                      # (H*W, C) + (1, C) broadcast, f32
    return jnp.maximum(y, 0.0).reshape(H, W, C)


def _resblock_kernel(x_ref, w1_ref, b1_ref, w2_ref, b2_ref, w3_ref, b3_ref,
                     o_ref, pad_ref, s_ref, *, NB, H, W, C):
    """Fused kernel for a block of NB images.

    x_ref  : (NB, H, W, C)          input (conv #1 input + residual branch)
    wN_ref : (3, 3*C, C)  bf16      weights laid out (kh, kw*Cin, Cout)
    bN_ref : (1, C)       f32       biases
    o_ref  : (NB, H, W, C)          output
    pad_ref: (NB, H+2, W+16, C) f32 VMEM scratch, interior at width offset 8
    s_ref  : (H+2, W, 3*C) bf16     VMEM scratch, width-im2col staging
    """
    f32 = jnp.float32
    Wp = W + 16  # padded width: [0,8) left halo stripe, [8,W+8) interior, [W+8,W+16) right

    # Hoisted zero constants for the halo stores.
    zcol = jnp.zeros((H + 2, 8, C), f32)
    zrow = jnp.zeros((1, Wp, C), f32)

    conv = functools.partial(_conv3x3_bias_relu, pad_ref, s_ref, H=H, W=W, C=C)

    for n in range(NB):  # NB is small and static (1 or batch size)
        # Zero only the halo of the pad scratch; full 8-sublane width stripes and
        # full top/bottom rows are all sublane-aligned, unmasked stores.  Done every
        # grid step so it stays correct when the batch axis is sharded across
        # TensorCores ("parallel": per-core scratch contents are undefined).
        pad_ref[n, :, 0:8, :] = zcol
        pad_ref[n, :, W + 8:W + 16, :] = zcol
        pad_ref[n, 0:1, :, :] = zrow
        pad_ref[n, H + 1:H + 2, :, :] = zrow

        # conv20 + relu
        pad_ref[n, 1:H + 1, 8:W + 8, :] = x_ref[n].astype(f32)
        y = conv(w1_ref, b1_ref, n)
        # conv21 + relu
        pad_ref[n, 1:H + 1, 8:W + 8, :] = y
        y = conv(w2_ref, b2_ref, n)
        # conv22 + relu
        pad_ref[n, 1:H + 1, 8:W + 8, :] = y
        y = conv(w3_ref, b3_ref, n)

        # Residual add: re-read x from the (still resident) VMEM input block instead
        # of keeping it live in vregs across all three convs.
        o_ref[n] = (x_ref[n].astype(f32) + y).astype(o_ref.dtype)


def _auto_images_per_step(n_batch):
    """Images per grid step.

    Multi-TensorCore chips (v4 megacore, v7x): 1 image/step so the "parallel" batch
    axis is sharded across cores.  Single-TC chips (v5e/v6e): process the whole
    batch in one step (extra grid steps only add fixed per-step overhead).
    """
    try:
        kind = jax.devices()[0].device_kind.lower()
    except Exception:
        return n_batch
    if "v4" in kind or "7" in kind:
        return 1
    return n_batch


def resblock_pallas(x, w1, b1, w2, b2, w3, b3, images_per_step=None):
    """x: (N, H, W, C) NHWC.  Returns x + relu(c3(relu(c2(relu(c1(x))))))."""
    N, H, W, C = x.shape
    NB = _auto_images_per_step(N) if images_per_step is None else images_per_step
    if N % NB != 0:
        NB = 1

    # Fold the kw tap axis into the contraction dim once, outside the kernel, and
    # ship weights in bf16 (MXU-native on v5e/v6e/v7x; halves weight DMA bytes).
    wf = lambda w: w.reshape(3, 3 * C, C).astype(jnp.bfloat16)
    bf = lambda b: b.reshape(1, C).astype(jnp.float32)

    kernel = functools.partial(_resblock_kernel, NB=NB, H=H, W=W, C=C)

    act_spec = pl.BlockSpec((NB, H, W, C), lambda b: (b, 0, 0, 0))
    w_spec = pl.BlockSpec((3, 3 * C, C), lambda b: (0, 0, 0))
    b_spec = pl.BlockSpec((1, C), lambda b: (0, 0))

    # NOTE: per-step VMEM residency is ~1.5 MiB (NB=2) at 16x16x64.  If H, W or C
    # grow, add a row-block grid axis (with a 1-row halo through the pad scratch)
    # before approaching v7x's 64 MiB physical / 32 MiB default-scoped VMEM; that
    # also lengthens the grid so the DMA pipeline has compute to overlap with.
    grid_spec = pltpu.PrefetchScalarGridSpec(
        num_scalar_prefetch=0,
        grid=(N // NB,),
        in_specs=[act_spec, w_spec, b_spec, w_spec, b_spec, w_spec, b_spec],
        out_specs=act_spec,
        scratch_shapes=[
            pltpu.VMEM((NB, H + 2, W + 16, C), jnp.float32),   # aligned pad buffer
            pltpu.VMEM((H + 2, W, 3 * C), jnp.bfloat16),       # im2col staging
        ],
    )

    return pl.pallas_call(
        kernel,
        out_shape=jax.ShapeDtypeStruct((N, H, W, C), x.dtype),
        grid_spec=grid_spec,
        compiler_params=pltpu.CompilerParams(
            dimension_semantics=("parallel",)),   # batch steps are independent
    )(x, wf(w1), bf(b1), wf(w2), bf(b2), wf(w3), bf(b3))


def resblock_reference(x, w1, b1, w2, b2, w3, b3):
    """Pure-JAX f32 reference (NHWC / HWIO) mirroring the PyTorch forward."""
    def conv(h, w, b):
        y = jax.lax.conv_general_dilated(
            h, w, window_strides=(1, 1), padding="SAME",
            dimension_numbers=("NHWC", "HWIO", "NHWC"))
        return jax.nn.relu(y + b)

    rs1 = conv(x, w1, b1)
    rs1 = conv(rs1, w2, b2)
    rs1 = conv(rs1, w3, b3)
    return x + rs1


if __name__ == "__main__":
    # Module hardcodes the internal channel count to 64, and the residual add
    # forces in_channels == out_channels == 64.
    N, H, W, C = 2, 16, 16, 64

    key = jax.random.PRNGKey(0)
    kx, k1, k2, k3, kb1, kb2, kb3 = jax.random.split(key, 7)

    x = jax.random.normal(kx, (N, H, W, C), dtype=jnp.float32)

    fan_in = 3 * 3 * C
    scale = 1.0 / np.sqrt(fan_in)
    w1 = jax.random.normal(k1, (3, 3, C, C), dtype=jnp.float32) * scale
    w2 = jax.random.normal(k2, (3, 3, C, C), dtype=jnp.float32) * scale
    w3 = jax.random.normal(k3, (3, 3, C, C), dtype=jnp.float32) * scale
    b1 = jax.random.normal(kb1, (C,), dtype=jnp.float32) * scale
    b2 = jax.random.normal(kb2, (C,), dtype=jnp.float32) * scale
    b3 = jax.random.normal(kb3, (C,), dtype=jnp.float32) * scale

    out = resblock_pallas(x, w1, b1, w2, b2, w3, b3)
    out = jax.block_until_ready(out)

    ref = jax.block_until_ready(resblock_reference(x, w1, b1, w2, b2, w3, b3))

    # bf16 matmul operands (f32 accumulation) -> tolerance loosened vs the f32 reference.
    np.testing.assert_allclose(np.asarray(out), np.asarray(ref),
                               rtol=5e-2, atol=5e-2)
    print("KERNEL_OK")
</pallas_src>

<mosaic_0001>
module attributes {stable_mosaic.version = 11 : i64} {
  func.func @_resblock_kernel(%arg0: i32, %arg1: memref<2x16x16x64xf32, #tpu.memory_space<vmem>>, %arg2: memref<3x192x64xbf16, #tpu.memory_space<vmem>>, %arg3: memref<1x64xf32, #tpu.memory_space<vmem>>, %arg4: memref<3x192x64xbf16, #tpu.memory_space<vmem>>, %arg5: memref<1x64xf32, #tpu.memory_space<vmem>>, %arg6: memref<3x192x64xbf16, #tpu.memory_space<vmem>>, %arg7: memref<1x64xf32, #tpu.memory_space<vmem>>, %arg8: memref<2x16x16x64xf32, #tpu.memory_space<vmem>>, %arg9: memref<2x18x32x64xf32, #tpu.memory_space<vmem>>, %arg10: memref<18x16x192xbf16, #tpu.memory_space<vmem>>) attributes {dimension_semantics = [#tpu.dimension_semantics<parallel>], iteration_bounds = array<i64: 1>, scalar_prefetch = 0 : i64, scratch_operands = 2 : i64, tpu.core_type = #tpu.core_type<tc>, window_params = [{transform_indices = @transform_0, window_bounds = array<i64: 2, 16, 16, 64>}, {pipeline_mode = #tpu.pipeline_mode<synchronous>, transform_indices = @transform_1, window_bounds = array<i64: 3, 192, 64>}, {pipeline_mode = #tpu.pipeline_mode<synchronous>, transform_indices = @transform_2, window_bounds = array<i64: 1, 64>}, {pipeline_mode = #tpu.pipeline_mode<synchronous>, transform_indices = @transform_3, window_bounds = array<i64: 3, 192, 64>}, {pipeline_mode = #tpu.pipeline_mode<synchronous>, transform_indices = @transform_4, window_bounds = array<i64: 1, 64>}, {pipeline_mode = #tpu.pipeline_mode<synchronous>, transform_indices = @transform_5, window_bounds = array<i64: 3, 192, 64>}, {pipeline_mode = #tpu.pipeline_mode<synchronous>, transform_indices = @transform_6, window_bounds = array<i64: 1, 64>}, {transform_indices = @transform_7, window_bounds = array<i64: 2, 16, 16, 64>}]} {
    %cst = arith.constant 0.000000e+00 : f32
    %0 = vector.broadcast %cst : f32 to vector<18x8x64xf32>
    %cst_0 = arith.constant 0.000000e+00 : f32
    %1 = vector.broadcast %cst_0 : f32 to vector<1x32x64xf32>
    %c0 = arith.constant 0 : index
    %c0_1 = arith.constant 0 : index
    %c0_2 = arith.constant 0 : index
    %c0_3 = arith.constant 0 : index
    %2 = vector.load %arg9[%c0, %c0_1, %c0_2, %c0_3] : memref<2x18x32x64xf32, #tpu.memory_space<vmem>>, vector<1x18x8x64xf32>
    %3 = vector.shape_cast %2 : vector<1x18x8x64xf32> to vector<18x8x64xf32>
    %4 = vector.shape_cast %0 : vector<18x8x64xf32> to vector<1x18x8x64xf32>
    tpu.vector_store %arg9[%c0, %c0_1, %c0_2, %c0_3], %4 {strides = array<i32>} : memref<2x18x32x64xf32, #tpu.memory_space<vmem>>, vector<1x18x8x64xf32>,
    %c0_4 = arith.constant 0 : index
    %c0_5 = arith.constant 0 : index
    %c24 = arith.constant 24 : index
    %c0_6 = arith.constant 0 : index
    %5 = vector.load %arg9[%c0_4, %c0_5, %c24, %c0_6] : memref<2x18x32x64xf32, #tpu.memory_space<vmem>>, vector<1x18x8x64xf32>
    %6 = vector.shape_cast %5 : vector<1x18x8x64xf32> to vector<18x8x64xf32>
    %7 = vector.shape_cast %0 : vector<18x8x64xf32> to vector<1x18x8x64xf32>
    tpu.vector_store %arg9[%c0_4, %c0_5, %c24, %c0_6], %7 {strides = array<i32>} : memref<2x18x32x64xf32, #tpu.memory_space<vmem>>, vector<1x18x8x64xf32>,
    %c0_7 = arith.constant 0 : index
    %c0_8 = arith.constant 0 : index
    %c0_9 = arith.constant 0 : index
    %c0_10 = arith.constant 0 : index
    %8 = vector.load %arg9[%c0_7, %c0_8, %c0_9, %c0_10] : memref<2x18x32x64xf32, #tpu.memory_space<vmem>>, vector<1x1x32x64xf32>
    %9 = vector.shape_cast %8 : vector<1x1x32x64xf32> to vector<1x32x64xf32>
    %10 = vector.shape_cast %1 : vector<1x32x64xf32> to vector<1x1x32x64xf32>
    tpu.vector_store %arg9[%c0_7, %c0_8, %c0_9, %c0_10], %10 {strides = array<i32>} : memref<2x18x32x64xf32, #tpu.memory_space<vmem>>, vector<1x1x32x64xf32>,
    %c0_11 = arith.constant 0 : index
    %c17 = arith.constant 17 : index
    %c0_12 = arith.constant 0 : index
    %c0_13 = arith.constant 0 : index
    %11 = vector.load %arg9[%c0_11, %c17, %c0_12, %c0_13] : memref<2x18x32x64xf32, #tpu.memory_space<vmem>>, vector<1x1x32x64xf32>
    %12 = vector.shape_cast %11 : vector<1x1x32x64xf32> to vector<1x32x64xf32>
    %13 = vector.shape_cast %1 : vector<1x32x64xf32> to vector<1x1x32x64xf32>
    tpu.vector_store %arg9[%c0_11, %c17, %c0_12, %c0_13], %13 {strides = array<i32>} : memref<2x18x32x64xf32, #tpu.memory_space<vmem>>, vector<1x1x32x64xf32>,
    %c0_14 = arith.constant 0 : index
    %c0_15 = arith.constant 0 : index
    %c0_16 = arith.constant 0 : index
    %c0_17 = arith.constant 0 : index
    %14 = vector.load %arg1[%c0_14, %c0_15, %c0_16, %c0_17] : memref<2x16x16x64xf32, #tpu.memory_space<vmem>>, vector<1x16x16x64xf32>
    %15 = vector.shape_cast %14 : vector<1x16x16x64xf32> to vector<16x16x64xf32>
    %c0_18 = arith.constant 0 : index
    %c1 = arith.constant 1 : index
    %c8 = arith.constant 8 : index
    %c0_19 = arith.constant 0 : index
    %16 = vector.load %arg9[%c0_18, %c1, %c8, %c0_19] : memref<2x18x32x64xf32, #tpu.memory_space<vmem>>, vector<1x16x16x64xf32>
    %17 = vector.shape_cast %16 : vector<1x16x16x64xf32> to vector<16x16x64xf32>
    %18 = vector.shape_cast %15 : vector<16x16x64xf32> to vector<1x16x16x64xf32>
    tpu.vector_store %arg9[%c0_18, %c1, %c8, %c0_19], %18 {strides = array<i32>} : memref<2x18x32x64xf32, #tpu.memory_space<vmem>>, vector<1x16x16x64xf32>,
    %c0_20 = arith.constant 0 : index
    %c0_21 = arith.constant 0 : index
    %c7 = arith.constant 7 : index
    %c0_22 = arith.constant 0 : index
    %19 = vector.load %arg9[%c0_20, %c0_21, %c7, %c0_22] : memref<2x18x32x64xf32, #tpu.memory_space<vmem>>, vector<1x18x16x64xf32>
    %20 = vector.shape_cast %19 : vector<1x18x16x64xf32> to vector<18x16x64xf32>
    %21 = arith.truncf %20 : vector<18x16x64xf32> to vector<18x16x64xbf16>
    %c0_23 = arith.constant 0 : index
    %c0_24 = arith.constant 0 : index
    %c0_25 = arith.constant 0 : index
    %22 = vector.load %arg10[%c0_23, %c0_24, %c0_25] : memref<18x16x192xbf16, #tpu.memory_space<vmem>>, vector<18x16x64xbf16>
    tpu.vector_store %arg10[%c0_23, %c0_24, %c0_25], %21 {strides = array<i32>} : memref<18x16x192xbf16, #tpu.memory_space<vmem>>, vector<18x16x64xbf16>,
    %c0_26 = arith.constant 0 : index
    %c0_27 = arith.constant 0 : index
    %c8_28 = arith.constant 8 : index
    %c0_29 = arith.constant 0 : index
    %23 = vector.load %arg9[%c0_26, %c0_27, %c8_28, %c0_29] : memref<2x18x32x64xf32, #tpu.memory_space<vmem>>, vector<1x18x16x64xf32>
    %24 = vector.shape_cast %23 : vector<1x18x16x64xf32> to vector<18x16x64xf32>
    %25 = arith.truncf %24 : vector<18x16x64xf32> to vector<18x16x64xbf16>
    %c0_30 = arith.constant 0 : index
    %c0_31 = arith.constant 0 : index
    %c64 = arith.constant 64 : index
    %26 = vector.load %arg10[%c0_30, %c0_31, %c64] : memref<18x16x192xbf16, #tpu.memory_space<vmem>>, vector<18x16x64xbf16>
    tpu.vector_store %arg10[%c0_30, %c0_31, %c64], %25 {strides = array<i32>} : memref<18x16x192xbf16, #tpu.memory_space<vmem>>, vector<18x16x64xbf16>,
    %c0_32 = arith.constant 0 : index
    %c0_33 = arith.constant 0 : index
    %c9 = arith.constant 9 : index
    %c0_34 = arith.constant 0 : index
    %27 = vector.load %arg9[%c0_32, %c0_33, %c9, %c0_34] : memref<2x18x32x64xf32, #tpu.memory_space<vmem>>, vector<1x18x16x64xf32>
    %28 = vector.shape_cast %27 : vector<1x18x16x64xf32> to vector<18x16x64xf32>
    %29 = arith.truncf %28 : vector<18x16x64xf32> to vector<18x16x64xbf16>
    %c0_35 = arith.constant 0 : index
    %c0_36 = arith.constant 0 : index
    %c128 = arith.constant 128 : index
    %30 = vector.load %arg10[%c0_35, %c0_36, %c128] : memref<18x16x192xbf16, #tpu.memory_space<vmem>>, vector<18x16x64xbf16>
    tpu.vector_store %arg10[%c0_35, %c0_36, %c128], %29 {strides = array<i32>} : memref<18x16x192xbf16, #tpu.memory_space<vmem>>, vector<18x16x64xbf16>,
    %c0_37 = arith.constant 0 : index
    %c0_38 = arith.constant 0 : index
    %c0_39 = arith.constant 0 : index
    %31 = vector.load %arg10[%c0_37, %c0_38, %c0_39] : memref<18x16x192xbf16, #tpu.memory_space<vmem>>, vector<16x16x192xbf16>
    %32 = vector.shape_cast %31 : vector<16x16x192xbf16> to vector<256x192xbf16>
    %c0_40 = arith.constant 0 : index
    %c0_41 = arith.constant 0 : index
    %c0_42 = arith.constant 0 : index
    %33 = vector.load %arg2[%c0_40, %c0_41, %c0_42] : memref<3x192x64xbf16, #tpu.memory_space<vmem>>, vector<1x192x64xbf16>
    %34 = vector.shape_cast %33 : vector<1x192x64xbf16> to vector<192x64xbf16>
    %cst_43 = arith.constant dense<0.000000e+00> : vector<256x64xf32>
    %35 = tpu.matmul %32, %34, %cst_43 {dimension_numbers = #tpu.dot_dimension_numbers<[1], [0], [0], [1], [0, 0, 1, 1], [], []>} : vector<256x192xbf16>, vector<192x64xbf16>, vector<256x64xf32> -> vector<256x64xf32>
    %c1_44 = arith.constant 1 : index
    %c0_45 = arith.constant 0 : index
    %c0_46 = arith.constant 0 : index
    %36 = vector.load %arg10[%c1_44, %c0_45, %c0_46] : memref<18x16x192xbf16, #tpu.memory_space<vmem>>, vector<16x16x192xbf16>
    %37 = vector.shape_cast %36 : vector<16x16x192xbf16> to vector<256x192xbf16>
    %c1_47 = arith.constant 1 : index
    %c0_48 = arith.constant 0 : index
    %c0_49 = arith.constant 0 : index
    %38 = vector.load %arg2[%c1_47, %c0_48, %c0_49] : memref<3x192x64xbf16, #tpu.memory_space<vmem>>, vector<1x192x64xbf16>
    %39 = vector.shape_cast %38 : vector<1x192x64xbf16> to vector<192x64xbf16>
    %cst_50 = arith.constant dense<0.000000e+00> : vector<256x64xf32>
    %40 = tpu.matmul %37, %39, %cst_50 {dimension_numbers = #tpu.dot_dimension_numbers<[1], [0], [0], [1], [0, 0, 1, 1], [], []>} : vector<256x192xbf16>, vector<192x64xbf16>, vector<256x64xf32> -> vector<256x64xf32>
    %41 = arith.addf %35, %40 : vector<256x64xf32>
    %c2 = arith.constant 2 : index
    %c0_51 = arith.constant 0 : index
    %c0_52 = arith.constant 0 : index
    %42 = vector.load %arg10[%c2, %c0_51, %c0_52] : memref<18x16x192xbf16, #tpu.memory_space<vmem>>, vector<16x16x192xbf16>
    %43 = vector.shape_cast %42 : vector<16x16x192xbf16> to vector<256x192xbf16>
    %c2_53 = arith.constant 2 : index
    %c0_54 = arith.constant 0 : index
    %c0_55 = arith.constant 0 : index
    %44 = vector.load %arg2[%c2_53, %c0_54, %c0_55] : memref<3x192x64xbf16, #tpu.memory_space<vmem>>, vector<1x192x64xbf16>
    %45 = vector.shape_cast %44 : vector<1x192x64xbf16> to vector<192x64xbf16>
    %cst_56 = arith.constant dense<0.000000e+00> : vector<256x64xf32>
    %46 = tpu.matmul %43, %45, %cst_56 {dimension_numbers = #tpu.dot_dimension_numbers<[1], [0], [0], [1], [0, 0, 1, 1], [], []>} : vector<256x192xbf16>, vector<192x64xbf16>, vector<256x64xf32> -> vector<256x64xf32>
    %47 = arith.addf %41, %46 : vector<256x64xf32>
    %c0_57 = arith.constant 0 : index
    %c0_58 = arith.constant 0 : index
    %48 = vector.load %arg3[%c0_57, %c0_58] : memref<1x64xf32, #tpu.memory_space<vmem>>, vector<1x64xf32>
    %49 = vector.broadcast %48 : vector<1x64xf32> to vector<256x64xf32>
    %50 = arith.addf %47, %49 : vector<256x64xf32>
    %cst_59 = arith.constant 0.000000e+00 : f32
    %51 = vector.broadcast %cst_59 : f32 to vector<256x64xf32>
    %52 = arith.maximumf %50, %51 : vector<256x64xf32>
    %53 = vector.shape_cast %52 : vector<256x64xf32> to vector<16x16x64xf32>
    %c0_60 = arith.constant 0 : index
    %c1_61 = arith.constant 1 : index
    %c8_62 = arith.constant 8 : index
    %c0_63 = arith.constant 0 : index
    %54 = vector.load %arg9[%c0_60, %c1_61, %c8_62, %c0_63] : memref<2x18x32x64xf32, #tpu.memory_space<vmem>>, vector<1x16x16x64xf32>
    %55 = vector.shape_cast %54 : vector<1x16x16x64xf32> to vector<16x16x64xf32>
    %56 = vector.shape_cast %53 : vector<16x16x64xf32> to vector<1x16x16x64xf32>
    tpu.vector_store %arg9[%c0_60, %c1_61, %c8_62, %c0_63], %56 {strides = array<i32>} : memref<2x18x32x64xf32, #tpu.memory_space<vmem>>, vector<1x16x16x64xf32>,
    %c0_64 = arith.constant 0 : index
    %c0_65 = arith.constant 0 : index
    %c7_66 = arith.constant 7 : index
    %c0_67 = arith.constant 0 : index
    %57 = vector.load %arg9[%c0_64, %c0_65, %c7_66, %c0_67] : memref<2x18x32x64xf32, #tpu.memory_space<vmem>>, vector<1x18x16x64xf32>
    %58 = vector.shape_cast %57 : vector<1x18x16x64xf32> to vector<18x16x64xf32>
    %59 = arith.truncf %58 : vector<18x16x64xf32> to vector<18x16x64xbf16>
    %c0_68 = arith.constant 0 : index
    %c0_69 = arith.constant 0 : index
    %c0_70 = arith.constant 0 : index
    %60 = vector.load %arg10[%c0_68, %c0_69, %c0_70] : memref<18x16x192xbf16, #tpu.memory_space<vmem>>, vector<18x16x64xbf16>
    tpu.vector_store %arg10[%c0_68, %c0_69, %c0_70], %59 {strides = array<i32>} : memref<18x16x192xbf16, #tpu.memory_space<vmem>>, vector<18x16x64xbf16>,
    %c0_71 = arith.constant 0 : index
    %c0_72 = arith.constant 0 : index
    %c8_73 = arith.constant 8 : index
    %c0_74 = arith.constant 0 : index
    %61 = vector.load %arg9[%c0_71, %c0_72, %c8_73, %c0_74] : memref<2x18x32x64xf32, #tpu.memory_space<vmem>>, vector<1x18x16x64xf32>
    %62 = vector.shape_cast %61 : vector<1x18x16x64xf32> to vector<18x16x64xf32>
    %63 = arith.truncf %62 : vector<18x16x64xf32> to vector<18x16x64xbf16>
    %c0_75 = arith.constant 0 : index
    %c0_76 = arith.constant 0 : index
    %c64_77 = arith.constant 64 : index
    %64 = vector.load %arg10[%c0_75, %c0_76, %c64_77] : memref<18x16x192xbf16, #tpu.memory_space<vmem>>, vector<18x16x64xbf16>
    tpu.vector_store %arg10[%c0_75, %c0_76, %c64_77], %63 {strides = array<i32>} : memref<18x16x192xbf16, #tpu.memory_space<vmem>>, vector<18x16x64xbf16>,
    %c0_78 = arith.constant 0 : index
    %c0_79 = arith.constant 0 : index
    %c9_80 = arith.constant 9 : index
    %c0_81 = arith.constant 0 : index
    %65 = vector.load %arg9[%c0_78, %c0_79, %c9_80, %c0_81] : memref<2x18x32x64xf32, #tpu.memory_space<vmem>>, vector<1x18x16x64xf32>
    %66 = vector.shape_cast %65 : vector<1x18x16x64xf32> to vector<18x16x64xf32>
    %67 = arith.truncf %66 : vector<18x16x64xf32> to vector<18x16x64xbf16>
    %c0_82 = arith.constant 0 : index
    %c0_83 = arith.constant 0 : index
    %c128_84 = arith.constant 128 : index
    %68 = vector.load %arg10[%c0_82, %c0_83, %c128_84] : memref<18x16x192xbf16, #tpu.memory_space<vmem>>, vector<18x16x64xbf16>
    tpu.vector_store %arg10[%c0_82, %c0_83, %c128_84], %67 {strides = array<i32>} : memref<18x16x192xbf16, #tpu.memory_space<vmem>>, vector<18x16x64xbf16>,
    %c0_85 = arith.constant 0 : index
    %c0_86 = arith.constant 0 : index
    %c0_87 = arith.constant 0 : index
    %69 = vector.load %arg10[%c0_85, %c0_86, %c0_87] : memref<18x16x192xbf16, #tpu.memory_space<vmem>>, vector<16x16x192xbf16>
    %70 = vector.shape_cast %69 : vector<16x16x192xbf16> to vector<256x192xbf16>
    %c0_88 = arith.constant 0 : index
    %c0_89 = arith.constant 0 : index
    %c0_90 = arith.constant 0 : index
    %71 = vector.load %arg4[%c0_88, %c0_89, %c0_90] : memref<3x192x64xbf16, #tpu.memory_space<vmem>>, vector<1x192x64xbf16>
    %72 = vector.shape_cast %71 : vector<1x192x64xbf16> to vector<192x64xbf16>
    %cst_91 = arith.constant dense<0.000000e+00> : vector<256x64xf32>
    %73 = tpu.matmul %70, %72, %cst_91 {dimension_numbers = #tpu.dot_dimension_numbers<[1], [0], [0], [1], [0, 0, 1, 1], [], []>} : vector<256x192xbf16>, vector<192x64xbf16>, vector<256x64xf32> -> vector<256x64xf32>
    %c1_92 = arith.constant 1 : index
    %c0_93 = arith.constant 0 : index
    %c0_94 = arith.constant 0 : index
    %74 = vector.load %arg10[%c1_92, %c0_93, %c0_94] : memref<18x16x192xbf16, #tpu.memory_space<vmem>>, vector<16x16x192xbf16>
    %75 = vector.shape_cast %74 : vector<16x16x192xbf16> to vector<256x192xbf16>
    %c1_95 = arith.constant 1 : index
    %c0_96 = arith.constant 0 : index
    %c0_97 = arith.constant 0 : index
    %76 = vector.load %arg4[%c1_95, %c0_96, %c0_97] : memref<3x192x64xbf16, #tpu.memory_space<vmem>>, vector<1x192x64xbf16>
    %77 = vector.shape_cast %76 : vector<1x192x64xbf16> to vector<192x64xbf16>
    %cst_98 = arith.constant dense<0.000000e+00> : vector<256x64xf32>
    %78 = tpu.matmul %75, %77, %cst_98 {dimension_numbers = #tpu.dot_dimension_numbers<[1], [0], [0], [1], [0, 0, 1, 1], [], []>} : vector<256x192xbf16>, vector<192x64xbf16>, vector<256x64xf32> -> vector<256x64xf32>
    %79 = arith.addf %73, %78 : vector<256x64xf32>
    %c2_99 = arith.constant 2 : index
    %c0_100 = arith.constant 0 : index
    %c0_101 = arith.constant 0 : index
    %80 = vector.load %arg10[%c2_99, %c0_100, %c0_101] : memref<18x16x192xbf16, #tpu.memory_space<vmem>>, vector<16x16x192xbf16>
    %81 = vector.shape_cast %80 : vector<16x16x192xbf16> to vector<256x192xbf16>
    %c2_102 = arith.constant 2 : index
    %c0_103 = arith.constant 0 : index
    %c0_104 = arith.constant 0 : index
    %82 = vector.load %arg4[%c2_102, %c0_103, %c0_104] : memref<3x192x64xbf16, #tpu.memory_space<vmem>>, vector<1x192x64xbf16>
    %83 = vector.shape_cast %82 : vector<1x192x64xbf16> to vector<192x64xbf16>
    %cst_105 = arith.constant dense<0.000000e+00> : vector<256x64xf32>
    %84 = tpu.matmul %81, %83, %cst_105 {dimension_numbers = #tpu.dot_dimension_numbers<[1], [0], [0], [1], [0, 0, 1, 1], [], []>} : vector<256x192xbf16>, vector<192x64xbf16>, vector<256x64xf32> -> vector<256x64xf32>
    %85 = arith.addf %79, %84 : vector<256x64xf32>
    %c0_106 = arith.constant 0 : index
    %c0_107 = arith.constant 0 : index
    %86 = vector.load %arg5[%c0_106, %c0_107] : memref<1x64xf32, #tpu.memory_space<vmem>>, vector<1x64xf32>
    %87 = vector.broadcast %86 : vector<1x64xf32> to vector<256x64xf32>
    %88 = arith.addf %85, %87 : vector<256x64xf32>
    %cst_108 = arith.constant 0.000000e+00 : f32
    %89 = vector.broadcast %cst_108 : f32 to vector<256x64xf32>
    %90 = arith.maximumf %88, %89 : vector<256x64xf32>
    %91 = vector.shape_cast %90 : vector<256x64xf32> to vector<16x16x64xf32>
    %c0_109 = arith.constant 0 : index
    %c1_110 = arith.constant 1 : index
    %c8_111 = arith.constant 8 : index
    %c0_112 = arith.constant 0 : index
    %92 = vector.load %arg9[%c0_109, %c1_110, %c8_111, %c0_112] : memref<2x18x32x64xf32, #tpu.memory_space<vmem>>, vector<1x16x16x64xf32>
    %93 = vector.shape_cast %92 : vector<1x16x16x64xf32> to vector<16x16x64xf32>
    %94 = vector.shape_cast %91 : vector<16x16x64xf32> to vector<1x16x16x64xf32>
    tpu.vector_store %arg9[%c0_109, %c1_110, %c8_111, %c0_112], %94 {strides = array<i32>} : memref<2x18x32x64xf32, #tpu.memory_space<vmem>>, vector<1x16x16x64xf32>,
    %c0_113 = arith.constant 0 : index
    %c0_114 = arith.constant 0 : index
    %c7_115 = arith.constant 7 : index
    %c0_116 = arith.constant 0 : index
    %95 = vector.load %arg9[%c0_113, %c0_114, %c7_115, %c0_116] : memref<2x18x32x64xf32, #tpu.memory_space<vmem>>, vector<1x18x16x64xf32>
    %96 = vector.shape_cast %95 : vector<1x18x16x64xf32> to vector<18x16x64xf32>
    %97 = arith.truncf %96 : vector<18x16x64xf32> to vector<18x16x64xbf16>
    %c0_117 = arith.constant 0 : index
    %c0_118 = arith.constant 0 : index
    %c0_119 = arith.constant 0 : index
    %98 = vector.load %arg10[%c0_117, %c0_118, %c0_119] : memref<18x16x192xbf16, #tpu.memory_space<vmem>>, vector<18x16x64xbf16>
    tpu.vector_store %arg10[%c0_117, %c0_118, %c0_119], %97 {strides = array<i32>} : memref<18x16x192xbf16, #tpu.memory_space<vmem>>, vector<18x16x64xbf16>,
    %c0_120 = arith.constant 0 : index
    %c0_121 = arith.constant 0 : index
    %c8_122 = arith.constant 8 : index
    %c0_123 = arith.constant 0 : index
    %99 = vector.load %arg9[%c0_120, %c0_121, %c8_122, %c0_123] : memref<2x18x32x64xf32, #tpu.memory_space<vmem>>, vector<1x18x16x64xf32>
    %100 = vector.shape_cast %99 : vector<1x18x16x64xf32> to vector<18x16x64xf32>
    %101 = arith.truncf %100 : vector<18x16x64xf32> to vector<18x16x64xbf16>
    %c0_124 = arith.constant 0 : index
    %c0_125 = arith.constant 0 : index
    %c64_126 = arith.constant 64 : index
    %102 = vector.load %arg10[%c0_124, %c0_125, %c64_126] : memref<18x16x192xbf16, #tpu.memory_space<vmem>>, vector<18x16x64xbf16>
    tpu.vector_store %arg10[%c0_124, %c0_125, %c64_126], %101 {strides = array<i32>} : memref<18x16x192xbf16, #tpu.memory_space<vmem>>, vector<18x16x64xbf16>,
    %c0_127 = arith.constant 0 : index
    %c0_128 = arith.constant 0 : index
    %c9_129 = arith.constant 9 : index
    %c0_130 = arith.constant 0 : index
    %103 = vector.load %arg9[%c0_127, %c0_128, %c9_129, %c0_130] : memref<2x18x32x64xf32, #tpu.memory_space<vmem>>, vector<1x18x16x64xf32>
    %104 = vector.shape_cast %103 : vector<1x18x16x64xf32> to vector<18x16x64xf32>
    %105 = arith.truncf %104 : vector<18x16x64xf32> to vector<18x16x64xbf16>
    %c0_131 = arith.constant 0 : index
    %c0_132 = arith.constant 0 : index
    %c128_133 = arith.constant 128 : index
    %106 = vector.load %arg10[%c0_131, %c0_132, %c128_133] : memref<18x16x192xbf16, #tpu.memory_space<vmem>>, vector<18x16x64xbf16>
    tpu.vector_store %arg10[%c0_131, %c0_132, %c128_133], %105 {strides = array<i32>} : memref<18x16x192xbf16, #tpu.memory_space<vmem>>, vector<18x16x64xbf16>,
    %c0_134 = arith.constant 0 : index
    %c0_135 = arith.constant 0 : index
    %c0_136 = arith.constant 0 : index
    %107 = vector.load %arg10[%c0_134, %c0_135, %c0_136] : memref<18x16x192xbf16, #tpu.memory_space<vmem>>, vector<16x16x192xbf16>
    %108 = vector.shape_cast %107 : vector<16x16x192xbf16> to vector<256x192xbf16>
    %c0_137 = arith.constant 0 : index
    %c0_138 = arith.constant 0 : index
    %c0_139 = arith.constant 0 : index
    %109 = vector.load %arg6[%c0_137, %c0_138, %c0_139] : memref<3x192x64xbf16, #tpu.memory_space<vmem>>, vector<1x192x64xbf16>
    %110 = vector.shape_cast %109 : vector<1x192x64xbf16> to vector<192x64xbf16>
    %cst_140 = arith.constant dense<0.000000e+00> : vector<256x64xf32>
    %111 = tpu.matmul %108, %110, %cst_140 {dimension_numbers = #tpu.dot_dimension_numbers<[1], [0], [0], [1], [0, 0, 1, 1], [], []>} : vector<256x192xbf16>, vector<192x64xbf16>, vector<256x64xf32> -> vector<256x64xf32>
    %c1_141 = arith.constant 1 : index
    %c0_142 = arith.constant 0 : index
    %c0_143 = arith.constant 0 : index
    %112 = vector.load %arg10[%c1_141, %c0_142, %c0_143] : memref<18x16x192xbf16, #tpu.memory_space<vmem>>, vector<16x16x192xbf16>
    %113 = vector.shape_cast %112 : vector<16x16x192xbf16> to vector<256x192xbf16>
    %c1_144 = arith.constant 1 : index
    %c0_145 = arith.constant 0 : index
    %c0_146 = arith.constant 0 : index
    %114 = vector.load %arg6[%c1_144, %c0_145, %c0_146] : memref<3x192x64xbf16, #tpu.memory_space<vmem>>, vector<1x192x64xbf16>
    %115 = vector.shape_cast %114 : vector<1x192x64xbf16> to vector<192x64xbf16>
    %cst_147 = arith.constant dense<0.000000e+00> : vector<256x64xf32>
    %116 = tpu.matmul %113, %115, %cst_147 {dimension_numbers = #tpu.dot_dimension_numbers<[1], [0], [0], [1], [0, 0, 1, 1], [], []>} : vector<256x192xbf16>, vector<192x64xbf16>, vector<256x64xf32> -> vector<256x64xf32>
    %117 = arith.addf %111, %116 : vector<256x64xf32>
    %c2_148 = arith.constant 2 : index
    %c0_149 = arith.constant 0 : index
    %c0_150 = arith.constant 0 : index
    %118 = vector.load %arg10[%c2_148, %c0_149, %c0_150] : memref<18x16x192xbf16, #tpu.memory_space<vmem>>, vector<16x16x192xbf16>
    %119 = vector.shape_cast %118 : vector<16x16x192xbf16> to vector<256x192xbf16>
    %c2_151 = arith.constant 2 : index
    %c0_152 = arith.constant 0 : index
    %c0_153 = arith.constant 0 : index
    %120 = vector.load %arg6[%c2_151, %c0_152, %c0_153] : memref<3x192x64xbf16, #tpu.memory_space<vmem>>, vector<1x192x64xbf16>
    %121 = vector.shape_cast %120 : vector<1x192x64xbf16> to vector<192x64xbf16>
    %cst_154 = arith.constant dense<0.000000e+00> : vector<256x64xf32>
    %122 = tpu.matmul %119, %121, %cst_154 {dimension_numbers = #tpu.dot_dimension_numbers<[1], [0], [0], [1], [0, 0, 1, 1], [], []>} : vector<256x192xbf16>, vector<192x64xbf16>, vector<256x64xf32> -> vector<256x64xf32>
    %123 = arith.addf %117, %122 : vector<256x64xf32>
    %c0_155 = arith.constant 0 : index
    %c0_156 = arith.constant 0 : index
    %124 = vector.load %arg7[%c0_155, %c0_156] : memref<1x64xf32, #tpu.memory_space<vmem>>, vector<1x64xf32>
    %125 = vector.broadcast %124 : vector<1x64xf32> to vector<256x64xf32>
    %126 = arith.addf %123, %125 : vector<256x64xf32>
    %cst_157 = arith.constant 0.000000e+00 : f32
    %127 = vector.broadcast %cst_157 : f32 to vector<256x64xf32>
    %128 = arith.maximumf %126, %127 : vector<256x64xf32>
    %129 = vector.shape_cast %128 : vector<256x64xf32> to vector<16x16x64xf32>
    %c0_158 = arith.constant 0 : index
    %c0_159 = arith.constant 0 : index
    %c0_160 = arith.constant 0 : index
    %c0_161 = arith.constant 0 : index
    %130 = vector.load %arg1[%c0_158, %c0_159, %c0_160, %c0_161] : memref<2x16x16x64xf32, #tpu.memory_space<vmem>>, vector<1x16x16x64xf32>
    %131 = vector.shape_cast %130 : vector<1x16x16x64xf32> to vector<16x16x64xf32>
    %132 = arith.addf %131, %129 : vector<16x16x64xf32>
    %c0_162 = arith.constant 0 : index
    %c0_163 = arith.constant 0 : index
    %c0_164 = arith.constant 0 : index
    %c0_165 = arith.constant 0 : index
    %133 = vector.load %arg8[%c0_162, %c0_163, %c0_164, %c0_165] : memref<2x16x16x64xf32, #tpu.memory_space<vmem>>, vector<1x16x16x64xf32>
    %134 = vector.shape_cast %133 : vector<1x16x16x64xf32> to vector<16x16x64xf32>
    %135 = vector.shape_cast %132 : vector<16x16x64xf32> to vector<1x16x16x64xf32>
    tpu.vector_store %arg8[%c0_162, %c0_163, %c0_164, %c0_165], %135 {strides = array<i32>} : memref<2x16x16x64xf32, #tpu.memory_space<vmem>>, vector<1x16x16x64xf32>,
    %c1_166 = arith.constant 1 : index
    %c0_167 = arith.constant 0 : index
    %c0_168 = arith.constant 0 : index
    %c0_169 = arith.constant 0 : index
    %136 = vector.load %arg9[%c1_166, %c0_167, %c0_168, %c0_169] : memref<2x18x32x64xf32, #tpu.memory_space<vmem>>, vector<1x18x8x64xf32>
    %137 = vector.shape_cast %136 : vector<1x18x8x64xf32> to vector<18x8x64xf32>
    %138 = vector.shape_cast %0 : vector<18x8x64xf32> to vector<1x18x8x64xf32>
    tpu.vector_store %arg9[%c1_166, %c0_167, %c0_168, %c0_169], %138 {strides = array<i32>} : memref<2x18x32x64xf32, #tpu.memory_space<vmem>>, vector<1x18x8x64xf32>,
    %c1_170 = arith.constant 1 : index
    %c0_171 = arith.constant 0 : index
    %c24_172 = arith.constant 24 : index
    %c0_173 = arith.constant 0 : index
    %139 = vector.load %arg9[%c1_170, %c0_171, %c24_172, %c0_173] : memref<2x18x32x64xf32, #tpu.memory_space<vmem>>, vector<1x18x8x64xf32>
    %140 = vector.shape_cast %139 : vector<1x18x8x64xf32> to vector<18x8x64xf32>
    %141 = vector.shape_cast %0 : vector<18x8x64xf32> to vector<1x18x8x64xf32>
    tpu.vector_store %arg9[%c1_170, %c0_171, %c24_172, %c0_173], %141 {strides = array<i32>} : memref<2x18x32x64xf32, #tpu.memory_space<vmem>>, vector<1x18x8x64xf32>,
    %c1_174 = arith.constant 1 : index
    %c0_175 = arith.constant 0 : index
    %c0_176 = arith.constant 0 : index
    %c0_177 = arith.constant 0 : index
    %142 = vector.load %arg9[%c1_174, %c0_175, %c0_176, %c0_177] : memref<2x18x32x64xf32, #tpu.memory_space<vmem>>, vector<1x1x32x64xf32>
    %143 = vector.shape_cast %142 : vector<1x1x32x64xf32> to vector<1x32x64xf32>
    %144 = vector.shape_cast %1 : vector<1x32x64xf32> to vector<1x1x32x64xf32>
    tpu.vector_store %arg9[%c1_174, %c0_175, %c0_176, %c0_177], %144 {strides = array<i32>} : memref<2x18x32x64xf32, #tpu.memory_space<vmem>>, vector<1x1x32x64xf32>,
    %c1_178 = arith.constant 1 : index
    %c17_179 = arith.constant 17 : index
    %c0_180 = arith.constant 0 : index
    %c0_181 = arith.constant 0 : index
    %145 = vector.load %arg9[%c1_178, %c17_179, %c0_180, %c0_181] : memref<2x18x32x64xf32, #tpu.memory_space<vmem>>, vector<1x1x32x64xf32>
    %146 = vector.shape_cast %145 : vector<1x1x32x64xf32> to vector<1x32x64xf32>
    %147 = vector.shape_cast %1 : vector<1x32x64xf32> to vector<1x1x32x64xf32>
    tpu.vector_store %arg9[%c1_178, %c17_179, %c0_180, %c0_181], %147 {strides = array<i32>} : memref<2x18x32x64xf32, #tpu.memory_space<vmem>>, vector<1x1x32x64xf32>,
    %c1_182 = arith.constant 1 : index
    %c0_183 = arith.constant 0 : index
    %c0_184 = arith.constant 0 : index
    %c0_185 = arith.constant 0 : index
    %148 = vector.load %arg1[%c1_182, %c0_183, %c0_184, %c0_185] : memref<2x16x16x64xf32, #tpu.memory_space<vmem>>, vector<1x16x16x64xf32>
    %149 = vector.shape_cast %148 : vector<1x16x16x64xf32> to vector<16x16x64xf32>
    %c1_186 = arith.constant 1 : index
    %c1_187 = arith.constant 1 : index
    %c8_188 = arith.constant 8 : index
    %c0_189 = arith.constant 0 : index
    %150 = vector.load %arg9[%c1_186, %c1_187, %c8_188, %c0_189] : memref<2x18x32x64xf32, #tpu.memory_space<vmem>>, vector<1x16x16x64xf32>
    %151 = vector.shape_cast %150 : vector<1x16x16x64xf32> to vector<16x16x64xf32>
    %152 = vector.shape_cast %149 : vector<16x16x64xf32> to vector<1x16x16x64xf32>
    tpu.vector_store %arg9[%c1_186, %c1_187, %c8_188, %c0_189], %152 {strides = array<i32>} : memref<2x18x32x64xf32, #tpu.memory_space<vmem>>, vector<1x16x16x64xf32>,
    %c1_190 = arith.constant 1 : index
    %c0_191 = arith.constant 0 : index
    %c7_192 = arith.constant 7 : index
    %c0_193 = arith.constant 0 : index
    %153 = vector.load %arg9[%c1_190, %c0_191, %c7_192, %c0_193] : memref<2x18x32x64xf32, #tpu.memory_space<vmem>>, vector<1x18x16x64xf32>
    %154 = vector.shape_cast %153 : vector<1x18x16x64xf32> to vector<18x16x64xf32>
    %155 = arith.truncf %154 : vector<18x16x64xf32> to vector<18x16x64xbf16>
    %c0_194 = arith.constant 0 : index
    %c0_195 = arith.constant 0 : index
    %c0_196 = arith.constant 0 : index
    %156 = vector.load %arg10[%c0_194, %c0_195, %c0_196] : memref<18x16x192xbf16, #tpu.memory_space<vmem>>, vector<18x16x64xbf16>
    tpu.vector_store %arg10[%c0_194, %c0_195, %c0_196], %155 {strides = array<i32>} : memref<18x16x192xbf16, #tpu.memory_space<vmem>>, vector<18x16x64xbf16>,
    %c1_197 = arith.constant 1 : index
    %c0_198 = arith.constant 0 : index
    %c8_199 = arith.constant 8 : index
    %c0_200 = arith.constant 0 : index
    %157 = vector.load %arg9[%c1_197, %c0_198, %c8_199, %c0_200] : memref<2x18x32x64xf32, #tpu.memory_space<vmem>>, vector<1x18x16x64xf32>
    %158 = vector.shape_cast %157 : vector<1x18x16x64xf32> to vector<18x16x64xf32>
    %159 = arith.truncf %158 : vector<18x16x64xf32> to vector<18x16x64xbf16>
    %c0_201 = arith.constant 0 : index
    %c0_202 = arith.constant 0 : index
    %c64_203 = arith.constant 64 : index
    %160 = vector.load %arg10[%c0_201, %c0_202, %c64_203] : memref<18x16x192xbf16, #tpu.memory_space<vmem>>, vector<18x16x64xbf16>
    tpu.vector_store %arg10[%c0_201, %c0_202, %c64_203], %159 {strides = array<i32>} : memref<18x16x192xbf16, #tpu.memory_space<vmem>>, vector<18x16x64xbf16>,
    %c1_204 = arith.constant 1 : index
    %c0_205 = arith.constant 0 : index
    %c9_206 = arith.constant 9 : index
    %c0_207 = arith.constant 0 : index
    %161 = vector.load %arg9[%c1_204, %c0_205, %c9_206, %c0_207] : memref<2x18x32x64xf32, #tpu.memory_space<vmem>>, vector<1x18x16x64xf32>
    %162 = vector.shape_cast %161 : vector<1x18x16x64xf32> to vector<18x16x64xf32>
    %163 = arith.truncf %162 : vector<18x16x64xf32> to vector<18x16x64xbf16>
    %c0_208 = arith.constant 0 : index
    %c0_209 = arith.constant 0 : index
    %c128_210 = arith.constant 128 : index
    %164 = vector.load %arg10[%c0_208, %c0_209, %c128_210] : memref<18x16x192xbf16, #tpu.memory_space<vmem>>, vector<18x16x64xbf16>
    tpu.vector_store %arg10[%c0_208, %c0_209, %c128_210], %163 {strides = array<i32>} : memref<18x16x192xbf16, #tpu.memory_space<vmem>>, vector<18x16x64xbf16>,
    %c0_211 = arith.constant 0 : index
    %c0_212 = arith.constant 0 : index
    %c0_213 = arith.constant 0 : index
    %165 = vector.load %arg10[%c0_211, %c0_212, %c0_213] : memref<18x16x192xbf16, #tpu.memory_space<vmem>>, vector<16x16x192xbf16>
    %166 = vector.shape_cast %165 : vector<16x16x192xbf16> to vector<256x192xbf16>
    %c0_214 = arith.constant 0 : index
    %c0_215 = arith.constant 0 : index
    %c0_216 = arith.constant 0 : index
    %167 = vector.load %arg2[%c0_214, %c0_215, %c0_216] : memref<3x192x64xbf16, #tpu.memory_space<vmem>>, vector<1x192x64xbf16>
    %168 = vector.shape_cast %167 : vector<1x192x64xbf16> to vector<192x64xbf16>
    %cst_217 = arith.constant dense<0.000000e+00> : vector<256x64xf32>
    %169 = tpu.matmul %166, %168, %cst_217 {dimension_numbers = #tpu.dot_dimension_numbers<[1], [0], [0], [1], [0, 0, 1, 1], [], []>} : vector<256x192xbf16>, vector<192x64xbf16>, vector<256x64xf32> -> vector<256x64xf32>
    %c1_218 = arith.constant 1 : index
    %c0_219 = arith.constant 0 : index
    %c0_220 = arith.constant 0 : index
    %170 = vector.load %arg10[%c1_218, %c0_219, %c0_220] : memref<18x16x192xbf16, #tpu.memory_space<vmem>>, vector<16x16x192xbf16>
    %171 = vector.shape_cast %170 : vector<16x16x192xbf16> to vector<256x192xbf16>
    %c1_221 = arith.constant 1 : index
    %c0_222 = arith.constant 0 : index
    %c0_223 = arith.constant 0 : index
    %172 = vector.load %arg2[%c1_221, %c0_222, %c0_223] : memref<3x192x64xbf16, #tpu.memory_space<vmem>>, vector<1x192x64xbf16>
    %173 = vector.shape_cast %172 : vector<1x192x64xbf16> to vector<192x64xbf16>
    %cst_224 = arith.constant dense<0.000000e+00> : vector<256x64xf32>
    %174 = tpu.matmul %171, %173, %cst_224 {dimension_numbers = #tpu.dot_dimension_numbers<[1], [0], [0], [1], [0, 0, 1, 1], [], []>} : vector<256x192xbf16>, vector<192x64xbf16>, vector<256x64xf32> -> vector<256x64xf32>
    %175 = arith.addf %169, %174 : vector<256x64xf32>
    %c2_225 = arith.constant 2 : index
    %c0_226 = arith.constant 0 : index
    %c0_227 = arith.constant 0 : index
    %176 = vector.load %arg10[%c2_225, %c0_226, %c0_227] : memref<18x16x192xbf16, #tpu.memory_space<vmem>>, vector<16x16x192xbf16>
    %177 = vector.shape_cast %176 : vector<16x16x192xbf16> to vector<256x192xbf16>
    %c2_228 = arith.constant 2 : index
    %c0_229 = arith.constant 0 : index
    %c0_230 = arith.constant 0 : index
    %178 = vector.load %arg2[%c2_228, %c0_229, %c0_230] : memref<3x192x64xbf16, #tpu.memory_space<vmem>>, vector<1x192x64xbf16>
    %179 = vector.shape_cast %178 : vector<1x192x64xbf16> to vector<192x64xbf16>
    %cst_231 = arith.constant dense<0.000000e+00> : vector<256x64xf32>
    %180 = tpu.matmul %177, %179, %cst_231 {dimension_numbers = #tpu.dot_dimension_numbers<[1], [0], [0], [1], [0, 0, 1, 1], [], []>} : vector<256x192xbf16>, vector<192x64xbf16>, vector<256x64xf32> -> vector<256x64xf32>
    %181 = arith.addf %175, %180 : vector<256x64xf32>
    %c0_232 = arith.constant 0 : index
    %c0_233 = arith.constant 0 : index
    %182 = vector.load %arg3[%c0_232, %c0_233] : memref<1x64xf32, #tpu.memory_space<vmem>>, vector<1x64xf32>
    %183 = vector.broadcast %182 : vector<1x64xf32> to vector<256x64xf32>
    %184 = arith.addf %181, %183 : vector<256x64xf32>
    %cst_234 = arith.constant 0.000000e+00 : f32
    %185 = vector.broadcast %cst_234 : f32 to vector<256x64xf32>
    %186 = arith.maximumf %184, %185 : vector<256x64xf32>
    %187 = vector.shape_cast %186 : vector<256x64xf32> to vector<16x16x64xf32>
    %c1_235 = arith.constant 1 : index
    %c1_236 = arith.constant 1 : index
    %c8_237 = arith.constant 8 : index
    %c0_238 = arith.constant 0 : index
    %188 = vector.load %arg9[%c1_235, %c1_236, %c8_237, %c0_238] : memref<2x18x32x64xf32, #tpu.memory_space<vmem>>, vector<1x16x16x64xf32>
    %189 = vector.shape_cast %188 : vector<1x16x16x64xf32> to vector<16x16x64xf32>
    %190 = vector.shape_cast %187 : vector<16x16x64xf32> to vector<1x16x16x64xf32>
    tpu.vector_store %arg9[%c1_235, %c1_236, %c8_237, %c0_238], %190 {strides = array<i32>} : memref<2x18x32x64xf32, #tpu.memory_space<vmem>>, vector<1x16x16x64xf32>,
    %c1_239 = arith.constant 1 : index
    %c0_240 = arith.constant 0 : index
    %c7_241 = arith.constant 7 : index
    %c0_242 = arith.constant 0 : index
    %191 = vector.load %arg9[%c1_239, %c0_240, %c7_241, %c0_242] : memref<2x18x32x64xf32, #tpu.memory_space<vmem>>, vector<1x18x16x64xf32>
    %192 = vector.shape_cast %191 : vector<1x18x16x64xf32> to vector<18x16x64xf32>
    %193 = arith.truncf %192 : vector<18x16x64xf32> to vector<18x16x64xbf16>
    %c0_243 = arith.constant 0 : index
    %c0_244 = arith.constant 0 : index
    %c0_245 = arith.constant 0 : index
    %194 = vector.load %arg10[%c0_243, %c0_244, %c0_245] : memref<18x16x192xbf16, #tpu.memory_space<vmem>>, vector<18x16x64xbf16>
    tpu.vector_store %arg10[%c0_243, %c0_244, %c0_245], %193 {strides = array<i32>} : memref<18x16x192xbf16, #tpu.memory_space<vmem>>, vector<18x16x64xbf16>,
    %c1_246 = arith.constant 1 : index
    %c0_247 = arith.constant 0 : index
    %c8_248 = arith.constant 8 : index
    %c0_249 = arith.constant 0 : index
    %195 = vector.load %arg9[%c1_246, %c0_247, %c8_248, %c0_249] : memref<2x18x32x64xf32, #tpu.memory_space<vmem>>, vector<1x18x16x64xf32>
    %196 = vector.shape_cast %195 : vector<1x18x16x64xf32> to vector<18x16x64xf32>
    %197 = arith.truncf %196 : vector<18x16x64xf32> to vector<18x16x64xbf16>
    %c0_250 = arith.constant 0 : index
    %c0_251 = arith.constant 0 : index
    %c64_252 = arith.constant 64 : index
    %198 = vector.load %arg10[%c0_250, %c0_251, %c64_252] : memref<18x16x192xbf16, #tpu.memory_space<vmem>>, vector<18x16x64xbf16>
    tpu.vector_store %arg10[%c0_250, %c0_251, %c64_252], %197 {strides = array<i32>} : memref<18x16x192xbf16, #tpu.memory_space<vmem>>, vector<18x16x64xbf16>,
    %c1_253 = arith.constant 1 : index
    %c0_254 = arith.constant 0 : index
    %c9_255 = arith.constant 9 : index
    %c0_256 = arith.constant 0 : index
    %199 = vector.load %arg9[%c1_253, %c0_254, %c9_255, %c0_256] : memref<2x18x32x64xf32, #tpu.memory_space<vmem>>, vector<1x18x16x64xf32>
    %200 = vector.shape_cast %199 : vector<1x18x16x64xf32> to vector<18x16x64xf32>
    %201 = arith.truncf %200 : vector<18x16x64xf32> to vector<18x16x64xbf16>
    %c0_257 = arith.constant 0 : index
    %c0_258 = arith.constant 0 : index
    %c128_259 = arith.constant 128 : index
    %202 = vector.load %arg10[%c0_257, %c0_258, %c128_259] : memref<18x16x192xbf16, #tpu.memory_space<vmem>>, vector<18x16x64xbf16>
    tpu.vector_store %arg10[%c0_257, %c0_258, %c128_259], %201 {strides = array<i32>} : memref<18x16x192xbf16, #tpu.memory_space<vmem>>, vector<18x16x64xbf16>,
    %c0_260 = arith.constant 0 : index
    %c0_261 = arith.constant 0 : index
    %c0_262 = arith.constant 0 : index
    %203 = vector.load %arg10[%c0_260, %c0_261, %c0_262] : memref<18x16x192xbf16, #tpu.memory_space<vmem>>, vector<16x16x192xbf16>
    %204 = vector.shape_cast %203 : vector<16x16x192xbf16> to vector<256x192xbf16>
    %c0_263 = arith.constant 0 : index
    %c0_264 = arith.constant 0 : index
    %c0_265 = arith.constant 0 : index
    %205 = vector.load %arg4[%c0_263, %c0_264, %c0_265] : memref<3x192x64xbf16, #tpu.memory_space<vmem>>, vector<1x192x64xbf16>
    %206 = vector.shape_cast %205 : vector<1x192x64xbf16> to vector<192x64xbf16>
    %cst_266 = arith.constant dense<0.000000e+00> : vector<256x64xf32>
    %207 = tpu.matmul %204, %206, %cst_266 {dimension_numbers = #tpu.dot_dimension_numbers<[1], [0], [0], [1], [0, 0, 1, 1], [], []>} : vector<256x192xbf16>, vector<192x64xbf16>, vector<256x64xf32> -> vector<256x64xf32>
    %c1_267 = arith.constant 1 : index
    %c0_268 = arith.constant 0 : index
    %c0_269 = arith.constant 0 : index
    %208 = vector.load %arg10[%c1_267, %c0_268, %c0_269] : memref<18x16x192xbf16, #tpu.memory_space<vmem>>, vector<16x16x192xbf16>
    %209 = vector.shape_cast %208 : vector<16x16x192xbf16> to vector<256x192xbf16>
    %c1_270 = arith.constant 1 : index
    %c0_271 = arith.constant 0 : index
    %c0_272 = arith.constant 0 : index
    %210 = vector.load %arg4[%c1_270, %c0_271, %c0_272] : memref<3x192x64xbf16, #tpu.memory_space<vmem>>, vector<1x192x64xbf16>
    %211 = vector.shape_cast %210 : vector<1x192x64xbf16> to vector<192x64xbf16>
    %cst_273 = arith.constant dense<0.000000e+00> : vector<256x64xf32>
    %212 = tpu.matmul %209, %211, %cst_273 {dimension_numbers = #tpu.dot_dimension_numbers<[1], [0], [0], [1], [0, 0, 1, 1], [], []>} : vector<256x192xbf16>, vector<192x64xbf16>, vector<256x64xf32> -> vector<256x64xf32>
    %213 = arith.addf %207, %212 : vector<256x64xf32>
    %c2_274 = arith.constant 2 : index
    %c0_275 = arith.constant 0 : index
    %c0_276 = arith.constant 0 : index
    %214 = vector.load %arg10[%c2_274, %c0_275, %c0_276] : memref<18x16x192xbf16, #tpu.memory_space<vmem>>, vector<16x16x192xbf16>
    %215 = vector.shape_cast %214 : vector<16x16x192xbf16> to vector<256x192xbf16>
    %c2_277 = arith.constant 2 : index
    %c0_278 = arith.constant 0 : index
    %c0_279 = arith.constant 0 : index
    %216 = vector.load %arg4[%c2_277, %c0_278, %c0_279] : memref<3x192x64xbf16, #tpu.memory_space<vmem>>, vector<1x192x64xbf16>
    %217 = vector.shape_cast %216 : vector<1x192x64xbf16> to vector<192x64xbf16>
    %cst_280 = arith.constant dense<0.000000e+00> : vector<256x64xf32>
    %218 = tpu.matmul %215, %217, %cst_280 {dimension_numbers = #tpu.dot_dimension_numbers<[1], [0], [0], [1], [0, 0, 1, 1], [], []>} : vector<256x192xbf16>, vector<192x64xbf16>, vector<256x64xf32> -> vector<256x64xf32>
    %219 = arith.addf %213, %218 : vector<256x64xf32>
    %c0_281 = arith.constant 0 : index
    %c0_282 = arith.constant 0 : index
    %220 = vector.load %arg5[%c0_281, %c0_282] : memref<1x64xf32, #tpu.memory_space<vmem>>, vector<1x64xf32>
    %221 = vector.broadcast %220 : vector<1x64xf32> to vector<256x64xf32>
    %222 = arith.addf %219, %221 : vector<256x64xf32>
    %cst_283 = arith.constant 0.000000e+00 : f32
    %223 = vector.broadcast %cst_283 : f32 to vector<256x64xf32>
    %224 = arith.maximumf %222, %223 : vector<256x64xf32>
    %225 = vector.shape_cast %224 : vector<256x64xf32> to vector<16x16x64xf32>
    %c1_284 = arith.constant 1 : index
    %c1_285 = arith.constant 1 : index
    %c8_286 = arith.constant 8 : index
    %c0_287 = arith.constant 0 : index
    %226 = vector.load %arg9[%c1_284, %c1_285, %c8_286, %c0_287] : memref<2x18x32x64xf32, #tpu.memory_space<vmem>>, vector<1x16x16x64xf32>
    %227 = vector.shape_cast %226 : vector<1x16x16x64xf32> to vector<16x16x64xf32>
    %228 = vector.shape_cast %225 : vector<16x16x64xf32> to vector<1x16x16x64xf32>
    tpu.vector_store %arg9[%c1_284, %c1_285, %c8_286, %c0_287], %228 {strides = array<i32>} : memref<2x18x32x64xf32, #tpu.memory_space<vmem>>, vector<1x16x16x64xf32>,
    %c1_288 = arith.constant 1 : index
    %c0_289 = arith.constant 0 : index
    %c7_290 = arith.constant 7 : index
    %c0_291 = arith.constant 0 : index
    %229 = vector.load %arg9[%c1_288, %c0_289, %c7_290, %c0_291] : memref<2x18x32x64xf32, #tpu.memory_space<vmem>>, vector<1x18x16x64xf32>
    %230 = vector.shape_cast %229 : vector<1x18x16x64xf32> to vector<18x16x64xf32>
    %231 = arith.truncf %230 : vector<18x16x64xf32> to vector<18x16x64xbf16>
    %c0_292 = arith.constant 0 : index
    %c0_293 = arith.constant 0 : index
    %c0_294 = arith.constant 0 : index
    %232 = vector.load %arg10[%c0_292, %c0_293, %c0_294] : memref<18x16x192xbf16, #tpu.memory_space<vmem>>, vector<18x16x64xbf16>
    tpu.vector_store %arg10[%c0_292, %c0_293, %c0_294], %231 {strides = array<i32>} : memref<18x16x192xbf16, #tpu.memory_space<vmem>>, vector<18x16x64xbf16>,
    %c1_295 = arith.constant 1 : index
    %c0_296 = arith.constant 0 : index
    %c8_297 = arith.constant 8 : index
    %c0_298 = arith.constant 0 : index
    %233 = vector.load %arg9[%c1_295, %c0_296, %c8_297, %c0_298] : memref<2x18x32x64xf32, #tpu.memory_space<vmem>>, vector<1x18x16x64xf32>
    %234 = vector.shape_cast %233 : vector<1x18x16x64xf32> to vector<18x16x64xf32>
    %235 = arith.truncf %234 : vector<18x16x64xf32> to vector<18x16x64xbf16>
    %c0_299 = arith.constant 0 : index
    %c0_300 = arith.constant 0 : index
    %c64_301 = arith.constant 64 : index
    %236 = vector.load %arg10[%c0_299, %c0_300, %c64_301] : memref<18x16x192xbf16, #tpu.memory_space<vmem>>, vector<18x16x64xbf16>
    tpu.vector_store %arg10[%c0_299, %c0_300, %c64_301], %235 {strides = array<i32>} : memref<18x16x192xbf16, #tpu.memory_space<vmem>>, vector<18x16x64xbf16>,
    %c1_302 = arith.constant 1 : index
    %c0_303 = arith.constant 0 : index
    %c9_304 = arith.constant 9 : index
    %c0_305 = arith.constant 0 : index
    %237 = vector.load %arg9[%c1_302, %c0_303, %c9_304, %c0_305] : memref<2x18x32x64xf32, #tpu.memory_space<vmem>>, vector<1x18x16x64xf32>
    %238 = vector.shape_cast %237 : vector<1x18x16x64xf32> to vector<18x16x64xf32>
    %239 = arith.truncf %238 : vector<18x16x64xf32> to vector<18x16x64xbf16>
    %c0_306 = arith.constant 0 : index
    %c0_307 = arith.constant 0 : index
    %c128_308 = arith.constant 128 : index
    %240 = vector.load %arg10[%c0_306, %c0_307, %c128_308] : memref<18x16x192xbf16, #tpu.memory_space<vmem>>, vector<18x16x64xbf16>
    tpu.vector_store %arg10[%c0_306, %c0_307, %c128_308], %239 {strides = array<i32>} : memref<18x16x192xbf16, #tpu.memory_space<vmem>>, vector<18x16x64xbf16>,
    %c0_309 = arith.constant 0 : index
    %c0_310 = arith.constant 0 : index
    %c0_311 = arith.constant 0 : index
    %241 = vector.load %arg10[%c0_309, %c0_310, %c0_311] : memref<18x16x192xbf16, #tpu.memory_space<vmem>>, vector<16x16x192xbf16>
    %242 = vector.shape_cast %241 : vector<16x16x192xbf16> to vector<256x192xbf16>
    %c0_312 = arith.constant 0 : index
    %c0_313 = arith.constant 0 : index
    %c0_314 = arith.constant 0 : index
    %243 = vector.load %arg6[%c0_312, %c0_313, %c0_314] : memref<3x192x64xbf16, #tpu.memory_space<vmem>>, vector<1x192x64xbf16>
    %244 = vector.shape_cast %243 : vector<1x192x64xbf16> to vector<192x64xbf16>
    %cst_315 = arith.constant dense<0.000000e+00> : vector<256x64xf32>
    %245 = tpu.matmul %242, %244, %cst_315 {dimension_numbers = #tpu.dot_dimension_numbers<[1], [0], [0], [1], [0, 0, 1, 1], [], []>} : vector<256x192xbf16>, vector<192x64xbf16>, vector<256x64xf32> -> vector<256x64xf32>
    %c1_316 = arith.constant 1 : index
    %c0_317 = arith.constant 0 : index
    %c0_318 = arith.constant 0 : index
    %246 = vector.load %arg10[%c1_316, %c0_317, %c0_318] : memref<18x16x192xbf16, #tpu.memory_space<vmem>>, vector<16x16x192xbf16>
    %247 = vector.shape_cast %246 : vector<16x16x192xbf16> to vector<256x192xbf16>
    %c1_319 = arith.constant 1 : index
    %c0_320 = arith.constant 0 : index
    %c0_321 = arith.constant 0 : index
    %248 = vector.load %arg6[%c1_319, %c0_320, %c0_321] : memref<3x192x64xbf16, #tpu.memory_space<vmem>>, vector<1x192x64xbf16>
    %249 = vector.shape_cast %248 : vector<1x192x64xbf16> to vector<192x64xbf16>
    %cst_322 = arith.constant dense<0.000000e+00> : vector<256x64xf32>
    %250 = tpu.matmul %247, %249, %cst_322 {dimension_numbers = #tpu.dot_dimension_numbers<[1], [0], [0], [1], [0, 0, 1, 1], [], []>} : vector<256x192xbf16>, vector<192x64xbf16>, vector<256x64xf32> -> vector<256x64xf32>
    %251 = arith.addf %245, %250 : vector<256x64xf32>
    %c2_323 = arith.constant 2 : index
    %c0_324 = arith.constant 0 : index
    %c0_325 = arith.constant 0 : index
    %252 = vector.load %arg10[%c2_323, %c0_324, %c0_325] : memref<18x16x192xbf16, #tpu.memory_space<vmem>>, vector<16x16x192xbf16>
    %253 = vector.shape_cast %252 : vector<16x16x192xbf16> to vector<256x192xbf16>
    %c2_326 = arith.constant 2 : index
    %c0_327 = arith.constant 0 : index
    %c0_328 = arith.constant 0 : index
    %254 = vector.load %arg6[%c2_326, %c0_327, %c0_328] : memref<3x192x64xbf16, #tpu.memory_space<vmem>>, vector<1x192x64xbf16>
    %255 = vector.shape_cast %254 : vector<1x192x64xbf16> to vector<192x64xbf16>
    %cst_329 = arith.constant dense<0.000000e+00> : vector<256x64xf32>
    %256 = tpu.matmul %253, %255, %cst_329 {dimension_numbers = #tpu.dot_dimension_numbers<[1], [0], [0], [1], [0, 0, 1, 1], [], []>} : vector<256x192xbf16>, vector<192x64xbf16>, vector<256x64xf32> -> vector<256x64xf32>
    %257 = arith.addf %251, %256 : vector<256x64xf32>
    %c0_330 = arith.constant 0 : index
    %c0_331 = arith.constant 0 : index
    %258 = vector.load %arg7[%c0_330, %c0_331] : memref<1x64xf32, #tpu.memory_space<vmem>>, vector<1x64xf32>
    %259 = vector.broadcast %258 : vector<1x64xf32> to vector<256x64xf32>
    %260 = arith.addf %257, %259 : vector<256x64xf32>
    %cst_332 = arith.constant 0.000000e+00 : f32
    %261 = vector.broadcast %cst_332 : f32 to vector<256x64xf32>
    %262 = arith.maximumf %260, %261 : vector<256x64xf32>
    %263 = vector.shape_cast %262 : vector<256x64xf32> to vector<16x16x64xf32>
    %c1_333 = arith.constant 1 : index
    %c0_334 = arith.constant 0 : index
    %c0_335 = arith.constant 0 : index
    %c0_336 = arith.constant 0 : index
    %264 = vector.load %arg1[%c1_333, %c0_334, %c0_335, %c0_336] : memref<2x16x16x64xf32, #tpu.memory_space<vmem>>, vector<1x16x16x64xf32>
    %265 = vector.shape_cast %264 : vector<1x16x16x64xf32> to vector<16x16x64xf32>
    %266 = arith.addf %265, %263 : vector<16x16x64xf32>
    %c1_337 = arith.constant 1 : index
    %c0_338 = arith.constant 0 : index
    %c0_339 = arith.constant 0 : index
    %c0_340 = arith.constant 0 : index
    %267 = vector.load %arg8[%c1_337, %c0_338, %c0_339, %c0_340] : memref<2x16x16x64xf32, #tpu.memory_space<vmem>>, vector<1x16x16x64xf32>
    %268 = vector.shape_cast %267 : vector<1x16x16x64xf32> to vector<16x16x64xf32>
    %269 = vector.shape_cast %266 : vector<16x16x64xf32> to vector<1x16x16x64xf32>
    tpu.vector_store %arg8[%c1_337, %c0_338, %c0_339, %c0_340], %269 {strides = array<i32>} : memref<2x16x16x64xf32, #tpu.memory_space<vmem>>, vector<1x16x16x64xf32>,
    return
  }
  func.func @transform_0(%arg0: i32) -> (i32, i32, i32, i32) {
    %c0_i32 = arith.constant 0 : i32
    %c0_i32_0 = arith.constant 0 : i32
    %c0_i32_1 = arith.constant 0 : i32
    %c0_i32_2 = arith.constant 0 : i32
    return %arg0, %c0_i32, %c0_i32_0, %c0_i32_1 : i32, i32, i32, i32
  }
  func.func @transform_1(%arg0: i32) -> (i32, i32, i32) {
    %c0_i32 = arith.constant 0 : i32
    %c0_i32_0 = arith.constant 0 : i32
    %c0_i32_1 = arith.constant 0 : i32
    %c0_i32_2 = arith.constant 0 : i32
    return %c0_i32, %c0_i32_0, %c0_i32_1 : i32, i32, i32
  }
  func.func @transform_2(%arg0: i32) -> (i32, i32) {
    %c0_i32 = arith.constant 0 : i32
    %c0_i32_0 = arith.constant 0 : i32
    %c0_i32_1 = arith.constant 0 : i32
    return %c0_i32, %c0_i32_0 : i32, i32
  }
  func.func @transform_3(%arg0: i32) -> (i32, i32, i32) {
    %c0_i32 = arith.constant 0 : i32
    %c0_i32_0 = arith.constant 0 : i32
    %c0_i32_1 = arith.constant 0 : i32
    %c0_i32_2 = arith.constant 0 : i32
    return %c0_i32, %c0_i32_0, %c0_i32_1 : i32, i32, i32
  }
  func.func @transform_4(%arg0: i32) -> (i32, i32) {
    %c0_i32 = arith.constant 0 : i32
    %c0_i32_0 = arith.constant 0 : i32
    %c0_i32_1 = arith.constant 0 : i32
    return %c0_i32, %c0_i32_0 : i32, i32
  }
  func.func @transform_5(%arg0: i32) -> (i32, i32, i32) {
    %c0_i32 = arith.constant 0 : i32
    %c0_i32_0 = arith.constant 0 : i32
    %c0_i32_1 = arith.constant 0 : i32
    %c0_i32_2 = arith.constant 0 : i32
    return %c0_i32, %c0_i32_0, %c0_i32_1 : i32, i32, i32
  }
  func.func @transform_6(%arg0: i32) -> (i32, i32) {
    %c0_i32 = arith.constant 0 : i32
    %c0_i32_0 = arith.constant 0 : i32
    %c0_i32_1 = arith.constant 0 : i32
    return %c0_i32, %c0_i32_0 : i32, i32
  }
  func.func @transform_7(%arg0: i32) -> (i32, i32, i32, i32) {
    %c0_i32 = arith.constant 0 : i32
    %c0_i32_0 = arith.constant 0 : i32
    %c0_i32_1 = arith.constant 0 : i32
    %c0_i32_2 = arith.constant 0 : i32
    return %arg0, %c0_i32, %c0_i32_0, %c0_i32_1 : i32, i32, i32, i32
  }
}

</mosaic_0001>

<bundles_post_ra>
// kernel: tpu_custom_call.1
= control target key start
LH: loop header
LB: loop body
LE: loop exit
PB: predicated region body
PF: predicated region fallthrough
CT: control target
= control target key end

     0   :  { %vm28_vm0 = vcmask 523264   ;;  %v10118_v6 = vmov 0.0   ;;  %v10119_v10 = vmov 0   ;;  %s10120_s26 = smov 64   ;;  %vm337_vm1 = vcmask 1048064   ;;  %s14342_s0 = inlined_call_operand.vmem [shape: f32[2,16,16,64], index: 0, kind: input, shape index: {}]   ;;  %s14343_s1 = inlined_call_operand.vmem [shape: bf16[3,192,64], index: 1, kind: input, shape index: {}]   ;;  %s14344_s2 = inlined_call_operand.vmem [shape: f32[1,64], index: 2, kind: input, shape index: {}]   ;;  %s14345_s3 = inlined_call_operand.vmem [shape: bf16[3,192,64], index: 3, kind: input, shape index: {}]   ;;  %s14346_s4 = inlined_call_operand.vmem [shape: f32[1,64], index: 4, kind: input, shape index: {}]   ;;  %s14347_s5 = inlined_call_operand.vmem [shape: bf16[3,192,64], index: 5, kind: input, shape index: {}]   ;;  %s14348_s6 = inlined_call_operand.vmem [shape: f32[1,64], index: 6, kind: input, shape index: {}]   ;;  %s14349_s7 = inlined_call_operand.hbm [shape: f32[2,16,16,64], index: 7, kind: output, shape index: {}]  }
   0x1   :  { %v74_v0 = vld [vmem:[%s14342_s0] sm:$0xff]  ;;  %v75_v1 = vld [vmem:[%s14342_s0 + $0x8] sm:$0xff]  ;;  %v76_v2 = vld [vmem:[%s14342_s0 + $0x10] sm:$0xff]  ;;  %66 = vst.msk [vmem:[#allocation2 + $0x8] sm:$0xff] %vm28_vm0, %v10118_v6  ;;  %662 = vmatprep.subr.bf16.mxu0 %v10119_v10  ;;  %943 = vmatprep.subr.bf16.mxu1 %v10119_v10 }
   0x2   :  { %107 = vst.msk [vmem:[#allocation2 + $0x28] sm:$0xff] %vm28_vm0, %v74_v0  ;;  %108 = vst.msk [vmem:[#allocation2 + $0x30] sm:$0xff] %vm28_vm0, %v75_v1  ;;  %v10178_v3 = vld [vmem:[%s14342_s0 + $0x18] sm:$0xff]  ;;  %v10184_v4 = vld [vmem:[%s14342_s0 + $0x40] sm:$0xff] }
   0x3   :  { %109 = vst.msk [vmem:[#allocation2 + $0x48] sm:$0xff] %vm28_vm0, %v76_v2  ;;  %v10189_v5 = vld [vmem:[%s14342_s0 + $0x48] sm:$0xff]  ;;  %67 = vst.msk [vmem:[#allocation2 + $0x10] sm:$0xff] %vm28_vm0, %v10118_v6  ;;  %v86_v7 = vld [vmem:[%s14342_s0 + $0x60] sm:$0xff] }
   0x4   :  { %29 = vst.msk [vmem:[#allocation2] sm:$0xff] %vm28_vm0, %v10118_v6  ;;  %30 = vst.msk [vmem:[#allocation2 + $0x20] sm:$0xff] %vm28_vm0, %v10118_v6  ;;  %v87_v8 = vld [vmem:[%s14342_s0 + $0x68] sm:$0xff]  ;;  %v78_v9 = vld [vmem:[%s14342_s0 + $0x20] sm:$0xff] }
   0x5   :  { %31 = vst.msk [vmem:[#allocation2 + $0x40] sm:$0xff] %vm28_vm0, %v10118_v6  ;;  %32 = vst.msk [vmem:[#allocation2 + $0x60] sm:$0xff] %vm28_vm0, %v10118_v6  ;;  %v79_v11 = vld [vmem:[%s14342_s0 + $0x28] sm:$0xff]  ;;  %v90_v12 = vld [vmem:[%s14342_s0 + $0x80] sm:$0xff] }
   0x6   :  { %33 = vst.msk [vmem:[#allocation2 + $0x80] sm:$0xff] %vm28_vm0, %v10118_v6  ;;  %34 = vst.msk [vmem:[#allocation2 + $0xa0] sm:$0xff] %vm28_vm0, %v10118_v6  ;;  %v91_v13 = vld [vmem:[%s14342_s0 + $0x88] sm:$0xff]  ;;  %v94_v14 = vld [vmem:[%s14342_s0 + $0xa0] sm:$0xff] }
   0x7   :  { %35 = vst.msk [vmem:[#allocation2 + $0xc0] sm:$0xff] %vm28_vm0, %v10118_v6  ;;  %36 = vst.msk [vmem:[#allocation2 + $0xe0] sm:$0xff] %vm28_vm0, %v10118_v6  ;;  %v95_v15 = vld [vmem:[%s14342_s0 + $0xa8] sm:$0xff]  ;;  %v80_v16 = vld [vmem:[%s14342_s0 + $0x30] sm:$0xff] }
   0x8   :  { %37 = vst.msk [vmem:[#allocation2 + $0x100] sm:$0xff] %vm28_vm0, %v10118_v6  ;;  %38 = vst.msk [vmem:[#allocation2 + $0x120] sm:$0xff] %vm28_vm0, %v10118_v6  ;;  %v81_v17 = vld [vmem:[%s14342_s0 + $0x38] sm:$0xff]  ;;  %v98_v18 = vld [vmem:[%s14342_s0 + $0xc0] sm:$0xff] }
   0x9   :  { %39 = vst.msk [vmem:[#allocation2 + $0x140] sm:$0xff] %vm28_vm0, %v10118_v6  ;;  %40 = vst.msk [vmem:[#allocation2 + $0x160] sm:$0xff] %vm28_vm0, %v10118_v6  ;;  %v99_v19 = vld [vmem:[%s14342_s0 + $0xc8] sm:$0xff]  ;;  %v102_v20 = vld [vmem:[%s14342_s0 + $0xe0] sm:$0xff] }
   0xa   :  { %41 = vst.msk [vmem:[#allocation2 + $0x180] sm:$0xff] %vm28_vm0, %v10118_v6  ;;  %42 = vst.msk [vmem:[#allocation2 + $0x1a0] sm:$0xff] %vm28_vm0, %v10118_v6  ;;  %v103_v21 = vld [vmem:[%s14342_s0 + $0xe8] sm:$0xff]  ;;  %v84_v22 = vld [vmem:[%s14342_s0 + $0x50] sm:$0xff] }
   0xb   :  { %43 = vst.msk [vmem:[#allocation2 + $0x1c0] sm:$0xff] %vm28_vm0, %v10118_v6  ;;  %44 = vst.msk [vmem:[#allocation2 + $0x1e0] sm:$0xff] %vm28_vm0, %v10118_v6  ;;  %v85_v23 = vld [vmem:[%s14342_s0 + $0x58] sm:$0xff]  ;;  %v88_v24 = vld [vmem:[%s14342_s0 + $0x70] sm:$0xff] }
   0xc   :  { %45 = vst.msk [vmem:[#allocation2 + $0x200] sm:$0xff] %vm28_vm0, %v10118_v6  ;;  %46 = vst.msk [vmem:[#allocation2 + $0x220] sm:$0xff] %vm28_vm0, %v10118_v6  ;;  %v89_v25 = vld [vmem:[%s14342_s0 + $0x78] sm:$0xff]  ;;  %v213_v26 = vld [vmem:[#allocation2 + $0x28] sm:$0xff] }
   0xd   :  { %47 = vst.msk [vmem:[#allocation2 + $0x18] sm:$0xff] %vm28_vm0, %v10118_v6  ;;  %48 = vst.msk [vmem:[#allocation2 + $0x38] sm:$0xff] %vm28_vm0, %v10118_v6  ;;  %v214_v27 = vld [vmem:[#allocation2 + $0x30] sm:$0xff]  ;;  %v215_v28 = vld [vmem:[#allocation2 + $0x48] sm:$0xff] }
   0xe   :  { %49 = vst.msk [vmem:[#allocation2 + $0x58] sm:$0xff] %vm28_vm0, %v10118_v6  ;;  %50 = vst.msk [vmem:[#allocation2 + $0x78] sm:$0xff] %vm28_vm0, %v10118_v6  ;;  %v248_v29 = vpack.c.bf16 %v214_v27, %v213_v26  ;;  %v92_v45 = vld [vmem:[%s14342_s0 + $0x90] sm:$0xff]  ;;  %v93_v47 = vld [vmem:[%s14342_s0 + $0x98] sm:$0xff] }
   0xf   :  { %51 = vst.msk [vmem:[#allocation2 + $0x98] sm:$0xff] %vm28_vm0, %v10118_v6  ;;  %52 = vst.msk [vmem:[#allocation2 + $0xb8] sm:$0xff] %vm28_vm0, %v10118_v6  ;;  %v9877_v51 = vld [vmem:[%s14343_s1 + $0x60] sm:$0xff]   ;;  %v9878_v54 = vld [vmem:[%s14343_s1 + $0x68] sm:$0xff]  }
  0x10   :  { %53 = vst.msk [vmem:[#allocation2 + $0xd8] sm:$0xff] %vm28_vm0, %v10118_v6  ;;  %54 = vst.msk [vmem:[#allocation2 + $0xf8] sm:$0xff] %vm28_vm0, %v10118_v6  ;;  %285 = vrot.lane.b32.xlu0 %v248_v29, %s10120_s26  ;;  %663 = vmatpush1.bf16.msra.mxu0 %v9877_v51  ;;  %v96_v55 = vld [vmem:[%s14342_s0 + $0xb0] sm:$0xff]  ;;  %v97_v56 = vld [vmem:[%s14342_s0 + $0xb8] sm:$0xff] }
  0x11   :  { %55 = vst.msk [vmem:[#allocation2 + $0x118] sm:$0xff] %vm28_vm0, %v10118_v6  ;;  %56 = vst.msk [vmem:[#allocation2 + $0x138] sm:$0xff] %vm28_vm0, %v10118_v6  ;;  %664 = vmatprep.subr.bf16.mxu0 %v10119_v10  ;;  %v9879_v61 = vld [vmem:[%s14343_s1 + $0x70] sm:$0xff]   ;;  %v143_v27 = vld [vmem:[#allocation2 + $0x47] sm:$0xff] }
  0x12   :  { %57 = vst.msk [vmem:[#allocation2 + $0x158] sm:$0xff] %vm28_vm0, %v10118_v6  ;;  %58 = vst.msk [vmem:[#allocation2 + $0x178] sm:$0xff] %vm28_vm0, %v10118_v6 }
  0x13   :  { %59 = vst.msk [vmem:[#allocation2 + $0x198] sm:$0xff] %vm28_vm0, %v10118_v6  ;;  %60 = vst.msk [vmem:[#allocation2 + $0x1b8] sm:$0xff] %vm28_vm0, %v10118_v6 }
  0x14   :  { %61 = vst.msk [vmem:[#allocation2 + $0x1d8] sm:$0xff] %vm28_vm0, %v10118_v6  ;;  %62 = vst.msk [vmem:[#allocation2 + $0x1f8] sm:$0xff] %vm28_vm0, %v10118_v6  ;;  %665 = vmatpush1.bf16.msra.mxu0 %v9878_v54 }
  0x15   :  { %63 = vst.msk [vmem:[#allocation2 + $0x218] sm:$0xff] %vm28_vm0, %v10118_v6  ;;  %64 = vst.msk [vmem:[#allocation2 + $0x238] sm:$0xff] %vm28_vm0, %v10118_v6  ;;  %666 = vmatprep.subr.bf16.mxu0 %v10119_v10 }
  0x16   :  { %71 = vst.msk [vmem:[#allocation2 + $0x228] sm:$0xff] %vm28_vm0, %v10118_v6  ;;  %72 = vst.msk [vmem:[#allocation2 + $0x230] sm:$0xff] %vm28_vm0, %v10118_v6 }
  0x17   :  { %4515 = vst.msk [vmem:[#allocation2 + $0x240] sm:$0xff] %vm28_vm0, %v10118_v6  ;;  %4516 = vst.msk [vmem:[#allocation2 + $0x260] sm:$0xff] %vm28_vm0, %v10118_v6 }
  0x18   :  { %4517 = vst.msk [vmem:[#allocation2 + $0x280] sm:$0xff] %vm28_vm0, %v10118_v6  ;;  %4518 = vst.msk [vmem:[#allocation2 + $0x2a0] sm:$0xff] %vm28_vm0, %v10118_v6  ;;  %667 = vmatpush1.bf16.msra.mxu0 %v9879_v61 }
  0x19   :  { %4519 = vst.msk [vmem:[#allocation2 + $0x2c0] sm:$0xff] %vm28_vm0, %v10118_v6  ;;  %4520 = vst.msk [vmem:[#allocation2 + $0x2e0] sm:$0xff] %vm28_vm0, %v10118_v6  ;;  %668 = vmatprep.subr.bf16.mxu0 %v10119_v10 }
  0x1a   :  { %4521 = vst.msk [vmem:[#allocation2 + $0x300] sm:$0xff] %vm28_vm0, %v10118_v6  ;;  %4522 = vst.msk [vmem:[#allocation2 + $0x320] sm:$0xff] %vm28_vm0, %v10118_v6 }
  0x1b   :  { %4523 = vst.msk [vmem:[#allocation2 + $0x340] sm:$0xff] %vm28_vm0, %v10118_v6  ;;  %4524 = vst.msk [vmem:[#allocation2 + $0x360] sm:$0xff] %vm28_vm0, %v10118_v6 }
  0x1c   :  { %4525 = vst.msk [vmem:[#allocation2 + $0x380] sm:$0xff] %vm28_vm0, %v10118_v6  ;;  %4526 = vst.msk [vmem:[#allocation2 + $0x3a0] sm:$0xff] %vm28_vm0, %v10118_v6 }
  0x1d   :  { %4527 = vst.msk [vmem:[#allocation2 + $0x3c0] sm:$0xff] %vm28_vm0, %v10118_v6  ;;  %4528 = vst.msk [vmem:[#allocation2 + $0x3e0] sm:$0xff] %vm28_vm0, %v10118_v6 }
  0x1e   :  { %4529 = vst.msk [vmem:[#allocation2 + $0x400] sm:$0xff] %vm28_vm0, %v10118_v6  ;;  %4530 = vst.msk [vmem:[#allocation2 + $0x420] sm:$0xff] %vm28_vm0, %v10118_v6 }
  0x1f   :  { %4531 = vst.msk [vmem:[#allocation2 + $0x440] sm:$0xff] %vm28_vm0, %v10118_v6  ;;  %4532 = vst.msk [vmem:[#allocation2 + $0x460] sm:$0xff] %vm28_vm0, %v10118_v6 }
  0x20   :  { %4533 = vst.msk [vmem:[#allocation2 + $0x258] sm:$0xff] %vm28_vm0, %v10118_v6  ;;  %4534 = vst.msk [vmem:[#allocation2 + $0x278] sm:$0xff] %vm28_vm0, %v10118_v6 }
  0x21   :  { %4535 = vst.msk [vmem:[#allocation2 + $0x298] sm:$0xff] %vm28_vm0, %v10118_v6  ;;  %4536 = vst.msk [vmem:[#allocation2 + $0x2b8] sm:$0xff] %vm28_vm0, %v10118_v6 }
  0x22   :  { %4537 = vst.msk [vmem:[#allocation2 + $0x2d8] sm:$0xff] %vm28_vm0, %v10118_v6  ;;  %4538 = vst.msk [vmem:[#allocation2 + $0x2f8] sm:$0xff] %vm28_vm0, %v10118_v6 }
  0x23   :  { %4539 = vst.msk [vmem:[#allocation2 + $0x318] sm:$0xff] %vm28_vm0, %v10118_v6  ;;  %4540 = vst.msk [vmem:[#allocation2 + $0x338] sm:$0xff] %vm28_vm0, %v10118_v6 }
  0x24   :  { %4541 = vst.msk [vmem:[#allocation2 + $0x358] sm:$0xff] %vm28_vm0, %v10118_v6  ;;  %4542 = vst.msk [vmem:[#allocation2 + $0x378] sm:$0xff] %vm28_vm0, %v10118_v6 }
  0x25   :  { %4543 = vst.msk [vmem:[#allocation2 + $0x398] sm:$0xff] %vm28_vm0, %v10118_v6  ;;  %4544 = vst.msk [vmem:[#allocation2 + $0x3b8] sm:$0xff] %vm28_vm0, %v10118_v6 }
  0x26   :  { %4545 = vst.msk [vmem:[#allocation2 + $0x3d8] sm:$0xff] %vm28_vm0, %v10118_v6  ;;  %4546 = vst.msk [vmem:[#allocation2 + $0x3f8] sm:$0xff] %vm28_vm0, %v10118_v6 }
  0x27   :  { %4547 = vst.msk [vmem:[#allocation2 + $0x418] sm:$0xff] %vm28_vm0, %v10118_v6  ;;  %4548 = vst.msk [vmem:[#allocation2 + $0x438] sm:$0xff] %vm28_vm0, %v10118_v6 }
  0x28   :  { %4549 = vst.msk [vmem:[#allocation2 + $0x458] sm:$0xff] %vm28_vm0, %v10118_v6  ;;  %4550 = vst.msk [vmem:[#allocation2 + $0x478] sm:$0xff] %vm28_vm0, %v10118_v6 }
  0x29   :  { %4552 = vst.msk [vmem:[#allocation2 + $0x248] sm:$0xff] %vm28_vm0, %v10118_v6  ;;  %4553 = vst.msk [vmem:[#allocation2 + $0x250] sm:$0xff] %vm28_vm0, %v10118_v6 }
  0x2a   :  { %4557 = vst.msk [vmem:[#allocation2 + $0x468] sm:$0xff] %vm28_vm0, %v10118_v6  ;;  %4558 = vst.msk [vmem:[#allocation2 + $0x470] sm:$0xff] %vm28_vm0, %v10118_v6 }
  0x2b   :  { %110 = vst.msk [vmem:[#allocation2 + $0x50] sm:$0xff] %vm28_vm0, %v10178_v3  ;;  %115 = vst.msk [vmem:[#allocation2 + $0xa8] sm:$0xff] %vm28_vm0, %v10184_v4  ;;  %v100_v3 = vld [vmem:[%s14342_s0 + $0xd0] sm:$0xff] }
  0x2c   :  { %116 = vst.msk [vmem:[#allocation2 + $0xb0] sm:$0xff] %vm28_vm0, %v10189_v5  ;;  %65 = vst.msk [vmem:[#allocation2] sm:$0xff] %vm28_vm0, %v10118_v6  ;;  %v101_v5 = vld [vmem:[%s14342_s0 + $0xd8] sm:$0xff] }
  0x2d   :  { %68 = vst.msk [vmem:[#allocation2 + $0x18] sm:$0xff] %vm28_vm0, %v10118_v6  ;;  %70 = vst.msk [vmem:[#allocation2 + $0x220] sm:$0xff] %vm28_vm0, %v10118_v6 }
  0x2e   :  { %73 = vst.msk [vmem:[#allocation2 + $0x238] sm:$0xff] %vm28_vm0, %v10118_v6  ;;  %4551 = vst.msk [vmem:[#allocation2 + $0x240] sm:$0xff] %vm28_vm0, %v10118_v6 }
  0x2f   :  { %4554 = vst.msk [vmem:[#allocation2 + $0x258] sm:$0xff] %vm28_vm0, %v10118_v6  ;;  %4556 = vst.msk [vmem:[#allocation2 + $0x460] sm:$0xff] %vm28_vm0, %v10118_v6 }
  0x30   :  { %4559 = vst.msk [vmem:[#allocation2 + $0x478] sm:$0xff] %vm28_vm0, %v10118_v6  ;;  %119 = vst.msk [vmem:[#allocation2 + $0xe8] sm:$0xff] %vm28_vm0, %v86_v7  ;;  %v9880_v6 = vld [vmem:[%s14343_s1 + $0x78] sm:$0xff]  }
  0x31   :  { %120 = vst.msk [vmem:[#allocation2 + $0xf0] sm:$0xff] %vm28_vm0, %v87_v8  ;;  %111 = vst.msk [vmem:[#allocation2 + $0x68] sm:$0xff] %vm28_vm0, %v78_v9  ;;  %v9886_v9 = vld [vmem:[%s14343_s1] sm:$0xff]   ;;  %669 = vmatpush1.bf16.msra.mxu0 %v9880_v6 }
  0x32   :  { %112 = vst.msk [vmem:[#allocation2 + $0x70] sm:$0xff] %vm28_vm0, %v79_v11  ;;  %123 = vst.msk [vmem:[#allocation2 + $0x128] sm:$0xff] %vm28_vm0, %v90_v12  ;;  %v216_v30 = vld [vmem:[#allocation2 + $0x50] sm:$0xff]  ;;  %v221_v34 = vld [vmem:[#allocation2 + $0xa8] sm:$0xff]  ;;  %944 = vmatpush1.bf16.msra.mxu1 %v9886_v9  ;;  %670 = vmatprep.subr.bf16.mxu0 %v10119_v10 }
  0x33   :  { %124 = vst.msk [vmem:[#allocation2 + $0x130] sm:$0xff] %vm28_vm0, %v91_v13  ;;  %127 = vst.msk [vmem:[#allocation2 + $0x168] sm:$0xff] %vm28_vm0, %v94_v14  ;;  %v249_v32 = vpack.c.bf16 %v216_v30, %v215_v28  ;;  %v222_v35 = vld [vmem:[#allocation2 + $0xb0] sm:$0xff]  ;;  %v9881_v14 = vld [vmem:[%s14343_s1 + $0x80] sm:$0xff]   ;;  %945 = vmatprep.subr.bf16.mxu1 %v10119_v10 }
  0x34   :  { %128 = vst.msk [vmem:[#allocation2 + $0x170] sm:$0xff] %vm28_vm0, %v95_v15  ;;  %113 = vst.msk [vmem:[#allocation2 + $0x88] sm:$0xff] %vm28_vm0, %v80_v16  ;;  %v252_v40 = vpack.c.bf16 %v222_v35, %v221_v34  ;;  %v9888_v16 = vld [vmem:[%s14343_s1 + $0x8] sm:$0xff]   ;;  %v361_v54 = vld [vmem:[#allocation2 + $0x51] sm:$0xff] }
  0x35   :  { %114 = vst.msk [vmem:[#allocation2 + $0x90] sm:$0xff] %vm28_vm0, %v81_v17  ;;  %131 = vst.msk [vmem:[#allocation2 + $0x1a8] sm:$0xff] %vm28_vm0, %v98_v18  ;;  %287 = vrot.lane.b32.xlu0 %v249_v32, %s10120_s26  ;;  %v141_v17 = vld [vmem:[#allocation2 + $0x27] sm:$0xff]  ;;  %v142_v18 = vld [vmem:[#allocation2 + $0x2f] sm:$0xff]  ;;  %671 = vmatpush1.bf16.msra.mxu0 %v9881_v14 }
  0x36   :  { %132 = vst.msk [vmem:[#allocation2 + $0x1b0] sm:$0xff] %vm28_vm0, %v99_v19  ;;  %135 = vst.msk [vmem:[#allocation2 + $0x1e8] sm:$0xff] %vm28_vm0, %v102_v20  ;;  %v176_v19 = vpack.c.bf16 %v142_v18, %v141_v17  ;;  %v211_v20 = vld [vmem:[#allocation2 + $0x8] sm:$0xff]  ;;  %946 = vmatpush1.bf16.msra.mxu1 %v9888_v16  ;;  %672 = vmatprep.subr.bf16.mxu0 %v10119_v10  ;;  %v104_v32 = vld [vmem:[%s14342_s0 + $0xf0] sm:$0xff] }
  0x37   :  { %136 = vst.msk [vmem:[#allocation2 + $0x1f0] sm:$0xff] %vm28_vm0, %v103_v21  ;;  %117 = vst.msk [vmem:[#allocation2 + $0xc8] sm:$0xff] %vm28_vm0, %v84_v22  ;;  %v225_v43 = vld [vmem:[#allocation2 + $0xe8] sm:$0xff]  ;;  %v212_v21 = vld [vmem:[#allocation2 + $0x10] sm:$0xff]  ;;  %947 = vmatprep.subr.bf16.mxu1 %v10119_v10 }
  0x38   :  { %118 = vst.msk [vmem:[#allocation2 + $0xd0] sm:$0xff] %vm28_vm0, %v85_v23  ;;  %121 = vst.msk [vmem:[#allocation2 + $0x108] sm:$0xff] %vm28_vm0, %v88_v24  ;;  %v217_v31 = vld [vmem:[#allocation2 + $0x68] sm:$0xff]  ;;  %v226_v44 = vld [vmem:[#allocation2 + $0xf0] sm:$0xff]  ;;  %v247_v35 = vpack.c.bf16 %v212_v21, %v211_v20 }
  0x39   :  { %122 = vst.msk [vmem:[#allocation2 + $0x110] sm:$0xff] %vm28_vm0, %v89_v25  ;;  %v218_v33 = vld [vmem:[#allocation2 + $0x70] sm:$0xff]  ;;  %125 = vst.msk [vmem:[#allocation2 + $0x148] sm:$0xff] %vm28_vm0, %v92_v45  ;;  %v229_v48 = vld [vmem:[#allocation2 + $0x128] sm:$0xff]  ;;  %293 = vrot.lane.b32.xlu0 %v252_v40, %s10120_s26  ;;  %v254_v52 = vpack.c.bf16 %v226_v44, %v225_v43 }
  0x3a   :  { %v250_v36 = vpack.c.bf16 %v218_v33, %v217_v31  ;;  %v230_v49 = vld [vmem:[#allocation2 + $0x130] sm:$0xff]  ;;  %126 = vst.msk [vmem:[#allocation2 + $0x150] sm:$0xff] %vm28_vm0, %v93_v47  ;;  %v233_v57 = vld [vmem:[#allocation2 + $0x168] sm:$0xff]  ;;  %129 = vst.msk [vmem:[#allocation2 + $0x188] sm:$0xff] %vm28_vm0, %v96_v55 }
  0x3b   :  { %v219_v37 = vld [vmem:[#allocation2 + $0x88] sm:$0xff]  ;;  %v234_v58 = vld [vmem:[#allocation2 + $0x170] sm:$0xff]  ;;  %130 = vst.msk [vmem:[#allocation2 + $0x190] sm:$0xff] %vm28_vm0, %v97_v56  ;;  %v256_v60 = vpack.c.bf16 %v230_v49, %v229_v48  ;;  %133 = vst.msk [vmem:[#allocation2 + $0x1c8] sm:$0xff] %vm28_vm0, %v100_v3 }
  0x3c   :  { %v220_v38 = vld [vmem:[#allocation2 + $0x90] sm:$0xff]  ;;  %289 = vrot.lane.b32.xlu1 %v250_v36, %s10120_s26  ;;  %v237_v0 = vld [vmem:[#allocation2 + $0x1a8] sm:$0xff]  ;;  %v258_v4 = vpack.c.bf16 %v234_v58, %v233_v57  ;;  %134 = vst.msk [vmem:[#allocation2 + $0x1d0] sm:$0xff] %vm28_vm0, %v101_v5  ;;  %194 = vst.msk [vmem:[#allocation3 + $0x10] sm:$0xff] %vm28_vm0, %v176_v19 }
  0x3d   :  { %v251_v39 = vpack.c.bf16 %v220_v38, %v219_v37  ;;  %297 = vrot.lane.b32.xlu0 %v254_v52, %s10120_s26  ;;  %v238_v1 = vld [vmem:[#allocation2 + $0x1b0] sm:$0xff]  ;;  %v241_v11 = vld [vmem:[#allocation2 + $0x1e8] sm:$0xff]  ;;  %v9892_v31 = vld [vmem:[%s14343_s1 + $0x18] sm:$0xff]   ;;  %137 = vst.msk [vmem:[#allocation2 + $0x208] sm:$0xff] %vm28_vm0, %v104_v32 }
  0x3e   :  { %v223_v41 = vld [vmem:[#allocation2 + $0xc8] sm:$0xff]  ;;  %v242_v12 = vld [vmem:[#allocation2 + $0x1f0] sm:$0xff]  ;;  %v260_v15 = vpack.c.bf16 %v238_v1, %v237_v0  ;;  %v105_v33 = vld [vmem:[%s14342_s0 + $0xf8] sm:$0xff] }
  0x3f   :  { %v224_v42 = vld [vmem:[#allocation2 + $0xd0] sm:$0xff]  ;;  %v227_v46 = vld [vmem:[#allocation2 + $0x108] sm:$0xff]  ;;  %v262_v24 = vpack.c.bf16 %v242_v12, %v241_v11  ;;  %138 = vst.msk [vmem:[#allocation2 + $0x210] sm:$0xff] %vm28_vm0, %v105_v33  ;;  %v9894_v45 = vld [vmem:[%s14343_s1 + $0x20] sm:$0xff]  }
  0x40   :  { %291 = vrot.lane.b32.xlu1 %v251_v39, %s10120_s26  ;;  %v253_v50 = vpack.c.bf16 %v224_v42, %v223_v41  ;;  %v228_v53 = vld [vmem:[#allocation2 + $0x110] sm:$0xff]  ;;  %v231_v62 = vld [vmem:[#allocation2 + $0x148] sm:$0xff]  ;;  %v9884_v42 = vld [vmem:[%s14343_s1 + $0x98] sm:$0xff]  }
  0x41   :  { %v255_v59 = vpack.c.bf16 %v228_v53, %v227_v46  ;;  %v232_v63 = vld [vmem:[#allocation2 + $0x150] sm:$0xff]  ;;  %301 = vrot.lane.b32.xlu0 %v256_v60, %s10120_s26  ;;  %v235_v7 = vld [vmem:[#allocation2 + $0x188] sm:$0xff]  ;;  %v9898_v16 = vld [vmem:[%s14343_s1 + $0x38] sm:$0xff]  }
  0x42   :  { %v257_v2 = vpack.c.bf16 %v232_v63, %v231_v62  ;;  %v236_v8 = vld [vmem:[#allocation2 + $0x190] sm:$0xff]  ;;  %v239_v22 = vld [vmem:[#allocation2 + $0x1c8] sm:$0xff]  ;;  %v9885_v62 = vld [vmem:[%s14343_s1 + $0xa0] sm:$0xff]  }
  0x43   :  { %v259_v13 = vpack.c.bf16 %v236_v8, %v235_v7  ;;  %v9890_v23 = vld [vmem:[%s14343_s1 + $0x10] sm:$0xff]   ;;  %v9882_v28 = vld [vmem:[%s14343_s1 + $0x88] sm:$0xff]  }
  0x44   :  { %295 = vrot.lane.b32.xlu1 %v253_v50, %s10120_s26  ;;  %v240_v25 = vld [vmem:[#allocation2 + $0x1d0] sm:$0xff]  ;;  %948 = vmatpush1.bf16.msra.mxu1 %v9890_v23  ;;  %v149_v36 = vld [vmem:[#allocation2 + $0xa7] sm:$0xff]  ;;  %v9891_v23 = vld [vmem:[%s14343_s1 + $0xb8] sm:$0xff]  }
  0x45   :  { %305 = vrot.lane.b32.xlu0 %v258_v4, %s10120_s26  ;;  %v144_v26 = vld [vmem:[#allocation2 + $0x4f] sm:$0xff]  ;;  %v261_v29 = vpack.c.bf16 %v240_v25, %v239_v22  ;;  %673 = vmatpush1.bf16.msra.mxu0 %v9882_v28  ;;  %v153_v44 = vld [vmem:[#allocation2 + $0xe7] sm:$0xff] }
  0x46   :  { %v177_v30 = vpack.c.bf16 %v144_v26, %v143_v27  ;;  %v150_v34 = vld [vmem:[#allocation2 + $0xaf] sm:$0xff]  ;;  %949 = vmatprep.subr.bf16.mxu1 %v10119_v10  ;;  %674 = vmatprep.subr.bf16.mxu0 %v10119_v10  ;;  %v145_v47 = vld [vmem:[#allocation2 + $0x67] sm:$0xff] }
  0x47   :  { %v358_v37 = vld [vmem:[#allocation2 + $0x29] sm:$0xff]  ;;  %v359_v38 = vld [vmem:[#allocation2 + $0x31] sm:$0xff]  ;;  %v180_v40 = vpack.c.bf16 %v150_v34, %v149_v36  ;;  %v9899_v25 = vld [vmem:[%s14343_s1 + $0x40] sm:$0xff]  }
  0x48   :  { %299 = vrot.lane.b32.xlu1 %v255_v59, %s10120_s26  ;;  %195 = vst.msk [vmem:[#allocation3 + $0x20] sm:$0xff] %vm28_vm0, %v177_v30  ;;  %v9883_v39 = vld [vmem:[%s14343_s1 + $0x90] sm:$0xff]   ;;  %v393_v41 = vpack.c.bf16 %v359_v38, %v358_v37  ;;  %950 = vmatpush1.bf16.msra.mxu1 %v9892_v31  ;;  %v157_v50 = vld [vmem:[#allocation2 + $0x127] sm:$0xff] }
  0x49   :  { %309 = vrot.lane.b32.xlu0 %v260_v15, %s10120_s26  ;;  %198 = vst.msk [vmem:[#allocation3 + $0x50] sm:$0xff] %vm28_vm0, %v180_v40  ;;  %v154_v43 = vld [vmem:[#allocation2 + $0xef] sm:$0xff]  ;;  %675 = vmatpush1.bf16.msra.mxu0 %v9883_v39  ;;  %v161_v61 = vld [vmem:[#allocation2 + $0x167] sm:$0xff] }
  0x4a   :  { %411 = vst.msk [vmem:[#allocation3 + $0x18] sm:$0xff] %vm28_vm0, %v393_v41  ;;  %v182_v46 = vpack.c.bf16 %v154_v43, %v153_v44  ;;  %951 = vmatprep.subr.bf16.mxu1 %v10119_v10  ;;  %v146_v48 = vld [vmem:[#allocation2 + $0x6f] sm:$0xff]  ;;  %676 = vmatprep.subr.bf16.mxu0 %v10119_v10  ;;  %v147_v4 = vld [vmem:[#allocation2 + $0x87] sm:$0xff] }
  0x4b   :  { %v158_v49 = vld [vmem:[#allocation2 + $0x12f] sm:$0xff]  ;;  %v178_v51 = vpack.c.bf16 %v146_v48, %v145_v47  ;;  %v165_v7 = vld [vmem:[#allocation2 + $0x1a7] sm:$0xff] }
  0x4c   :  { %303 = vrot.lane.b32.xlu1 %v257_v2, %s10120_s26  ;;  %200 = vst.msk [vmem:[#allocation3 + $0x70] sm:$0xff] %vm28_vm0, %v182_v46  ;;  %v184_v52 = vpack.c.bf16 %v158_v49, %v157_v50  ;;  %v360_v53 = vld [vmem:[#allocation2 + $0x49] sm:$0xff]  ;;  %952 = vmatpush1.bf16.msra.mxu1 %v9894_v45  ;;  %v363_v11 = vld [vmem:[#allocation2 + $0x71] sm:$0xff] }
  0x4d   :  { %313 = vrot.lane.b32.xlu0 %v262_v24, %s10120_s26  ;;  %v243_v55 = vld [vmem:[#allocation2 + $0x208] sm:$0xff]  ;;  %v244_v56 = vld [vmem:[#allocation2 + $0x210] sm:$0xff]  ;;  %v394_v57 = vpack.c.bf16 %v361_v54, %v360_v53  ;;  %196 = vst.msk [vmem:[#allocation3 + $0x30] sm:$0xff] %vm28_vm0, %v178_v51  ;;  %677 = vmatpush1.bf16.msra.mxu0 %v9884_v42  ;;  %v9903_v54 = vld [vmem:[%s14343_s1 + $0x58] sm:$0xff]  }
  0x4e   :  { %v263_v58 = vpack.c.bf16 %v244_v56, %v243_v55  ;;  %v9895_v59 = vld [vmem:[%s14343_s1 + $0x28] sm:$0xff]   ;;  %202 = vst.msk [vmem:[#allocation3 + $0x90] sm:$0xff] %vm28_vm0, %v184_v52  ;;  %953 = vmatprep.subr.bf16.mxu1 %v10119_v10  ;;  %678 = vmatprep.subr.bf16.mxu0 %v10119_v10  ;;  %v9896_v2 = vld [vmem:[%s14343_s1 + $0x30] sm:$0xff]  }
  0x4f   :  { %v162_v60 = vld [vmem:[#allocation2 + $0x16f] sm:$0xff]  ;;  %412 = vst.msk [vmem:[#allocation3 + $0x28] sm:$0xff] %vm28_vm0, %v394_v57  ;;  %v169_v14 = vld [vmem:[#allocation2 + $0x1e7] sm:$0xff] }
  0x50   :  { %307 = vrot.lane.b32.xlu1 %v259_v13, %s10120_s26  ;;  %v186_v63 = vpack.c.bf16 %v162_v60, %v161_v61  ;;  %v9887_v1 = vld [vmem:[%s14343_s1 + $0xa8] sm:$0xff]   ;;  %954 = vmatpush1.bf16.msra.mxu1 %v9895_v59  ;;  %v9889_v17 = vld [vmem:[%s14343_s1 + $0xb0] sm:$0xff]  }
  0x51   :  { %283 = vrot.lane.b32.xlu0 %v247_v35, %s10120_s26  ;;  %v10562_v0 = vld [vmem:[#allocation3 + $0x18] sm:$0xff]  ;;  %v148_v3 = vld [vmem:[#allocation2 + $0x8f] sm:$0xff]  ;;  %679 = vmatpush1.bf16.msra.mxu0 %v9885_v62  ;;  %v139_v18 = vld [vmem:[#allocation2 + $0x7] sm:$0xff] }
  0x52   :  { %9045 = vmatprep.mubr.msk.bf16.mxu0 %vm28_vm0, %v10562_v0  ;;  %204 = vst.msk [vmem:[#allocation3 + $0xb0] sm:$0xff] %vm28_vm0, %v186_v63  ;;  %v179_v5 = vpack.c.bf16 %v148_v3, %v147_v4  ;;  %v166_v6 = vld [vmem:[#allocation2 + $0x1af] sm:$0xff]  ;;  %955 = vmatprep.subr.bf16.mxu1 %v10119_v10  ;;  %v151_v27 = vld [vmem:[#allocation2 + $0xc7] sm:$0xff] }
  0x53   :  { %v362_v8 = vld [vmem:[#allocation2 + $0x69] sm:$0xff]  ;;  %v188_v9 = vpack.c.bf16 %v166_v6, %v165_v7  ;;  %680 = vmatprep.subr.bf16.mxu0 %v10119_v10  ;;  %v365_v22 = vld [vmem:[#allocation2 + $0x91] sm:$0xff] }
  0x54   :  { %311 = vrot.lane.b32.xlu1 %v261_v29, %s10120_s26  ;;  %197 = vst.msk [vmem:[#allocation3 + $0x40] sm:$0xff] %vm28_vm0, %v179_v5  ;;  %v395_v12 = vpack.c.bf16 %v363_v11, %v362_v8  ;;  %v170_v13 = vld [vmem:[#allocation2 + $0x1ef] sm:$0xff]  ;;  %956 = vmatpush1.bf16.msra.mxu1 %v9896_v2  ;;  %v155_v40 = vld [vmem:[#allocation2 + $0x107] sm:$0xff] }
  0x55   :  { %206 = vst.msk [vmem:[#allocation3 + $0xd0] sm:$0xff] %vm28_vm0, %v188_v9  ;;  %v190_v15 = vpack.c.bf16 %v170_v13, %v169_v14  ;;  %681 = vmatpush1.bf16.msra.mxu0 %v9887_v1  ;;  %957 = vmatprep.subr.bf16.mxu1 %v10119_v10  ;;  %v140_v19 = vld [vmem:[#allocation2 + $0xf] sm:$0xff]  ;;  %v159_v50 = vld [vmem:[#allocation2 + $0x147] sm:$0xff] }
  0x56   :  { %413 = vst.msk [vmem:[#allocation3 + $0x38] sm:$0xff] %vm28_vm0, %v395_v12  ;;  %682 = vmatprep.subr.bf16.mxu0 %v10119_v10  ;;  %v175_v20 = vpack.c.bf16 %v140_v19, %v139_v18  ;;  %v364_v21 = vld [vmem:[#allocation2 + $0x89] sm:$0xff]  ;;  %v367_v29 = vld [vmem:[#allocation2 + $0xb1] sm:$0xff] }
  0x57   :  { %208 = vst.msk [vmem:[#allocation3 + $0xf0] sm:$0xff] %vm28_vm0, %v190_v15  ;;  %v396_v24 = vpack.c.bf16 %v365_v22, %v364_v21  ;;  %v152_v26 = vld [vmem:[#allocation2 + $0xcf] sm:$0xff]  ;;  %v163_v1 = vld [vmem:[#allocation2 + $0x187] sm:$0xff] }
  0x58   :  { %315 = vrot.lane.b32.xlu1 %v263_v58, %s10120_s26  ;;  %958 = vmatpush1.bf16.msra.mxu1 %v9898_v16  ;;  %193 = vst.msk [vmem:[#allocation3] sm:$0xff] %vm28_vm0, %v175_v20  ;;  %v366_v28 = vld [vmem:[#allocation2 + $0xa9] sm:$0xff]  ;;  %v181_v30 = vpack.c.bf16 %v152_v26, %v151_v27  ;;  %v357_v33 = vld [vmem:[#allocation2 + $0x11] sm:$0xff] }
  0x59   :  { %683 = vmatpush1.bf16.msra.mxu0 %v9889_v17  ;;  %959 = vmatprep.subr.bf16.mxu1 %v10119_v10  ;;  %414 = vst.msk [vmem:[#allocation3 + $0x48] sm:$0xff] %vm28_vm0, %v396_v24  ;;  %v397_v31 = vpack.c.bf16 %v367_v29, %v366_v28  ;;  %v356_v32 = vld [vmem:[#allocation2 + $0x9] sm:$0xff]  ;;  %v369_v37 = vld [vmem:[#allocation2 + $0xd1] sm:$0xff] }
  0x5a   :  { %684 = vmatprep.subr.bf16.mxu0 %v10119_v10  ;;  %v9900_v34 = vld [vmem:[%s14343_s1 + $0x48] sm:$0xff]   ;;  %v392_v35 = vpack.c.bf16 %v357_v33, %v356_v32  ;;  %199 = vst.msk [vmem:[#allocation3 + $0x60] sm:$0xff] %vm28_vm0, %v181_v30  ;;  %v371_v42 = vld [vmem:[#allocation2 + $0xf1] sm:$0xff] }
  0x5b   :  { %415 = vst.msk [vmem:[#allocation3 + $0x58] sm:$0xff] %vm28_vm0, %v397_v31  ;;  %v368_v36 = vld [vmem:[#allocation2 + $0xc9] sm:$0xff]  ;;  %v373_v47 = vld [vmem:[#allocation2 + $0x111] sm:$0xff]  ;;  %v9893_v31 = vld [vmem:[%s14343_s1 + $0xc0] sm:$0xff]  }
  0x5c   :  { %960 = vmatpush1.bf16.msra.mxu1 %v9899_v25  ;;  %410 = vst.msk [vmem:[#allocation3 + $0x8] sm:$0xff] %vm28_vm0, %v392_v35  ;;  %v398_v38 = vpack.c.bf16 %v369_v37, %v368_v36  ;;  %v156_v39 = vld [vmem:[#allocation2 + $0x10f] sm:$0xff]  ;;  %v167_v11 = vld [vmem:[#allocation2 + $0x1c7] sm:$0xff] }
  0x5d   :  { %685 = vmatpush1.bf16.msra.mxu0 %v9891_v23  ;;  %961 = vmatprep.subr.bf16.mxu1 %v10119_v10  ;;  %v370_v41 = vld [vmem:[#allocation2 + $0xe9] sm:$0xff]  ;;  %v183_v43 = vpack.c.bf16 %v156_v39, %v155_v40  ;;  %v375_v53 = vld [vmem:[#allocation2 + $0x131] sm:$0xff] }
  0x5e   :  { %1282 = vmatprep.subr.bf16.mxu0 %v10119_v10  ;;  %416 = vst.msk [vmem:[#allocation3 + $0x68] sm:$0xff] %vm28_vm0, %v398_v38  ;;  %v399_v44 = vpack.c.bf16 %v371_v42, %v370_v41  ;;  %v9902_v45 = vld [vmem:[%s14343_s1 + $0x50] sm:$0xff]   ;;  %v171_v20 = vld [vmem:[#allocation2 + $0x207] sm:$0xff]  ;;  %v10659_v41 = vld [vmem:[#allocation3 + $0x38] sm:$0xff] }
  0x5f   :  { %v372_v46 = vld [vmem:[#allocation2 + $0x109] sm:$0xff]  ;;  %201 = vst.msk [vmem:[#allocation3 + $0x80] sm:$0xff] %vm28_vm0, %v183_v43  ;;  %v377_v58 = vld [vmem:[#allocation2 + $0x151] sm:$0xff] }
  0x60   :  { %962 = vmatpush1.bf16.msra.mxu1 %v9900_v34  ;;  %417 = vst.msk [vmem:[#allocation3 + $0x78] sm:$0xff] %vm28_vm0, %v399_v44  ;;  %v400_v48 = vpack.c.bf16 %v373_v47, %v372_v46  ;;  %v160_v49 = vld [vmem:[#allocation2 + $0x14f] sm:$0xff]  ;;  %v9904_v44 = vld [vmem:[%s14343_s1 + $0xd8] sm:$0xff]  }
  0x61   :  { %963 = vmatprep.subr.bf16.mxu1 %v10119_v10  ;;  %v374_v51 = vld [vmem:[#allocation2 + $0x129] sm:$0xff]  ;;  %v185_v52 = vpack.c.bf16 %v160_v49, %v159_v50  ;;  %v379_v61 = vld [vmem:[#allocation2 + $0x171] sm:$0xff] }
  0x62   :  { %418 = vst.msk [vmem:[#allocation3 + $0x88] sm:$0xff] %vm28_vm0, %v400_v48  ;;  %v401_v55 = vpack.c.bf16 %v375_v53, %v374_v51  ;;  %v376_v56 = vld [vmem:[#allocation2 + $0x149] sm:$0xff]  ;;  %v381_v4 = vld [vmem:[#allocation2 + $0x191] sm:$0xff]  ;;  %v9905_v48 = vld [vmem:[%s14343_s1 + $0xe0] sm:$0xff]  }
  0x63   :  { %v429_v57 = vld [vmem:[#allocation3 + $0x8] sm:$0xff]  ;;  %203 = vst.msk [vmem:[#allocation3 + $0xa0] sm:$0xff] %vm28_vm0, %v185_v52  ;;  %v402_v59 = vpack.c.bf16 %v377_v58, %v376_v56  ;;  %v383_v7 = vld [vmem:[#allocation2 + $0x1b1] sm:$0xff] }
  0x64   :  { %964 = vmatpush1.bf16.msra.mxu1 %v9902_v45  ;;  %9073 = vmatprep.mubr.msk.bf16.mxu1 %vm28_vm0, %v429_v57  ;;  %1848 = vst.msk [vmem:[#allocation3 + $0x8] sm:$0xff] %vm28_vm0, %v392_v35  ;;  %419 = vst.msk [vmem:[#allocation3 + $0x98] sm:$0xff] %vm28_vm0, %v401_v55  ;;  %v378_v60 = vld [vmem:[#allocation2 + $0x169] sm:$0xff]  ;;  %v385_v14 = vld [vmem:[#allocation2 + $0x1d1] sm:$0xff] }
  0x65   :  { %965 = vmatprep.subr.bf16.mxu1 %v10119_v10  ;;  %420 = vst.msk [vmem:[#allocation3 + $0xa8] sm:$0xff] %vm28_vm0, %v402_v59  ;;  %v403_v62 = vpack.c.bf16 %v379_v61, %v378_v60  ;;  %v164_v63 = vld [vmem:[#allocation2 + $0x18f] sm:$0xff]  ;;  %v10697_v57 = vld [vmem:[#allocation3 + $0x58] sm:$0xff] }
  0x66   :  { %v187_v2 = vpack.c.bf16 %v164_v63, %v163_v1  ;;  %v380_v3 = vld [vmem:[#allocation2 + $0x189] sm:$0xff]  ;;  %v387_v17 = vld [vmem:[#allocation2 + $0x1f1] sm:$0xff] }
  0x67   :  { %421 = vst.msk [vmem:[#allocation3 + $0xb8] sm:$0xff] %vm28_vm0, %v403_v62  ;;  %v404_v5 = vpack.c.bf16 %v381_v4, %v380_v3  ;;  %v382_v6 = vld [vmem:[#allocation2 + $0x1a9] sm:$0xff]  ;;  %v389_v23 = vld [vmem:[#allocation2 + $0x211] sm:$0xff]  ;;  %v9909_v62 = vld [vmem:[%s14343_s1 + $0x100] sm:$0xff]  }
  0x68   :  { %966 = vmatpush1.bf16.msra.mxu1 %v9903_v54  ;;  %205 = vst.msk [vmem:[#allocation3 + $0xc0] sm:$0xff] %vm28_vm0, %v187_v2  ;;  %v405_v8 = vpack.c.bf16 %v383_v7, %v382_v6  ;;  %v168_v9 = vld [vmem:[#allocation2 + $0x1cf] sm:$0xff]  ;;  %v9908_v59 = vld [vmem:[%s14343_s1 + $0xf8] sm:$0xff]  }
  0x69   :  { %2099 = vmatprep.subr.bf16.mxu1 %v10119_v10  ;;  %422 = vst.msk [vmem:[#allocation3 + $0xc8] sm:$0xff] %vm28_vm0, %v404_v5  ;;  %v189_v12 = vpack.c.bf16 %v168_v9, %v167_v11  ;;  %v384_v13 = vld [vmem:[#allocation2 + $0x1c9] sm:$0xff]  ;;  %v10726_v3 = vld [vmem:[#allocation3 + $0x78] sm:$0xff] }
  0x6a   :  { %423 = vst.msk [vmem:[#allocation3 + $0xd8] sm:$0xff] %vm28_vm0, %v405_v8  ;;  %v406_v15 = vpack.c.bf16 %v385_v14, %v384_v13  ;;  %v386_v16 = vld [vmem:[#allocation2 + $0x1e9] sm:$0xff] }
  0x6b   :  { %207 = vst.msk [vmem:[#allocation3 + $0xe0] sm:$0xff] %vm28_vm0, %v189_v12  ;;  %v407_v18 = vpack.c.bf16 %v387_v17, %v386_v16  ;;  %v172_v19 = vld [vmem:[#allocation2 + $0x20f] sm:$0xff]  ;;  %v10757_v9 = vld [vmem:[#allocation3 + $0x98] sm:$0xff] }
  0x6c   :  { %424 = vst.msk [vmem:[#allocation3 + $0xe8] sm:$0xff] %vm28_vm0, %v406_v15  ;;  %v191_v21 = vpack.c.bf16 %v172_v19, %v171_v20  ;;  %v388_v22 = vld [vmem:[#allocation2 + $0x209] sm:$0xff] }
  0x6d   :  { %425 = vst.msk [vmem:[#allocation3 + $0xf8] sm:$0xff] %vm28_vm0, %v407_v18  ;;  %v408_v24 = vpack.c.bf16 %v389_v23, %v388_v22  ;;  %v245_v26 = vld [vmem:[#allocation2 + $0x228] sm:$0xff]  ;;  %v246_v27 = vld [vmem:[#allocation2 + $0x230] sm:$0xff] }
  0x6e   :  { %209 = vst.msk [vmem:[#allocation3 + $0x100] sm:$0xff] %vm28_vm0, %v191_v21  ;;  %v264_v28 = vpack.c.bf16 %v246_v27, %v245_v26  ;;  %v10639_v32 = vld [vmem:[#allocation3 + $0x28] sm:$0xff]  ;;  %v9901_v40 = vld [vmem:[%s14343_s1 + $0xd0] sm:$0xff]   ;;  %v10777_v14 = vld [vmem:[#allocation3 + $0xb8] sm:$0xff] }
  0x6f   :  { %426 = vst.msk [vmem:[#allocation3 + $0x108] sm:$0xff] %vm28_vm0, %v408_v24  ;;  %v9897_v36 = vld [vmem:[%s14343_s1 + $0xc8] sm:$0xff]   ;;  %v9907_v56 = vld [vmem:[%s14343_s1 + $0xf0] sm:$0xff]  }
  0x70   :  { %317 = vrot.lane.b32.xlu1 %v264_v28, %s10120_s26  ;;  %v10678_v49 = vld [vmem:[#allocation3 + $0x48] sm:$0xff]  ;;  %v9911_v4 = vld [vmem:[%s14343_s1 + $0x110] sm:$0xff]  }
  0x71   :  { %v9906_v52 = vld [vmem:[%s14343_s1 + $0xe8] sm:$0xff]  }
  0x72   :  { %v10710_v61 = vld [vmem:[#allocation3 + $0x68] sm:$0xff] }
  0x73   :  { %v9910_v2 = vld [vmem:[%s14343_s1 + $0x108] sm:$0xff]  }
  0x74   :  { %v10746_v7 = vld [vmem:[#allocation3 + $0x88] sm:$0xff] }
  0x75   :  { %v10767_v12 = vld [vmem:[#allocation3 + $0xa8] sm:$0xff] }
  0x76   :  { %v10787_v16 = vld [vmem:[#allocation3 + $0xc8] sm:$0xff] }
  0x82   :  { %v286_v25 = vpop.permute.xlu0 %285 }
  0x83   :  { %339 = vst.msk [vmem:[#allocation3 + $0x10] sm:$0xff] %vm337_vm1, %v286_v25 }
  0x8a   :  { %v10641_v35 = vld [vmem:[#allocation3 + $0x10] sm:$0xff] }
  0x8b   :  { %695 = vmatmul.mubr.bf16.vlgmr.msra.gmra.mrb[0].mxu0 %v10641_v35 }
  0x8c   :  { %1283 = vmatpush1.bf16.msra.mxu0 %v9893_v31  ;;  %9046 = vmatprep.mubr.msk.bf16.mxu0 %vm28_vm0, %v10639_v32 }
  0x8d   :  { %1284 = vmatprep.subr.bf16.mxu0 %v10119_v10 }
  0x90   :  { %1285 = vmatpush1.bf16.msra.mxu0 %v9897_v36 }
  0x91   :  { %1286 = vmatprep.subr.bf16.mxu0 %v10119_v10 }
  0x94   :  { %1287 = vmatpush1.bf16.msra.mxu0 %v9901_v40 }
  0x95   :  { %1288 = vmatprep.subr.bf16.mxu0 %v10119_v10 }
  0x98   :  { %1289 = vmatpush1.bf16.msra.mxu0 %v9904_v44 }
  0x99   :  { %1290 = vmatprep.subr.bf16.mxu0 %v10119_v10 }
  0x9c   :  { %1291 = vmatpush1.bf16.msra.mxu0 %v9905_v48 }
  0x9d   :  { %1292 = vmatprep.subr.bf16.mxu0 %v10119_v10 }
  0xa0   :  { %1293 = vmatpush1.bf16.msra.mxu0 %v9906_v52 }
  0xa1   :  { %1294 = vmatprep.subr.bf16.mxu0 %v10119_v10 }
  0xa4   :  { %1295 = vmatpush1.bf16.msra.mxu0 %v9907_v56 }
  0xa5   :  { %1296 = vmatprep.subr.bf16.mxu0 %v10119_v10 }
  0xa7   :  { %v288_v30 = vpop.permute.xlu0 %287 }
  0xa8   :  { %340 = vst.msk [vmem:[#allocation3 + $0x20] sm:$0xff] %vm337_vm1, %v288_v30  ;;  %1297 = vmatpush1.bf16.msra.mxu0 %v9908_v59 }
  0xa9   :  { %1298 = vmatprep.subr.bf16.mxu0 %v10119_v10 }
  0xab   :  { %v294_v34 = vpop.permute.xlu0 %293 }
  0xac   :  { %343 = vst.msk [vmem:[#allocation3 + $0x50] sm:$0xff] %vm337_vm1, %v294_v34  ;;  %1299 = vmatpush1.bf16.msra.mxu0 %v9909_v62 }
  0xad   :  { %1300 = vmatprep.subr.bf16.mxu0 %v10119_v10 }
  0xae   :  { %v290_v29 = vpop.permute.xlu1 %289 }
  0xaf   :  { %341 = vst.msk [vmem:[#allocation3 + $0x30] sm:$0xff] %vm337_vm1, %v290_v29  ;;  %v298_v38 = vpop.permute.xlu0 %297  ;;  %v10652_v39 = vld [vmem:[#allocation3 + $0x20] sm:$0xff] }
  0xb0   :  { %345 = vst.msk [vmem:[#allocation3 + $0x70] sm:$0xff] %vm337_vm1, %v298_v38  ;;  %703 = vmatmul.mubr.bf16.gmra.mrb[4].mxu0 %v10652_v39 }
  0xb1   :  { %9047 = vmatprep.mubr.msk.bf16.mxu0 %vm28_vm0, %v10659_v41  ;;  %1301 = vmatpush1.bf16.msra.mxu0 %v9910_v2 }
  0xb2   :  { %v292_v33 = vpop.permute.xlu1 %291  ;;  %1302 = vmatprep.subr.bf16.mxu0 %v10119_v10 }
  0xb3   :  { %342 = vst.msk [vmem:[#allocation3 + $0x40] sm:$0xff] %vm337_vm1, %v292_v33  ;;  %v302_v43 = vpop.permute.xlu0 %301  ;;  %v10708_v60 = vld [vmem:[#allocation3 + $0x50] sm:$0xff] }
  0xb4   :  { %347 = vst.msk [vmem:[#allocation3 + $0x90] sm:$0xff] %vm337_vm1, %v302_v43 }
  0xb5   :  { %1303 = vmatpush1.bf16.msra.mxu0 %v9911_v4 }
  0xb6   :  { %v296_v37 = vpop.permute.xlu1 %295  ;;  %v10671_v47 = vld [vmem:[#allocation3 + $0x30] sm:$0xff]  ;;  %1304 = vmatprep.subr.bf16.mxu0 %v10119_v10 }
  0xb7   :  { %344 = vst.msk [vmem:[#allocation3 + $0x60] sm:$0xff] %vm337_vm1, %v296_v37  ;;  %v306_v46 = vpop.permute.xlu0 %305  ;;  %v10743_v6 = vld [vmem:[#allocation3 + $0x70] sm:$0xff] }
  0xb8   :  { %349 = vst.msk [vmem:[#allocation3 + $0xb0] sm:$0xff] %vm337_vm1, %v306_v46  ;;  %711 = vmatmul.mubr.bf16.gmra.mrb[8].mxu0 %v10671_v47 }
  0xb9   :  { %9048 = vmatprep.mubr.msk.bf16.mxu0 %vm28_vm0, %v10678_v49 }
  0xba   :  { %v300_v42 = vpop.permute.xlu1 %299  ;;  %v10690_v55 = vld [vmem:[#allocation3 + $0x40] sm:$0xff] }
  0xbb   :  { %346 = vst.msk [vmem:[#allocation3 + $0x80] sm:$0xff] %vm337_vm1, %v300_v42  ;;  %v310_v51 = vpop.permute.xlu0 %309  ;;  %v10765_v11 = vld [vmem:[#allocation3 + $0x90] sm:$0xff] }
  0xbc   :  { %351 = vst.msk [vmem:[#allocation3 + $0xd0] sm:$0xff] %vm337_vm1, %v310_v51 }
  0xbe   :  { %v304_v45 = vpop.permute.xlu1 %303  ;;  %v10731_v5 = vld [vmem:[#allocation3 + $0x60] sm:$0xff] }
  0xbf   :  { %348 = vst.msk [vmem:[#allocation3 + $0xa0] sm:$0xff] %vm337_vm1, %v304_v45  ;;  %v314_v54 = vpop.permute.xlu0 %313  ;;  %v10785_v15 = vld [vmem:[#allocation3 + $0xb0] sm:$0xff] }
  0xc0   :  { %353 = vst.msk [vmem:[#allocation3 + $0xf0] sm:$0xff] %vm337_vm1, %v314_v54  ;;  %719 = vmatmul.mubr.bf16.gmra.mrb[12].mxu0 %v10690_v55 }
  0xc1   :  { %9049 = vmatprep.mubr.msk.bf16.mxu0 %vm28_vm0, %v10697_v57 }
  0xc2   :  { %v308_v50 = vpop.permute.xlu1 %307  ;;  %v10755_v8 = vld [vmem:[#allocation3 + $0x80] sm:$0xff] }
  0xc3   :  { %350 = vst.msk [vmem:[#allocation3 + $0xc0] sm:$0xff] %vm337_vm1, %v308_v50  ;;  %v284_v58 = vpop.permute.xlu0 %283 }
  0xc4   :  { %338 = vst.msk [vmem:[#allocation3] sm:$0xff] %vm337_vm1, %v284_v58 }
  0xc6   :  { %v312_v53 = vpop.permute.xlu1 %311  ;;  %v10775_v13 = vld [vmem:[#allocation3 + $0xa0] sm:$0xff] }
  0xc7   :  { %352 = vst.msk [vmem:[#allocation3 + $0xe0] sm:$0xff] %vm337_vm1, %v312_v53 }
  0xc8   :  { %727 = vmatmul.mubr.bf16.gmra.mrb[16].mxu0 %v10708_v60 }
  0xc9   :  { %9050 = vmatprep.mubr.msk.bf16.mxu0 %vm28_vm0, %v10710_v61 }
  0xca   :  { %v316_v63 = vpop.permute.xlu1 %315 }
  0xcb   :  { %354 = vst.msk [vmem:[#allocation3 + $0x100] sm:$0xff] %vm337_vm1, %v316_v63  ;;  %v428_v1 = vld [vmem:[#allocation3] sm:$0xff] }
  0xcc   :  { %976 = vmatmul.mubr.bf16.vlgmr.msra.gmra.mrb[0].mxu1 %v428_v1 }
  0xcd   :  { %9074 = vmatprep.mubr.msk.bf16.mxu1 %vm28_vm0, %v10562_v0  ;;  %v9912_v0 = vld [vmem:[%s14343_s1 + $0x118] sm:$0xff]  }
  0xce   :  { %1305 = vmatpush1.bf16.msra.mxu0 %v9912_v0 }
  0xcf   :  { %2380 = vmatprep.subr.bf16.mxu0 %v10119_v10 }
  0xd0   :  { %735 = vmatmul.mubr.bf16.gmra.mrb[20].mxu0 %v10731_v5 }
  0xd1   :  { %9051 = vmatprep.mubr.msk.bf16.mxu0 %vm28_vm0, %v10726_v3 }
  0xd4   :  { %984 = vmatmul.mubr.bf16.gmra.mrb[4].mxu1 %v10641_v35 }
  0xd5   :  { %9075 = vmatprep.mubr.msk.bf16.mxu1 %vm28_vm0, %v10639_v32 }
  0xd8   :  { %743 = vmatmul.mubr.bf16.gmra.mrb[24].mxu0 %v10743_v6 }
  0xd9   :  { %9052 = vmatprep.mubr.msk.bf16.mxu0 %vm28_vm0, %v10746_v7 }
  0xdc   :  { %992 = vmatmul.mubr.bf16.gmra.mrb[8].mxu1 %v10652_v39 }
  0xdd   :  { %9076 = vmatprep.mubr.msk.bf16.mxu1 %vm28_vm0, %v10659_v41 }
  0xe0   :  { %751 = vmatmul.mubr.bf16.gmra.mrb[28].mxu0 %v10755_v8 }
  0xe1   :  { %9053 = vmatprep.mubr.msk.bf16.mxu0 %vm28_vm0, %v10757_v9 }
  0xe4   :  { %1000 = vmatmul.mubr.bf16.gmra.mrb[12].mxu1 %v10671_v47 }
  0xe5   :  { %9077 = vmatprep.mubr.msk.bf16.mxu1 %vm28_vm0, %v10678_v49 }
  0xe8   :  { %759 = vmatmul.mubr.bf16.gmra.mrb[32].mxu0 %v10765_v11 }
  0xe9   :  { %9054 = vmatprep.mubr.msk.bf16.mxu0 %vm28_vm0, %v10767_v12 }
  0xec   :  { %1008 = vmatmul.mubr.bf16.gmra.mrb[16].mxu1 %v10690_v55 }
  0xed   :  { %9078 = vmatprep.mubr.msk.bf16.mxu1 %vm28_vm0, %v10697_v57 }
  0xf0   :  { %767 = vmatmul.mubr.bf16.gmra.mrb[36].mxu0 %v10775_v13 }
  0xf1   :  { %9055 = vmatprep.mubr.msk.bf16.mxu0 %vm28_vm0, %v10777_v14 }
  0xf4   :  { %1016 = vmatmul.mubr.bf16.gmra.mrb[20].mxu1 %v10708_v60 }
  0xf5   :  { %9079 = vmatprep.mubr.msk.bf16.mxu1 %vm28_vm0, %v10710_v61 }
  0xf6   :  { %12 = vsyncpa [#allocation5], 0  ;;  %v10795_v17 = vld [vmem:[#allocation3 + $0xc0] sm:$0xff]  ;;  %v10797_v18 = vld [vmem:[#allocation3 + $0xd8] sm:$0xff]  ;;  %v318_v30 = vpop.permute.xlu1 %317  ;;  %s10121_s25 = smov [#allocation4]  }
  0xf7   :  { %v10805_v19 = vld [vmem:[#allocation3 + $0xd0] sm:$0xff]  ;;  %v10807_v20 = vld [vmem:[#allocation3 + $0xe8] sm:$0xff]  ;;  %v10815_v21 = vld [vmem:[#allocation3 + $0xe0] sm:$0xff] }
  0xf8   :  { %775 = vmatmul.mubr.bf16.gmra.mrb[40].mxu0 %v10785_v15  ;;  %v10817_v22 = vld [vmem:[#allocation3 + $0xf8] sm:$0xff]  ;;  %v173_v23 = vld [vmem:[#allocation2 + $0x227] sm:$0xff]  ;;  %v174_v24 = vld [vmem:[#allocation2 + $0x22f] sm:$0xff] }
  0xf9   :  { %9056 = vmatprep.mubr.msk.bf16.mxu0 %vm28_vm0, %v10787_v16  ;;  %v390_v25 = vld [vmem:[#allocation2 + $0x229] sm:$0xff]  ;;  %v192_v27 = vpack.c.bf16 %v174_v24, %v173_v23  ;;  %v391_v28 = vld [vmem:[#allocation2 + $0x231] sm:$0xff]  ;;  %v515_v33 = vld [vmem:[#allocation3 + $0x100] sm:$0xff] }
  0xfa   :  { %v10825_v26 = vld [vmem:[#allocation3 + $0xf0] sm:$0xff]  ;;  %v10827_v29 = vld [vmem:[#allocation3 + $0x108] sm:$0xff]  ;;  %v409_v31 = vpack.c.bf16 %v391_v28, %v390_v25  ;;  %v9913_v44 = vld [vmem:[%s14345_s3 + $0x60] sm:$0xff]  }
  0xfb   :  { %210 = vst.msk [vmem:[#allocation3 + $0x110] sm:$0xff] %vm28_vm0, %v192_v27  ;;  %2100 = vmatpush1.bf16.msra.mxu1 %v9913_v44  ;;  %v9914_v51 = vld [vmem:[%s14345_s3 + $0x68] sm:$0xff]  }
  0xfc   :  { %1024 = vmatmul.mubr.bf16.gmra.mrb[24].mxu1 %v10731_v5  ;;  %355 = vst.msk [vmem:[#allocation3 + $0x110] sm:$0xff] %vm337_vm1, %v318_v30  ;;  %2101 = vmatprep.subr.bf16.mxu1 %v10119_v10 }
  0xfd   :  { %9080 = vmatprep.mubr.msk.bf16.mxu1 %vm28_vm0, %v10726_v3  ;;  %427 = vst.msk [vmem:[#allocation3 + $0x118] sm:$0xff] %vm28_vm0, %v409_v31 }
  0xff   :  { %2102 = vmatpush1.bf16.msra.mxu1 %v9914_v51 }
 0x100   :  { %783 = vmatmul.mubr.bf16.gmra.mrb[44].mxu0 %v10795_v17  ;;  %2103 = vmatprep.subr.bf16.mxu1 %v10119_v10 }
 0x101   :  { %9057 = vmatprep.mubr.msk.bf16.mxu0 %vm28_vm0, %v10797_v18 }
 0x103   :  { %v1135_v59 = vld [vmem:[#allocation3 + $0x110] sm:$0xff] }
 0x104   :  { %1032 = vmatmul.mubr.bf16.gmra.mrb[28].mxu1 %v10743_v6  ;;  %v1136_v34 = vld [vmem:[#allocation3 + $0x118] sm:$0xff] }
 0x105   :  { %9081 = vmatprep.mubr.msk.bf16.mxu1 %vm28_vm0, %v10746_v7  ;;  %1865 = vst.msk [vmem:[#allocation3 + $0x118] sm:$0xff] %vm28_vm0, %v409_v31 }
 0x108   :  { %791 = vmatmul.mubr.bf16.gmra.mrb[48].mxu0 %v10805_v19 }
 0x109   :  { %9058 = vmatprep.mubr.msk.bf16.mxu0 %vm28_vm0, %v10807_v20 }
 0x10c   :  { %1040 = vmatmul.mubr.bf16.gmra.mrb[32].mxu1 %v10755_v8 }
 0x10d   :  { %9082 = vmatprep.mubr.msk.bf16.mxu1 %vm28_vm0, %v10757_v9 }
 0x110   :  { %799 = vmatmul.mubr.bf16.gmra.mrb[52].mxu0 %v10815_v21 }
 0x111   :  { %9059 = vmatprep.mubr.msk.bf16.mxu0 %vm28_vm0, %v10817_v22 }
 0x114   :  { %1048 = vmatmul.mubr.bf16.gmra.mrb[36].mxu1 %v10765_v11 }
 0x115   :  { %9083 = vmatprep.mubr.msk.bf16.mxu1 %vm28_vm0, %v10767_v12 }
 0x118   :  { %807 = vmatmul.mubr.bf16.gmra.mrb[56].mxu0 %v10825_v26 }
 0x119   :  { %9060 = vmatprep.mubr.msk.bf16.mxu0 %vm28_vm0, %v10827_v29 }
 0x11c   :  { %1056 = vmatmul.mubr.bf16.gmra.mrb[40].mxu1 %v10775_v13 }
 0x11d   :  { %9084 = vmatprep.mubr.msk.bf16.mxu1 %vm28_vm0, %v10777_v14 }
 0x120   :  { %815 = vmatmul.mubr.bf16.gmra.mrb[60].mxu0 %v515_v33 }
 0x121   :  { %9125 = vmatprep.mubr.msk.bf16.mxu0 %vm28_vm0, %v10639_v32 }
 0x124   :  { %1064 = vmatmul.mubr.bf16.gmra.mrb[44].mxu1 %v10785_v15 }
 0x125   :  { %9085 = vmatprep.mubr.msk.bf16.mxu1 %vm28_vm0, %v10787_v16 }
 0x128   :  { %1315 = vmatmul.mubr.bf16.vlgmr.msra.gmra.mrb[64].mxu0 %v10652_v39 }
 0x129   :  { %9126 = vmatprep.mubr.msk.bf16.mxu0 %vm28_vm0, %v10659_v41 }
 0x12c   :  { %1072 = vmatmul.mubr.bf16.gmra.mrb[48].mxu1 %v10795_v17 }
 0x12d   :  { %9086 = vmatprep.mubr.msk.bf16.mxu1 %vm28_vm0, %v10797_v18 }
 0x130   :  { %1323 = vmatmul.mubr.bf16.gmra.mrb[68].mxu0 %v10671_v47 }
 0x131   :  { %9127 = vmatprep.mubr.msk.bf16.mxu0 %vm28_vm0, %v10678_v49 }
 0x134   :  { %1080 = vmatmul.mubr.bf16.gmra.mrb[52].mxu1 %v10805_v19 }
 0x135   :  { %9087 = vmatprep.mubr.msk.bf16.mxu1 %vm28_vm0, %v10807_v20 }
 0x138   :  { %1331 = vmatmul.mubr.bf16.gmra.mrb[72].mxu0 %v10690_v55 }
 0x139   :  { %9128 = vmatprep.mubr.msk.bf16.mxu0 %vm28_vm0, %v10697_v57 }
 0x13c   :  { %1088 = vmatmul.mubr.bf16.gmra.mrb[56].mxu1 %v10815_v21 }
 0x13d   :  { %9088 = vmatprep.mubr.msk.bf16.mxu1 %vm28_vm0, %v10817_v22 }
 0x140   :  { %1339 = vmatmul.mubr.bf16.gmra.mrb[76].mxu0 %v10708_v60 }
 0x141   :  { %9129 = vmatprep.mubr.msk.bf16.mxu0 %vm28_vm0, %v10710_v61 }
 0x144   :  { %1096 = vmatmul.mubr.bf16.gmra.mrb[60].mxu1 %v10825_v26 }
 0x148   :  { %1347 = vmatmul.mubr.bf16.gmra.mrb[80].mxu0 %v10731_v5  ;;  %v9915_v5 = vld [vmem:[%s14345_s3 + $0x70] sm:$0xff]  }
 0x149   :  { %9130 = vmatprep.mubr.msk.bf16.mxu0 %vm28_vm0, %v10726_v3  ;;  %2104 = vmatpush1.bf16.msra.mxu1 %v9915_v5 }
 0x14a   :  { %2105 = vmatprep.subr.bf16.mxu1 %v10119_v10 }
 0x150   :  { %1355 = vmatmul.mubr.bf16.gmra.mrb[84].mxu0 %v10743_v6 }
 0x151   :  { %9131 = vmatprep.mubr.msk.bf16.mxu0 %vm28_vm0, %v10746_v7 }
 0x158   :  { %1363 = vmatmul.mubr.bf16.gmra.mrb[88].mxu0 %v10755_v8 }
 0x159   :  { %9132 = vmatprep.mubr.msk.bf16.mxu0 %vm28_vm0, %v10757_v9 }
 0x15e   :  { %v696_v32 = vpop.f32.mrb[0].mxu0 }
 0x15f   :  { %v698_v35 = vpop.f32.mrb[1].mxu0 }
 0x160   :  { %1371 = vmatmul.mubr.bf16.gmra.mrb[92].mxu0 %v10765_v11  ;;  %v699_v36 = vpop.f32.mrb[2].mxu0 }
 0x161   :  { %9133 = vmatprep.mubr.msk.bf16.mxu0 %vm28_vm0, %v10767_v12  ;;  %v701_v37 = vpop.f32.mrb[3].mxu0 }
 0x168   :  { %1379 = vmatmul.mubr.bf16.gmra.mrb[96].mxu0 %v10775_v13 }
 0x169   :  { %9134 = vmatprep.mubr.msk.bf16.mxu0 %vm28_vm0, %v10777_v14 }
 0x170   :  { %1387 = vmatmul.mubr.bf16.gmra.mrb[100].mxu0 %v10785_v15 }
 0x171   :  { %9135 = vmatprep.mubr.msk.bf16.mxu0 %vm28_vm0, %v10787_v16  ;;  %v9916_v16 = vld [vmem:[%s14345_s3 + $0x78] sm:$0xff]  }
 0x172   :  { %2106 = vmatpush1.bf16.msra.mxu1 %v9916_v16 }
 0x173   :  { %2107 = vmatprep.subr.bf16.mxu1 %v10119_v10 }
 0x178   :  { %1395 = vmatmul.mubr.bf16.gmra.mrb[104].mxu0 %v10795_v17 }
 0x179   :  { %9136 = vmatprep.mubr.msk.bf16.mxu0 %vm28_vm0, %v10797_v18 }
 0x180   :  { %1403 = vmatmul.mubr.bf16.gmra.mrb[108].mxu0 %v10805_v19 }
 0x181   :  { %9137 = vmatprep.mubr.msk.bf16.mxu0 %vm28_vm0, %v10807_v20 }
 0x183   :  { %v704_v38 = vpop.f32.mrb[4].mxu0 }
 0x184   :  { %v706_v39 = vpop.f32.mrb[5].mxu0 }
 0x185   :  { %v707_v40 = vpop.f32.mrb[6].mxu0 }
 0x186   :  { %v709_v41 = vpop.f32.mrb[7].mxu0 }
 0x188   :  { %1411 = vmatmul.mubr.bf16.gmra.mrb[112].mxu0 %v10815_v21 }
 0x189   :  { %9138 = vmatprep.mubr.msk.bf16.mxu0 %vm28_vm0, %v10817_v22 }
 0x18b   :  { %v712_v42 = vpop.f32.mrb[8].mxu0 }
 0x18c   :  { %v714_v43 = vpop.f32.mrb[9].mxu0 }
 0x18d   :  { %v715_v45 = vpop.f32.mrb[10].mxu0 }
 0x18e   :  { %v717_v46 = vpop.f32.mrb[11].mxu0 }
 0x190   :  { %1419 = vmatmul.mubr.bf16.gmra.mrb[116].mxu0 %v10825_v26 }
 0x191   :  { %9139 = vmatprep.mubr.msk.bf16.mxu0 %vm28_vm0, %v10827_v29 }
 0x193   :  { %v720_v47 = vpop.f32.mrb[12].mxu0 }
 0x194   :  { %v722_v48 = vpop.f32.mrb[13].mxu0 }
 0x195   :  { %v723_v49 = vpop.f32.mrb[14].mxu0  ;;  %v9918_v48 = vld [vmem:[%s14345_s3 + $0x88] sm:$0xff]  }
 0x196   :  { %v725_v50 = vpop.f32.mrb[15].mxu0 }
 0x198   :  { %1427 = vmatmul.mubr.bf16.gmra.mrb[120].mxu0 %v515_v33  ;;  %v9917_v33 = vld [vmem:[%s14345_s3 + $0x80] sm:$0xff]  }
 0x199   :  { %9140 = vmatprep.mubr.msk.bf16.mxu0 %vm28_vm0, %v1136_v34  ;;  %2108 = vmatpush1.bf16.msra.mxu1 %v9917_v33 }
 0x19a   :  { %2109 = vmatprep.subr.bf16.mxu1 %v10119_v10 }
 0x19b   :  { %v728_v52 = vpop.f32.mrb[16].mxu0 }
 0x19c   :  { %v730_v55 = vpop.f32.mrb[17].mxu0 }
 0x19d   :  { %v731_v57 = vpop.f32.mrb[18].mxu0  ;;  %2110 = vmatpush1.bf16.msra.mxu1 %v9918_v48 }
 0x19e   :  { %v733_v61 = vpop.f32.mrb[19].mxu0  ;;  %2111 = vmatprep.subr.bf16.mxu1 %v10119_v10 }
 0x19f   :  { %v977_v53 = vpop.f32.mrb[0].mxu1  ;;  %v9919_v61 = vld [vmem:[%s14345_s3 + $0x90] sm:$0xff]  }
 0x1a0   :  { %v10904_v54 = vadd.f32 %v977_v53, %v696_v32  ;;  %v979_v56 = vpop.f32.mrb[1].mxu1  ;;  %1435 = vmatmul.mubr.bf16.gmra.mrb[124].mxu0 %v1135_v59 }
 0x1a1   :  { %v980_v58 = vpop.f32.mrb[2].mxu1  ;;  %2112 = vmatpush1.bf16.msra.mxu1 %v9919_v61 }
 0x1a2   :  { %v10907_v60 = vadd.f32 %v980_v58, %v699_v36  ;;  %v982_v62 = vpop.f32.mrb[3].mxu1  ;;  %2113 = vmatprep.subr.bf16.mxu1 %v10119_v10 }
 0x1a3   :  { %v736_v63 = vpop.f32.mrb[20].mxu0 }
 0x1a4   :  { %v738_v3 = vpop.f32.mrb[21].mxu0 }
 0x1a5   :  { %v739_v0 = vpop.f32.mrb[22].mxu0 }
 0x1a6   :  { %v741_v8 = vpop.f32.mrb[23].mxu0 }
 0x1a7   :  { %v985_v1 = vpop.f32.mrb[4].mxu1 }
 0x1a8   :  { %v10909_v2 = vadd.f32 %v985_v1, %v704_v38  ;;  %v987_v4 = vpop.f32.mrb[5].mxu1 }
 0x1a9   :  { %v988_v6 = vpop.f32.mrb[6].mxu1 }
 0x1aa   :  { %v10914_v7 = vadd.f32 %v988_v6, %v707_v40  ;;  %v990_v9 = vpop.f32.mrb[7].mxu1 }
 0x1ab   :  { %v744_v11 = vpop.f32.mrb[24].mxu0 }
 0x1ac   :  { %v746_v14 = vpop.f32.mrb[25].mxu0 }
 0x1ad   :  { %v747_v17 = vpop.f32.mrb[26].mxu0 }
 0x1ae   :  { %v749_v20 = vpop.f32.mrb[27].mxu0 }
 0x1af   :  { %v993_v12 = vpop.f32.mrb[8].mxu1 }
 0x1b0   :  { %v10917_v13 = vadd.f32 %v993_v12, %v712_v42  ;;  %v995_v15 = vpop.f32.mrb[9].mxu1 }
 0x1b1   :  { %v996_v18 = vpop.f32.mrb[10].mxu1 }
 0x1b2   :  { %v10922_v19 = vadd.f32 %v996_v18, %v715_v45  ;;  %v998_v21 = vpop.f32.mrb[11].mxu1 }
 0x1b3   :  { %v752_v22 = vpop.f32.mrb[28].mxu0 }
 0x1b4   :  { %v754_v25 = vpop.f32.mrb[29].mxu0 }
 0x1b5   :  { %v755_v27 = vpop.f32.mrb[30].mxu0 }
 0x1b6   :  { %v757_v30 = vpop.f32.mrb[31].mxu0 }
 0x1b7   :  { %v1001_v23 = vpop.f32.mrb[12].mxu1 }
 0x1b8   :  { %v10925_v24 = vadd.f32 %v1001_v23, %v720_v47  ;;  %v1003_v26 = vpop.f32.mrb[13].mxu1 }
 0x1b9   :  { %v1004_v28 = vpop.f32.mrb[14].mxu1 }
 0x1ba   :  { %v10927_v29 = vadd.f32 %v1004_v28, %v723_v49  ;;  %v1006_v31 = vpop.f32.mrb[15].mxu1 }
 0x1bb   :  { %v760_v34 = vpop.f32.mrb[32].mxu0 }
 0x1bc   :  { %v762_v36 = vpop.f32.mrb[33].mxu0 }
 0x1bd   :  { %v763_v38 = vpop.f32.mrb[34].mxu0 }
 0x1be   :  { %v765_v41 = vpop.f32.mrb[35].mxu0 }
 0x1bf   :  { %v1009_v32 = vpop.f32.mrb[16].mxu1 }
 0x1c0   :  { %v10932_v35 = vadd.f32 %v1009_v32, %v728_v52  ;;  %v1011_v37 = vpop.f32.mrb[17].mxu1 }
 0x1c1   :  { %v1012_v39 = vpop.f32.mrb[18].mxu1 }
 0x1c2   :  { %v10935_v40 = vadd.f32 %v1012_v39, %v731_v57  ;;  %v1014_v42 = vpop.f32.mrb[19].mxu1 }
 0x1c3   :  { %v768_v43 = vpop.f32.mrb[36].mxu0 }
 0x1c4   :  { %v770_v46 = vpop.f32.mrb[37].mxu0 }
 0x1c5   :  { %v771_v49 = vpop.f32.mrb[38].mxu0 }
 0x1c6   :  { %v773_v52 = vpop.f32.mrb[39].mxu0 }
 0x1c7   :  { %v1017_v44 = vpop.f32.mrb[20].mxu1  ;;  %v9922_v52 = vld [vmem:[%s14345_s3 + $0xa8] sm:$0xff]  }
 0x1c8   :  { %v10937_v45 = vadd.f32 %v1017_v44, %v736_v63  ;;  %v1019_v47 = vpop.f32.mrb[21].mxu1 }
 0x1c9   :  { %v1020_v50 = vpop.f32.mrb[22].mxu1 }
 0x1ca   :  { %v10942_v51 = vadd.f32 %v1020_v50, %v739_v0  ;;  %v1022_v53 = vpop.f32.mrb[23].mxu1 }
 0x1cb   :  { %v776_v55 = vpop.f32.mrb[40].mxu0 }
 0x1cc   :  { %v778_v58 = vpop.f32.mrb[41].mxu0 }
 0x1cd   :  { %v779_v62 = vpop.f32.mrb[42].mxu0 }
 0x1ce   :  { %v781_v3 = vpop.f32.mrb[43].mxu0 }
 0x1cf   :  { %v1025_v56 = vpop.f32.mrb[24].mxu1 }
 0x1d0   :  { %v10945_v57 = vadd.f32 %v1025_v56, %v744_v11  ;;  %v1027_v59 = vpop.f32.mrb[25].mxu1 }
 0x1d1   :  { %v1028_v63 = vpop.f32.mrb[26].mxu1 }
 0x1d2   :  { %v10950_v1 = vadd.f32 %v1028_v63, %v747_v17  ;;  %v1030_v4 = vpop.f32.mrb[27].mxu1  ;;  %v9920_v17 = vld [vmem:[%s14345_s3 + $0x98] sm:$0xff]  }
 0x1d3   :  { %v784_v5 = vpop.f32.mrb[44].mxu0  ;;  %2114 = vmatpush1.bf16.msra.mxu1 %v9920_v17 }
 0x1d4   :  { %v786_v8 = vpop.f32.mrb[45].mxu0  ;;  %2115 = vmatprep.subr.bf16.mxu1 %v10119_v10 }
 0x1d5   :  { %v787_v11 = vpop.f32.mrb[46].mxu0 }
 0x1d6   :  { %v789_v15 = vpop.f32.mrb[47].mxu0 }
 0x1d7   :  { %v1033_v0 = vpop.f32.mrb[28].mxu1  ;;  %v9923_v15 = vld [vmem:[%s14345_s3 + $0xb0] sm:$0xff]  }
 0x1d8   :  { %v10953_v6 = vadd.f32 %v1033_v0, %v752_v22  ;;  %v1035_v9 = vpop.f32.mrb[29].mxu1 }
 0x1d9   :  { %v1036_v12 = vpop.f32.mrb[30].mxu1 }
 0x1da   :  { %v10955_v14 = vadd.f32 %v1036_v12, %v755_v27  ;;  %v1038_v16 = vpop.f32.mrb[31].mxu1 }
 0x1db   :  { %v792_v18 = vpop.f32.mrb[48].mxu0 }
 0x1dc   :  { %v794_v23 = vpop.f32.mrb[49].mxu0 }
 0x1dd   :  { %v795_v22 = vpop.f32.mrb[50].mxu0 }
 0x1de   :  { %v797_v27 = vpop.f32.mrb[51].mxu0 }
 0x1df   :  { %v1041_v20 = vpop.f32.mrb[32].mxu1 }
 0x1e0   :  { %v10960_v21 = vadd.f32 %v1041_v20, %v760_v34  ;;  %v1043_v25 = vpop.f32.mrb[33].mxu1  ;;  %v9921_v34 = vld [vmem:[%s14345_s3 + $0xa0] sm:$0xff]  }
 0x1e1   :  { %v1044_v26 = vpop.f32.mrb[34].mxu1  ;;  %2116 = vmatpush1.bf16.msra.mxu1 %v9921_v34 }
 0x1e2   :  { %v10963_v28 = vadd.f32 %v1044_v26, %v763_v38  ;;  %v1046_v30 = vpop.f32.mrb[35].mxu1  ;;  %2117 = vmatprep.subr.bf16.mxu1 %v10119_v10 }
 0x1e3   :  { %v10965_v31 = vpop.f32.mrb[52].mxu0 }
 0x1e4   :  { %v802_v36 = vpop.f32.mrb[53].mxu0 }
 0x1e5   :  { %v10972_v39 = vpop.f32.mrb[54].mxu0  ;;  %2118 = vmatpush1.bf16.msra.mxu1 %v9922_v52 }
 0x1e6   :  { %v805_v38 = vpop.f32.mrb[55].mxu0  ;;  %2119 = vmatprep.subr.bf16.mxu1 %v10119_v10 }
 0x1e7   :  { %v1049_v33 = vpop.f32.mrb[36].mxu1 }
 0x1e8   :  { %v10967_v32 = vadd.f32 %v1049_v33, %v768_v43  ;;  %v1051_v37 = vpop.f32.mrb[37].mxu1 }
 0x1e9   :  { %v1052_v41 = vpop.f32.mrb[38].mxu1  ;;  %2120 = vmatpush1.bf16.msra.mxu1 %v9923_v15 }
 0x1ea   :  { %v10974_v42 = vadd.f32 %v1052_v41, %v771_v49  ;;  %v1054_v44 = vpop.f32.mrb[39].mxu1  ;;  %2121 = vmatprep.subr.bf16.mxu1 %v10119_v10 }
 0x1eb   :  { %v10977_v46 = vpop.f32.mrb[56].mxu0 }
 0x1ec   :  { %v810_v48 = vpop.f32.mrb[57].mxu0 }
 0x1ed   :  { %v10984_v53 = vpop.f32.mrb[58].mxu0 }
 0x1ee   :  { %v813_v58 = vpop.f32.mrb[59].mxu0 }
 0x1ef   :  { %v1057_v43 = vpop.f32.mrb[40].mxu1 }
 0x1f0   :  { %v10979_v47 = vadd.f32 %v1057_v43, %v776_v55  ;;  %v1059_v50 = vpop.f32.mrb[41].mxu1 }
 0x1f1   :  { %v1060_v49 = vpop.f32.mrb[42].mxu1 }
 0x1f2   :  { %v10986_v56 = vadd.f32 %v1060_v49, %v779_v62  ;;  %v1062_v59 = vpop.f32.mrb[43].mxu1 }
 0x1f3   :  { %v10989_v61 = vpop.f32.mrb[60].mxu0 }
 0x1f4   :  { %v818_v3 = vpop.f32.mrb[61].mxu0 }
 0x1f5   :  { %v10993_v0 = vpop.f32.mrb[62].mxu0 }
 0x1f6   :  { %v821_v12 = vpop.f32.mrb[63].mxu0 }
 0x1f7   :  { %v1065_v55 = vpop.f32.mrb[44].mxu1 }
 0x1f8   :  { %v10991_v63 = vadd.f32 %v1065_v55, %v784_v5  ;;  %v1067_v4 = vpop.f32.mrb[45].mxu1  ;;  %v11003_v5 = vld [vmem:[%s14344_s2] ss:$0 sm:$0xff] }
 0x1f9   :  { %v1068_v8 = vpop.f32.mrb[46].mxu1 }
 0x1fa   :  { %v10995_v9 = vadd.f32 %v1068_v8, %v787_v11  ;;  %v1070_v62 = vpop.f32.mrb[47].mxu1 }
 0x1fb   :  { %v1316_v17 = vpop.f32.mrb[64].mxu0 }
 0x1fc   :  { %v1443_v23 = vadd.f32 %v1316_v17, %v10904_v54  ;;  %v1318_v11 = vpop.f32.mrb[65].mxu0 }
 0x1fd   :  { %v1319_v27 = vpop.f32.mrb[66].mxu0 }
 0x1fe   :  { %v1482_v30 = vadd.f32 %v11003_v5, %v1443_v23  ;;  %v1444_v36 = vadd.f32 %v1319_v27, %v10907_v60  ;;  %v1321_v34 = vpop.f32.mrb[67].mxu0 }
 0x1ff   :  { %v1073_v16 = vpop.f32.mrb[48].mxu1 }
 0x200   :  { %v11005_v20 = vadd.f32 %v1073_v16, %v792_v18  ;;  %v1075_v25 = vpop.f32.mrb[49].mxu1  ;;  %v9924_v18 = vld [vmem:[%s14345_s3 + $0xb8] sm:$0xff]   ;;  %v1514_v54 = vmax.f32 %v1482_v30, 0.0  ;;  %v1483_v41 = vadd.f32 %v11003_v5, %v1444_v36 }
 0x201   :  { %v1076_v26 = vpop.f32.mrb[50].mxu1  ;;  %2122 = vmatpush1.bf16.msra.mxu1 %v9924_v18 }
 0x202   :  { %v11010_v33 = vadd.f32 %v1076_v26, %v795_v22  ;;  %v1078_v37 = vpop.f32.mrb[51].mxu1  ;;  %2718 = vmatprep.subr.bf16.mxu1 %v10119_v10  ;;  %1546 = vst.msk [vmem:[#allocation2 + $0x28] sm:$0xff] %vm28_vm0, %v1514_v54  ;;  %v1515_v38 = vmax.f32 %v1483_v41, 0.0 }
 0x203   :  { %v1324_v22 = vpop.f32.mrb[68].mxu0 }
 0x204   :  { %1547 = vst.msk [vmem:[#allocation2 + $0x30] sm:$0xff] %vm28_vm0, %v1515_v38  ;;  %v1445_v43 = vadd.f32 %v1324_v22, %v10909_v2  ;;  %v1326_v50 = vpop.f32.mrb[69].mxu0 }
 0x205   :  { %v1327_v49 = vpop.f32.mrb[70].mxu0 }
 0x206   :  { %v1484_v58 = vadd.f32 %v11003_v5, %v1445_v43  ;;  %v1446_v55 = vadd.f32 %v1327_v49, %v10914_v7  ;;  %v1329_v4 = vpop.f32.mrb[71].mxu0 }
 0x207   :  { %v1081_v44 = vpop.f32.mrb[52].mxu1 }
 0x208   :  { %v11021_v60 = vadd.f32 %v1081_v44, %v10965_v31  ;;  %v1083_v48 = vpop.f32.mrb[53].mxu1  ;;  %v9925_v31 = vld [vmem:[%s14345_s3] sm:$0xff]   ;;  %v1516_v8 = vmax.f32 %v1484_v58, 0.0  ;;  %v1485_v2 = vadd.f32 %v11003_v5, %v1446_v55 }
 0x209   :  { %v1084_v52 = vpop.f32.mrb[54].mxu1  ;;  %2381 = vmatpush1.bf16.msra.mxu0 %v9925_v31  ;;  %v1652_v62 = vld [vmem:[#allocation2 + $0x28] sm:$0xff] }
 0x20a   :  { %v11026_v59 = vadd.f32 %v1084_v52, %v10972_v39  ;;  %v1086_v3 = vpop.f32.mrb[55].mxu1  ;;  %2382 = vmatprep.subr.bf16.mxu0 %v10119_v10  ;;  %1548 = vst.msk [vmem:[#allocation2 + $0x48] sm:$0xff] %vm28_vm0, %v1516_v8  ;;  %v1517_v12 = vmax.f32 %v1485_v2, 0.0  ;;  %v1580_v36 = vld [vmem:[#allocation2 + $0x27] sm:$0xff] }
 0x20b   :  { %v1332_v15 = vpop.f32.mrb[72].mxu0  ;;  %v1653_v16 = vld [vmem:[#allocation2 + $0x30] sm:$0xff] }
 0x20c   :  { %v1796_v7 = vld [vmem:[#allocation2 + $0x29] sm:$0xff]  ;;  %v1797_v17 = vld [vmem:[#allocation2 + $0x31] sm:$0xff]  ;;  %1549 = vst.msk [vmem:[#allocation2 + $0x50] sm:$0xff] %vm28_vm0, %v1517_v12  ;;  %v1447_v25 = vadd.f32 %v1332_v15, %v10917_v13  ;;  %v1334_v26 = vpop.f32.mrb[73].mxu0  ;;  %v1687_v27 = vpack.c.bf16 %v1653_v16, %v1652_v62 }
 0x20d   :  { %v1831_v30 = vpack.c.bf16 %v1797_v17, %v1796_v7  ;;  %v1581_v37 = vld [vmem:[#allocation2 + $0x2f] sm:$0xff]  ;;  %v1335_v18 = vpop.f32.mrb[74].mxu0 }
 0x20e   :  { %v1615_v54 = vpack.c.bf16 %v1581_v37, %v1580_v36  ;;  %v1486_v41 = vadd.f32 %v11003_v5, %v1447_v25  ;;  %v1448_v44 = vadd.f32 %v1335_v18, %v10922_v19  ;;  %v1337_v22 = vpop.f32.mrb[75].mxu0  ;;  %1724 = vrot.lane.b32.xlu0 %v1687_v27, %s10120_s26  ;;  %v9927_v19 = vld [vmem:[%s14345_s3 + $0x8] sm:$0xff]  }
 0x20f   :  { %v1089_v39 = vpop.f32.mrb[56].mxu1  ;;  %1849 = vst.msk [vmem:[#allocation3 + $0x18] sm:$0xff] %vm28_vm0, %v1831_v30  ;;  %2383 = vmatpush1.bf16.msra.mxu0 %v9927_v19 }
 0x210   :  { %v11037_v23 = vadd.f32 %v1089_v39, %v10977_v46  ;;  %v1091_v11 = vpop.f32.mrb[57].mxu1  ;;  %1633 = vst.msk [vmem:[#allocation3 + $0x10] sm:$0xff] %vm28_vm0, %v1615_v54  ;;  %v1518_v13 = vmax.f32 %v1486_v41, 0.0  ;;  %v1487_v43 = vadd.f32 %v11003_v5, %v1448_v44  ;;  %2384 = vmatprep.subr.bf16.mxu0 %v10119_v10 }
 0x211   :  { %v1092_v34 = vpop.f32.mrb[58].mxu1  ;;  %v1654_v50 = vld [vmem:[#allocation2 + $0x48] sm:$0xff] }
 0x212   :  { %v11042_v38 = vadd.f32 %v1092_v34, %v10984_v53  ;;  %v1094_v46 = vpop.f32.mrb[59].mxu1  ;;  %1550 = vst.msk [vmem:[#allocation2 + $0x68] sm:$0xff] %vm28_vm0, %v1518_v13  ;;  %v1519_v48 = vmax.f32 %v1487_v43, 0.0  ;;  %v1582_v52 = vld [vmem:[#allocation2 + $0x47] sm:$0xff] }
 0x213   :  { %v1340_v49 = vpop.f32.mrb[76].mxu0  ;;  %v1655_v58 = vld [vmem:[#allocation2 + $0x50] sm:$0xff] }
 0x214   :  { %v1583_v55 = vld [vmem:[#allocation2 + $0x4f] sm:$0xff]  ;;  %1551 = vst.msk [vmem:[#allocation2 + $0x70] sm:$0xff] %vm28_vm0, %v1519_v48  ;;  %v1449_v31 = vadd.f32 %v1340_v49, %v10925_v24  ;;  %v1342_v2 = vpop.f32.mrb[77].mxu0  ;;  %v1688_v12 = vpack.c.bf16 %v1655_v58, %v1654_v50 }
 0x215   :  { %v1798_v3 = vld [vmem:[#allocation2 + $0x49] sm:$0xff]  ;;  %v1616_v62 = vpack.c.bf16 %v1583_v55, %v1582_v52  ;;  %v1799_v39 = vld [vmem:[#allocation2 + $0x51] sm:$0xff]  ;;  %v1343_v16 = vpop.f32.mrb[78].mxu0 }
 0x216   :  { %v1923_v7 = vld [vmem:[#allocation3 + $0x18] sm:$0xff]  ;;  %v1832_v17 = vpack.c.bf16 %v1799_v39, %v1798_v3  ;;  %v1488_v25 = vadd.f32 %v11003_v5, %v1449_v31  ;;  %v1345_v26 = vpop.f32.mrb[79].mxu0  ;;  %1726 = vrot.lane.b32.xlu1 %v1688_v12, %s10120_s26 }
 0x217   :  { %v1097_v53 = vpop.f32.mrb[60].mxu1  ;;  %9178 = vmatprep.mubr.msk.bf16.mxu1 %vm28_vm0, %v1923_v7  ;;  %1634 = vst.msk [vmem:[#allocation3 + $0x20] sm:$0xff] %vm28_vm0, %v1616_v62  ;;  %v9931_v31 = vld [vmem:[%s14345_s3 + $0x18] sm:$0xff]  }
 0x218   :  { %v11055_v4 = vadd.f32 %v1097_v53, %v10989_v61  ;;  %v1099_v8 = vpop.f32.mrb[61].mxu1  ;;  %v1450_v61 = vadd.f32 %v1343_v16, %v10927_v29  ;;  %1850 = vst.msk [vmem:[#allocation3 + $0x28] sm:$0xff] %vm28_vm0, %v1832_v17  ;;  %v1520_v27 = vmax.f32 %v1488_v25, 0.0  ;;  %v9929_v29 = vld [vmem:[%s14345_s3 + $0x10] sm:$0xff]  }
 0x219   :  { %v1100_v15 = vpop.f32.mrb[62].mxu1  ;;  %v1584_v37 = vld [vmem:[#allocation2 + $0x67] sm:$0xff]  ;;  %2385 = vmatpush1.bf16.msra.mxu0 %v9929_v29 }
 0x21a   :  { %v11061_v11 = vadd.f32 %v1100_v15, %v10993_v0  ;;  %v1102_v24 = vpop.f32.mrb[63].mxu1  ;;  %v1489_v30 = vadd.f32 %v11003_v5, %v1450_v61  ;;  %1552 = vst.msk [vmem:[#allocation2 + $0x88] sm:$0xff] %vm28_vm0, %v1520_v27  ;;  %v1656_v0 = vld [vmem:[#allocation2 + $0x68] sm:$0xff]  ;;  %2386 = vmatprep.subr.bf16.mxu0 %v10119_v10 }
 0x21b   :  { %v1348_v34 = vpop.f32.mrb[80].mxu0  ;;  %v1657_v18 = vld [vmem:[#allocation2 + $0x70] sm:$0xff] }
 0x21c   :  { %v1521_v36 = vmax.f32 %v1489_v30, 0.0  ;;  %v1585_v54 = vld [vmem:[#allocation2 + $0x6f] sm:$0xff]  ;;  %v1451_v44 = vadd.f32 %v1348_v34, %v10932_v35  ;;  %v1350_v46 = vpop.f32.mrb[81].mxu0  ;;  %v1689_v22 = vpack.c.bf16 %v1657_v18, %v1656_v0 }
 0x21d   :  { %v1800_v41 = vld [vmem:[#allocation2 + $0x69] sm:$0xff]  ;;  %v1617_v13 = vpack.c.bf16 %v1585_v54, %v1584_v37  ;;  %v1801_v43 = vld [vmem:[#allocation2 + $0x71] sm:$0xff]  ;;  %v1351_v48 = vpop.f32.mrb[82].mxu0  ;;  %2387 = vmatpush1.bf16.msra.mxu0 %v9931_v31 }
 0x21e   :  { %1553 = vst.msk [vmem:[#allocation2 + $0x90] sm:$0xff] %vm28_vm0, %v1521_v36  ;;  %v1833_v50 = vpack.c.bf16 %v1801_v43, %v1800_v41  ;;  %v1490_v52 = vadd.f32 %v11003_v5, %v1451_v44  ;;  %v1452_v19 = vadd.f32 %v1351_v48, %v10935_v40  ;;  %v1353_v53 = vpop.f32.mrb[83].mxu0  ;;  %1728 = vrot.lane.b32.xlu0 %v1689_v22, %s10120_s26 }
 0x21f   :  { %1635 = vst.msk [vmem:[#allocation3 + $0x30] sm:$0xff] %vm28_vm0, %v1617_v13  ;;  %2388 = vmatprep.subr.bf16.mxu0 %v10119_v10 }
 0x220   :  { %1851 = vst.msk [vmem:[#allocation3 + $0x38] sm:$0xff] %vm28_vm0, %v1833_v50  ;;  %v1522_v35 = vmax.f32 %v1490_v52, 0.0  ;;  %v1491_v49 = vadd.f32 %v11003_v5, %v1452_v19 }
 0x221   :  { %v1658_v55 = vld [vmem:[#allocation2 + $0x88] sm:$0xff] }
 0x222   :  { %1554 = vst.msk [vmem:[#allocation2 + $0xa8] sm:$0xff] %vm28_vm0, %v1522_v35  ;;  %v1523_v58 = vmax.f32 %v1491_v49, 0.0  ;;  %v1586_v3 = vld [vmem:[#allocation2 + $0x87] sm:$0xff] }
 0x223   :  { %v1356_v40 = vpop.f32.mrb[84].mxu0  ;;  %v9933_v49 = vld [vmem:[%s14345_s3 + $0x20] sm:$0xff]  }
 0x224   :  { %1555 = vst.msk [vmem:[#allocation2 + $0xb0] sm:$0xff] %vm28_vm0, %v1523_v58  ;;  %v1453_v62 = vadd.f32 %v1356_v40, %v10937_v45  ;;  %v1358_v39 = vpop.f32.mrb[85].mxu0  ;;  %2389 = vmatpush1.bf16.msra.mxu0 %v9933_v49 }
 0x225   :  { %v1659_v8 = vld [vmem:[#allocation2 + $0x90] sm:$0xff]  ;;  %v1359_v17 = vpop.f32.mrb[86].mxu0  ;;  %2390 = vmatprep.subr.bf16.mxu0 %v10119_v10 }
 0x226   :  { %v1587_v2 = vld [vmem:[#allocation2 + $0x8f] sm:$0xff]  ;;  %v1690_v15 = vpack.c.bf16 %v1659_v8, %v1658_v55  ;;  %v1492_v61 = vadd.f32 %v11003_v5, %v1453_v62  ;;  %v1454_v24 = vadd.f32 %v1359_v17, %v10942_v51  ;;  %v1361_v26 = vpop.f32.mrb[87].mxu0 }
 0x227   :  { %v1802_v12 = vld [vmem:[#allocation2 + $0x89] sm:$0xff]  ;;  %v1618_v16 = vpack.c.bf16 %v1587_v2, %v1586_v3  ;;  %v1803_v7 = vld [vmem:[#allocation2 + $0x91] sm:$0xff] }
 0x228   :  { %v1834_v25 = vpack.c.bf16 %v1803_v7, %v1802_v12  ;;  %1730 = vrot.lane.b32.xlu1 %v1690_v15, %s10120_s26  ;;  %v1524_v45 = vmax.f32 %v1492_v61, 0.0  ;;  %v1493_v27 = vadd.f32 %v11003_v5, %v1454_v24  ;;  %v9935_v26 = vld [vmem:[%s14345_s3 + $0x28] sm:$0xff]  }
 0x229   :  { %1636 = vst.msk [vmem:[#allocation3 + $0x40] sm:$0xff] %vm28_vm0, %v1618_v16  ;;  %v1660_v36 = vld [vmem:[#allocation2 + $0xa8] sm:$0xff]  ;;  %2391 = vmatpush1.bf16.msra.mxu0 %v9935_v26 }
 0x22a   :  { %1852 = vst.msk [vmem:[#allocation3 + $0x48] sm:$0xff] %vm28_vm0, %v1834_v25  ;;  %1556 = vst.msk [vmem:[#allocation2 + $0xc8] sm:$0xff] %vm28_vm0, %v1524_v45  ;;  %v1525_v30 = vmax.f32 %v1493_v27, 0.0  ;;  %v1588_v0 = vld [vmem:[#allocation2 + $0xa7] sm:$0xff]  ;;  %2392 = vmatprep.subr.bf16.mxu0 %v10119_v10 }
 0x22b   :  { %v1364_v37 = vpop.f32.mrb[88].mxu0  ;;  %v1661_v29 = vld [vmem:[#allocation2 + $0xb0] sm:$0xff] }
 0x22c   :  { %v1589_v34 = vld [vmem:[#allocation2 + $0xaf] sm:$0xff]  ;;  %1557 = vst.msk [vmem:[#allocation2 + $0xd0] sm:$0xff] %vm28_vm0, %v1525_v30  ;;  %v1455_v51 = vadd.f32 %v1364_v37, %v10945_v57  ;;  %v1366_v54 = vpop.f32.mrb[89].mxu0  ;;  %v1691_v41 = vpack.c.bf16 %v1661_v29, %v1660_v36 }
 0x22d   :  { %v1804_v18 = vld [vmem:[#allocation2 + $0xa9] sm:$0xff]  ;;  %v1619_v44 = vpack.c.bf16 %v1589_v34, %v1588_v0  ;;  %v1805_v46 = vld [vmem:[#allocation2 + $0xb1] sm:$0xff]  ;;  %v1367_v22 = vpop.f32.mrb[90].mxu0 }
 0x22e   :  { %v1835_v13 = vpack.c.bf16 %v1805_v46, %v1804_v18  ;;  %v1494_v43 = vadd.f32 %v11003_v5, %v1455_v51  ;;  %v1456_v48 = vadd.f32 %v1367_v22, %v10950_v1  ;;  %v1369_v50 = vpop.f32.mrb[91].mxu0  ;;  %1732 = vrot.lane.b32.xlu0 %v1691_v41, %s10120_s26 }
 0x22f   :  { %1637 = vst.msk [vmem:[#allocation3 + $0x50] sm:$0xff] %vm28_vm0, %v1619_v44 }
 0x230   :  { %1853 = vst.msk [vmem:[#allocation3 + $0x58] sm:$0xff] %vm28_vm0, %v1835_v13  ;;  %v1526_v52 = vmax.f32 %v1494_v43, 0.0  ;;  %v1495_v57 = vadd.f32 %v11003_v5, %v1456_v48  ;;  %v9937_v48 = vld [vmem:[%s14345_s3 + $0x30] sm:$0xff]  }
 0x231   :  { %v1662_v53 = vld [vmem:[#allocation2 + $0xc8] sm:$0xff]  ;;  %2393 = vmatpush1.bf16.msra.mxu0 %v9937_v48 }
 0x232   :  { %1558 = vst.msk [vmem:[#allocation2 + $0xe8] sm:$0xff] %vm28_vm0, %v1526_v52  ;;  %v1527_v19 = vmax.f32 %v1495_v57, 0.0  ;;  %v1590_v35 = vld [vmem:[#allocation2 + $0xc7] sm:$0xff]  ;;  %2394 = vmatprep.subr.bf16.mxu0 %v10119_v10 }
 0x233   :  { %v1372_v1 = vpop.f32.mrb[92].mxu0  ;;  %v1663_v58 = vld [vmem:[#allocation2 + $0xd0] sm:$0xff] }
 0x234   :  { %v1591_v55 = vld [vmem:[#allocation2 + $0xcf] sm:$0xff]  ;;  %1559 = vst.msk [vmem:[#allocation2 + $0xf0] sm:$0xff] %vm28_vm0, %v1527_v19  ;;  %v1457_v31 = vadd.f32 %v1372_v1, %v10953_v6  ;;  %v1374_v40 = vpop.f32.mrb[93].mxu0  ;;  %v1692_v8 = vpack.c.bf16 %v1663_v58, %v1662_v53 }
 0x235   :  { %v1806_v3 = vld [vmem:[#allocation2 + $0xc9] sm:$0xff]  ;;  %v1620_v2 = vpack.c.bf16 %v1591_v55, %v1590_v35  ;;  %v1807_v12 = vld [vmem:[#allocation2 + $0xd1] sm:$0xff]  ;;  %v1375_v62 = vpop.f32.mrb[94].mxu0 }
 0x236   :  { %v1836_v39 = vpack.c.bf16 %v1807_v12, %v1806_v3  ;;  %v1496_v15 = vadd.f32 %v11003_v5, %v1457_v31  ;;  %v1458_v16 = vadd.f32 %v1375_v62, %v10955_v14  ;;  %v1377_v7 = vpop.f32.mrb[95].mxu0  ;;  %1734 = vrot.lane.b32.xlu1 %v1692_v8, %s10120_s26 }
 0x237   :  { %1638 = vst.msk [vmem:[#allocation3 + $0x60] sm:$0xff] %vm28_vm0, %v1620_v2 }
 0x238   :  { %1854 = vst.msk [vmem:[#allocation3 + $0x68] sm:$0xff] %vm28_vm0, %v1836_v39  ;;  %v1528_v6 = vmax.f32 %v1496_v15, 0.0  ;;  %v1497_v17 = vadd.f32 %v11003_v5, %v1458_v16 }
 0x239   :  { %v1664_v61 = vld [vmem:[#allocation2 + $0xe8] sm:$0xff] }
 0x23a   :  { %1560 = vst.msk [vmem:[#allocation2 + $0x108] sm:$0xff] %vm28_vm0, %v1528_v6  ;;  %v1529_v25 = vmax.f32 %v1497_v17, 0.0  ;;  %v1592_v24 = vld [vmem:[#allocation2 + $0xe7] sm:$0xff] }
 0x23b   :  { %v1380_v14 = vpop.f32.mrb[96].mxu0  ;;  %v1665_v45 = vld [vmem:[#allocation2 + $0xf0] sm:$0xff] }
 0x23c   :  { %v1593_v27 = vld [vmem:[#allocation2 + $0xef] sm:$0xff]  ;;  %1561 = vst.msk [vmem:[#allocation2 + $0x110] sm:$0xff] %vm28_vm0, %v1529_v25  ;;  %v1459_v36 = vadd.f32 %v1380_v14, %v10960_v21  ;;  %v1382_v0 = vpop.f32.mrb[97].mxu0  ;;  %v1693_v37 = vpack.c.bf16 %v1665_v45, %v1664_v61 }
 0x23d   :  { %v1808_v30 = vld [vmem:[#allocation2 + $0xe9] sm:$0xff]  ;;  %v1621_v29 = vpack.c.bf16 %v1593_v27, %v1592_v24  ;;  %v1809_v34 = vld [vmem:[#allocation2 + $0xf1] sm:$0xff]  ;;  %v1383_v18 = vpop.f32.mrb[98].mxu0 }
 0x23e   :  { %v1837_v51 = vpack.c.bf16 %v1809_v34, %v1808_v30  ;;  %v1498_v54 = vadd.f32 %v11003_v5, %v1459_v36  ;;  %v1460_v41 = vadd.f32 %v1383_v18, %v10963_v28  ;;  %v1385_v44 = vpop.f32.mrb[99].mxu0  ;;  %1736 = vrot.lane.b32.xlu0 %v1693_v37, %s10120_s26 }
 0x23f   :  { %1639 = vst.msk [vmem:[#allocation3 + $0x70] sm:$0xff] %vm28_vm0, %v1621_v29  ;;  %v9939_v29 = vld [vmem:[%s14345_s3 + $0x38] sm:$0xff]  }
 0x240   :  { %1855 = vst.msk [vmem:[#allocation3 + $0x78] sm:$0xff] %vm28_vm0, %v1837_v51  ;;  %v1530_v21 = vmax.f32 %v1498_v54, 0.0  ;;  %v1499_v46 = vadd.f32 %v11003_v5, %v1460_v41  ;;  %2395 = vmatpush1.bf16.msra.mxu0 %v9939_v29 }
 0x241   :  { %v1666_v13 = vld [vmem:[#allocation2 + $0x108] sm:$0xff]  ;;  %2396 = vmatprep.subr.bf16.mxu0 %v10119_v10 }
 0x242   :  { %1562 = vst.msk [vmem:[#allocation2 + $0x128] sm:$0xff] %vm28_vm0, %v1530_v21  ;;  %v1531_v22 = vmax.f32 %v1499_v46, 0.0  ;;  %v1594_v43 = vld [vmem:[#allocation2 + $0x107] sm:$0xff] }
 0x243   :  { %v1388_v28 = vpop.f32.mrb[100].mxu0  ;;  %v1667_v50 = vld [vmem:[#allocation2 + $0x110] sm:$0xff] }
 0x244   :  { %v1595_v52 = vld [vmem:[#allocation2 + $0x10f] sm:$0xff]  ;;  %1563 = vst.msk [vmem:[#allocation2 + $0x130] sm:$0xff] %vm28_vm0, %v1531_v22  ;;  %v1461_v19 = vadd.f32 %v1388_v28, %v10967_v32  ;;  %v1390_v53 = vpop.f32.mrb[101].mxu0  ;;  %v1694_v35 = vpack.c.bf16 %v1667_v50, %v1666_v13 }
 0x245   :  { %v1810_v57 = vld [vmem:[#allocation2 + $0x109] sm:$0xff]  ;;  %v1622_v49 = vpack.c.bf16 %v1595_v52, %v1594_v43  ;;  %v1811_v1 = vld [vmem:[#allocation2 + $0x111] sm:$0xff]  ;;  %v1391_v58 = vpop.f32.mrb[102].mxu0  ;;  %v9941_v53 = vld [vmem:[%s14345_s3 + $0x40] sm:$0xff]  }
 0x246   :  { %v1838_v55 = vpack.c.bf16 %v1811_v1, %v1810_v57  ;;  %v1500_v3 = vadd.f32 %v11003_v5, %v1461_v19  ;;  %v1462_v31 = vadd.f32 %v1391_v58, %v10974_v42  ;;  %v1393_v40 = vpop.f32.mrb[103].mxu0  ;;  %1738 = vrot.lane.b32.xlu1 %v1694_v35, %s10120_s26  ;;  %2397 = vmatpush1.bf16.msra.mxu0 %v9941_v53  ;;  %v9945_v53 = vld [vmem:[%s14345_s3 + $0x50] sm:$0xff]  }
 0x247   :  { %1640 = vst.msk [vmem:[#allocation3 + $0x80] sm:$0xff] %vm28_vm0, %v1622_v49  ;;  %2398 = vmatprep.subr.bf16.mxu0 %v10119_v10 }
 0x248   :  { %1856 = vst.msk [vmem:[#allocation3 + $0x88] sm:$0xff] %vm28_vm0, %v1838_v55  ;;  %v1532_v32 = vmax.f32 %v1500_v3, 0.0  ;;  %v1501_v8 = vadd.f32 %v11003_v5, %v1462_v31 }
 0x249   :  { %v1668_v12 = vld [vmem:[#allocation2 + $0x128] sm:$0xff] }
 0x24a   :  { %1564 = vst.msk [vmem:[#allocation2 + $0x148] sm:$0xff] %vm28_vm0, %v1532_v32  ;;  %v1533_v2 = vmax.f32 %v1501_v8, 0.0  ;;  %v1596_v62 = vld [vmem:[#allocation2 + $0x127] sm:$0xff] }
 0x24b   :  { %v1396_v39 = vpop.f32.mrb[104].mxu0  ;;  %v1669_v15 = vld [vmem:[#allocation2 + $0x130] sm:$0xff] }
 0x24c   :  { %v1597_v16 = vld [vmem:[#allocation2 + $0x12f] sm:$0xff]  ;;  %1565 = vst.msk [vmem:[#allocation2 + $0x150] sm:$0xff] %vm28_vm0, %v1533_v2  ;;  %v1463_v42 = vadd.f32 %v1396_v39, %v10979_v47  ;;  %v1398_v6 = vpop.f32.mrb[105].mxu0  ;;  %v1695_v17 = vpack.c.bf16 %v1669_v15, %v1668_v12 }
 0x24d   :  { %v1812_v7 = vld [vmem:[#allocation2 + $0x129] sm:$0xff]  ;;  %v1623_v25 = vpack.c.bf16 %v1597_v16, %v1596_v62  ;;  %v1813_v61 = vld [vmem:[#allocation2 + $0x131] sm:$0xff]  ;;  %v1399_v24 = vpop.f32.mrb[106].mxu0 }
 0x24e   :  { %v1839_v26 = vpack.c.bf16 %v1813_v61, %v1812_v7  ;;  %v1502_v14 = vadd.f32 %v11003_v5, %v1463_v42  ;;  %v1464_v45 = vadd.f32 %v1399_v24, %v10986_v56  ;;  %v1401_v27 = vpop.f32.mrb[107].mxu0  ;;  %1740 = vrot.lane.b32.xlu0 %v1695_v17, %s10120_s26  ;;  %v9943_v42 = vld [vmem:[%s14345_s3 + $0x48] sm:$0xff]  }
 0x24f   :  { %1641 = vst.msk [vmem:[#allocation3 + $0x90] sm:$0xff] %vm28_vm0, %v1623_v25  ;;  %2399 = vmatpush1.bf16.msra.mxu0 %v9943_v42  ;;  %v1651_v42 = vld [vmem:[#allocation2 + $0x10] sm:$0xff] }
 0x250   :  { %1857 = vst.msk [vmem:[#allocation3 + $0x98] sm:$0xff] %vm28_vm0, %v1839_v26  ;;  %v1534_v30 = vmax.f32 %v1502_v14, 0.0  ;;  %v1503_v47 = vadd.f32 %v11003_v5, %v1464_v45  ;;  %2400 = vmatprep.subr.bf16.mxu0 %v10119_v10 }
 0x251   :  { %v1670_v0 = vld [vmem:[#allocation2 + $0x148] sm:$0xff] }
 0x252   :  { %1566 = vst.msk [vmem:[#allocation2 + $0x168] sm:$0xff] %vm28_vm0, %v1534_v30  ;;  %v1535_v36 = vmax.f32 %v1503_v47, 0.0  ;;  %v1598_v37 = vld [vmem:[#allocation2 + $0x147] sm:$0xff] }
 0x253   :  { %v1404_v56 = vpop.f32.mrb[108].mxu0  ;;  %v1671_v34 = vld [vmem:[#allocation2 + $0x150] sm:$0xff]  ;;  %2401 = vmatpush1.bf16.msra.mxu0 %v9945_v53 }
 0x254   :  { %v1599_v18 = vld [vmem:[#allocation2 + $0x14f] sm:$0xff]  ;;  %1567 = vst.msk [vmem:[#allocation2 + $0x170] sm:$0xff] %vm28_vm0, %v1535_v36  ;;  %v1465_v54 = vadd.f32 %v1404_v56, %v10991_v63  ;;  %v1406_v41 = vpop.f32.mrb[109].mxu0  ;;  %v1696_v44 = vpack.c.bf16 %v1671_v34, %v1670_v0  ;;  %2402 = vmatprep.subr.bf16.mxu0 %v10119_v10 }
 0x255   :  { %v1814_v51 = vld [vmem:[#allocation2 + $0x149] sm:$0xff]  ;;  %v1624_v21 = vpack.c.bf16 %v1599_v18, %v1598_v37  ;;  %v1815_v46 = vld [vmem:[#allocation2 + $0x151] sm:$0xff]  ;;  %v1407_v22 = vpop.f32.mrb[110].mxu0 }
 0x256   :  { %v1840_v13 = vpack.c.bf16 %v1815_v46, %v1814_v51  ;;  %v1504_v43 = vadd.f32 %v11003_v5, %v1465_v54  ;;  %v1466_v48 = vadd.f32 %v1407_v22, %v10995_v9  ;;  %v1409_v28 = vpop.f32.mrb[111].mxu0  ;;  %1742 = vrot.lane.b32.xlu1 %v1696_v44, %s10120_s26 }
 0x257   :  { %1642 = vst.msk [vmem:[#allocation3 + $0xa0] sm:$0xff] %vm28_vm0, %v1624_v21 }
 0x258   :  { %1858 = vst.msk [vmem:[#allocation3 + $0xa8] sm:$0xff] %vm28_vm0, %v1840_v13  ;;  %v1536_v63 = vmax.f32 %v1504_v43, 0.0  ;;  %v1505_v50 = vadd.f32 %v11003_v5, %v1466_v48 }
 0x259   :  { %v1672_v57 = vld [vmem:[#allocation2 + $0x168] sm:$0xff] }
 0x25a   :  { %1568 = vst.msk [vmem:[#allocation2 + $0x188] sm:$0xff] %vm28_vm0, %v1536_v63  ;;  %v1537_v52 = vmax.f32 %v1505_v50, 0.0  ;;  %v1600_v19 = vld [vmem:[#allocation2 + $0x167] sm:$0xff] }
 0x25b   :  { %v1412_v9 = vpop.f32.mrb[112].mxu0  ;;  %v1673_v35 = vld [vmem:[#allocation2 + $0x170] sm:$0xff] }
 0x25c   :  { %v1601_v49 = vld [vmem:[#allocation2 + $0x16f] sm:$0xff]  ;;  %1569 = vst.msk [vmem:[#allocation2 + $0x190] sm:$0xff] %vm28_vm0, %v1537_v52  ;;  %v1467_v58 = vadd.f32 %v1412_v9, %v11005_v20  ;;  %v1414_v55 = vpop.f32.mrb[113].mxu0  ;;  %v1697_v3 = vpack.c.bf16 %v1673_v35, %v1672_v57 }
 0x25d   :  { %v1816_v1 = vld [vmem:[#allocation2 + $0x169] sm:$0xff]  ;;  %v1625_v31 = vpack.c.bf16 %v1601_v49, %v1600_v19  ;;  %v1817_v40 = vld [vmem:[#allocation2 + $0x171] sm:$0xff]  ;;  %v1415_v32 = vpop.f32.mrb[114].mxu0 }
 0x25e   :  { %v1841_v8 = vpack.c.bf16 %v1817_v40, %v1816_v1  ;;  %v1506_v2 = vadd.f32 %v11003_v5, %v1467_v58  ;;  %v1468_v12 = vadd.f32 %v1415_v32, %v11010_v33  ;;  %v1417_v62 = vpop.f32.mrb[115].mxu0  ;;  %1744 = vrot.lane.b32.xlu0 %v1697_v3, %s10120_s26  ;;  %v1579_v9 = vld [vmem:[#allocation2 + $0xf] sm:$0xff] }
 0x25f   :  { %1643 = vst.msk [vmem:[#allocation3 + $0xb0] sm:$0xff] %vm28_vm0, %v1625_v31 }
 0x260   :  { %1859 = vst.msk [vmem:[#allocation3 + $0xb8] sm:$0xff] %vm28_vm0, %v1841_v8  ;;  %v1538_v20 = vmax.f32 %v1506_v2, 0.0  ;;  %v1507_v39 = vadd.f32 %v11003_v5, %v1468_v12 }
 0x261   :  { %v1674_v16 = vld [vmem:[#allocation2 + $0x188] sm:$0xff] }
 0x262   :  { %1570 = vst.msk [vmem:[#allocation2 + $0x1a8] sm:$0xff] %vm28_vm0, %v1538_v20  ;;  %v1539_v15 = vmax.f32 %v1507_v39, 0.0  ;;  %v1602_v7 = vld [vmem:[#allocation2 + $0x187] sm:$0xff] }
 0x263   :  { %v1420_v33 = vpop.f32.mrb[116].mxu0  ;;  %v1675_v6 = vld [vmem:[#allocation2 + $0x190] sm:$0xff] }
 0x264   :  { %v1603_v17 = vld [vmem:[#allocation2 + $0x18f] sm:$0xff]  ;;  %1571 = vst.msk [vmem:[#allocation2 + $0x1b0] sm:$0xff] %vm28_vm0, %v1539_v15  ;;  %v1469_v61 = vadd.f32 %v1420_v33, %v11021_v60  ;;  %v1422_v24 = vpop.f32.mrb[117].mxu0  ;;  %v1698_v26 = vpack.c.bf16 %v1675_v6, %v1674_v16  ;;  %v9947_v6 = vld [vmem:[%s14345_s3 + $0x58] sm:$0xff]  }
 0x265   :  { %v1818_v25 = vld [vmem:[#allocation2 + $0x189] sm:$0xff]  ;;  %v1626_v14 = vpack.c.bf16 %v1603_v17, %v1602_v7  ;;  %v1819_v45 = vld [vmem:[#allocation2 + $0x191] sm:$0xff]  ;;  %v1423_v27 = vpop.f32.mrb[118].mxu0  ;;  %2403 = vmatpush1.bf16.msra.mxu0 %v9947_v6 }
 0x266   :  { %v1842_v30 = vpack.c.bf16 %v1819_v45, %v1818_v25  ;;  %v1508_v47 = vadd.f32 %v11003_v5, %v1469_v61  ;;  %v1470_v36 = vadd.f32 %v1423_v27, %v11026_v59  ;;  %v1425_v0 = vpop.f32.mrb[119].mxu0  ;;  %1746 = vrot.lane.b32.xlu1 %v1698_v26, %s10120_s26  ;;  %v1650_v7 = vld [vmem:[#allocation2 + $0x8] sm:$0xff]  ;;  %v3231_v61 = vld [vmem:[#allocation2 + $0x11] sm:$0xff]  ;;  %3535 = vmatprep.subr.bf16.mxu0 %v10119_v10 }
 0x267   :  { %1644 = vst.msk [vmem:[#allocation3 + $0xc0] sm:$0xff] %vm28_vm0, %v1626_v14  ;;  %v1867_v17 = vld [vmem:[#allocation3 + $0x8] sm:$0xff]  ;;  %v11343_v6 = vld [vmem:[#allocation3 + $0x98] sm:$0xff] }
 0x268   :  { %1860 = vst.msk [vmem:[#allocation3 + $0xc8] sm:$0xff] %vm28_vm0, %v1842_v30  ;;  %v1540_v60 = vmax.f32 %v1508_v47, 0.0  ;;  %v1509_v37 = vadd.f32 %v11003_v5, %v1470_v36  ;;  %v3230_v25 = vld [vmem:[#allocation2 + $0x9] sm:$0xff]  ;;  %9206 = vmatprep.mubr.msk.bf16.mxu0 %vm28_vm0, %v1867_v17  ;;  %v1686_v36 = vpack.c.bf16 %v1651_v42, %v1650_v7 }
 0x269   :  { %v1676_v56 = vld [vmem:[#allocation2 + $0x1a8] sm:$0xff] }
 0x26a   :  { %1572 = vst.msk [vmem:[#allocation2 + $0x1c8] sm:$0xff] %vm28_vm0, %v1540_v60  ;;  %v1541_v29 = vmax.f32 %v1509_v37, 0.0  ;;  %v1604_v34 = vld [vmem:[#allocation2 + $0x1a7] sm:$0xff] }
 0x26b   :  { %v1428_v18 = vpop.f32.mrb[120].mxu0  ;;  %v1677_v51 = vld [vmem:[#allocation2 + $0x1b0] sm:$0xff]  ;;  %v11335_v7 = vld [vmem:[#allocation3 + $0x88] sm:$0xff] }
 0x26c   :  { %v1605_v54 = vld [vmem:[#allocation2 + $0x1af] sm:$0xff]  ;;  %1573 = vst.msk [vmem:[#allocation2 + $0x1d0] sm:$0xff] %vm28_vm0, %v1541_v29  ;;  %v1471_v59 = vadd.f32 %v1428_v18, %v11037_v23  ;;  %v1430_v44 = vpop.f32.mrb[121].mxu0  ;;  %v1699_v21 = vpack.c.bf16 %v1677_v51, %v1676_v56 }
 0x26d   :  { %v1820_v41 = vld [vmem:[#allocation2 + $0x1a9] sm:$0xff]  ;;  %v1627_v46 = vpack.c.bf16 %v1605_v54, %v1604_v34  ;;  %v1821_v22 = vld [vmem:[#allocation2 + $0x1b1] sm:$0xff]  ;;  %v1431_v13 = vpop.f32.mrb[122].mxu0 }
 0x26e   :  { %v1843_v43 = vpack.c.bf16 %v1821_v22, %v1820_v41  ;;  %v1510_v48 = vadd.f32 %v11003_v5, %v1471_v59  ;;  %v1472_v28 = vadd.f32 %v1431_v13, %v11042_v38  ;;  %v1433_v63 = vpop.f32.mrb[123].mxu0  ;;  %1748 = vrot.lane.b32.xlu0 %v1699_v21, %s10120_s26  ;;  %v1578_v38 = vld [vmem:[#allocation2 + $0x7] sm:$0xff]  ;;  %v1685_v59 = vld [vmem:[#allocation2 + $0x230] sm:$0xff] }
 0x26f   :  { %1645 = vst.msk [vmem:[#allocation3 + $0xd0] sm:$0xff] %vm28_vm0, %v1627_v46  ;;  %v11204_v55 = vpack.c.bf16 %v1579_v9, %v1578_v38  ;;  %v1684_v41 = vld [vmem:[#allocation2 + $0x228] sm:$0xff]  ;;  %v9926_v21 = vld [vmem:[%s14345_s3 + $0xc0] sm:$0xff]  }
 0x270   :  { %1861 = vst.msk [vmem:[#allocation3 + $0xd8] sm:$0xff] %vm28_vm0, %v1843_v43  ;;  %v1542_v50 = vmax.f32 %v1510_v48, 0.0  ;;  %v1511_v23 = vadd.f32 %v11003_v5, %v1472_v28  ;;  %v1703_v46 = vpack.c.bf16 %v1685_v59, %v1684_v41  ;;  %v11240_v43 = vld [vmem:[#allocation3 + $0x28] sm:$0xff]  ;;  %v9930_v28 = vld [vmem:[%s14345_s3 + $0xd0] sm:$0xff]  }
 0x271   :  { %v1678_v52 = vld [vmem:[#allocation2 + $0x1c8] sm:$0xff]  ;;  %1632 = vst.msk [vmem:[#allocation3] sm:$0xff] %vm28_vm0, %v11204_v55 }
 0x272   :  { %v1606_v57 = vld [vmem:[#allocation2 + $0x1c7] sm:$0xff]  ;;  %1574 = vst.msk [vmem:[#allocation2 + $0x1e8] sm:$0xff] %vm28_vm0, %v1542_v50  ;;  %v1543_v19 = vmax.f32 %v1511_v23, 0.0  ;;  %v11258_v23 = vld [vmem:[#allocation3 + $0x38] sm:$0xff] }
 0x273   :  { %v1436_v35 = vpop.f32.mrb[124].mxu0  ;;  %v1679_v49 = vld [vmem:[#allocation2 + $0x1d0] sm:$0xff]  ;;  %v9928_v48 = vld [vmem:[%s14345_s3 + $0xc8] sm:$0xff]  }
 0x274   :  { %v1607_v1 = vld [vmem:[#allocation2 + $0x1cf] sm:$0xff]  ;;  %1575 = vst.msk [vmem:[#allocation2 + $0x1f0] sm:$0xff] %vm28_vm0, %v1543_v19  ;;  %v1473_v3 = vadd.f32 %v1436_v35, %v11055_v4  ;;  %v1438_v31 = vpop.f32.mrb[125].mxu0  ;;  %v1700_v40 = vpack.c.bf16 %v1679_v49, %v1678_v52  ;;  %v9932_v52 = vld [vmem:[%s14345_s3 + $0xd8] sm:$0xff]  }
 0x275   :  { %v1822_v58 = vld [vmem:[#allocation2 + $0x1c9] sm:$0xff]  ;;  %v1628_v32 = vpack.c.bf16 %v1607_v1, %v1606_v57  ;;  %v1823_v8 = vld [vmem:[#allocation2 + $0x1d1] sm:$0xff]  ;;  %v1439_v2 = vpop.f32.mrb[126].mxu0  ;;  %v9934_v57 = vld [vmem:[%s14345_s3 + $0xe0] sm:$0xff]  }
 0x276   :  { %v1844_v12 = vpack.c.bf16 %v1823_v8, %v1822_v58  ;;  %v1512_v62 = vadd.f32 %v11003_v5, %v1473_v3  ;;  %v1474_v20 = vadd.f32 %v1439_v2, %v11061_v11  ;;  %v1441_v39 = vpop.f32.mrb[127].mxu0  ;;  %1750 = vrot.lane.b32.xlu1 %v1700_v40, %s10120_s26  ;;  %v11274_v38 = vld [vmem:[#allocation3 + $0x48] sm:$0xff]  ;;  %v9938_v35 = vld [vmem:[%s14345_s3 + $0xf0] sm:$0xff]   ;;  %v11290_v58 = vld [vmem:[#allocation3 + $0x58] sm:$0xff] }
 0x277   :  { %1646 = vst.msk [vmem:[#allocation3 + $0xe0] sm:$0xff] %vm28_vm0, %v1628_v32  ;;  %v9936_v9 = vld [vmem:[%s14345_s3 + $0xe8] sm:$0xff]   ;;  %v9940_v3 = vld [vmem:[%s14345_s3 + $0xf8] sm:$0xff]   ;;  %v9942_v31 = vld [vmem:[%s14345_s3 + $0x100] sm:$0xff]  }
 0x278   :  { %1862 = vst.msk [vmem:[#allocation3 + $0xe8] sm:$0xff] %vm28_vm0, %v1844_v12  ;;  %v1544_v4 = vmax.f32 %v1512_v62, 0.0  ;;  %v1513_v15 = vadd.f32 %v11003_v5, %v1474_v20  ;;  %v3266_v5 = vpack.c.bf16 %v3231_v61, %v3230_v25  ;;  %v11306_v8 = vld [vmem:[#allocation3 + $0x68] sm:$0xff]  ;;  %v9946_v12 = vld [vmem:[%s14345_s3 + $0x110] sm:$0xff]   ;;  %v11322_v39 = vld [vmem:[#allocation3 + $0x78] sm:$0xff] }
 0x279   :  { %v1680_v16 = vld [vmem:[#allocation2 + $0x1e8] sm:$0xff] }
 0x27a   :  { %v1608_v33 = vld [vmem:[#allocation2 + $0x1e7] sm:$0xff]  ;;  %1576 = vst.msk [vmem:[#allocation2 + $0x208] sm:$0xff] %vm28_vm0, %v1544_v4  ;;  %v1545_v11 = vmax.f32 %v1513_v15, 0.0  ;;  %3284 = vst.msk [vmem:[#allocation3 + $0x8] sm:$0xff] %vm28_vm0, %v3266_v5  ;;  %v9948_v4 = vld [vmem:[%s14345_s3 + $0x118] sm:$0xff]  }
 0x27b   :  { %v1681_v24 = vld [vmem:[#allocation2 + $0x1f0] sm:$0xff]  ;;  %v9944_v2 = vld [vmem:[%s14345_s3 + $0x108] sm:$0xff]  }
 0x27c   :  { %v1609_v26 = vld [vmem:[#allocation2 + $0x1ef] sm:$0xff]  ;;  %1577 = vst.msk [vmem:[#allocation2 + $0x210] sm:$0xff] %vm28_vm0, %v1545_v11  ;;  %v1701_v45 = vpack.c.bf16 %v1681_v24, %v1680_v16 }
 0x27d   :  { %v1824_v14 = vld [vmem:[#allocation2 + $0x1e9] sm:$0xff]  ;;  %v1629_v27 = vpack.c.bf16 %v1609_v26, %v1608_v33  ;;  %v1825_v30 = vld [vmem:[#allocation2 + $0x1f1] sm:$0xff] }
 0x27e   :  { %v1845_v47 = vpack.c.bf16 %v1825_v30, %v1824_v14  ;;  %1752 = vrot.lane.b32.xlu0 %v1701_v45, %s10120_s26  ;;  %v11351_v25 = vld [vmem:[#allocation3 + $0xa8] sm:$0xff]  ;;  %v11359_v26 = vld [vmem:[#allocation3 + $0xb8] sm:$0xff] }
 0x27f   :  { %1647 = vst.msk [vmem:[#allocation3 + $0xf0] sm:$0xff] %vm28_vm0, %v1629_v27  ;;  %v11367_v45 = vld [vmem:[#allocation3 + $0xc8] sm:$0xff] }
 0x280   :  { %1863 = vst.msk [vmem:[#allocation3 + $0xf8] sm:$0xff] %vm28_vm0, %v1845_v47  ;;  %v1725_v0 = vpop.permute.xlu0 %1724  ;;  %v11375_v47 = vld [vmem:[#allocation3 + $0xd8] sm:$0xff] }
 0x281   :  { %1777 = vst.msk [vmem:[#allocation3 + $0x10] sm:$0xff] %vm337_vm1, %v1725_v0  ;;  %v1682_v60 = vld [vmem:[#allocation2 + $0x208] sm:$0xff] }
 0x282   :  { %1722 = vrot.lane.b32.xlu0 %v1686_v36, %s10120_s26  ;;  %v1610_v37 = vld [vmem:[#allocation2 + $0x207] sm:$0xff] }
 0x283   :  { %v1683_v29 = vld [vmem:[#allocation2 + $0x210] sm:$0xff] }
 0x284   :  { %v1611_v56 = vld [vmem:[#allocation2 + $0x20f] sm:$0xff]  ;;  %v1702_v18 = vpack.c.bf16 %v1683_v29, %v1682_v60 }
 0x285   :  { %v1826_v34 = vld [vmem:[#allocation2 + $0x209] sm:$0xff]  ;;  %v1630_v51 = vpack.c.bf16 %v1611_v56, %v1610_v37  ;;  %v1827_v54 = vld [vmem:[#allocation2 + $0x211] sm:$0xff] }
 0x286   :  { %v1846_v44 = vpack.c.bf16 %v1827_v54, %v1826_v34  ;;  %1754 = vrot.lane.b32.xlu1 %v1702_v18, %s10120_s26  ;;  %v11383_v60 = vld [vmem:[#allocation3 + $0xe8] sm:$0xff] }
 0x287   :  { %1648 = vst.msk [vmem:[#allocation3 + $0x100] sm:$0xff] %vm28_vm0, %v1630_v51  ;;  %v11391_v56 = vld [vmem:[#allocation3 + $0xf8] sm:$0xff]  ;;  %v1612_v18 = vld [vmem:[#allocation2 + $0x227] sm:$0xff]  ;;  %v1613_v51 = vld [vmem:[#allocation2 + $0x22f] sm:$0xff] }
 0x288   :  { %1864 = vst.msk [vmem:[#allocation3 + $0x108] sm:$0xff] %vm28_vm0, %v1846_v44  ;;  %v1727_v22 = vpop.permute.xlu1 %1726  ;;  %v11236_v13 = vld [vmem:[#allocation3 + $0x10] sm:$0xff]  ;;  %v1631_v54 = vpack.c.bf16 %v1613_v51, %v1612_v18  ;;  %v9964_v51 = vld [vmem:[%s14347_s5 + $0x78] sm:$0xff]  }
 0x289   :  { %1778 = vst.msk [vmem:[#allocation3 + $0x20] sm:$0xff] %vm337_vm1, %v1727_v22  ;;  %2132 = vmatmul.mubr.bf16.vlgmr.msra.gmra.mrb[64].mxu1 %v11236_v13 }
 0x28a   :  { %2719 = vmatpush1.bf16.msra.mxu1 %v9926_v21  ;;  %9179 = vmatprep.mubr.msk.bf16.mxu1 %vm28_vm0, %v11240_v43  ;;  %1649 = vst.msk [vmem:[#allocation3 + $0x110] sm:$0xff] %vm28_vm0, %v1631_v54 }
 0x28b   :  { %2720 = vmatprep.subr.bf16.mxu1 %v10119_v10  ;;  %1756 = vrot.lane.b32.xlu1 %v1703_v46, %s10120_s26  ;;  %v1869_v46 = vld [vmem:[#allocation3 + $0x18] sm:$0xff] }
 0x28e   :  { %2721 = vmatpush1.bf16.msra.mxu1 %v9928_v48  ;;  %v3264_v48 = vld [vmem:[#allocation2 + $0x229] sm:$0xff] }
 0x28f   :  { %2722 = vmatprep.subr.bf16.mxu1 %v10119_v10  ;;  %3158 = vrot.lane.b32.xlu1 %v1686_v36, %s10120_s26  ;;  %v11400_v44 = vld [vmem:[#allocation3 + $0x108] sm:$0xff] }
 0x290   :  { %v1729_v63 = vpop.permute.xlu0 %1728  ;;  %v11254_v50 = vld [vmem:[#allocation3 + $0x20] sm:$0xff] }
 0x291   :  { %1779 = vst.msk [vmem:[#allocation3 + $0x30] sm:$0xff] %vm337_vm1, %v1729_v63  ;;  %2140 = vmatmul.mubr.bf16.gmra.mrb[68].mxu1 %v11254_v50 }
 0x292   :  { %9180 = vmatprep.mubr.msk.bf16.mxu1 %vm28_vm0, %v11258_v23  ;;  %2723 = vmatpush1.bf16.msra.mxu1 %v9930_v28  ;;  %v3265_v28 = vld [vmem:[#allocation2 + $0x231] sm:$0xff] }
 0x293   :  { %2724 = vmatprep.subr.bf16.mxu1 %v10119_v10 }
 0x296   :  { %2725 = vmatpush1.bf16.msra.mxu1 %v9932_v52  ;;  %v3283_v52 = vpack.c.bf16 %v3265_v28, %v3264_v48 }
 0x297   :  { %2726 = vmatprep.subr.bf16.mxu1 %v10119_v10 }
 0x298   :  { %v11270_v53 = vld [vmem:[#allocation3 + $0x30] sm:$0xff] }
 0x299   :  { %2148 = vmatmul.mubr.bf16.gmra.mrb[72].mxu1 %v11270_v53 }
 0x29a   :  { %v1731_v19 = vpop.permute.xlu1 %1730  ;;  %9181 = vmatprep.mubr.msk.bf16.mxu1 %vm28_vm0, %v11274_v38  ;;  %2727 = vmatpush1.bf16.msra.mxu1 %v9934_v57  ;;  %v11412_v57 = vld [vmem:[#allocation3 + $0x118] sm:$0xff] }
 0x29b   :  { %1780 = vst.msk [vmem:[#allocation3 + $0x40] sm:$0xff] %vm337_vm1, %v1731_v19  ;;  %2728 = vmatprep.subr.bf16.mxu1 %v10119_v10  ;;  %v9954_v19 = vld [vmem:[%s14347_s5 + $0x28] sm:$0xff]  }
 0x29c   :  { %3301 = vst.msk [vmem:[#allocation3 + $0x118] sm:$0xff] %vm28_vm0, %v3283_v52 }
 0x29e   :  { %2729 = vmatpush1.bf16.msra.mxu1 %v9936_v9 }
 0x29f   :  { %2730 = vmatprep.subr.bf16.mxu1 %v10119_v10 }
 0x2a0   :  { %v1733_v49 = vpop.permute.xlu0 %1732 }
 0x2a1   :  { %1781 = vst.msk [vmem:[#allocation3 + $0x50] sm:$0xff] %vm337_vm1, %v1733_v49 }
 0x2a2   :  { %v11286_v1 = vld [vmem:[#allocation3 + $0x40] sm:$0xff]  ;;  %2731 = vmatpush1.bf16.msra.mxu1 %v9938_v35  ;;  %v9955_v35 = vld [vmem:[%s14347_s5 + $0x30] sm:$0xff]  }
 0x2a3   :  { %2156 = vmatmul.mubr.bf16.gmra.mrb[76].mxu1 %v11286_v1  ;;  %2732 = vmatprep.subr.bf16.mxu1 %v10119_v10 }
 0x2a4   :  { %9182 = vmatprep.mubr.msk.bf16.mxu1 %vm28_vm0, %v11290_v58 }
 0x2a6   :  { %2733 = vmatpush1.bf16.msra.mxu1 %v9940_v3 }
 0x2a7   :  { %2734 = vmatprep.subr.bf16.mxu1 %v10119_v10 }
 0x2a8   :  { %v1735_v40 = vpop.permute.xlu1 %1734  ;;  %v11302_v32 = vld [vmem:[#allocation3 + $0x50] sm:$0xff] }
 0x2a9   :  { %1782 = vst.msk [vmem:[#allocation3 + $0x60] sm:$0xff] %vm337_vm1, %v1735_v40  ;;  %v9957_v40 = vld [vmem:[%s14347_s5 + $0x40] sm:$0xff]  }
 0x2aa   :  { %2735 = vmatpush1.bf16.msra.mxu1 %v9942_v31 }
 0x2ab   :  { %2164 = vmatmul.mubr.bf16.gmra.mrb[80].mxu1 %v11302_v32  ;;  %2736 = vmatprep.subr.bf16.mxu1 %v10119_v10 }
 0x2ac   :  { %9183 = vmatprep.mubr.msk.bf16.mxu1 %vm28_vm0, %v11306_v8 }
 0x2ae   :  { %2737 = vmatpush1.bf16.msra.mxu1 %v9944_v2 }
 0x2af   :  { %2738 = vmatprep.subr.bf16.mxu1 %v10119_v10 }
 0x2b0   :  { %v1737_v62 = vpop.permute.xlu0 %1736  ;;  %v11318_v20 = vld [vmem:[#allocation3 + $0x60] sm:$0xff] }
 0x2b1   :  { %1783 = vst.msk [vmem:[#allocation3 + $0x70] sm:$0xff] %vm337_vm1, %v1737_v62  ;;  %v9958_v62 = vld [vmem:[%s14347_s5 + $0x60] sm:$0xff]  }
 0x2b2   :  { %2739 = vmatpush1.bf16.msra.mxu1 %v9946_v12 }
 0x2b3   :  { %2172 = vmatmul.mubr.bf16.gmra.mrb[84].mxu1 %v11318_v20  ;;  %2740 = vmatprep.subr.bf16.mxu1 %v10119_v10 }
 0x2b4   :  { %9184 = vmatprep.mubr.msk.bf16.mxu1 %vm28_vm0, %v11322_v39 }
 0x2b6   :  { %2741 = vmatpush1.bf16.msra.mxu1 %v9948_v4  ;;  %v9960_v4 = vld [vmem:[%s14347_s5 + $0x50] sm:$0xff]  }
 0x2b7   :  { %3816 = vmatprep.subr.bf16.mxu1 %v10119_v10 }
 0x2b8   :  { %v1739_v15 = vpop.permute.xlu1 %1738  ;;  %v11331_v16 = vld [vmem:[#allocation3 + $0x70] sm:$0xff] }
 0x2b9   :  { %1784 = vst.msk [vmem:[#allocation3 + $0x80] sm:$0xff] %vm337_vm1, %v1739_v15 }
 0x2bb   :  { %2180 = vmatmul.mubr.bf16.gmra.mrb[88].mxu1 %v11331_v16 }
 0x2bc   :  { %9185 = vmatprep.mubr.msk.bf16.mxu1 %vm28_vm0, %v11335_v7 }
 0x2c0   :  { %v1741_v42 = vpop.permute.xlu0 %1740  ;;  %v11339_v33 = vld [vmem:[#allocation3 + $0x80] sm:$0xff] }
 0x2c1   :  { %1785 = vst.msk [vmem:[#allocation3 + $0x90] sm:$0xff] %vm337_vm1, %v1741_v42 }
 0x2c3   :  { %2188 = vmatmul.mubr.bf16.gmra.mrb[92].mxu1 %v11339_v33 }
 0x2c4   :  { %9186 = vmatprep.mubr.msk.bf16.mxu1 %vm28_vm0, %v11343_v6 }
 0x2c8   :  { %v1743_v11 = vpop.permute.xlu1 %1742  ;;  %v11347_v17 = vld [vmem:[#allocation3 + $0x90] sm:$0xff] }
 0x2c9   :  { %1786 = vst.msk [vmem:[#allocation3 + $0xa0] sm:$0xff] %vm337_vm1, %v1743_v11  ;;  %v9962_v11 = vld [vmem:[%s14347_s5 + $0x68] sm:$0xff]  }
 0x2cb   :  { %2196 = vmatmul.mubr.bf16.gmra.mrb[96].mxu1 %v11347_v17 }
 0x2cc   :  { %9187 = vmatprep.mubr.msk.bf16.mxu1 %vm28_vm0, %v11351_v25 }
 0x2d0   :  { %v1745_v61 = vpop.permute.xlu0 %1744  ;;  %v11355_v24 = vld [vmem:[#allocation3 + $0xa0] sm:$0xff] }
 0x2d1   :  { %1787 = vst.msk [vmem:[#allocation3 + $0xb0] sm:$0xff] %vm337_vm1, %v1745_v61 }
 0x2d3   :  { %2204 = vmatmul.mubr.bf16.gmra.mrb[100].mxu1 %v11355_v24 }
 0x2d4   :  { %9188 = vmatprep.mubr.msk.bf16.mxu1 %vm28_vm0, %v11359_v26 }
 0x2d8   :  { %v1747_v14 = vpop.permute.xlu1 %1746  ;;  %v11363_v5 = vld [vmem:[#allocation3 + $0xb0] sm:$0xff] }
 0x2d9   :  { %1788 = vst.msk [vmem:[#allocation3 + $0xc0] sm:$0xff] %vm337_vm1, %v1747_v14  ;;  %v3303_v14 = vld [vmem:[#allocation3 + $0x8] sm:$0xff] }
 0x2db   :  { %2212 = vmatmul.mubr.bf16.gmra.mrb[104].mxu1 %v11363_v5 }
 0x2dc   :  { %9189 = vmatprep.mubr.msk.bf16.mxu1 %vm28_vm0, %v11367_v45 }
 0x2e0   :  { %v1749_v27 = vpop.permute.xlu0 %1748  ;;  %v11371_v30 = vld [vmem:[#allocation3 + $0xc0] sm:$0xff] }
 0x2e1   :  { %1789 = vst.msk [vmem:[#allocation3 + $0xd0] sm:$0xff] %vm337_vm1, %v1749_v27 }
 0x2e3   :  { %2220 = vmatmul.mubr.bf16.gmra.mrb[108].mxu1 %v11371_v30 }
 0x2e4   :  { %9190 = vmatprep.mubr.msk.bf16.mxu1 %vm28_vm0, %v11375_v47 }
 0x2e8   :  { %v1751_v36 = vpop.permute.xlu1 %1750  ;;  %v11379_v0 = vld [vmem:[#allocation3 + $0xd0] sm:$0xff] }
 0x2e9   :  { %1790 = vst.msk [vmem:[#allocation3 + $0xe0] sm:$0xff] %vm337_vm1, %v1751_v36 }
 0x2eb   :  { %2228 = vmatmul.mubr.bf16.gmra.mrb[112].mxu1 %v11379_v0 }
 0x2ec   :  { %9191 = vmatprep.mubr.msk.bf16.mxu1 %vm28_vm0, %v11383_v60 }
 0x2f0   :  { %v1753_v37 = vpop.permute.xlu0 %1752  ;;  %v11387_v29 = vld [vmem:[#allocation3 + $0xe0] sm:$0xff] }
 0x2f1   :  { %1791 = vst.msk [vmem:[#allocation3 + $0xf0] sm:$0xff] %vm337_vm1, %v1753_v37 }
 0x2f3   :  { %2236 = vmatmul.mubr.bf16.gmra.mrb[116].mxu1 %v11387_v29 }
 0x2f4   :  { %9192 = vmatprep.mubr.msk.bf16.mxu1 %vm28_vm0, %v11391_v56  ;;  %v1723_v34 = vpop.permute.xlu0 %1722 }
 0x2f5   :  { %1776 = vst.msk [vmem:[#allocation3] sm:$0xff] %vm337_vm1, %v1723_v34 }
 0x2f8   :  { %v1755_v41 = vpop.permute.xlu1 %1754  ;;  %v11396_v59 = vld [vmem:[#allocation3 + $0xf0] sm:$0xff] }
 0x2f9   :  { %1792 = vst.msk [vmem:[#allocation3 + $0x100] sm:$0xff] %vm337_vm1, %v1755_v41 }
 0x2fb   :  { %2244 = vmatmul.mubr.bf16.gmra.mrb[120].mxu1 %v11396_v59 }
 0x2fc   :  { %9193 = vmatprep.mubr.msk.bf16.mxu1 %vm28_vm0, %v11400_v44  ;;  %v1866_v21 = vld [vmem:[#allocation3] sm:$0xff] }
 0x2fd   :  { %2413 = vmatmul.mubr.bf16.vlgmr.msra.gmra.mrb[128].mxu0 %v1866_v21  ;;  %v1757_v22 = vpop.permute.xlu1 %1756  ;;  %3068 = vst.msk [vmem:[#allocation3] sm:$0xff] %vm28_vm0, %v11204_v55  ;;  %v9949_v55 = vld [vmem:[%s14347_s5] sm:$0xff]  }
 0x2fe   :  { %9207 = vmatprep.mubr.msk.bf16.mxu0 %vm28_vm0, %v1869_v46  ;;  %1793 = vst.msk [vmem:[#allocation3 + $0x110] sm:$0xff] %vm337_vm1, %v1757_v22  ;;  %3536 = vmatpush1.bf16.msra.mxu0 %v9958_v62  ;;  %v9965_v22 = vld [vmem:[%s14347_s5 + $0x80] sm:$0xff]  }
 0x2ff   :  { %3537 = vmatprep.subr.bf16.mxu0 %v10119_v10 }
 0x300   :  { %v11409_v63 = vld [vmem:[#allocation3 + $0x100] sm:$0xff] }
 0x302   :  { %3538 = vmatpush1.bf16.msra.mxu0 %v9962_v11 }
 0x303   :  { %2252 = vmatmul.mubr.bf16.gmra.mrb[124].mxu1 %v11409_v63  ;;  %3539 = vmatprep.subr.bf16.mxu0 %v10119_v10 }
 0x304   :  { %9258 = vmatprep.mubr.msk.bf16.mxu1 %vm28_vm0, %v11240_v43 }
 0x305   :  { %2421 = vmatmul.mubr.bf16.gmra.mrb[132].mxu0 %v11236_v13  ;;  %v9950_v13 = vld [vmem:[%s14347_s5 + $0x8] sm:$0xff]  }
 0x306   :  { %9208 = vmatprep.mubr.msk.bf16.mxu0 %vm28_vm0, %v11240_v43  ;;  %v9951_v43 = vld [vmem:[%s14347_s5 + $0x10] sm:$0xff]  }
 0x30b   :  { %2751 = vmatmul.mubr.bf16.vlgmr.msra.gmra.mrb[128].mxu1 %v11254_v50 }
 0x30c   :  { %9259 = vmatprep.mubr.msk.bf16.mxu1 %vm28_vm0, %v11258_v23  ;;  %3817 = vmatpush1.bf16.msra.mxu1 %v9949_v55 }
 0x30d   :  { %2429 = vmatmul.mubr.bf16.gmra.mrb[136].mxu0 %v11254_v50  ;;  %3818 = vmatprep.subr.bf16.mxu1 %v10119_v10  ;;  %v9952_v50 = vld [vmem:[%s14347_s5 + $0x18] sm:$0xff]  }
 0x30e   :  { %9209 = vmatprep.mubr.msk.bf16.mxu0 %vm28_vm0, %v11258_v23  ;;  %v9953_v23 = vld [vmem:[%s14347_s5 + $0x20] sm:$0xff]  }
 0x310   :  { %3819 = vmatpush1.bf16.msra.mxu1 %v9950_v13  ;;  %v9966_v13 = vld [vmem:[%s14347_s5 + $0x88] sm:$0xff]  }
 0x311   :  { %3820 = vmatprep.subr.bf16.mxu1 %v10119_v10 }
 0x313   :  { %2759 = vmatmul.mubr.bf16.gmra.mrb[132].mxu1 %v11270_v53 }
 0x314   :  { %9260 = vmatprep.mubr.msk.bf16.mxu1 %vm28_vm0, %v11274_v38  ;;  %3821 = vmatpush1.bf16.msra.mxu1 %v9951_v43 }
 0x315   :  { %2437 = vmatmul.mubr.bf16.gmra.mrb[140].mxu0 %v11270_v53  ;;  %3822 = vmatprep.subr.bf16.mxu1 %v10119_v10 }
 0x316   :  { %9210 = vmatprep.mubr.msk.bf16.mxu0 %vm28_vm0, %v11274_v38 }
 0x318   :  { %3823 = vmatpush1.bf16.msra.mxu1 %v9952_v50 }
 0x319   :  { %3824 = vmatprep.subr.bf16.mxu1 %v10119_v10 }
 0x31b   :  { %2767 = vmatmul.mubr.bf16.gmra.mrb[136].mxu1 %v11286_v1 }
 0x31c   :  { %9261 = vmatprep.mubr.msk.bf16.mxu1 %vm28_vm0, %v11290_v58  ;;  %3825 = vmatpush1.bf16.msra.mxu1 %v9953_v23 }
 0x31d   :  { %2445 = vmatmul.mubr.bf16.gmra.mrb[144].mxu0 %v11286_v1  ;;  %3826 = vmatprep.subr.bf16.mxu1 %v10119_v10  ;;  %v9956_v1 = vld [vmem:[%s14347_s5 + $0x38] sm:$0xff]  }
 0x31e   :  { %9211 = vmatprep.mubr.msk.bf16.mxu0 %vm28_vm0, %v11290_v58 }
 0x320   :  { %3827 = vmatpush1.bf16.msra.mxu1 %v9954_v19 }
 0x321   :  { %3828 = vmatprep.subr.bf16.mxu1 %v10119_v10 }
 0x323   :  { %2775 = vmatmul.mubr.bf16.gmra.mrb[140].mxu1 %v11302_v32 }
 0x324   :  { %9262 = vmatprep.mubr.msk.bf16.mxu1 %vm28_vm0, %v11306_v8  ;;  %3829 = vmatpush1.bf16.msra.mxu1 %v9955_v35 }
 0x325   :  { %2453 = vmatmul.mubr.bf16.gmra.mrb[148].mxu0 %v11302_v32  ;;  %3830 = vmatprep.subr.bf16.mxu1 %v10119_v10 }
 0x326   :  { %9212 = vmatprep.mubr.msk.bf16.mxu0 %vm28_vm0, %v11306_v8  ;;  %v9959_v8 = vld [vmem:[%s14347_s5 + $0x48] sm:$0xff]  }
 0x328   :  { %3831 = vmatpush1.bf16.msra.mxu1 %v9956_v1 }
 0x329   :  { %3832 = vmatprep.subr.bf16.mxu1 %v10119_v10 }
 0x32b   :  { %2783 = vmatmul.mubr.bf16.gmra.mrb[144].mxu1 %v11318_v20 }
 0x32c   :  { %9263 = vmatprep.mubr.msk.bf16.mxu1 %vm28_vm0, %v11322_v39  ;;  %3833 = vmatpush1.bf16.msra.mxu1 %v9957_v40 }
 0x32d   :  { %2461 = vmatmul.mubr.bf16.gmra.mrb[152].mxu0 %v11318_v20  ;;  %3834 = vmatprep.subr.bf16.mxu1 %v10119_v10 }
 0x32e   :  { %9213 = vmatprep.mubr.msk.bf16.mxu0 %vm28_vm0, %v11322_v39  ;;  %v3159_v39 = vpop.permute.xlu1 %3158 }
 0x32f   :  { %3212 = vst.msk [vmem:[#allocation3] sm:$0xff] %vm337_vm1, %v3159_v39 }
 0x330   :  { %3835 = vmatpush1.bf16.msra.mxu1 %v9959_v8  ;;  %v9968_v8 = vld [vmem:[%s14347_s5 + $0x98] sm:$0xff]  }
 0x331   :  { %3836 = vmatprep.subr.bf16.mxu1 %v10119_v10 }
 0x333   :  { %2791 = vmatmul.mubr.bf16.gmra.mrb[148].mxu1 %v11331_v16 }
 0x334   :  { %9264 = vmatprep.mubr.msk.bf16.mxu1 %vm28_vm0, %v11335_v7  ;;  %3837 = vmatpush1.bf16.msra.mxu1 %v9960_v4 }
 0x335   :  { %2469 = vmatmul.mubr.bf16.gmra.mrb[156].mxu0 %v11331_v16  ;;  %3838 = vmatprep.subr.bf16.mxu1 %v10119_v10  ;;  %v9961_v16 = vld [vmem:[%s14347_s5 + $0x58] sm:$0xff]  }
 0x336   :  { %9214 = vmatprep.mubr.msk.bf16.mxu0 %vm28_vm0, %v11335_v7 }
 0x338   :  { %3839 = vmatpush1.bf16.msra.mxu1 %v9961_v16 }
 0x339   :  { %5146 = vmatprep.subr.bf16.mxu1 %v10119_v10 }
 0x33b   :  { %2799 = vmatmul.mubr.bf16.gmra.mrb[152].mxu1 %v11339_v33 }
 0x33c   :  { %9265 = vmatprep.mubr.msk.bf16.mxu1 %vm28_vm0, %v11343_v6 }
 0x33d   :  { %2477 = vmatmul.mubr.bf16.gmra.mrb[160].mxu0 %v11339_v33 }
 0x33e   :  { %9215 = vmatprep.mubr.msk.bf16.mxu0 %vm28_vm0, %v11343_v6 }
 0x343   :  { %2807 = vmatmul.mubr.bf16.gmra.mrb[156].mxu1 %v11347_v17 }
 0x344   :  { %9266 = vmatprep.mubr.msk.bf16.mxu1 %vm28_vm0, %v11351_v25 }
 0x345   :  { %2485 = vmatmul.mubr.bf16.gmra.mrb[164].mxu0 %v11347_v17  ;;  %v4842_v17 = vld [vmem:[#allocation2 + $0x249] sm:$0xff] }
 0x346   :  { %9216 = vmatprep.mubr.msk.bf16.mxu0 %vm28_vm0, %v11351_v25  ;;  %v4843_v25 = vld [vmem:[#allocation2 + $0x251] sm:$0xff] }
 0x34b   :  { %2815 = vmatmul.mubr.bf16.gmra.mrb[160].mxu1 %v11355_v24 }
 0x34c   :  { %9267 = vmatprep.mubr.msk.bf16.mxu1 %vm28_vm0, %v11359_v26 }
 0x34d   :  { %2493 = vmatmul.mubr.bf16.gmra.mrb[168].mxu0 %v11355_v24  ;;  %v4878_v24 = vpack.c.bf16 %v4843_v25, %v4842_v17 }
 0x34e   :  { %9217 = vmatprep.mubr.msk.bf16.mxu0 %vm28_vm0, %v11359_v26 }
 0x34f   :  { %4896 = vst.msk [vmem:[#allocation3 + $0x8] sm:$0xff] %vm28_vm0, %v4878_v24  ;;  %v9970_v24 = vld [vmem:[%s14347_s5 + $0xa8] sm:$0xff]  }
 0x353   :  { %2823 = vmatmul.mubr.bf16.gmra.mrb[164].mxu1 %v11363_v5 }
 0x354   :  { %9268 = vmatprep.mubr.msk.bf16.mxu1 %vm28_vm0, %v11367_v45 }
 0x355   :  { %2501 = vmatmul.mubr.bf16.gmra.mrb[172].mxu0 %v11363_v5  ;;  %v9408_v5 = vld [vmem:[%s14342_s0 + $0x100] sm:$0xff] }
 0x356   :  { %9218 = vmatprep.mubr.msk.bf16.mxu0 %vm28_vm0, %v11367_v45  ;;  %v9409_v45 = vld [vmem:[%s14342_s0 + $0x108] sm:$0xff]  ;;  %4594 = vst.msk [vmem:[#allocation2 + $0x268] sm:$0xff] %vm28_vm0, %v9408_v5 }
 0x357   :  { %4595 = vst.msk [vmem:[#allocation2 + $0x270] sm:$0xff] %vm28_vm0, %v9409_v45 }
 0x35b   :  { %2831 = vmatmul.mubr.bf16.gmra.mrb[168].mxu1 %v11371_v30 }
 0x35c   :  { %9269 = vmatprep.mubr.msk.bf16.mxu1 %vm28_vm0, %v11375_v47  ;;  %v11506_v53 = vpop.f32.mrb[64].mxu1 }
 0x35d   :  { %v2135_v38 = vpop.f32.mrb[65].mxu1  ;;  %2509 = vmatmul.mubr.bf16.gmra.mrb[176].mxu0 %v11371_v30  ;;  %v2571_v30 = vld [vmem:[#allocation3 + $0x110] sm:$0xff] }
 0x35e   :  { %v11510_v9 = vpop.f32.mrb[66].mxu1  ;;  %9219 = vmatprep.mubr.msk.bf16.mxu0 %vm28_vm0, %v11375_v47  ;;  %v9967_v38 = vld [vmem:[%s14347_s5 + $0x90] sm:$0xff]  }
 0x35f   :  { %v2138_v49 = vpop.f32.mrb[67].mxu1 }
 0x363   :  { %2839 = vmatmul.mubr.bf16.gmra.mrb[172].mxu1 %v11379_v0 }
 0x364   :  { %9270 = vmatprep.mubr.msk.bf16.mxu1 %vm28_vm0, %v11383_v60  ;;  %v11524_v58 = vpop.f32.mrb[68].mxu1 }
 0x365   :  { %v2143_v3 = vpop.f32.mrb[69].mxu1  ;;  %2517 = vmatmul.mubr.bf16.gmra.mrb[180].mxu0 %v11379_v0 }
 0x366   :  { %v11528_v31 = vpop.f32.mrb[70].mxu1  ;;  %9220 = vmatprep.mubr.msk.bf16.mxu0 %vm28_vm0, %v11383_v60  ;;  %v9963_v60 = vld [vmem:[%s14347_s5 + $0x70] sm:$0xff]  }
 0x367   :  { %v2146_v32 = vpop.f32.mrb[71].mxu1  ;;  %3540 = vmatpush1.bf16.msra.mxu0 %v9963_v60 }
 0x368   :  { %3541 = vmatprep.subr.bf16.mxu0 %v10119_v10 }
 0x36b   :  { %2847 = vmatmul.mubr.bf16.gmra.mrb[176].mxu1 %v11387_v29  ;;  %3542 = vmatpush1.bf16.msra.mxu0 %v9964_v51 }
 0x36c   :  { %9271 = vmatprep.mubr.msk.bf16.mxu1 %vm28_vm0, %v11391_v56  ;;  %v11542_v2 = vpop.f32.mrb[72].mxu1  ;;  %3543 = vmatprep.subr.bf16.mxu0 %v10119_v10 }
 0x36d   :  { %v2151_v12 = vpop.f32.mrb[73].mxu1  ;;  %2525 = vmatmul.mubr.bf16.gmra.mrb[184].mxu0 %v11387_v29  ;;  %v3302_v29 = vld [vmem:[#allocation3] sm:$0xff] }
 0x36e   :  { %v11549_v20 = vpop.f32.mrb[74].mxu1  ;;  %9221 = vmatprep.mubr.msk.bf16.mxu0 %vm28_vm0, %v11391_v56 }
 0x36f   :  { %v2154_v15 = vpop.f32.mrb[75].mxu1  ;;  %3544 = vmatpush1.bf16.msra.mxu0 %v9965_v22 }
 0x370   :  { %3545 = vmatprep.subr.bf16.mxu0 %v10119_v10 }
 0x373   :  { %2855 = vmatmul.mubr.bf16.gmra.mrb[180].mxu1 %v11396_v59  ;;  %3546 = vmatpush1.bf16.msra.mxu0 %v9966_v13 }
 0x374   :  { %9272 = vmatprep.mubr.msk.bf16.mxu1 %vm28_vm0, %v11400_v44  ;;  %3547 = vmatprep.subr.bf16.mxu0 %v10119_v10 }
 0x375   :  { %2533 = vmatmul.mubr.bf16.gmra.mrb[188].mxu0 %v11396_v59 }
 0x376   :  { %v11565_v7 = vpop.f32.mrb[76].mxu1 }
 0x377   :  { %v2159_v42 = vpop.f32.mrb[77].mxu1  ;;  %3548 = vmatpush1.bf16.msra.mxu0 %v9967_v38 }
 0x378   :  { %v11569_v33 = vpop.f32.mrb[78].mxu1  ;;  %3549 = vmatprep.subr.bf16.mxu0 %v10119_v10  ;;  %v9969_v42 = vld [vmem:[%s14347_s5 + $0xa0] sm:$0xff]  }
 0x379   :  { %v2162_v6 = vpop.f32.mrb[79].mxu1 }
 0x37b   :  { %2863 = vmatmul.mubr.bf16.gmra.mrb[184].mxu1 %v11409_v63  ;;  %3550 = vmatpush1.bf16.msra.mxu0 %v9968_v8 }
 0x37c   :  { %9273 = vmatprep.mubr.msk.bf16.mxu1 %vm28_vm0, %v11412_v57  ;;  %3551 = vmatprep.subr.bf16.mxu0 %v10119_v10 }
 0x37e   :  { %v11577_v61 = vpop.f32.mrb[80].mxu1 }
 0x37f   :  { %v2167_v26 = vpop.f32.mrb[81].mxu1  ;;  %3552 = vmatpush1.bf16.msra.mxu0 %v9969_v42 }
 0x380   :  { %v11585_v27 = vpop.f32.mrb[82].mxu1  ;;  %3553 = vmatprep.subr.bf16.mxu0 %v10119_v10 }
 0x381   :  { %v2170_v47 = vpop.f32.mrb[83].mxu1 }
 0x383   :  { %2871 = vmatmul.mubr.bf16.gmra.mrb[188].mxu1 %v2571_v30  ;;  %3554 = vmatpush1.bf16.msra.mxu0 %v9970_v24 }
 0x384   :  { %9339 = vmatprep.mubr.msk.bf16.mxu1 %vm28_vm0, %v3303_v14  ;;  %3555 = vmatprep.subr.bf16.mxu0 %v10119_v10 }
 0x386   :  { %v11592_v36 = vpop.f32.mrb[84].mxu1 }
 0x387   :  { %v2175_v0 = vpop.f32.mrb[85].mxu1 }
 0x388   :  { %v11597_v37 = vpop.f32.mrb[86].mxu1 }
 0x389   :  { %v2178_v56 = vpop.f32.mrb[87].mxu1 }
 0x38b   :  { %3849 = vmatmul.mubr.bf16.vlgmr.msra.gmra.mrb[192].mxu1 %v3302_v29 }
 0x38e   :  { %v11600_v34 = vpop.f32.mrb[88].mxu1 }
 0x38f   :  { %v2183_v18 = vpop.f32.mrb[89].mxu1 }
 0x390   :  { %v11605_v54 = vpop.f32.mrb[90].mxu1 }
 0x391   :  { %v2186_v41 = vpop.f32.mrb[91].mxu1 }
 0x396   :  { %v11608_v59 = vpop.f32.mrb[92].mxu1 }
 0x397   :  { %v2191_v44 = vpop.f32.mrb[93].mxu1 }
 0x398   :  { %v11610_v21 = vpop.f32.mrb[94].mxu1 }
 0x399   :  { %v2194_v46 = vpop.f32.mrb[95].mxu1 }
 0x39e   :  { %v11615_v48 = vpop.f32.mrb[96].mxu1 }
 0x39f   :  { %v2199_v28 = vpop.f32.mrb[97].mxu1 }
 0x3a0   :  { %v11617_v63 = vpop.f32.mrb[98].mxu1 }
 0x3a1   :  { %v2202_v52 = vpop.f32.mrb[99].mxu1 }
 0x3a6   :  { %v11620_v57 = vpop.f32.mrb[100].mxu1 }
 0x3a7   :  { %v2207_v55 = vpop.f32.mrb[101].mxu1 }
 0x3a8   :  { %v11625_v43 = vpop.f32.mrb[102].mxu1  ;;  %v11678_v55 = vld [vmem:[%s14346_s4] ss:$0 sm:$0xff] }
 0x3a9   :  { %v2210_v50 = vpop.f32.mrb[103].mxu1 }
 0x3ae   :  { %v11628_v23 = vpop.f32.mrb[104].mxu1 }
 0x3af   :  { %v2215_v19 = vpop.f32.mrb[105].mxu1 }
 0x3b0   :  { %v11633_v35 = vpop.f32.mrb[106].mxu1 }
 0x3b1   :  { %v2218_v49 = vpop.f32.mrb[107].mxu1 }
 0x3b2   :  { %v9972_v49 = vld [vmem:[%s14347_s5 + $0xb8] sm:$0xff]  }
 0x3b6   :  { %v11636_v1 = vpop.f32.mrb[108].mxu1 }
 0x3b7   :  { %v2223_v3 = vpop.f32.mrb[109].mxu1 }
 0x3b8   :  { %v11638_v40 = vpop.f32.mrb[110].mxu1 }
 0x3b9   :  { %v2226_v32 = vpop.f32.mrb[111].mxu1 }
 0x3be   :  { %v11643_v12 = vpop.f32.mrb[112].mxu1 }
 0x3bf   :  { %v2231_v62 = vpop.f32.mrb[113].mxu1 }
 0x3c0   :  { %v11645_v39 = vpop.f32.mrb[114].mxu1 }
 0x3c1   :  { %v2234_v4 = vpop.f32.mrb[115].mxu1 }
 0x3c6   :  { %v11648_v15 = vpop.f32.mrb[116].mxu1 }
 0x3c7   :  { %v2239_v16 = vpop.f32.mrb[117].mxu1 }
 0x3c8   :  { %v11653_v6 = vpop.f32.mrb[118].mxu1 }
 0x3c9   :  { %v2242_v11 = vpop.f32.mrb[119].mxu1 }
 0x3ce   :  { %v11656_v17 = vpop.f32.mrb[120].mxu1 }
 0x3cf   :  { %v2247_v25 = vpop.f32.mrb[121].mxu1 }
 0x3d0   :  { %v11661_v26 = vpop.f32.mrb[122].mxu1  ;;  %v2414_v5 = vpop.f32.mrb[128].mxu0 }
 0x3d1   :  { %v2250_v14 = vpop.f32.mrb[123].mxu1  ;;  %v2415_v45 = vadd.f32 %v2414_v5, %v11506_v53  ;;  %v2416_v30 = vpop.f32.mrb[129].mxu0  ;;  %v9971_v53 = vld [vmem:[%s14347_s5 + $0xb0] sm:$0xff]  }
 0x3d2   :  { %v2417_v47 = vpop.f32.mrb[130].mxu0  ;;  %3556 = vmatpush1.bf16.msra.mxu0 %v9971_v53 }
 0x3d3   :  { %v2418_v0 = vadd.f32 %v2417_v47, %v11510_v9  ;;  %v2419_v60 = vpop.f32.mrb[131].mxu0  ;;  %3557 = vmatprep.subr.bf16.mxu0 %v10119_v10 }
 0x3d6   :  { %v11666_v29 = vpop.f32.mrb[124].mxu1  ;;  %3558 = vmatpush1.bf16.msra.mxu0 %v9972_v49 }
 0x3d7   :  { %v2255_v56 = vpop.f32.mrb[125].mxu1  ;;  %4154 = vmatprep.subr.bf16.mxu0 %v10119_v10 }
 0x3d8   :  { %v11668_v18 = vpop.f32.mrb[126].mxu1  ;;  %v2422_v41 = vpop.f32.mrb[132].mxu0 }
 0x3d9   :  { %v2258_v51 = vpop.f32.mrb[127].mxu1  ;;  %v2423_v44 = vadd.f32 %v2422_v41, %v11524_v58  ;;  %v2424_v46 = vpop.f32.mrb[133].mxu0 }
 0x3da   :  { %v2425_v22 = vpop.f32.mrb[134].mxu0 }
 0x3db   :  { %v2426_v28 = vadd.f32 %v2425_v22, %v11528_v31  ;;  %v2427_v52 = vpop.f32.mrb[135].mxu0 }
 0x3de   :  { %v2752_v9 = vpop.f32.mrb[128].mxu1 }
 0x3df   :  { %v2879_v13 = vadd.f32 %v2752_v9, %v2415_v45  ;;  %v2754_v50 = vpop.f32.mrb[129].mxu1  ;;  %v9411_v45 = vld [vmem:[%s14342_s0 + $0x118] sm:$0xff] }
 0x3e0   :  { %v2755_v19 = vpop.f32.mrb[130].mxu1  ;;  %v2430_v3 = vpop.f32.mrb[136].mxu0  ;;  %4597 = vst.msk [vmem:[#allocation2 + $0x290] sm:$0xff] %vm28_vm0, %v9411_v45 }
 0x3e1   :  { %v2918_v58 = vadd.f32 %v11678_v55, %v2879_v13  ;;  %v2880_v31 = vadd.f32 %v2755_v19, %v2418_v0  ;;  %v2757_v38 = vpop.f32.mrb[131].mxu1  ;;  %v2431_v62 = vadd.f32 %v2430_v3, %v11542_v2  ;;  %v2432_v4 = vpop.f32.mrb[137].mxu0  ;;  %v9410_v2 = vld [vmem:[%s14342_s0 + $0x110] sm:$0xff] }
 0x3e2   :  { %v2433_v16 = vpop.f32.mrb[138].mxu0  ;;  %4596 = vst.msk [vmem:[#allocation2 + $0x288] sm:$0xff] %vm28_vm0, %v9410_v2  ;;  %v9412_v4 = vld [vmem:[%s14342_s0 + $0x120] sm:$0xff] }
 0x3e3   :  { %v2950_v32 = vmax.f32 %v2918_v58, 0.0  ;;  %v2919_v8 = vadd.f32 %v11678_v55, %v2880_v31  ;;  %v2434_v11 = vadd.f32 %v2433_v16, %v11549_v20  ;;  %v2435_v25 = vpop.f32.mrb[139].mxu0  ;;  %v9413_v16 = vld [vmem:[%s14342_s0 + $0x128] sm:$0xff]  ;;  %4598 = vst.msk [vmem:[#allocation2 + $0x2a8] sm:$0xff] %vm28_vm0, %v9412_v4 }
 0x3e4   :  { %4599 = vst.msk [vmem:[#allocation2 + $0x2b0] sm:$0xff] %vm28_vm0, %v9413_v16 }
 0x3e5   :  { %2982 = vst.msk [vmem:[#allocation2 + $0x28] sm:$0xff] %vm28_vm0, %v2950_v32  ;;  %v2951_v42 = vmax.f32 %v2919_v8, 0.0  ;;  %v9974_v32 = vld [vmem:[%s14343_s1 + $0x60] sm:$0xff]  }
 0x3e6   :  { %v2760_v24 = vpop.f32.mrb[132].mxu1  ;;  %5147 = vmatpush1.bf16.msra.mxu1 %v9974_v32  ;;  %v9415_v32 = vld [vmem:[%s14342_s0 + $0x138] sm:$0xff] }
 0x3e7   :  { %2983 = vst.msk [vmem:[#allocation2 + $0x30] sm:$0xff] %vm28_vm0, %v2951_v42  ;;  %v2881_v14 = vadd.f32 %v2760_v24, %v2423_v44  ;;  %v2762_v5 = vpop.f32.mrb[133].mxu1  ;;  %5148 = vmatprep.subr.bf16.mxu1 %v10119_v10  ;;  %4601 = vst.msk [vmem:[#allocation2 + $0x2d0] sm:$0xff] %vm28_vm0, %v9415_v32 }
 0x3e8   :  { %v2763_v30 = vpop.f32.mrb[134].mxu1  ;;  %v2438_v60 = vpop.f32.mrb[140].mxu0  ;;  %v4845_v5 = vld [vmem:[#allocation2 + $0x271] sm:$0xff] }
 0x3e9   :  { %v2920_v20 = vadd.f32 %v11678_v55, %v2881_v14  ;;  %v2882_v47 = vadd.f32 %v2763_v30, %v2426_v28  ;;  %v2765_v0 = vpop.f32.mrb[135].mxu1  ;;  %v2439_v41 = vadd.f32 %v2438_v60, %v11565_v7  ;;  %v2440_v44 = vpop.f32.mrb[141].mxu0  ;;  %v4844_v14 = vld [vmem:[#allocation2 + $0x269] sm:$0xff] }
 0x3ea   :  { %v2441_v46 = vpop.f32.mrb[142].mxu0 }
 0x3eb   :  { %v2952_v56 = vmax.f32 %v2920_v20, 0.0  ;;  %v2921_v51 = vadd.f32 %v11678_v55, %v2882_v47  ;;  %v2442_v52 = vadd.f32 %v2441_v46, %v11569_v33  ;;  %v2443_v53 = vpop.f32.mrb[143].mxu0 }
 0x3ec   :  { %v3088_v9 = vld [vmem:[#allocation2 + $0x28] sm:$0xff] }
 0x3ed   :  { %2984 = vst.msk [vmem:[#allocation2 + $0x48] sm:$0xff] %vm28_vm0, %v2952_v56  ;;  %v2953_v22 = vmax.f32 %v2921_v51, 0.0  ;;  %v3016_v7 = vld [vmem:[#allocation2 + $0x27] sm:$0xff]  ;;  %v4879_v56 = vpack.c.bf16 %v4845_v5, %v4844_v14 }
 0x3ee   :  { %v2768_v13 = vpop.f32.mrb[136].mxu1  ;;  %v3089_v50 = vld [vmem:[#allocation2 + $0x30] sm:$0xff] }
 0x3ef   :  { %v3232_v19 = vld [vmem:[#allocation2 + $0x29] sm:$0xff]  ;;  %v3233_v28 = vld [vmem:[#allocation2 + $0x31] sm:$0xff]  ;;  %2985 = vst.msk [vmem:[#allocation2 + $0x50] sm:$0xff] %vm28_vm0, %v2953_v22  ;;  %v2883_v58 = vadd.f32 %v2768_v13, %v2431_v62  ;;  %v2770_v31 = vpop.f32.mrb[137].mxu1  ;;  %v3123_v38 = vpack.c.bf16 %v3089_v50, %v3088_v9 }
 0x3f0   :  { %v3267_v49 = vpack.c.bf16 %v3233_v28, %v3232_v19  ;;  %v3017_v3 = vld [vmem:[#allocation2 + $0x2f] sm:$0xff]  ;;  %v2771_v8 = vpop.f32.mrb[138].mxu1  ;;  %v2446_v24 = vpop.f32.mrb[144].mxu0 }
 0x3f1   :  { %v3051_v33 = vpack.c.bf16 %v3017_v3, %v3016_v7  ;;  %v2922_v62 = vadd.f32 %v11678_v55, %v2883_v58  ;;  %v2884_v42 = vadd.f32 %v2771_v8, %v2434_v11  ;;  %3160 = vrot.lane.b32.xlu0 %v3123_v38, %s10120_s26  ;;  %v2773_v25 = vpop.f32.mrb[139].mxu1  ;;  %v2447_v45 = vadd.f32 %v2446_v24, %v11577_v61  ;;  %v2448_v30 = vpop.f32.mrb[145].mxu0  ;;  %v9976_v58 = vld [vmem:[%s14343_s1 + $0x68] sm:$0xff]  }
 0x3f2   :  { %3285 = vst.msk [vmem:[#allocation3 + $0x18] sm:$0xff] %vm28_vm0, %v3267_v49  ;;  %v2449_v20 = vpop.f32.mrb[146].mxu0  ;;  %5149 = vmatpush1.bf16.msra.mxu1 %v9976_v58 }
 0x3f3   :  { %3069 = vst.msk [vmem:[#allocation3 + $0x10] sm:$0xff] %vm28_vm0, %v3051_v33  ;;  %v2954_v2 = vmax.f32 %v2922_v62, 0.0  ;;  %v2923_v11 = vadd.f32 %v11678_v55, %v2884_v42  ;;  %v2450_v0 = vadd.f32 %v2449_v20, %v11585_v27  ;;  %v2451_v60 = vpop.f32.mrb[147].mxu0  ;;  %5150 = vmatprep.subr.bf16.mxu1 %v10119_v10 }
 0x3f4   :  { %v3090_v51 = vld [vmem:[#allocation2 + $0x48] sm:$0xff] }
 0x3f5   :  { %2986 = vst.msk [vmem:[#allocation2 + $0x68] sm:$0xff] %vm28_vm0, %v2954_v2  ;;  %v2955_v47 = vmax.f32 %v2923_v11, 0.0  ;;  %v3018_v44 = vld [vmem:[#allocation2 + $0x47] sm:$0xff] }
 0x3f6   :  { %v2776_v46 = vpop.f32.mrb[140].mxu1  ;;  %v3091_v22 = vld [vmem:[#allocation2 + $0x50] sm:$0xff] }
 0x3f7   :  { %v3019_v53 = vld [vmem:[#allocation2 + $0x4f] sm:$0xff]  ;;  %2987 = vst.msk [vmem:[#allocation2 + $0x70] sm:$0xff] %vm28_vm0, %v2955_v47  ;;  %v2885_v13 = vadd.f32 %v2776_v46, %v2439_v41  ;;  %v2778_v50 = vpop.f32.mrb[141].mxu1  ;;  %v3124_v61 = vpack.c.bf16 %v3091_v22, %v3090_v51 }
 0x3f8   :  { %v3234_v9 = vld [vmem:[#allocation2 + $0x49] sm:$0xff]  ;;  %v3052_v19 = vpack.c.bf16 %v3019_v53, %v3018_v44  ;;  %v3235_v28 = vld [vmem:[#allocation2 + $0x51] sm:$0xff]  ;;  %v2779_v27 = vpop.f32.mrb[142].mxu1  ;;  %v9416_v44 = vld [vmem:[%s14342_s0 + $0x140] sm:$0xff] }
 0x3f9   :  { %v3359_v31 = vld [vmem:[#allocation3 + $0x18] sm:$0xff]  ;;  %v3268_v38 = vpack.c.bf16 %v3235_v28, %v3234_v9  ;;  %v2924_v49 = vadd.f32 %v11678_v55, %v2885_v13  ;;  %v2886_v7 = vadd.f32 %v2779_v27, %v2442_v52  ;;  %v2781_v3 = vpop.f32.mrb[143].mxu1  ;;  %v9414_v41 = vld [vmem:[%s14342_s0 + $0x130] sm:$0xff]  ;;  %3162 = vrot.lane.b32.xlu0 %v3124_v61, %s10120_s26  ;;  %v2454_v52 = vpop.f32.mrb[148].mxu0  ;;  %v9417_v22 = vld [vmem:[%s14342_s0 + $0x148] sm:$0xff]  ;;  %4602 = vst.msk [vmem:[#allocation2 + $0x2e8] sm:$0xff] %vm28_vm0, %v9416_v44 }
 0x3fa   :  { %9311 = vmatprep.mubr.msk.bf16.mxu0 %vm28_vm0, %v3359_v31  ;;  %9340 = vmatprep.mubr.msk.bf16.mxu1 %vm28_vm0, %v3359_v31  ;;  %4897 = vst.msk [vmem:[#allocation3 + $0x18] sm:$0xff] %vm28_vm0, %v4879_v56  ;;  %3070 = vst.msk [vmem:[#allocation3 + $0x20] sm:$0xff] %vm28_vm0, %v3052_v19  ;;  %v2455_v4 = vadd.f32 %v2454_v52, %v11592_v36  ;;  %v2456_v16 = vpop.f32.mrb[149].mxu0 }
 0x3fb   :  { %3286 = vst.msk [vmem:[#allocation3 + $0x28] sm:$0xff] %vm28_vm0, %v3268_v38  ;;  %4600 = vst.msk [vmem:[#allocation2 + $0x2c8] sm:$0xff] %vm28_vm0, %v9414_v41  ;;  %v2956_v8 = vmax.f32 %v2924_v49, 0.0  ;;  %v2925_v33 = vadd.f32 %v11678_v55, %v2886_v7  ;;  %v2457_v62 = vpop.f32.mrb[150].mxu0  ;;  %v9978_v7 = vld [vmem:[%s14343_s1 + $0x70] sm:$0xff]  }
 0x3fc   :  { %v2458_v25 = vadd.f32 %v2457_v62, %v11597_v37  ;;  %v2459_v24 = vpop.f32.mrb[151].mxu0  ;;  %v3092_v14 = vld [vmem:[#allocation2 + $0x68] sm:$0xff]  ;;  %4603 = vst.msk [vmem:[#allocation2 + $0x2f0] sm:$0xff] %vm28_vm0, %v9417_v22  ;;  %5151 = vmatpush1.bf16.msra.mxu1 %v9978_v7 }
 0x3fd   :  { %2988 = vst.msk [vmem:[#allocation2 + $0x88] sm:$0xff] %vm28_vm0, %v2956_v8  ;;  %v2957_v42 = vmax.f32 %v2925_v33, 0.0  ;;  %v3020_v5 = vld [vmem:[#allocation2 + $0x67] sm:$0xff]  ;;  %5152 = vmatprep.subr.bf16.mxu1 %v10119_v10 }
 0x3fe   :  { %v2784_v2 = vpop.f32.mrb[144].mxu1  ;;  %v3093_v11 = vld [vmem:[#allocation2 + $0x70] sm:$0xff] }
 0x3ff   :  { %v3021_v30 = vld [vmem:[#allocation2 + $0x6f] sm:$0xff]  ;;  %2989 = vst.msk [vmem:[#allocation2 + $0x90] sm:$0xff] %vm28_vm0, %v2957_v42  ;;  %v2887_v47 = vadd.f32 %v2784_v2, %v2447_v45  ;;  %v2786_v36 = vpop.f32.mrb[145].mxu1  ;;  %v3125_v60 = vpack.c.bf16 %v3093_v11, %v3092_v14  ;;  %v9419_v14 = vld [vmem:[%s14342_s0 + $0x158] sm:$0xff] }
 0x400   :  { %v3236_v20 = vld [vmem:[#allocation2 + $0x69] sm:$0xff]  ;;  %v3053_v56 = vpack.c.bf16 %v3021_v30, %v3020_v5  ;;  %v3237_v51 = vld [vmem:[#allocation2 + $0x71] sm:$0xff]  ;;  %v2787_v46 = vpop.f32.mrb[146].mxu1  ;;  %v2462_v13 = vpop.f32.mrb[152].mxu0  ;;  %4605 = vst.msk [vmem:[#allocation2 + $0x310] sm:$0xff] %vm28_vm0, %v9419_v14 }
 0x401   :  { %v3269_v37 = vpack.c.bf16 %v3237_v51, %v3236_v20  ;;  %v2926_v53 = vadd.f32 %v11678_v55, %v2887_v47  ;;  %v2888_v9 = vadd.f32 %v2787_v46, %v2450_v0  ;;  %v2789_v45 = vpop.f32.mrb[147].mxu1  ;;  %3164 = vrot.lane.b32.xlu1 %v3125_v60, %s10120_s26  ;;  %v2463_v19 = vadd.f32 %v2462_v13, %v11600_v34  ;;  %v2464_v28 = vpop.f32.mrb[153].mxu0 }
 0x402   :  { %3071 = vst.msk [vmem:[#allocation3 + $0x30] sm:$0xff] %vm28_vm0, %v3053_v56  ;;  %v2465_v58 = vpop.f32.mrb[154].mxu0  ;;  %v9980_v28 = vld [vmem:[%s14343_s1 + $0x78] sm:$0xff]  }
 0x403   :  { %3287 = vst.msk [vmem:[#allocation3 + $0x38] sm:$0xff] %vm28_vm0, %v3269_v37  ;;  %v2958_v50 = vmax.f32 %v2926_v53, 0.0  ;;  %v2927_v61 = vadd.f32 %v11678_v55, %v2888_v9  ;;  %v2466_v27 = vadd.f32 %v2465_v58, %v11605_v54  ;;  %v2467_v31 = vpop.f32.mrb[155].mxu0  ;;  %v9418_v54 = vld [vmem:[%s14342_s0 + $0x150] sm:$0xff]  ;;  %5153 = vmatpush1.bf16.msra.mxu1 %v9980_v28 }
 0x404   :  { %v3094_v38 = vld [vmem:[#allocation2 + $0x88] sm:$0xff]  ;;  %4604 = vst.msk [vmem:[#allocation2 + $0x308] sm:$0xff] %vm28_vm0, %v9418_v54  ;;  %5154 = vmatprep.subr.bf16.mxu1 %v10119_v10 }
 0x405   :  { %2990 = vst.msk [vmem:[#allocation2 + $0xa8] sm:$0xff] %vm28_vm0, %v2958_v50  ;;  %v2959_v0 = vmax.f32 %v2927_v61, 0.0  ;;  %v3022_v49 = vld [vmem:[#allocation2 + $0x87] sm:$0xff] }
 0x406   :  { %v2792_v3 = vpop.f32.mrb[148].mxu1  ;;  %v3095_v41 = vld [vmem:[#allocation2 + $0x90] sm:$0xff]  ;;  %v9421_v31 = vld [vmem:[%s14342_s0 + $0x168] sm:$0xff] }
 0x407   :  { %v3023_v32 = vld [vmem:[#allocation2 + $0x8f] sm:$0xff]  ;;  %2991 = vst.msk [vmem:[#allocation2 + $0xb0] sm:$0xff] %vm28_vm0, %v2959_v0  ;;  %v2889_v34 = vadd.f32 %v2792_v3, %v2455_v4  ;;  %v2794_v8 = vpop.f32.mrb[149].mxu1  ;;  %v3126_v33 = vpack.c.bf16 %v3095_v41, %v3094_v38  ;;  %v9420_v0 = vld [vmem:[%s14342_s0 + $0x160] sm:$0xff]  ;;  %4607 = vst.msk [vmem:[#allocation2 + $0x330] sm:$0xff] %vm28_vm0, %v9421_v31 }
 0x408   :  { %v3238_v52 = vld [vmem:[#allocation2 + $0x89] sm:$0xff]  ;;  %v3054_v16 = vpack.c.bf16 %v3023_v32, %v3022_v49  ;;  %v3239_v62 = vld [vmem:[#allocation2 + $0x91] sm:$0xff]  ;;  %v2795_v42 = vpop.f32.mrb[150].mxu1  ;;  %v2470_v11 = vpop.f32.mrb[156].mxu0  ;;  %4606 = vst.msk [vmem:[#allocation2 + $0x328] sm:$0xff] %vm28_vm0, %v9420_v0 }
 0x409   :  { %v3270_v24 = vpack.c.bf16 %v3239_v62, %v3238_v52  ;;  %v2928_v4 = vadd.f32 %v11678_v55, %v2889_v34  ;;  %v2890_v5 = vadd.f32 %v2795_v42, %v2458_v25  ;;  %v2797_v2 = vpop.f32.mrb[151].mxu1  ;;  %3166 = vrot.lane.b32.xlu0 %v3126_v33, %s10120_s26  ;;  %v2471_v47 = vadd.f32 %v2470_v11, %v11608_v59  ;;  %v2472_v36 = vpop.f32.mrb[157].mxu0 }
 0x40a   :  { %3072 = vst.msk [vmem:[#allocation3 + $0x40] sm:$0xff] %vm28_vm0, %v3054_v16  ;;  %v2473_v60 = vpop.f32.mrb[158].mxu0  ;;  %v9422_v36 = vld [vmem:[%s14342_s0 + $0x170] sm:$0xff] }
 0x40b   :  { %3288 = vst.msk [vmem:[#allocation3 + $0x48] sm:$0xff] %vm28_vm0, %v3270_v24  ;;  %v2960_v30 = vmax.f32 %v2928_v4, 0.0  ;;  %v2929_v20 = vadd.f32 %v11678_v55, %v2890_v5  ;;  %v2474_v56 = vadd.f32 %v2473_v60, %v11610_v21  ;;  %v2475_v51 = vpop.f32.mrb[159].mxu0  ;;  %4608 = vst.msk [vmem:[#allocation2 + $0x348] sm:$0xff] %vm28_vm0, %v9422_v36 }
 0x40c   :  { %v3096_v44 = vld [vmem:[#allocation2 + $0xa8] sm:$0xff] }
 0x40d   :  { %2992 = vst.msk [vmem:[#allocation2 + $0xc8] sm:$0xff] %vm28_vm0, %v2960_v30  ;;  %v2961_v25 = vmax.f32 %v2929_v20, 0.0  ;;  %v3024_v46 = vld [vmem:[#allocation2 + $0xa7] sm:$0xff] }
 0x40e   :  { %v2800_v37 = vpop.f32.mrb[152].mxu1  ;;  %v3097_v22 = vld [vmem:[#allocation2 + $0xb0] sm:$0xff]  ;;  %v9982_v30 = vld [vmem:[%s14343_s1 + $0x80] sm:$0xff]  }
 0x40f   :  { %v3025_v53 = vld [vmem:[#allocation2 + $0xaf] sm:$0xff]  ;;  %2993 = vst.msk [vmem:[#allocation2 + $0xd0] sm:$0xff] %vm28_vm0, %v2961_v25  ;;  %v2891_v45 = vadd.f32 %v2800_v37, %v2463_v19  ;;  %v2802_v13 = vpop.f32.mrb[153].mxu1  ;;  %v3127_v50 = vpack.c.bf16 %v3097_v22, %v3096_v44  ;;  %5155 = vmatpush1.bf16.msra.mxu1 %v9982_v30 }
 0x410   :  { %v3240_v9 = vld [vmem:[#allocation2 + $0xa9] sm:$0xff]  ;;  %v3055_v59 = vpack.c.bf16 %v3025_v53, %v3024_v46  ;;  %v3241_v61 = vld [vmem:[#allocation2 + $0xb1] sm:$0xff]  ;;  %v2803_v58 = vpop.f32.mrb[154].mxu1  ;;  %v2478_v7 = vpop.f32.mrb[160].mxu0  ;;  %5156 = vmatprep.subr.bf16.mxu1 %v10119_v10 }
 0x411   :  { %v3271_v21 = vpack.c.bf16 %v3241_v61, %v3240_v9  ;;  %v2930_v19 = vadd.f32 %v11678_v55, %v2891_v45  ;;  %v2892_v38 = vadd.f32 %v2803_v58, %v2466_v27  ;;  %v2805_v49 = vpop.f32.mrb[155].mxu1  ;;  %3168 = vrot.lane.b32.xlu1 %v3127_v50, %s10120_s26  ;;  %v2479_v27 = vadd.f32 %v2478_v7, %v11615_v48  ;;  %v2480_v32 = vpop.f32.mrb[161].mxu0 }
 0x412   :  { %3073 = vst.msk [vmem:[#allocation3 + $0x50] sm:$0xff] %vm28_vm0, %v3055_v59  ;;  %v2481_v52 = vpop.f32.mrb[162].mxu0  ;;  %v9424_v49 = vld [vmem:[%s14342_s0 + $0x180] sm:$0xff] }
 0x413   :  { %3289 = vst.msk [vmem:[#allocation3 + $0x58] sm:$0xff] %vm28_vm0, %v3271_v21  ;;  %v2962_v3 = vmax.f32 %v2930_v19, 0.0  ;;  %v2931_v41 = vadd.f32 %v11678_v55, %v2892_v38  ;;  %v2482_v8 = vadd.f32 %v2481_v52, %v11617_v63  ;;  %v2483_v33 = vpop.f32.mrb[163].mxu0  ;;  %4610 = vst.msk [vmem:[#allocation2 + $0x368] sm:$0xff] %vm28_vm0, %v9424_v49 }
 0x414   :  { %v3098_v16 = vld [vmem:[#allocation2 + $0xc8] sm:$0xff] }
 0x415   :  { %2994 = vst.msk [vmem:[#allocation2 + $0xe8] sm:$0xff] %vm28_vm0, %v2962_v3  ;;  %v2963_v34 = vmax.f32 %v2931_v41, 0.0  ;;  %v3026_v62 = vld [vmem:[#allocation2 + $0xc7] sm:$0xff] }
 0x416   :  { %v2808_v54 = vpop.f32.mrb[156].mxu1  ;;  %v3099_v42 = vld [vmem:[#allocation2 + $0xd0] sm:$0xff]  ;;  %v9425_v3 = vld [vmem:[%s14342_s0 + $0x188] sm:$0xff] }
 0x417   :  { %v3027_v24 = vld [vmem:[#allocation2 + $0xcf] sm:$0xff]  ;;  %2995 = vst.msk [vmem:[#allocation2 + $0xf0] sm:$0xff] %vm28_vm0, %v2963_v34  ;;  %v2893_v4 = vadd.f32 %v2808_v54, %v2471_v47  ;;  %v2810_v5 = vpop.f32.mrb[157].mxu1  ;;  %v3128_v2 = vpack.c.bf16 %v3099_v42, %v3098_v16  ;;  %v9423_v47 = vld [vmem:[%s14342_s0 + $0x178] sm:$0xff]  ;;  %4611 = vst.msk [vmem:[#allocation2 + $0x370] sm:$0xff] %vm28_vm0, %v9425_v3 }
 0x418   :  { %v3242_v14 = vld [vmem:[#allocation2 + $0xc9] sm:$0xff]  ;;  %v3056_v48 = vpack.c.bf16 %v3027_v24, %v3026_v62  ;;  %v3243_v11 = vld [vmem:[#allocation2 + $0xd1] sm:$0xff]  ;;  %v2811_v20 = vpop.f32.mrb[158].mxu1  ;;  %v2486_v44 = vpop.f32.mrb[164].mxu0  ;;  %4609 = vst.msk [vmem:[#allocation2 + $0x350] sm:$0xff] %vm28_vm0, %v9423_v47 }
 0x419   :  { %v3272_v63 = vpack.c.bf16 %v3243_v11, %v3242_v14  ;;  %v2932_v60 = vadd.f32 %v11678_v55, %v2893_v4  ;;  %v2894_v25 = vadd.f32 %v2811_v20, %v2474_v56  ;;  %v2813_v51 = vpop.f32.mrb[159].mxu1  ;;  %3170 = vrot.lane.b32.xlu0 %v3128_v2, %s10120_s26  ;;  %v2487_v37 = vadd.f32 %v2486_v44, %v11620_v57  ;;  %v2488_v22 = vpop.f32.mrb[165].mxu0  ;;  %v9984_v5 = vld [vmem:[%s14343_s1 + $0x88] sm:$0xff]   ;;  %v9427_v47 = vld [vmem:[%s14342_s0 + $0x198] sm:$0xff] }
 0x41a   :  { %3074 = vst.msk [vmem:[#allocation3 + $0x60] sm:$0xff] %vm28_vm0, %v3056_v48  ;;  %v2489_v53 = vpop.f32.mrb[166].mxu0  ;;  %5157 = vmatpush1.bf16.msra.mxu1 %v9984_v5  ;;  %4613 = vst.msk [vmem:[#allocation2 + $0x390] sm:$0xff] %vm28_vm0, %v9427_v47 }
 0x41b   :  { %3290 = vst.msk [vmem:[#allocation3 + $0x68] sm:$0xff] %vm28_vm0, %v3272_v63  ;;  %v2964_v56 = vmax.f32 %v2932_v60, 0.0  ;;  %v2933_v46 = vadd.f32 %v11678_v55, %v2894_v25  ;;  %v2490_v45 = vadd.f32 %v2489_v53, %v11625_v43  ;;  %v2491_v13 = vpop.f32.mrb[167].mxu0  ;;  %5158 = vmatprep.subr.bf16.mxu1 %v10119_v10 }
 0x41c   :  { %v3100_v50 = vld [vmem:[#allocation2 + $0xe8] sm:$0xff] }
 0x41d   :  { %2996 = vst.msk [vmem:[#allocation2 + $0x108] sm:$0xff] %vm28_vm0, %v2964_v56  ;;  %v2965_v9 = vmax.f32 %v2933_v46, 0.0  ;;  %v3028_v59 = vld [vmem:[#allocation2 + $0xe7] sm:$0xff] }
 0x41e   :  { %v2816_v61 = vpop.f32.mrb[160].mxu1  ;;  %v3101_v28 = vld [vmem:[#allocation2 + $0xf0] sm:$0xff] }
 0x41f   :  { %v3029_v58 = vld [vmem:[#allocation2 + $0xef] sm:$0xff]  ;;  %2997 = vst.msk [vmem:[#allocation2 + $0x110] sm:$0xff] %vm28_vm0, %v2965_v9  ;;  %v2895_v0 = vadd.f32 %v2816_v61, %v2479_v27  ;;  %v2818_v31 = vpop.f32.mrb[161].mxu1  ;;  %v3129_v19 = vpack.c.bf16 %v3101_v28, %v3100_v50 }
 0x420   :  { %v3244_v21 = vld [vmem:[#allocation2 + $0xe9] sm:$0xff]  ;;  %v3057_v57 = vpack.c.bf16 %v3029_v58, %v3028_v59  ;;  %v3245_v38 = vld [vmem:[#allocation2 + $0xf1] sm:$0xff]  ;;  %v2819_v7 = vpop.f32.mrb[162].mxu1  ;;  %v2494_v52 = vpop.f32.mrb[168].mxu0 }
 0x421   :  { %v3273_v43 = vpack.c.bf16 %v3245_v38, %v3244_v21  ;;  %v2934_v41 = vadd.f32 %v11678_v55, %v2895_v0  ;;  %v2896_v32 = vadd.f32 %v2819_v7, %v2482_v8  ;;  %v2821_v27 = vpop.f32.mrb[163].mxu1  ;;  %3172 = vrot.lane.b32.xlu1 %v3129_v19, %s10120_s26  ;;  %v2495_v16 = vadd.f32 %v2494_v52, %v11628_v23  ;;  %v2496_v62 = vpop.f32.mrb[169].mxu0 }
 0x422   :  { %3075 = vst.msk [vmem:[#allocation3 + $0x70] sm:$0xff] %vm28_vm0, %v3057_v57  ;;  %v2497_v54 = vpop.f32.mrb[170].mxu0 }
 0x423   :  { %3291 = vst.msk [vmem:[#allocation3 + $0x78] sm:$0xff] %vm28_vm0, %v3273_v43  ;;  %v2966_v34 = vmax.f32 %v2934_v41, 0.0  ;;  %v2935_v33 = vadd.f32 %v11678_v55, %v2896_v32  ;;  %v2498_v42 = vadd.f32 %v2497_v54, %v11633_v35  ;;  %v2499_v24 = vpop.f32.mrb[171].mxu0  ;;  %v9426_v35 = vld [vmem:[%s14342_s0 + $0x190] sm:$0xff]  ;;  %v9428_v41 = vld [vmem:[%s14342_s0 + $0x1a0] sm:$0xff]  ;;  %v9429_v32 = vld [vmem:[%s14342_s0 + $0x1a8] sm:$0xff] }
 0x424   :  { %v3102_v14 = vld [vmem:[#allocation2 + $0x108] sm:$0xff]  ;;  %4612 = vst.msk [vmem:[#allocation2 + $0x388] sm:$0xff] %vm28_vm0, %v9426_v35  ;;  %v9986_v43 = vld [vmem:[%s14343_s1 + $0x90] sm:$0xff]   ;;  %4614 = vst.msk [vmem:[#allocation2 + $0x3a8] sm:$0xff] %vm28_vm0, %v9428_v41 }
 0x425   :  { %2998 = vst.msk [vmem:[#allocation2 + $0x128] sm:$0xff] %vm28_vm0, %v2966_v34  ;;  %v2967_v8 = vmax.f32 %v2935_v33, 0.0  ;;  %v3030_v4 = vld [vmem:[#allocation2 + $0x107] sm:$0xff]  ;;  %5159 = vmatpush1.bf16.msra.mxu1 %v9986_v43  ;;  %4615 = vst.msk [vmem:[#allocation2 + $0x3b0] sm:$0xff] %vm28_vm0, %v9429_v32  ;;  %v9988_v35 = vld [vmem:[%s14343_s1 + $0x98] sm:$0xff]  }
 0x426   :  { %v2824_v2 = vpop.f32.mrb[164].mxu1  ;;  %v3103_v48 = vld [vmem:[#allocation2 + $0x110] sm:$0xff]  ;;  %5160 = vmatprep.subr.bf16.mxu1 %v10119_v10 }
 0x427   :  { %v3031_v11 = vld [vmem:[#allocation2 + $0x10f] sm:$0xff]  ;;  %2999 = vst.msk [vmem:[#allocation2 + $0x130] sm:$0xff] %vm28_vm0, %v2967_v8  ;;  %v2897_v23 = vadd.f32 %v2824_v2, %v2487_v37  ;;  %v2826_v20 = vpop.f32.mrb[165].mxu1  ;;  %v3130_v63 = vpack.c.bf16 %v3103_v48, %v3102_v14 }
 0x428   :  { %v3246_v30 = vld [vmem:[#allocation2 + $0x109] sm:$0xff]  ;;  %v3058_v36 = vpack.c.bf16 %v3031_v11, %v3030_v4  ;;  %v3247_v60 = vld [vmem:[#allocation2 + $0x111] sm:$0xff]  ;;  %v2827_v25 = vpop.f32.mrb[166].mxu1  ;;  %v2502_v37 = vpop.f32.mrb[172].mxu0 }
 0x429   :  { %v3274_v51 = vpack.c.bf16 %v3247_v60, %v3246_v30  ;;  %v2936_v44 = vadd.f32 %v11678_v55, %v2897_v23  ;;  %v2898_v56 = vadd.f32 %v2827_v25, %v2490_v45  ;;  %v2829_v46 = vpop.f32.mrb[167].mxu1  ;;  %3174 = vrot.lane.b32.xlu0 %v3130_v63, %s10120_s26  ;;  %v2503_v9 = vadd.f32 %v2502_v37, %v11636_v1  ;;  %v2504_v13 = vpop.f32.mrb[173].mxu0 }
 0x42a   :  { %3076 = vst.msk [vmem:[#allocation3 + $0x80] sm:$0xff] %vm28_vm0, %v3058_v36  ;;  %v2505_v50 = vpop.f32.mrb[174].mxu0  ;;  %5161 = vmatpush1.bf16.msra.mxu1 %v9988_v35  ;;  %v9431_v46 = vld [vmem:[%s14342_s0 + $0x1b8] sm:$0xff] }
 0x42b   :  { %3292 = vst.msk [vmem:[#allocation3 + $0x88] sm:$0xff] %vm28_vm0, %v3274_v51  ;;  %v2968_v22 = vmax.f32 %v2936_v44, 0.0  ;;  %v2937_v53 = vadd.f32 %v11678_v55, %v2898_v56  ;;  %v2506_v59 = vadd.f32 %v2505_v50, %v11638_v40  ;;  %v2507_v61 = vpop.f32.mrb[175].mxu0  ;;  %v9430_v51 = vld [vmem:[%s14342_s0 + $0x1b0] sm:$0xff]  ;;  %4617 = vst.msk [vmem:[#allocation2 + $0x3d0] sm:$0xff] %vm28_vm0, %v9431_v46  ;;  %5162 = vmatprep.subr.bf16.mxu1 %v10119_v10 }
 0x42c   :  { %v3104_v28 = vld [vmem:[#allocation2 + $0x128] sm:$0xff]  ;;  %4616 = vst.msk [vmem:[#allocation2 + $0x3c8] sm:$0xff] %vm28_vm0, %v9430_v51 }
 0x42d   :  { %3000 = vst.msk [vmem:[#allocation2 + $0x148] sm:$0xff] %vm28_vm0, %v2968_v22  ;;  %v2969_v45 = vmax.f32 %v2937_v53, 0.0  ;;  %v3032_v58 = vld [vmem:[#allocation2 + $0x127] sm:$0xff] }
 0x42e   :  { %v2832_v21 = vpop.f32.mrb[168].mxu1  ;;  %v3105_v0 = vld [vmem:[#allocation2 + $0x130] sm:$0xff] }
 0x42f   :  { %v3033_v31 = vld [vmem:[#allocation2 + $0x12f] sm:$0xff]  ;;  %3001 = vst.msk [vmem:[#allocation2 + $0x150] sm:$0xff] %vm28_vm0, %v2969_v45  ;;  %v2899_v57 = vadd.f32 %v2832_v21, %v2495_v16  ;;  %v2834_v38 = vpop.f32.mrb[169].mxu1  ;;  %v3131_v49 = vpack.c.bf16 %v3105_v0, %v3104_v28 }
 0x430   :  { %v3248_v19 = vld [vmem:[#allocation2 + $0x129] sm:$0xff]  ;;  %v3059_v1 = vpack.c.bf16 %v3033_v31, %v3032_v58  ;;  %v3249_v7 = vld [vmem:[#allocation2 + $0x131] sm:$0xff]  ;;  %v2835_v3 = vpop.f32.mrb[170].mxu1  ;;  %v2510_v33 = vpop.f32.mrb[176].mxu0 }
 0x431   :  { %v3275_v40 = vpack.c.bf16 %v3249_v7, %v3248_v19  ;;  %v2938_v27 = vadd.f32 %v11678_v55, %v2899_v57  ;;  %v2900_v52 = vadd.f32 %v2835_v3, %v2498_v42  ;;  %v2837_v34 = vpop.f32.mrb[171].mxu1  ;;  %3176 = vrot.lane.b32.xlu1 %v3131_v49, %s10120_s26  ;;  %v2511_v54 = vadd.f32 %v2510_v33, %v11643_v12  ;;  %v2512_v8 = vpop.f32.mrb[177].mxu0  ;;  %v9432_v7 = vld [vmem:[%s14342_s0 + $0x1c0] sm:$0xff]  ;;  %v9433_v3 = vld [vmem:[%s14342_s0 + $0x1c8] sm:$0xff] }
 0x432   :  { %3077 = vst.msk [vmem:[#allocation3 + $0x90] sm:$0xff] %vm28_vm0, %v3059_v1  ;;  %v2513_v42 = vpop.f32.mrb[178].mxu0  ;;  %4618 = vst.msk [vmem:[#allocation2 + $0x3e8] sm:$0xff] %vm28_vm0, %v9432_v7 }
 0x433   :  { %3293 = vst.msk [vmem:[#allocation3 + $0x98] sm:$0xff] %vm28_vm0, %v3275_v40  ;;  %v2970_v16 = vmax.f32 %v2938_v27, 0.0  ;;  %v2939_v62 = vadd.f32 %v11678_v55, %v2900_v52  ;;  %v2514_v14 = vadd.f32 %v2513_v42, %v11645_v39  ;;  %v2515_v4 = vpop.f32.mrb[179].mxu0  ;;  %4619 = vst.msk [vmem:[#allocation2 + $0x3f0] sm:$0xff] %vm28_vm0, %v9433_v3 }
 0x434   :  { %v3106_v5 = vld [vmem:[#allocation2 + $0x148] sm:$0xff]  ;;  %v9990_v4 = vld [vmem:[%s14343_s1 + $0xa0] sm:$0xff]  }
 0x435   :  { %3002 = vst.msk [vmem:[#allocation2 + $0x168] sm:$0xff] %vm28_vm0, %v2970_v16  ;;  %v2971_v24 = vmax.f32 %v2939_v62, 0.0  ;;  %v3034_v2 = vld [vmem:[#allocation2 + $0x147] sm:$0xff]  ;;  %5163 = vmatpush1.bf16.msra.mxu1 %v9990_v4 }
 0x436   :  { %v2840_v48 = vpop.f32.mrb[172].mxu1  ;;  %v3107_v11 = vld [vmem:[#allocation2 + $0x150] sm:$0xff]  ;;  %5164 = vmatprep.subr.bf16.mxu1 %v10119_v10 }
 0x437   :  { %v3035_v30 = vld [vmem:[#allocation2 + $0x14f] sm:$0xff]  ;;  %3003 = vst.msk [vmem:[#allocation2 + $0x170] sm:$0xff] %vm28_vm0, %v2971_v24  ;;  %v2901_v20 = vadd.f32 %v2840_v48, %v2503_v9  ;;  %v2842_v63 = vpop.f32.mrb[173].mxu1  ;;  %v3132_v36 = vpack.c.bf16 %v3107_v11, %v3106_v5 }
 0x438   :  { %v3250_v23 = vld [vmem:[#allocation2 + $0x149] sm:$0xff]  ;;  %v3060_v12 = vpack.c.bf16 %v3035_v30, %v3034_v2  ;;  %v3251_v60 = vld [vmem:[#allocation2 + $0x151] sm:$0xff]  ;;  %v2843_v25 = vpop.f32.mrb[174].mxu1  ;;  %v2518_v37 = vpop.f32.mrb[180].mxu0 }
 0x439   :  { %v3276_v39 = vpack.c.bf16 %v3251_v60, %v3250_v23  ;;  %v2940_v47 = vadd.f32 %v11678_v55, %v2901_v20  ;;  %v2902_v44 = vadd.f32 %v2843_v25, %v2506_v59  ;;  %v2845_v56 = vpop.f32.mrb[175].mxu1  ;;  %3178 = vrot.lane.b32.xlu0 %v3132_v36, %s10120_s26  ;;  %v2519_v9 = vadd.f32 %v2518_v37, %v11648_v15  ;;  %v2520_v13 = vpop.f32.mrb[181].mxu0  ;;  %v9435_v60 = vld [vmem:[%s14342_s0 + $0x1d8] sm:$0xff] }
 0x43a   :  { %3078 = vst.msk [vmem:[#allocation3 + $0xa0] sm:$0xff] %vm28_vm0, %v3060_v12  ;;  %v2521_v50 = vpop.f32.mrb[182].mxu0  ;;  %4621 = vst.msk [vmem:[#allocation2 + $0x410] sm:$0xff] %vm28_vm0, %v9435_v60 }
 0x43b   :  { %3294 = vst.msk [vmem:[#allocation3 + $0xa8] sm:$0xff] %vm28_vm0, %v3276_v39  ;;  %v2972_v22 = vmax.f32 %v2940_v47, 0.0  ;;  %v2941_v53 = vadd.f32 %v11678_v55, %v2902_v44  ;;  %v2522_v59 = vadd.f32 %v2521_v50, %v11653_v6  ;;  %v2523_v61 = vpop.f32.mrb[183].mxu0 }
 0x43c   :  { %v3108_v28 = vld [vmem:[#allocation2 + $0x168] sm:$0xff] }
 0x43d   :  { %3004 = vst.msk [vmem:[#allocation2 + $0x188] sm:$0xff] %vm28_vm0, %v2972_v22  ;;  %v2973_v45 = vmax.f32 %v2941_v53, 0.0  ;;  %v3036_v58 = vld [vmem:[#allocation2 + $0x167] sm:$0xff] }
 0x43e   :  { %v2848_v21 = vpop.f32.mrb[176].mxu1  ;;  %v3109_v0 = vld [vmem:[#allocation2 + $0x170] sm:$0xff] }
 0x43f   :  { %v3037_v31 = vld [vmem:[#allocation2 + $0x16f] sm:$0xff]  ;;  %3005 = vst.msk [vmem:[#allocation2 + $0x190] sm:$0xff] %vm28_vm0, %v2973_v45  ;;  %v2903_v57 = vadd.f32 %v2848_v21, %v2511_v54  ;;  %v2850_v38 = vpop.f32.mrb[177].mxu1  ;;  %v3133_v49 = vpack.c.bf16 %v3109_v0, %v3108_v28 }
 0x440   :  { %v3252_v19 = vld [vmem:[#allocation2 + $0x169] sm:$0xff]  ;;  %v3061_v15 = vpack.c.bf16 %v3037_v31, %v3036_v58  ;;  %v3253_v1 = vld [vmem:[#allocation2 + $0x171] sm:$0xff]  ;;  %v2851_v43 = vpop.f32.mrb[178].mxu1  ;;  %v2526_v27 = vpop.f32.mrb[184].mxu0  ;;  %v9436_v38 = vld [vmem:[%s14342_s0 + $0x1e0] sm:$0xff] }
 0x441   :  { %v3277_v6 = vpack.c.bf16 %v3253_v1, %v3252_v19  ;;  %v2942_v40 = vadd.f32 %v11678_v55, %v2903_v57  ;;  %v2904_v41 = vadd.f32 %v2851_v43, %v2514_v14  ;;  %v2853_v32 = vpop.f32.mrb[179].mxu1  ;;  %3180 = vrot.lane.b32.xlu1 %v3133_v49, %s10120_s26  ;;  %v2527_v33 = vadd.f32 %v2526_v27, %v11656_v17  ;;  %v2528_v16 = vpop.f32.mrb[185].mxu0  ;;  %v9992_v19 = vld [vmem:[%s14343_s1 + $0xa8] sm:$0xff]  }
 0x442   :  { %3079 = vst.msk [vmem:[#allocation3 + $0xb0] sm:$0xff] %vm28_vm0, %v3061_v15  ;;  %v2529_v62 = vpop.f32.mrb[186].mxu0  ;;  %v9437_v49 = vld [vmem:[%s14342_s0 + $0x1e8] sm:$0xff]  ;;  %5165 = vmatpush1.bf16.msra.mxu1 %v9992_v19  ;;  %4622 = vst.msk [vmem:[#allocation2 + $0x428] sm:$0xff] %vm28_vm0, %v9436_v38 }
 0x443   :  { %3295 = vst.msk [vmem:[#allocation3 + $0xb8] sm:$0xff] %vm28_vm0, %v3277_v6  ;;  %v2974_v52 = vmax.f32 %v2942_v40, 0.0  ;;  %v2943_v34 = vadd.f32 %v11678_v55, %v2904_v41  ;;  %v2530_v8 = vadd.f32 %v2529_v62, %v11661_v26  ;;  %v2531_v42 = vpop.f32.mrb[187].mxu0  ;;  %v9434_v26 = vld [vmem:[%s14342_s0 + $0x1d0] sm:$0xff]  ;;  %4623 = vst.msk [vmem:[#allocation2 + $0x430] sm:$0xff] %vm28_vm0, %v9437_v49  ;;  %5166 = vmatprep.subr.bf16.mxu1 %v10119_v10  ;;  %v4702_v19 = vld [vmem:[#allocation2 + $0x288] sm:$0xff] }
 0x444   :  { %v3110_v24 = vld [vmem:[#allocation2 + $0x188] sm:$0xff]  ;;  %4620 = vst.msk [vmem:[#allocation2 + $0x408] sm:$0xff] %vm28_vm0, %v9434_v26  ;;  %v9994_v42 = vld [vmem:[%s14343_s1 + $0xb0] sm:$0xff]  }
 0x445   :  { %3006 = vst.msk [vmem:[#allocation2 + $0x1a8] sm:$0xff] %vm28_vm0, %v2974_v52  ;;  %v2975_v54 = vmax.f32 %v2943_v34, 0.0  ;;  %v3038_v14 = vld [vmem:[#allocation2 + $0x187] sm:$0xff]  ;;  %v4701_v26 = vld [vmem:[#allocation2 + $0x270] sm:$0xff] }
 0x446   :  { %v2856_v5 = vpop.f32.mrb[180].mxu1  ;;  %v3111_v2 = vld [vmem:[#allocation2 + $0x190] sm:$0xff]  ;;  %5167 = vmatpush1.bf16.msra.mxu1 %v9994_v42  ;;  %v4708_v49 = vld [vmem:[#allocation2 + $0x2e8] sm:$0xff] }
 0x447   :  { %v3039_v48 = vld [vmem:[#allocation2 + $0x18f] sm:$0xff]  ;;  %3007 = vst.msk [vmem:[#allocation2 + $0x1b0] sm:$0xff] %vm28_vm0, %v2975_v54  ;;  %v2905_v17 = vadd.f32 %v2856_v5, %v2519_v9  ;;  %v2858_v30 = vpop.f32.mrb[181].mxu1  ;;  %v3134_v23 = vpack.c.bf16 %v3111_v2, %v3110_v24  ;;  %5168 = vmatprep.subr.bf16.mxu1 %v10119_v10  ;;  %v4630_v42 = vld [vmem:[#allocation2 + $0x287] sm:$0xff] }
 0x448   :  { %v3254_v11 = vld [vmem:[#allocation2 + $0x189] sm:$0xff]  ;;  %v3062_v20 = vpack.c.bf16 %v3039_v48, %v3038_v14  ;;  %v3255_v63 = vld [vmem:[#allocation2 + $0x191] sm:$0xff]  ;;  %v2859_v36 = vpop.f32.mrb[182].mxu1  ;;  %v2534_v51 = vpop.f32.mrb[188].mxu0 }
 0x449   :  { %v3278_v12 = vpack.c.bf16 %v3255_v63, %v3254_v11  ;;  %v2944_v35 = vadd.f32 %v11678_v55, %v2905_v17  ;;  %v2906_v25 = vadd.f32 %v2859_v36, %v2522_v59  ;;  %v2861_v39 = vpop.f32.mrb[183].mxu1  ;;  %3182 = vrot.lane.b32.xlu0 %v3134_v23, %s10120_s26  ;;  %v2535_v56 = vadd.f32 %v2534_v51, %v11666_v29  ;;  %v2536_v46 = vpop.f32.mrb[189].mxu0  ;;  %v9438_v48 = vld [vmem:[%s14342_s0 + $0x1f0] sm:$0xff]  ;;  %v9439_v11 = vld [vmem:[%s14342_s0 + $0x1f8] sm:$0xff]  ;;  %v4700_v23 = vld [vmem:[#allocation2 + $0x268] sm:$0xff] }
 0x44a   :  { %3080 = vst.msk [vmem:[#allocation3 + $0xc0] sm:$0xff] %vm28_vm0, %v3062_v20  ;;  %v2537_v37 = vpop.f32.mrb[190].mxu0  ;;  %4624 = vst.msk [vmem:[#allocation2 + $0x448] sm:$0xff] %vm28_vm0, %v9438_v48  ;;  %v4704_v46 = vld [vmem:[#allocation2 + $0x2a8] sm:$0xff]  ;;  %v4717_v48 = vld [vmem:[#allocation2 + $0x370] sm:$0xff] }
 0x44b   :  { %3296 = vst.msk [vmem:[#allocation3 + $0xc8] sm:$0xff] %vm28_vm0, %v3278_v12  ;;  %v2976_v47 = vmax.f32 %v2944_v35, 0.0  ;;  %v2945_v44 = vadd.f32 %v11678_v55, %v2906_v25  ;;  %v2538_v53 = vadd.f32 %v2537_v37, %v11668_v18  ;;  %v2539_v9 = vpop.f32.mrb[191].mxu0  ;;  %4625 = vst.msk [vmem:[#allocation2 + $0x450] sm:$0xff] %vm28_vm0, %v9439_v11  ;;  %v4705_v37 = vld [vmem:[#allocation2 + $0x2b0] sm:$0xff] }
 0x44c   :  { %v3112_v13 = vld [vmem:[#allocation2 + $0x1a8] sm:$0xff] }
 0x44d   :  { %3008 = vst.msk [vmem:[#allocation2 + $0x1c8] sm:$0xff] %vm28_vm0, %v2976_v47  ;;  %v2977_v22 = vmax.f32 %v2945_v44, 0.0  ;;  %v3040_v50 = vld [vmem:[#allocation2 + $0x1a7] sm:$0xff]  ;;  %v9995_v47 = vld [vmem:[%s14343_s1 + $0xb8] sm:$0xff]  }
 0x44e   :  { %v2864_v45 = vpop.f32.mrb[184].mxu1  ;;  %v3113_v59 = vld [vmem:[#allocation2 + $0x1b0] sm:$0xff]  ;;  %5169 = vmatpush1.bf16.msra.mxu1 %v9995_v47  ;;  %v4632_v47 = vld [vmem:[#allocation2 + $0x2a7] sm:$0xff] }
 0x44f   :  { %v3041_v61 = vld [vmem:[#allocation2 + $0x1af] sm:$0xff]  ;;  %3009 = vst.msk [vmem:[#allocation2 + $0x1d0] sm:$0xff] %vm28_vm0, %v2977_v22  ;;  %v2907_v58 = vadd.f32 %v2864_v45, %v2527_v33  ;;  %v2866_v21 = vpop.f32.mrb[185].mxu1  ;;  %v3135_v0 = vpack.c.bf16 %v3113_v59, %v3112_v13  ;;  %5764 = vmatprep.subr.bf16.mxu1 %v10119_v10  ;;  %v4628_v45 = vld [vmem:[#allocation2 + $0x267] sm:$0xff] }
 0x450   :  { %v3256_v28 = vld [vmem:[#allocation2 + $0x1a9] sm:$0xff]  ;;  %v3063_v29 = vpack.c.bf16 %v3041_v61, %v3040_v50  ;;  %v3257_v31 = vld [vmem:[#allocation2 + $0x1b1] sm:$0xff]  ;;  %v2867_v57 = vpop.f32.mrb[186].mxu1  ;;  %v4737_v61 = vpack.c.bf16 %v4705_v37, %v4704_v46 }
 0x451   :  { %v3279_v18 = vpack.c.bf16 %v3257_v31, %v3256_v28  ;;  %v2946_v15 = vadd.f32 %v11678_v55, %v2907_v58  ;;  %v2908_v1 = vadd.f32 %v2867_v57, %v2530_v8  ;;  %v2869_v7 = vpop.f32.mrb[187].mxu1  ;;  %3184 = vrot.lane.b32.xlu1 %v3135_v0, %s10120_s26  ;;  %v10093_v55 = vld [vmem:[%s14346_s4] ss:$0 sm:$0xff]  ;;  %v4846_v22 = vld [vmem:[#allocation2 + $0x289] sm:$0xff] }
 0x452   :  { %3081 = vst.msk [vmem:[#allocation3 + $0xd0] sm:$0xff] %vm28_vm0, %v3063_v29  ;;  %v11994_v50 = vld [vmem:[#allocation3 + $0x28] sm:$0xff]  ;;  %v4703_v57 = vld [vmem:[#allocation2 + $0x290] sm:$0xff] }
 0x453   :  { %3297 = vst.msk [vmem:[#allocation3 + $0xd8] sm:$0xff] %vm28_vm0, %v3279_v18  ;;  %v2978_v43 = vmax.f32 %v2946_v15, 0.0  ;;  %v2947_v6 = vadd.f32 %v10093_v55, %v2908_v1  ;;  %v4629_v28 = vld [vmem:[#allocation2 + $0x26f] sm:$0xff] }
 0x454   :  { %v3114_v40 = vld [vmem:[#allocation2 + $0x1c8] sm:$0xff]  ;;  %v4709_v15 = vld [vmem:[#allocation2 + $0x2f0] sm:$0xff]  ;;  %v4663_v1 = vpack.c.bf16 %v4629_v28, %v4628_v45 }
 0x455   :  { %3010 = vst.msk [vmem:[#allocation2 + $0x1e8] sm:$0xff] %vm28_vm0, %v2978_v43  ;;  %v2979_v3 = vmax.f32 %v2947_v6, 0.0  ;;  %v3042_v41 = vld [vmem:[#allocation2 + $0x1c7] sm:$0xff]  ;;  %v4849_v6 = vld [vmem:[#allocation2 + $0x2b1] sm:$0xff] }
 0x456   :  { %v2872_v32 = vpop.f32.mrb[188].mxu1  ;;  %v3115_v27 = vld [vmem:[#allocation2 + $0x1d0] sm:$0xff]  ;;  %v9973_v43 = vld [vmem:[%s14347_s5 + $0xc0] sm:$0xff]   ;;  %v4718_v37 = vld [vmem:[#allocation2 + $0x388] sm:$0xff] }
 0x457   :  { %v3043_v52 = vld [vmem:[#allocation2 + $0x1cf] sm:$0xff]  ;;  %3011 = vst.msk [vmem:[#allocation2 + $0x1f0] sm:$0xff] %vm28_vm0, %v2979_v3  ;;  %v2909_v33 = vadd.f32 %v2872_v32, %v2535_v56  ;;  %v2874_v16 = vpop.f32.mrb[189].mxu1  ;;  %v3136_v62 = vpack.c.bf16 %v3115_v27, %v3114_v40  ;;  %v4735_v56 = vpack.c.bf16 %v4701_v26, %v4700_v23  ;;  %v4736_v3 = vpack.c.bf16 %v4703_v57, %v4702_v19  ;;  %v12005_v27 = vld [vmem:[#allocation3 + $0x38] sm:$0xff] }
 0x458   :  { %v3258_v34 = vld [vmem:[#allocation2 + $0x1c9] sm:$0xff]  ;;  %v3064_v54 = vpack.c.bf16 %v3043_v52, %v3042_v41  ;;  %v3259_v8 = vld [vmem:[#allocation2 + $0x1d1] sm:$0xff]  ;;  %v2875_v24 = vpop.f32.mrb[190].mxu1 }
 0x459   :  { %v3280_v14 = vpack.c.bf16 %v3259_v8, %v3258_v34  ;;  %v2948_v4 = vadd.f32 %v10093_v55, %v2909_v33  ;;  %v2910_v5 = vadd.f32 %v2875_v24, %v2538_v53  ;;  %v2877_v2 = vpop.f32.mrb[191].mxu1  ;;  %3186 = vrot.lane.b32.xlu0 %v3136_v62, %s10120_s26  ;;  %v4847_v53 = vld [vmem:[#allocation2 + $0x291] sm:$0xff]  ;;  %v4706_v40 = vld [vmem:[#allocation2 + $0x2c8] sm:$0xff]  ;;  %v4739_v34 = vpack.c.bf16 %v4709_v15, %v4708_v49 }
 0x45a   :  { %3082 = vst.msk [vmem:[#allocation3 + $0xe0] sm:$0xff] %vm28_vm0, %v3064_v54  ;;  %v4880_v13 = vpack.c.bf16 %v4847_v53, %v4846_v22  ;;  %v4707_v52 = vld [vmem:[#allocation2 + $0x2d0] sm:$0xff]  ;;  %v4712_v16 = vld [vmem:[#allocation2 + $0x328] sm:$0xff] }
 0x45b   :  { %3298 = vst.msk [vmem:[#allocation3 + $0xe8] sm:$0xff] %vm28_vm0, %v3280_v14  ;;  %v2980_v17 = vmax.f32 %v2948_v4, 0.0  ;;  %v2949_v30 = vadd.f32 %v10093_v55, %v2910_v5  ;;  %v4848_v55 = vld [vmem:[#allocation2 + $0x2a9] sm:$0xff]  ;;  %v4738_v8 = vpack.c.bf16 %v4707_v52, %v4706_v40 }
 0x45c   :  { %v3116_v63 = vld [vmem:[#allocation2 + $0x1e8] sm:$0xff]  ;;  %4898 = vst.msk [vmem:[#allocation3 + $0x28] sm:$0xff] %vm28_vm0, %v4880_v13  ;;  %v4881_v41 = vpack.c.bf16 %v4849_v6, %v4848_v55  ;;  %v4713_v62 = vld [vmem:[#allocation2 + $0x330] sm:$0xff] }
 0x45d   :  { %3012 = vst.msk [vmem:[#allocation2 + $0x208] sm:$0xff] %vm28_vm0, %v2980_v17  ;;  %v2981_v20 = vmax.f32 %v2949_v30, 0.0  ;;  %v3044_v36 = vld [vmem:[#allocation2 + $0x1e7] sm:$0xff]  ;;  %v4631_v24 = vld [vmem:[#allocation2 + $0x28f] sm:$0xff]  ;;  %v4741_v14 = vpack.c.bf16 %v4713_v62, %v4712_v16 }
 0x45e   :  { %v3117_v12 = vld [vmem:[#allocation2 + $0x1f0] sm:$0xff]  ;;  %4899 = vst.msk [vmem:[#allocation3 + $0x38] sm:$0xff] %vm28_vm0, %v4881_v41  ;;  %v9975_v54 = vld [vmem:[%s14347_s5 + $0xc8] sm:$0xff]   ;;  %v4664_v11 = vpack.c.bf16 %v4631_v24, %v4630_v42 }
 0x45f   :  { %v3045_v60 = vld [vmem:[#allocation2 + $0x1ef] sm:$0xff]  ;;  %3013 = vst.msk [vmem:[#allocation2 + $0x210] sm:$0xff] %vm28_vm0, %v2981_v20  ;;  %v3137_v25 = vpack.c.bf16 %v3117_v12, %v3116_v63  ;;  %v4634_v15 = vld [vmem:[#allocation2 + $0x2c7] sm:$0xff] }
 0x460   :  { %v3260_v35 = vld [vmem:[#allocation2 + $0x1e9] sm:$0xff]  ;;  %v3065_v39 = vpack.c.bf16 %v3045_v60, %v3044_v36  ;;  %v3261_v51 = vld [vmem:[#allocation2 + $0x1f1] sm:$0xff] }
 0x461   :  { %v3281_v44 = vpack.c.bf16 %v3261_v51, %v3260_v35  ;;  %3188 = vrot.lane.b32.xlu1 %v3137_v25, %s10120_s26  ;;  %v4710_v4 = vld [vmem:[#allocation2 + $0x308] sm:$0xff]  ;;  %v4711_v5 = vld [vmem:[#allocation2 + $0x310] sm:$0xff] }
 0x462   :  { %3083 = vst.msk [vmem:[#allocation3 + $0xf0] sm:$0xff] %vm28_vm0, %v3065_v39  ;;  %v4716_v2 = vld [vmem:[#allocation2 + $0x368] sm:$0xff]  ;;  %v4851_v30 = vld [vmem:[#allocation2 + $0x2d1] sm:$0xff]  ;;  %v4740_v36 = vpack.c.bf16 %v4711_v5, %v4710_v4 }
 0x463   :  { %3299 = vst.msk [vmem:[#allocation3 + $0xf8] sm:$0xff] %vm28_vm0, %v3281_v44  ;;  %v3161_v9 = vpop.permute.xlu0 %3160  ;;  %v4850_v17 = vld [vmem:[#allocation2 + $0x2c9] sm:$0xff]  ;;  %v4743_v25 = vpack.c.bf16 %v4717_v48, %v4716_v2  ;;  %v9987_v48 = vld [vmem:[%s14347_s5 + $0xf8] sm:$0xff]  }
 0x464   :  { %3213 = vst.msk [vmem:[#allocation3 + $0x10] sm:$0xff] %vm337_vm1, %v3161_v9  ;;  %v3118_v59 = vld [vmem:[#allocation2 + $0x208] sm:$0xff]  ;;  %v4882_v23 = vpack.c.bf16 %v4851_v30, %v4850_v17  ;;  %v9977_v26 = vld [vmem:[%s14347_s5 + $0xd0] sm:$0xff]  }
 0x465   :  { %4772 = vrot.lane.b32.xlu1 %v4735_v56, %s10120_s26  ;;  %v3046_v58 = vld [vmem:[#allocation2 + $0x207] sm:$0xff]  ;;  %v4715_v35 = vld [vmem:[#allocation2 + $0x350] sm:$0xff]  ;;  %v9979_v56 = vld [vmem:[%s14347_s5 + $0xd8] sm:$0xff]  }
 0x466   :  { %v3119_v21 = vld [vmem:[#allocation2 + $0x210] sm:$0xff]  ;;  %v12022_v63 = vld [vmem:[#allocation3 + $0x48] sm:$0xff] }
 0x467   :  { %v3047_v0 = vld [vmem:[#allocation2 + $0x20f] sm:$0xff]  ;;  %v3138_v31 = vpack.c.bf16 %v3119_v21, %v3118_v59  ;;  %4900 = vst.msk [vmem:[#allocation3 + $0x48] sm:$0xff] %vm28_vm0, %v4882_v23  ;;  %v4636_v5 = vld [vmem:[#allocation2 + $0x2e7] sm:$0xff] }
 0x468   :  { %v3262_v29 = vld [vmem:[#allocation2 + $0x209] sm:$0xff]  ;;  %v3066_v18 = vpack.c.bf16 %v3047_v0, %v3046_v58  ;;  %v3263_v38 = vld [vmem:[#allocation2 + $0x211] sm:$0xff] }
 0x469   :  { %v3282_v7 = vpack.c.bf16 %v3263_v38, %v3262_v29  ;;  %3190 = vrot.lane.b32.xlu0 %v3138_v31, %s10120_s26  ;;  %4776 = vrot.lane.b32.xlu1 %v4737_v61, %s10120_s26  ;;  %v4714_v12 = vld [vmem:[#allocation2 + $0x348] sm:$0xff]  ;;  %v4721_v51 = vld [vmem:[#allocation2 + $0x3b0] sm:$0xff]  ;;  %v12047_v0 = vld [vmem:[#allocation3 + $0x58] sm:$0xff] }
 0x46a   :  { %3084 = vst.msk [vmem:[#allocation3 + $0x100] sm:$0xff] %vm28_vm0, %v3066_v18  ;;  %v4720_v39 = vld [vmem:[#allocation2 + $0x3a8] sm:$0xff]  ;;  %v4742_v46 = vpack.c.bf16 %v4715_v35, %v4714_v12  ;;  %v4719_v22 = vld [vmem:[#allocation2 + $0x390] sm:$0xff]  ;;  %v9981_v29 = vld [vmem:[%s14347_s5 + $0xe0] sm:$0xff]  }
 0x46b   :  { %3300 = vst.msk [vmem:[#allocation3 + $0x108] sm:$0xff] %vm28_vm0, %v3282_v7  ;;  %v3358_v32 = vld [vmem:[#allocation3 + $0x10] sm:$0xff]  ;;  %v3163_v33 = vpop.permute.xlu0 %3162  ;;  %v4745_v53 = vpack.c.bf16 %v4721_v51, %v4720_v39  ;;  %v4724_v9 = vld [vmem:[#allocation2 + $0x3e8] sm:$0xff]  ;;  %v4744_v31 = vpack.c.bf16 %v4719_v22, %v4718_v37  ;;  %v9989_v39 = vld [vmem:[%s14347_s5 + $0x100] sm:$0xff]  }
 0x46c   :  { %3568 = vmatmul.mubr.bf16.vlgmr.msra.gmra.mrb[192].mxu0 %v3358_v32  ;;  %3857 = vmatmul.mubr.bf16.gmra.mrb[196].mxu1 %v3358_v32  ;;  %4681 = vst.msk [vmem:[#allocation3 + $0x10] sm:$0xff] %vm28_vm0, %v4663_v1  ;;  %v4633_v44 = vld [vmem:[#allocation2 + $0x2af] sm:$0xff] }
 0x46d   :  { %3214 = vst.msk [vmem:[#allocation3 + $0x20] sm:$0xff] %vm337_vm1, %v3163_v33  ;;  %4155 = vmatpush1.bf16.msra.mxu0 %v9973_v43  ;;  %9312 = vmatprep.mubr.msk.bf16.mxu0 %vm28_vm0, %v11994_v50  ;;  %v4665_v13 = vpack.c.bf16 %v4633_v44, %v4632_v47  ;;  %v4725_v45 = vld [vmem:[#allocation2 + $0x3f0] sm:$0xff]  ;;  %v4722_v19 = vld [vmem:[#allocation2 + $0x3c8] sm:$0xff] }
 0x46e   :  { %9341 = vmatprep.mubr.msk.bf16.mxu1 %vm28_vm0, %v11994_v50  ;;  %4774 = vrot.lane.b32.xlu0 %v4736_v3, %s10120_s26  ;;  %v4852_v59 = vld [vmem:[#allocation2 + $0x2e9] sm:$0xff]  ;;  %v4853_v61 = vld [vmem:[#allocation2 + $0x2f1] sm:$0xff]  ;;  %v4747_v18 = vpack.c.bf16 %v4725_v45, %v4724_v9 }
 0x46f   :  { %4156 = vmatprep.subr.bf16.mxu0 %v10119_v10  ;;  %4780 = vrot.lane.b32.xlu1 %v4739_v34, %s10120_s26  ;;  %v4883_v28 = vpack.c.bf16 %v4853_v61, %v4852_v59  ;;  %v4723_v57 = vld [vmem:[#allocation2 + $0x3d0] sm:$0xff]  ;;  %v4728_v38 = vld [vmem:[#allocation2 + $0x428] sm:$0xff] }
 0x470   :  { %v4729_v49 = vld [vmem:[#allocation2 + $0x430] sm:$0xff]  ;;  %v9983_v7 = vld [vmem:[%s14347_s5 + $0xe8] sm:$0xff]   ;;  %v4746_v43 = vpack.c.bf16 %v4723_v57, %v4722_v19 }
 0x471   :  { %4157 = vmatpush1.bf16.msra.mxu0 %v9975_v54  ;;  %4901 = vst.msk [vmem:[#allocation3 + $0x58] sm:$0xff] %vm28_vm0, %v4883_v28  ;;  %v4635_v1 = vld [vmem:[#allocation2 + $0x2cf] sm:$0xff]  ;;  %v4749_v3 = vpack.c.bf16 %v4729_v49, %v4728_v38  ;;  %v4638_v47 = vld [vmem:[#allocation2 + $0x307] sm:$0xff]  ;;  %v12141_v49 = vld [vmem:[#allocation3 + $0x98] sm:$0xff] }
 0x472   :  { %4158 = vmatprep.subr.bf16.mxu0 %v10119_v10  ;;  %4778 = vrot.lane.b32.xlu0 %v4738_v8, %s10120_s26  ;;  %v4726_v55 = vld [vmem:[#allocation2 + $0x408] sm:$0xff]  ;;  %v4727_v6 = vld [vmem:[#allocation2 + $0x410] sm:$0xff]  ;;  %v4666_v41 = vpack.c.bf16 %v4635_v1, %v4634_v15 }
 0x473   :  { %v3165_v20 = vpop.permute.xlu1 %3164  ;;  %4784 = vrot.lane.b32.xlu1 %v4741_v14, %s10120_s26  ;;  %v4730_v40 = vld [vmem:[#allocation2 + $0x448] sm:$0xff]  ;;  %v4731_v32 = vld [vmem:[#allocation2 + $0x450] sm:$0xff]  ;;  %v4748_v42 = vpack.c.bf16 %v4727_v6, %v4726_v55 }
 0x474   :  { %3215 = vst.msk [vmem:[#allocation3 + $0x30] sm:$0xff] %vm337_vm1, %v3165_v20  ;;  %v12029_v60 = vld [vmem:[#allocation3 + $0x20] sm:$0xff]  ;;  %v4854_v52 = vld [vmem:[#allocation2 + $0x309] sm:$0xff]  ;;  %v4855_v34 = vld [vmem:[#allocation2 + $0x311] sm:$0xff]  ;;  %v4750_v24 = vpack.c.bf16 %v4731_v32, %v4730_v40 }
 0x475   :  { %3576 = vmatmul.mubr.bf16.gmra.mrb[196].mxu0 %v12029_v60  ;;  %3865 = vmatmul.mubr.bf16.gmra.mrb[200].mxu1 %v12029_v60  ;;  %4682 = vst.msk [vmem:[#allocation3 + $0x20] sm:$0xff] %vm28_vm0, %v4664_v11  ;;  %v4884_v33 = vpack.c.bf16 %v4855_v34, %v4854_v52  ;;  %v12072_v54 = vld [vmem:[#allocation3 + $0x68] sm:$0xff]  ;;  %v9985_v8 = vld [vmem:[%s14347_s5 + $0xf0] sm:$0xff]  }
 0x476   :  { %9313 = vmatprep.mubr.msk.bf16.mxu0 %vm28_vm0, %v12005_v27  ;;  %9342 = vmatprep.mubr.msk.bf16.mxu1 %vm28_vm0, %v12005_v27  ;;  %v3120_v14 = vld [vmem:[#allocation2 + $0x228] sm:$0xff]  ;;  %v3121_v4 = vld [vmem:[#allocation2 + $0x230] sm:$0xff] }
 0x477   :  { %4159 = vmatpush1.bf16.msra.mxu0 %v9977_v26  ;;  %4782 = vrot.lane.b32.xlu0 %v4740_v36, %s10120_s26  ;;  %4902 = vst.msk [vmem:[#allocation3 + $0x68] sm:$0xff] %vm28_vm0, %v4884_v33  ;;  %v4637_v2 = vld [vmem:[#allocation2 + $0x2ef] sm:$0xff]  ;;  %v3139_v11 = vpack.c.bf16 %v3121_v4, %v3120_v14  ;;  %v4640_v61 = vld [vmem:[#allocation2 + $0x327] sm:$0xff]  ;;  %v12168_v14 = vld [vmem:[#allocation3 + $0xb8] sm:$0xff] }
 0x478   :  { %4160 = vmatprep.subr.bf16.mxu0 %v10119_v10  ;;  %4788 = vrot.lane.b32.xlu1 %v4743_v25, %s10120_s26  ;;  %v4698_v17 = vld [vmem:[#allocation2 + $0x248] sm:$0xff]  ;;  %v4699_v30 = vld [vmem:[#allocation2 + $0x250] sm:$0xff]  ;;  %v4667_v23 = vpack.c.bf16 %v4637_v2, %v4636_v5  ;;  %v12097_v25 = vld [vmem:[#allocation3 + $0x78] sm:$0xff] }
 0x479   :  { %v4856_v20 = vld [vmem:[#allocation2 + $0x329] sm:$0xff]  ;;  %v4857_v26 = vld [vmem:[#allocation2 + $0x331] sm:$0xff]  ;;  %v4734_v51 = vpack.c.bf16 %v4699_v30, %v4698_v17 }
 0x47a   :  { %v4885_v36 = vpack.c.bf16 %v4857_v26, %v4856_v20  ;;  %v4639_v44 = vld [vmem:[#allocation2 + $0x30f] sm:$0xff]  ;;  %v4642_v15 = vld [vmem:[#allocation2 + $0x347] sm:$0xff] }
 0x47b   :  { %v3167_v58 = vpop.permute.xlu0 %3166  ;;  %v12045_v21 = vld [vmem:[#allocation3 + $0x30] sm:$0xff]  ;;  %4161 = vmatpush1.bf16.msra.mxu0 %v9979_v56  ;;  %4786 = vrot.lane.b32.xlu0 %v4742_v46, %s10120_s26  ;;  %v9991_v56 = vld [vmem:[%s14347_s5 + $0x108] sm:$0xff]   ;;  %v4668_v46 = vpack.c.bf16 %v4639_v44, %v4638_v47 }
 0x47c   :  { %3216 = vst.msk [vmem:[#allocation3 + $0x40] sm:$0xff] %vm337_vm1, %v3167_v58  ;;  %4162 = vmatprep.subr.bf16.mxu0 %v10119_v10  ;;  %4792 = vrot.lane.b32.xlu1 %v4745_v53, %s10120_s26  ;;  %v4858_v37 = vld [vmem:[#allocation2 + $0x349] sm:$0xff]  ;;  %v4859_v22 = vld [vmem:[#allocation2 + $0x351] sm:$0xff] }
 0x47d   :  { %4683 = vst.msk [vmem:[#allocation3 + $0x30] sm:$0xff] %vm28_vm0, %v4665_v13  ;;  %3584 = vmatmul.mubr.bf16.gmra.mrb[200].mxu0 %v12045_v21  ;;  %3873 = vmatmul.mubr.bf16.gmra.mrb[204].mxu1 %v12045_v21  ;;  %4903 = vst.msk [vmem:[#allocation3 + $0x78] sm:$0xff] %vm28_vm0, %v4885_v36  ;;  %v4886_v53 = vpack.c.bf16 %v4859_v22, %v4858_v37  ;;  %v12120_v45 = vld [vmem:[#allocation3 + $0x88] sm:$0xff]  ;;  %v9993_v59 = vld [vmem:[%s14347_s5 + $0x110] sm:$0xff]  }
 0x47e   :  { %9314 = vmatprep.mubr.msk.bf16.mxu0 %vm28_vm0, %v12022_v63  ;;  %9343 = vmatprep.mubr.msk.bf16.mxu1 %vm28_vm0, %v12022_v63  ;;  %v4641_v28 = vld [vmem:[#allocation2 + $0x32f] sm:$0xff]  ;;  %v9996_v58 = vld [vmem:[%s14347_s5 + $0x118] sm:$0xff]   ;;  %v4644_v32 = vld [vmem:[#allocation2 + $0x367] sm:$0xff] }
 0x47f   :  { %4163 = vmatpush1.bf16.msra.mxu0 %v9981_v29  ;;  %4790 = vrot.lane.b32.xlu0 %v4744_v31, %s10120_s26  ;;  %4904 = vst.msk [vmem:[#allocation3 + $0x88] sm:$0xff] %vm28_vm0, %v4886_v53  ;;  %v4669_v29 = vpack.c.bf16 %v4641_v28, %v4640_v61  ;;  %v4860_v31 = vld [vmem:[#allocation2 + $0x369] sm:$0xff]  ;;  %v4861_v19 = vld [vmem:[#allocation2 + $0x371] sm:$0xff] }
 0x480   :  { %4164 = vmatprep.subr.bf16.mxu0 %v10119_v10  ;;  %4796 = vrot.lane.b32.xlu1 %v4747_v18, %s10120_s26  ;;  %v4887_v57 = vpack.c.bf16 %v4861_v19, %v4860_v31  ;;  %v4643_v1 = vld [vmem:[#allocation2 + $0x34f] sm:$0xff]  ;;  %v4646_v4 = vld [vmem:[#allocation2 + $0x387] sm:$0xff]  ;;  %v12196_v22 = vld [vmem:[#allocation3 + $0xd8] sm:$0xff] }
 0x481   :  { %v4863_v55 = vld [vmem:[#allocation2 + $0x391] sm:$0xff]  ;;  %v4864_v33 = vld [vmem:[#allocation2 + $0x3a9] sm:$0xff] }
 0x482   :  { %4905 = vst.msk [vmem:[#allocation3 + $0x98] sm:$0xff] %vm28_vm0, %v4887_v57  ;;  %v4645_v52 = vld [vmem:[#allocation2 + $0x36f] sm:$0xff]  ;;  %v4648_v26 = vld [vmem:[#allocation2 + $0x3a7] sm:$0xff] }
 0x483   :  { %v3169_v16 = vpop.permute.xlu1 %3168  ;;  %v12070_v62 = vld [vmem:[#allocation3 + $0x40] sm:$0xff]  ;;  %4165 = vmatpush1.bf16.msra.mxu0 %v9983_v7  ;;  %4794 = vrot.lane.b32.xlu0 %v4746_v43, %s10120_s26  ;;  %v4670_v7 = vpack.c.bf16 %v4643_v1, %v4642_v15  ;;  %v4862_v43 = vld [vmem:[#allocation2 + $0x389] sm:$0xff]  ;;  %v4671_v34 = vpack.c.bf16 %v4645_v52, %v4644_v32  ;;  %v4869_v44 = vld [vmem:[#allocation2 + $0x3f1] sm:$0xff] }
 0x484   :  { %3217 = vst.msk [vmem:[#allocation3 + $0x50] sm:$0xff] %vm337_vm1, %v3169_v16  ;;  %4166 = vmatprep.subr.bf16.mxu0 %v10119_v10  ;;  %4800 = vrot.lane.b32.xlu1 %v4749_v3, %s10120_s26  ;;  %v4888_v6 = vpack.c.bf16 %v4863_v55, %v4862_v43  ;;  %v4865_v16 = vld [vmem:[#allocation2 + $0x3b1] sm:$0xff]  ;;  %v12181_v20 = vld [vmem:[#allocation3 + $0xc8] sm:$0xff] }
 0x485   :  { %4684 = vst.msk [vmem:[#allocation3 + $0x40] sm:$0xff] %vm28_vm0, %v4666_v41  ;;  %3592 = vmatmul.mubr.bf16.gmra.mrb[204].mxu0 %v12070_v62  ;;  %3881 = vmatmul.mubr.bf16.gmra.mrb[208].mxu1 %v12070_v62  ;;  %v12155_v41 = vld [vmem:[#allocation3 + $0xa8] sm:$0xff]  ;;  %v4873_v55 = vld [vmem:[#allocation2 + $0x431] sm:$0xff] }
 0x486   :  { %9315 = vmatprep.mubr.msk.bf16.mxu0 %vm28_vm0, %v12047_v0  ;;  %9344 = vmatprep.mubr.msk.bf16.mxu1 %vm28_vm0, %v12047_v0  ;;  %4906 = vst.msk [vmem:[#allocation3 + $0xa8] sm:$0xff] %vm28_vm0, %v4888_v6  ;;  %v4647_v5 = vld [vmem:[#allocation2 + $0x38f] sm:$0xff]  ;;  %v4650_v53 = vld [vmem:[#allocation2 + $0x3c7] sm:$0xff]  ;;  %v12225_v52 = vld [vmem:[#allocation3 + $0xf8] sm:$0xff] }
 0x487   :  { %4167 = vmatpush1.bf16.msra.mxu0 %v9985_v8  ;;  %4798 = vrot.lane.b32.xlu0 %v4748_v42, %s10120_s26  ;;  %v4889_v8 = vpack.c.bf16 %v4865_v16, %v4864_v33  ;;  %v4672_v2 = vpack.c.bf16 %v4647_v5, %v4646_v4  ;;  %v4649_v36 = vld [vmem:[#allocation2 + $0x3af] sm:$0xff]  ;;  %v4652_v15 = vld [vmem:[#allocation2 + $0x3e7] sm:$0xff] }
 0x488   :  { %4168 = vmatprep.subr.bf16.mxu0 %v10119_v10  ;;  %4802 = vrot.lane.b32.xlu1 %v4750_v24, %s10120_s26  ;;  %v4868_v47 = vld [vmem:[#allocation2 + $0x3e9] sm:$0xff] }
 0x489   :  { %4907 = vst.msk [vmem:[#allocation3 + $0xb8] sm:$0xff] %vm28_vm0, %v4889_v8  ;;  %v4653_v1 = vld [vmem:[#allocation2 + $0x3ef] sm:$0xff] }
 0x48a   :  { %v4872_v43 = vld [vmem:[#allocation2 + $0x429] sm:$0xff] }
 0x48b   :  { %v3171_v12 = vpop.permute.xlu0 %3170  ;;  %v12095_v35 = vld [vmem:[#allocation3 + $0x50] sm:$0xff]  ;;  %4169 = vmatpush1.bf16.msra.mxu0 %v9987_v48  ;;  %3192 = vrot.lane.b32.xlu0 %v3139_v11, %s10120_s26  ;;  %v4893_v32 = vpack.c.bf16 %v4873_v55, %v4872_v43  ;;  %v9998_v43 = vld [vmem:[%s14343_s1 + $0xc0] sm:$0xff]  }
 0x48c   :  { %3218 = vst.msk [vmem:[#allocation3 + $0x60] sm:$0xff] %vm337_vm1, %v3171_v12  ;;  %4170 = vmatprep.subr.bf16.mxu0 %v10119_v10  ;;  %v4866_v48 = vld [vmem:[#allocation2 + $0x3c9] sm:$0xff]  ;;  %v4867_v11 = vld [vmem:[#allocation2 + $0x3d1] sm:$0xff]  ;;  %v12192_v12 = vpop.f32.mrb[192].mxu1 }
 0x48d   :  { %4685 = vst.msk [vmem:[#allocation3 + $0x50] sm:$0xff] %vm28_vm0, %v4667_v23  ;;  %3600 = vmatmul.mubr.bf16.gmra.mrb[208].mxu0 %v12095_v35  ;;  %3889 = vmatmul.mubr.bf16.gmra.mrb[212].mxu1 %v12095_v35  ;;  %v4890_v17 = vpack.c.bf16 %v4867_v11, %v4866_v48  ;;  %v4655_v33 = vld [vmem:[#allocation2 + $0x40f] sm:$0xff]  ;;  %4911 = vst.msk [vmem:[#allocation3 + $0xf8] sm:$0xff] %vm28_vm0, %v4893_v32  ;;  %v4656_v11 = vld [vmem:[#allocation2 + $0x427] sm:$0xff] }
 0x48e   :  { %9316 = vmatprep.mubr.msk.bf16.mxu0 %vm28_vm0, %v12072_v54  ;;  %9345 = vmatprep.mubr.msk.bf16.mxu1 %vm28_vm0, %v12072_v54  ;;  %v4874_v8 = vld [vmem:[#allocation2 + $0x449] sm:$0xff]  ;;  %v4877_v32 = vld [vmem:[#allocation2 + $0x471] sm:$0xff] }
 0x48f   :  { %4171 = vmatpush1.bf16.msra.mxu0 %v9989_v39  ;;  %4770 = vrot.lane.b32.xlu0 %v4734_v51, %s10120_s26  ;;  %4908 = vst.msk [vmem:[#allocation3 + $0xc8] sm:$0xff] %vm28_vm0, %v4890_v17  ;;  %v3852_v39 = vpop.f32.mrb[193].mxu1  ;;  %v4673_v51 = vpack.c.bf16 %v4649_v36, %v4648_v26  ;;  %v12238_v48 = vld [vmem:[#allocation3 + $0x108] sm:$0xff] }
 0x490   :  { %4172 = vmatprep.subr.bf16.mxu0 %v10119_v10  ;;  %v4657_v17 = vld [vmem:[#allocation2 + $0x42f] sm:$0xff]  ;;  %v3048_v36 = vld [vmem:[#allocation2 + $0x227] sm:$0xff] }
 0x491   :  { %v4677_v26 = vpack.c.bf16 %v4657_v17, %v4656_v11  ;;  %v3049_v39 = vld [vmem:[#allocation2 + $0x22f] sm:$0xff]  ;;  %v9997_v17 = vld [vmem:[%s14343_s1] sm:$0xff]  }
 0x493   :  { %v3173_v9 = vpop.permute.xlu1 %3172  ;;  %v12118_v13 = vld [vmem:[#allocation3 + $0x60] sm:$0xff]  ;;  %4173 = vmatpush1.bf16.msra.mxu0 %v9991_v56  ;;  %v4891_v56 = vpack.c.bf16 %v4869_v44, %v4868_v47 }
 0x494   :  { %3219 = vst.msk [vmem:[#allocation3 + $0x70] sm:$0xff] %vm337_vm1, %v3173_v9  ;;  %4174 = vmatprep.subr.bf16.mxu0 %v10119_v10  ;;  %v4651_v9 = vld [vmem:[#allocation2 + $0x3cf] sm:$0xff] }
 0x495   :  { %4686 = vst.msk [vmem:[#allocation3 + $0x60] sm:$0xff] %vm28_vm0, %v4668_v46  ;;  %3608 = vmatmul.mubr.bf16.gmra.mrb[212].mxu0 %v12118_v13  ;;  %3897 = vmatmul.mubr.bf16.gmra.mrb[216].mxu1 %v12118_v13  ;;  %4909 = vst.msk [vmem:[#allocation3 + $0xd8] sm:$0xff] %vm28_vm0, %v4891_v56  ;;  %v4674_v28 = vpack.c.bf16 %v4651_v9, %v4650_v53  ;;  %v12251_v56 = vld [vmem:[#allocation3 + $0x18] sm:$0xff]  ;;  %v4658_v53 = vld [vmem:[#allocation2 + $0x447] sm:$0xff] }
 0x496   :  { %9317 = vmatprep.mubr.msk.bf16.mxu0 %vm28_vm0, %v12097_v25  ;;  %9346 = vmatprep.mubr.msk.bf16.mxu1 %vm28_vm0, %v12097_v25  ;;  %v4659_v9 = vld [vmem:[#allocation2 + $0x44f] sm:$0xff] }
 0x497   :  { %4175 = vmatpush1.bf16.msra.mxu0 %v9993_v59  ;;  %v12203_v59 = vpop.f32.mrb[194].mxu1 }
 0x498   :  { %4176 = vmatprep.subr.bf16.mxu0 %v10119_v10  ;;  %v3855_v61 = vpop.f32.mrb[195].mxu1 }
 0x49b   :  { %v3175_v18 = vpop.permute.xlu0 %3174  ;;  %v12139_v38 = vld [vmem:[#allocation3 + $0x70] sm:$0xff]  ;;  %4177 = vmatpush1.bf16.msra.mxu0 %v9996_v58 }
 0x49c   :  { %3220 = vst.msk [vmem:[#allocation3 + $0x80] sm:$0xff] %vm337_vm1, %v3175_v18  ;;  %5427 = vmatprep.subr.bf16.mxu0 %v10119_v10  ;;  %v4870_v58 = vld [vmem:[#allocation2 + $0x409] sm:$0xff] }
 0x49d   :  { %4687 = vst.msk [vmem:[#allocation3 + $0x70] sm:$0xff] %vm28_vm0, %v4669_v29  ;;  %3616 = vmatmul.mubr.bf16.gmra.mrb[216].mxu0 %v12139_v38  ;;  %3905 = vmatmul.mubr.bf16.gmra.mrb[220].mxu1 %v12139_v38  ;;  %v4871_v29 = vld [vmem:[#allocation2 + $0x411] sm:$0xff]  ;;  %v12212_v18 = vld [vmem:[#allocation3 + $0xe8] sm:$0xff] }
 0x49e   :  { %9318 = vmatprep.mubr.msk.bf16.mxu0 %vm28_vm0, %v12120_v45  ;;  %9347 = vmatprep.mubr.msk.bf16.mxu1 %vm28_vm0, %v12120_v45  ;;  %v4892_v57 = vpack.c.bf16 %v4871_v29, %v4870_v58  ;;  %v4626_v29 = vld [vmem:[#allocation2 + $0x247] sm:$0xff] }
 0x4a0   :  { %4910 = vst.msk [vmem:[#allocation3 + $0xe8] sm:$0xff] %vm28_vm0, %v4892_v57 }
 0x4a3   :  { %v3177_v3 = vpop.permute.xlu1 %3176  ;;  %v12153_v40 = vld [vmem:[#allocation3 + $0x80] sm:$0xff] }
 0x4a4   :  { %3221 = vst.msk [vmem:[#allocation3 + $0x90] sm:$0xff] %vm337_vm1, %v3177_v3 }
 0x4a5   :  { %4688 = vst.msk [vmem:[#allocation3 + $0x80] sm:$0xff] %vm28_vm0, %v4670_v7  ;;  %3624 = vmatmul.mubr.bf16.gmra.mrb[220].mxu0 %v12153_v40  ;;  %3913 = vmatmul.mubr.bf16.gmra.mrb[224].mxu1 %v12153_v40  ;;  %v4675_v7 = vpack.c.bf16 %v4653_v1, %v4652_v15 }
 0x4a6   :  { %9319 = vmatprep.mubr.msk.bf16.mxu0 %vm28_vm0, %v12141_v49  ;;  %9348 = vmatprep.mubr.msk.bf16.mxu1 %vm28_vm0, %v12141_v49 }
 0x4ab   :  { %v3179_v42 = vpop.permute.xlu0 %3178  ;;  %v12166_v24 = vld [vmem:[#allocation3 + $0x90] sm:$0xff] }
 0x4ac   :  { %3222 = vst.msk [vmem:[#allocation3 + $0xa0] sm:$0xff] %vm337_vm1, %v3179_v42  ;;  %v4875_v42 = vld [vmem:[#allocation2 + $0x451] sm:$0xff] }
 0x4ad   :  { %4689 = vst.msk [vmem:[#allocation3 + $0x90] sm:$0xff] %vm28_vm0, %v4671_v34  ;;  %3632 = vmatmul.mubr.bf16.gmra.mrb[224].mxu0 %v12166_v24  ;;  %3921 = vmatmul.mubr.bf16.gmra.mrb[228].mxu1 %v12166_v24  ;;  %v4654_v34 = vld [vmem:[#allocation2 + $0x407] sm:$0xff] }
 0x4ae   :  { %9320 = vmatprep.mubr.msk.bf16.mxu0 %vm28_vm0, %v12155_v41  ;;  %9349 = vmatprep.mubr.msk.bf16.mxu1 %vm28_vm0, %v12155_v41  ;;  %v4676_v16 = vpack.c.bf16 %v4655_v33, %v4654_v34 }
 0x4b3   :  { %v3181_v30 = vpop.permute.xlu1 %3180  ;;  %v12179_v23 = vld [vmem:[#allocation3 + $0xa0] sm:$0xff] }
 0x4b4   :  { %3223 = vst.msk [vmem:[#allocation3 + $0xb0] sm:$0xff] %vm337_vm1, %v3181_v30 }
 0x4b5   :  { %4690 = vst.msk [vmem:[#allocation3 + $0xa0] sm:$0xff] %vm28_vm0, %v4672_v2  ;;  %3640 = vmatmul.mubr.bf16.gmra.mrb[228].mxu0 %v12179_v23  ;;  %3929 = vmatmul.mubr.bf16.gmra.mrb[232].mxu1 %v12179_v23  ;;  %v4894_v2 = vpack.c.bf16 %v4875_v42, %v4874_v8  ;;  %v4732_v8 = vld [vmem:[#allocation2 + $0x468] sm:$0xff]  ;;  %v4733_v42 = vld [vmem:[#allocation2 + $0x470] sm:$0xff] }
 0x4b6   :  { %9321 = vmatprep.mubr.msk.bf16.mxu0 %vm28_vm0, %v12168_v14  ;;  %9350 = vmatprep.mubr.msk.bf16.mxu1 %vm28_vm0, %v12168_v14 }
 0x4b7   :  { %4912 = vst.msk [vmem:[#allocation3 + $0x108] sm:$0xff] %vm28_vm0, %v4894_v2  ;;  %v4751_v2 = vpack.c.bf16 %v4733_v42, %v4732_v8  ;;  %v12360_v8 = vld [vmem:[#allocation3 + $0x58] sm:$0xff]  ;;  %v10005_v42 = vld [vmem:[%s14343_s1 + $0x20] sm:$0xff]  }
 0x4b9   :  { %4804 = vrot.lane.b32.xlu1 %v4751_v2, %s10120_s26 }
 0x4bb   :  { %v3183_v46 = vpop.permute.xlu0 %3182  ;;  %v12194_v37 = vld [vmem:[#allocation3 + $0xb0] sm:$0xff] }
 0x4bc   :  { %3224 = vst.msk [vmem:[#allocation3 + $0xc0] sm:$0xff] %vm337_vm1, %v3183_v46 }
 0x4bd   :  { %4691 = vst.msk [vmem:[#allocation3 + $0xb0] sm:$0xff] %vm28_vm0, %v4673_v51  ;;  %3648 = vmatmul.mubr.bf16.gmra.mrb[232].mxu0 %v12194_v37  ;;  %3937 = vmatmul.mubr.bf16.gmra.mrb[236].mxu1 %v12194_v37  ;;  %v3067_v51 = vpack.c.bf16 %v3049_v39, %v3048_v36  ;;  %v6277_v36 = vld [vmem:[#allocation2 + $0x251] sm:$0xff] }
 0x4be   :  { %9322 = vmatprep.mubr.msk.bf16.mxu0 %vm28_vm0, %v12181_v20  ;;  %9351 = vmatprep.mubr.msk.bf16.mxu1 %vm28_vm0, %v12181_v20  ;;  %v12302_v39 = vld [vmem:[#allocation3 + $0x38] sm:$0xff] }
 0x4bf   :  { %3085 = vst.msk [vmem:[#allocation3 + $0x110] sm:$0xff] %vm28_vm0, %v3067_v51  ;;  %v10002_v51 = vld [vmem:[%s14343_s1 + $0xd0] sm:$0xff]  }
 0x4c3   :  { %v3185_v31 = vpop.permute.xlu1 %3184  ;;  %v12209_v19 = vld [vmem:[#allocation3 + $0xc0] sm:$0xff] }
 0x4c4   :  { %3225 = vst.msk [vmem:[#allocation3 + $0xd0] sm:$0xff] %vm337_vm1, %v3185_v31  ;;  %v4627_v31 = vld [vmem:[#allocation2 + $0x24f] sm:$0xff] }
 0x4c5   :  { %4692 = vst.msk [vmem:[#allocation3 + $0xc0] sm:$0xff] %vm28_vm0, %v4674_v28  ;;  %3656 = vmatmul.mubr.bf16.gmra.mrb[236].mxu0 %v12209_v19  ;;  %3945 = vmatmul.mubr.bf16.gmra.mrb[240].mxu1 %v12209_v19  ;;  %v4678_v28 = vpack.c.bf16 %v4659_v9, %v4658_v53  ;;  %v4662_v15 = vpack.c.bf16 %v4627_v31, %v4626_v29  ;;  %v12310_v53 = vld [vmem:[#allocation3 + $0x8] sm:$0xff]  ;;  %v10001_v31 = vld [vmem:[%s14343_s1 + $0x10] sm:$0xff]  }
 0x4c6   :  { %9323 = vmatprep.mubr.msk.bf16.mxu0 %vm28_vm0, %v12196_v22  ;;  %9352 = vmatprep.mubr.msk.bf16.mxu1 %vm28_vm0, %v12196_v22  ;;  %v9999_v9 = vld [vmem:[%s14343_s1 + $0x8] sm:$0xff]  }
 0x4c7   :  { %4680 = vst.msk [vmem:[#allocation3] sm:$0xff] %vm28_vm0, %v4662_v15  ;;  %v12330_v29 = vld [vmem:[#allocation3 + $0x48] sm:$0xff]  ;;  %v10006_v15 = vld [vmem:[%s14343_s1 + $0xe0] sm:$0xff]  }
 0x4cb   :  { %v3187_v6 = vpop.permute.xlu0 %3186  ;;  %v12222_v3 = vld [vmem:[#allocation3 + $0xd0] sm:$0xff] }
 0x4cc   :  { %3226 = vst.msk [vmem:[#allocation3 + $0xe0] sm:$0xff] %vm337_vm1, %v3187_v6  ;;  %v4876_v6 = vld [vmem:[#allocation2 + $0x469] sm:$0xff] }
 0x4cd   :  { %4693 = vst.msk [vmem:[#allocation3 + $0xd0] sm:$0xff] %vm28_vm0, %v4675_v7  ;;  %3664 = vmatmul.mubr.bf16.gmra.mrb[240].mxu0 %v12222_v3  ;;  %3953 = vmatmul.mubr.bf16.gmra.mrb[244].mxu1 %v12222_v3  ;;  %v12269_v7 = vld [vmem:[#allocation3 + $0x28] sm:$0xff]  ;;  %v12279_v33 = vpack.c.bf16 %v4877_v32, %v4876_v6  ;;  %v10003_v6 = vld [vmem:[%s14343_s1 + $0x18] sm:$0xff]  }
 0x4ce   :  { %9324 = vmatprep.mubr.msk.bf16.mxu0 %vm28_vm0, %v12212_v18  ;;  %9353 = vmatprep.mubr.msk.bf16.mxu1 %vm28_vm0, %v12212_v18 }
 0x4d3   :  { %v3189_v4 = vpop.permute.xlu1 %3188  ;;  %v12235_v5 = vld [vmem:[#allocation3 + $0xe0] sm:$0xff] }
 0x4d4   :  { %3227 = vst.msk [vmem:[#allocation3 + $0xf0] sm:$0xff] %vm337_vm1, %v3189_v4  ;;  %v10000_v4 = vld [vmem:[%s14343_s1 + $0xc8] sm:$0xff]  }
 0x4d5   :  { %4694 = vst.msk [vmem:[#allocation3 + $0xe0] sm:$0xff] %vm28_vm0, %v4676_v16  ;;  %3672 = vmatmul.mubr.bf16.gmra.mrb[244].mxu0 %v12235_v5  ;;  %3961 = vmatmul.mubr.bf16.gmra.mrb[248].mxu1 %v12235_v5  ;;  %v12286_v16 = vld [vmem:[#allocation3 + $0x118] sm:$0xff] }
 0x4d6   :  { %9325 = vmatprep.mubr.msk.bf16.mxu0 %vm28_vm0, %v12225_v52  ;;  %9354 = vmatprep.mubr.msk.bf16.mxu1 %vm28_vm0, %v12225_v52  ;;  %4913 = vst.msk [vmem:[#allocation3 + $0x118] sm:$0xff] %vm28_vm0, %v12279_v33 }
 0x4d7   :  { %v4773_v30 = vpop.permute.xlu1 %4772 }
 0x4d8   :  { %4825 = vst.msk [vmem:[#allocation3 + $0x10] sm:$0xff] %vm337_vm1, %v4773_v30 }
 0x4db   :  { %v3191_v47 = vpop.permute.xlu0 %3190  ;;  %v12249_v44 = vld [vmem:[#allocation3 + $0xf0] sm:$0xff]  ;;  %v4777_v46 = vpop.permute.xlu1 %4776 }
 0x4dc   :  { %3228 = vst.msk [vmem:[#allocation3 + $0x100] sm:$0xff] %vm337_vm1, %v3191_v47  ;;  %4827 = vst.msk [vmem:[#allocation3 + $0x30] sm:$0xff] %vm337_vm1, %v4777_v46 }
 0x4dd   :  { %4695 = vst.msk [vmem:[#allocation3 + $0xf0] sm:$0xff] %vm28_vm0, %v4677_v26  ;;  %3680 = vmatmul.mubr.bf16.gmra.mrb[248].mxu0 %v12249_v44  ;;  %3969 = vmatmul.mubr.bf16.gmra.mrb[252].mxu1 %v12249_v44  ;;  %v6276_v26 = vld [vmem:[#allocation2 + $0x249] sm:$0xff] }
 0x4de   :  { %9326 = vmatprep.mubr.msk.bf16.mxu0 %vm28_vm0, %v12238_v48  ;;  %9476 = vmatprep.mubr.msk.bf16.mxu1 %vm28_vm0, %v12251_v56  ;;  %v6312_v47 = vpack.c.bf16 %v6277_v36, %v6276_v26  ;;  %v10009_v26 = vld [vmem:[%s14343_s1 + $0x30] sm:$0xff]   ;;  %v10014_v36 = vld [vmem:[%s14343_s1 + $0x100] sm:$0xff]  }
 0x4df   :  { %v12264_v57 = vld [vmem:[#allocation3 + $0x10] sm:$0xff] }
 0x4e0   :  { %v4775_v61 = vpop.permute.xlu0 %4774  ;;  %6330 = vst.msk [vmem:[#allocation3 + $0x8] sm:$0xff] %vm28_vm0, %v6312_v47  ;;  %v12415_v47 = vld [vmem:[#allocation3 + $0x78] sm:$0xff] }
 0x4e1   :  { %4826 = vst.msk [vmem:[#allocation3 + $0x20] sm:$0xff] %vm337_vm1, %v4775_v61  ;;  %v4781_v58 = vpop.permute.xlu1 %4780 }
 0x4e2   :  { %4829 = vst.msk [vmem:[#allocation3 + $0x50] sm:$0xff] %vm337_vm1, %v4781_v58 }
 0x4e3   :  { %v12267_v1 = vld [vmem:[#allocation3 + $0x100] sm:$0xff] }
 0x4e4   :  { %v4779_v55 = vpop.permute.xlu0 %4778  ;;  %4696 = vst.msk [vmem:[#allocation3 + $0x100] sm:$0xff] %vm28_vm0, %v4678_v28  ;;  %v12327_v28 = vld [vmem:[#allocation3 + $0x30] sm:$0xff] }
 0x4e5   :  { %3688 = vmatmul.mubr.bf16.gmra.mrb[252].mxu0 %v12267_v1  ;;  %5179 = vmatmul.mubr.bf16.vlgmr.msra.gmra.mrb[0].mxu1 %v12264_v57  ;;  %4828 = vst.msk [vmem:[#allocation3 + $0x40] sm:$0xff] %vm337_vm1, %v4779_v55  ;;  %v4785_v34 = vpop.permute.xlu1 %4784 }
 0x4e6   :  { %9391 = vmatprep.mubr.msk.bf16.mxu0 %vm28_vm0, %v11994_v50  ;;  %9477 = vmatprep.mubr.msk.bf16.mxu1 %vm28_vm0, %v12269_v7  ;;  %4831 = vst.msk [vmem:[#allocation3 + $0x70] sm:$0xff] %vm337_vm1, %v4785_v34 }
 0x4e7   :  { %5765 = vmatpush1.bf16.msra.mxu1 %v9998_v43 }
 0x4e8   :  { %5766 = vmatprep.subr.bf16.mxu1 %v10119_v10  ;;  %v12295_v11 = vld [vmem:[#allocation3 + $0x20] sm:$0xff] }
 0x4e9   :  { %v4783_v50 = vpop.permute.xlu0 %4782 }
 0x4ea   :  { %4830 = vst.msk [vmem:[#allocation3 + $0x60] sm:$0xff] %vm337_vm1, %v4783_v50  ;;  %v4789_v30 = vpop.permute.xlu1 %4788  ;;  %v10007_v50 = vld [vmem:[%s14343_s1 + $0x28] sm:$0xff]  }
 0x4eb   :  { %5767 = vmatpush1.bf16.msra.mxu1 %v10000_v4  ;;  %4833 = vst.msk [vmem:[#allocation3 + $0x90] sm:$0xff] %vm337_vm1, %v4789_v30  ;;  %v10010_v4 = vld [vmem:[%s14343_s1 + $0xf0] sm:$0xff]   ;;  %v12389_v30 = vld [vmem:[#allocation3 + $0x68] sm:$0xff] }
 0x4ec   :  { %5768 = vmatprep.subr.bf16.mxu1 %v10119_v10  ;;  %v12357_v32 = vld [vmem:[#allocation3 + $0x40] sm:$0xff] }
 0x4ed   :  { %4187 = vmatmul.mubr.bf16.vlgmr.msra.gmra.mrb[0].mxu0 %v12029_v60  ;;  %5187 = vmatmul.mubr.bf16.gmra.mrb[4].mxu1 %v12295_v11  ;;  %v4787_v46 = vpop.permute.xlu0 %4786 }
 0x4ee   :  { %5428 = vmatpush1.bf16.msra.mxu0 %v9997_v17  ;;  %9392 = vmatprep.mubr.msk.bf16.mxu0 %vm28_vm0, %v12005_v27  ;;  %4832 = vst.msk [vmem:[#allocation3 + $0x80] sm:$0xff] %vm337_vm1, %v4787_v46  ;;  %v4793_v61 = vpop.permute.xlu1 %4792  ;;  %v10004_v27 = vld [vmem:[%s14343_s1 + $0xd8] sm:$0xff]   ;;  %v12386_v17 = vld [vmem:[#allocation3 + $0x50] sm:$0xff]  ;;  %v10013_v46 = vld [vmem:[%s14343_s1 + $0x40] sm:$0xff]  }
 0x4ef   :  { %9478 = vmatprep.mubr.msk.bf16.mxu1 %vm28_vm0, %v12302_v39  ;;  %5429 = vmatprep.subr.bf16.mxu0 %v10119_v10  ;;  %4835 = vst.msk [vmem:[#allocation3 + $0xb0] sm:$0xff] %vm337_vm1, %v4793_v61  ;;  %v10015_v61 = vld [vmem:[%s14343_s1 + $0x48] sm:$0xff]  }
 0x4f0   :  { %5769 = vmatpush1.bf16.msra.mxu1 %v10002_v51  ;;  %v10011_v51 = vld [vmem:[%s14343_s1 + $0x38] sm:$0xff]  }
 0x4f1   :  { %5770 = vmatprep.subr.bf16.mxu1 %v10119_v10  ;;  %v4791_v60 = vpop.permute.xlu0 %4790 }
 0x4f2   :  { %5430 = vmatpush1.bf16.msra.mxu0 %v9999_v9  ;;  %4834 = vst.msk [vmem:[#allocation3 + $0xa0] sm:$0xff] %vm337_vm1, %v4791_v60  ;;  %v4797_v58 = vpop.permute.xlu1 %4796  ;;  %v10018_v9 = vld [vmem:[%s14343_s1 + $0x110] sm:$0xff]  }
 0x4f3   :  { %5431 = vmatprep.subr.bf16.mxu0 %v10119_v10  ;;  %4837 = vst.msk [vmem:[#allocation3 + $0xd0] sm:$0xff] %vm337_vm1, %v4797_v58  ;;  %v10017_v60 = vld [vmem:[%s14343_s1 + $0x50] sm:$0xff]   ;;  %v10020_v58 = vld [vmem:[%s14343_s1 + $0x58] sm:$0xff]  }
 0x4f4   :  { %5771 = vmatpush1.bf16.msra.mxu1 %v10004_v27  ;;  %v12441_v27 = vld [vmem:[#allocation3 + $0x88] sm:$0xff] }
 0x4f5   :  { %4195 = vmatmul.mubr.bf16.gmra.mrb[4].mxu0 %v12045_v21  ;;  %5195 = vmatmul.mubr.bf16.gmra.mrb[8].mxu1 %v12327_v28  ;;  %v4795_v43 = vpop.permute.xlu0 %4794 }
 0x4f6   :  { %9393 = vmatprep.mubr.msk.bf16.mxu0 %vm28_vm0, %v12022_v63  ;;  %9479 = vmatprep.mubr.msk.bf16.mxu1 %vm28_vm0, %v12330_v29  ;;  %4836 = vst.msk [vmem:[#allocation3 + $0xc0] sm:$0xff] %vm337_vm1, %v4795_v43  ;;  %v4801_v55 = vpop.permute.xlu1 %4800  ;;  %v10008_v63 = vld [vmem:[%s14343_s1 + $0xe8] sm:$0xff]  }
 0x4f7   :  { %5432 = vmatpush1.bf16.msra.mxu0 %v10001_v31  ;;  %5772 = vmatprep.subr.bf16.mxu1 %v10119_v10  ;;  %4839 = vst.msk [vmem:[#allocation3 + $0xf0] sm:$0xff] %vm337_vm1, %v4801_v55  ;;  %v12458_v31 = vld [vmem:[#allocation3 + $0x80] sm:$0xff] }
 0x4f8   :  { %5433 = vmatprep.subr.bf16.mxu0 %v10119_v10  ;;  %5773 = vmatpush1.bf16.msra.mxu1 %v10006_v15  ;;  %v12471_v15 = vld [vmem:[#allocation3 + $0xa8] sm:$0xff] }
 0x4f9   :  { %5774 = vmatprep.subr.bf16.mxu1 %v10119_v10  ;;  %v4799_v21 = vpop.permute.xlu0 %4798 }
 0x4fa   :  { %4838 = vst.msk [vmem:[#allocation3 + $0xe0] sm:$0xff] %vm337_vm1, %v4799_v21  ;;  %v4803_v34 = vpop.permute.xlu1 %4802 }
 0x4fb   :  { %5434 = vmatpush1.bf16.msra.mxu0 %v10003_v6  ;;  %4840 = vst.msk [vmem:[#allocation3 + $0x100] sm:$0xff] %vm337_vm1, %v4803_v34 }
 0x4fc   :  { %5435 = vmatprep.subr.bf16.mxu0 %v10119_v10  ;;  %5775 = vmatpush1.bf16.msra.mxu1 %v10008_v63 }
 0x4fd   :  { %4203 = vmatmul.mubr.bf16.gmra.mrb[8].mxu0 %v12070_v62  ;;  %5203 = vmatmul.mubr.bf16.gmra.mrb[12].mxu1 %v12357_v32  ;;  %v3193_v2 = vpop.permute.xlu0 %3192  ;;  %v10012_v62 = vld [vmem:[%s14343_s1 + $0xf8] sm:$0xff]  }
 0x4fe   :  { %9394 = vmatprep.mubr.msk.bf16.mxu0 %vm28_vm0, %v12047_v0  ;;  %9480 = vmatprep.mubr.msk.bf16.mxu1 %vm28_vm0, %v12360_v8  ;;  %3229 = vst.msk [vmem:[#allocation3 + $0x110] sm:$0xff] %vm337_vm1, %v3193_v2 }
 0x4ff   :  { %5436 = vmatpush1.bf16.msra.mxu0 %v10005_v42  ;;  %5776 = vmatprep.subr.bf16.mxu1 %v10119_v10 }
 0x500   :  { %5437 = vmatprep.subr.bf16.mxu0 %v10119_v10  ;;  %5777 = vmatpush1.bf16.msra.mxu1 %v10010_v4  ;;  %v12515_v4 = vld [vmem:[#allocation3 + $0xd0] sm:$0xff] }
 0x501   :  { %5778 = vmatprep.subr.bf16.mxu1 %v10119_v10  ;;  %v4771_v0 = vpop.permute.xlu0 %4770 }
 0x502   :  { %4824 = vst.msk [vmem:[#allocation3] sm:$0xff] %vm337_vm1, %v4771_v0 }
 0x503   :  { %5438 = vmatpush1.bf16.msra.mxu0 %v10007_v50 }
 0x504   :  { %5439 = vmatprep.subr.bf16.mxu0 %v10119_v10  ;;  %5779 = vmatpush1.bf16.msra.mxu1 %v10012_v62 }
 0x505   :  { %4211 = vmatmul.mubr.bf16.gmra.mrb[12].mxu0 %v12095_v35  ;;  %5211 = vmatmul.mubr.bf16.gmra.mrb[16].mxu1 %v12386_v17  ;;  %v10016_v35 = vld [vmem:[%s14343_s1 + $0x108] sm:$0xff]  }
 0x506   :  { %9395 = vmatprep.mubr.msk.bf16.mxu0 %vm28_vm0, %v12072_v54  ;;  %9481 = vmatprep.mubr.msk.bf16.mxu1 %vm28_vm0, %v12389_v30  ;;  %v12413_v54 = vld [vmem:[#allocation3 + $0x60] sm:$0xff] }
 0x507   :  { %5440 = vmatpush1.bf16.msra.mxu0 %v10009_v26  ;;  %5780 = vmatprep.subr.bf16.mxu1 %v10119_v10 }
 0x508   :  { %5441 = vmatprep.subr.bf16.mxu0 %v10119_v10  ;;  %5781 = vmatpush1.bf16.msra.mxu1 %v10014_v36  ;;  %v12527_v36 = vld [vmem:[#allocation3 + $0xe0] sm:$0xff] }
 0x509   :  { %5782 = vmatprep.subr.bf16.mxu1 %v10119_v10 }
 0x50b   :  { %5442 = vmatpush1.bf16.msra.mxu0 %v10011_v51 }
 0x50c   :  { %5443 = vmatprep.subr.bf16.mxu0 %v10119_v10  ;;  %5783 = vmatpush1.bf16.msra.mxu1 %v10016_v35 }
 0x50d   :  { %4219 = vmatmul.mubr.bf16.gmra.mrb[16].mxu0 %v12118_v13  ;;  %5219 = vmatmul.mubr.bf16.gmra.mrb[20].mxu1 %v12413_v54  ;;  %v10019_v13 = vld [vmem:[%s14343_s1 + $0x118] sm:$0xff]   ;;  %s8998_s1 = sshll.u32 %s10121_s25, 4  ;;  %s8999_s1 = int_to_ptr.vmem [resolvable:$true] %s8998_s1 }
 0x50e   :  { %9396 = vmatprep.mubr.msk.bf16.mxu0 %vm28_vm0, %v12097_v25  ;;  %9482 = vmatprep.mubr.msk.bf16.mxu1 %vm28_vm0, %v12415_v47  ;;  %v12439_v25 = vld [vmem:[#allocation3 + $0x70] sm:$0xff]  ;;  %s10094_s27 = scalar_lea.vmem %s8999_s1, 8192  ;;  %p10099_p1 = scmp.lt.s32.totalorder %s8999_s1, %s8999_s1 }
 0x50f   :  { %5444 = vmatpush1.bf16.msra.mxu0 %v10013_v46  ;;  %5784 = vmatprep.subr.bf16.mxu1 %v10119_v10  ;;  %v12531_v46 = vld [vmem:[#allocation3 + $0xf8] sm:$0xff]  ;;  %p10095_p0 = scmp.ne.s32.totalorder %s8999_s1, %s10094_s27  ;;  %p10100_p2 = scmp.lt.s32.totalorder %s10094_s27, %s10094_s27 }
 0x510   :  { %5445 = vmatprep.subr.bf16.mxu0 %v10119_v10  ;;  %5785 = vmatpush1.bf16.msra.mxu1 %v10018_v9 }
 0x511   :  { %5786 = vmatprep.subr.bf16.mxu1 %v10119_v10  ;;  %p10101_p3 = por %p10100_p2, %p10099_p1 }
 0x513   :  { %5446 = vmatpush1.bf16.msra.mxu0 %v10015_v61  ;;  %p10102_p4 = pnand %p10101_p3, %p10095_p0 }
 0x514   :  { %5447 = vmatprep.subr.bf16.mxu0 %v10119_v10  ;;  %5787 = vmatpush1.bf16.msra.mxu1 %v10019_v13 }
 0x515   :  { %4227 = vmatmul.mubr.bf16.gmra.mrb[20].mxu0 %v12139_v38  ;;  %5227 = vmatmul.mubr.bf16.gmra.mrb[24].mxu1 %v12439_v25  ;;  %v12460_v38 = vld [vmem:[#allocation3 + $0x98] sm:$0xff] }
 0x516   :  { %9397 = vmatprep.mubr.msk.bf16.mxu0 %vm28_vm0, %v12120_v45  ;;  %9483 = vmatprep.mubr.msk.bf16.mxu1 %vm28_vm0, %v12441_v27  ;;  %v12469_v45 = vld [vmem:[#allocation3 + $0x90] sm:$0xff] }
 0x517   :  { %5448 = vmatpush1.bf16.msra.mxu0 %v10017_v60  ;;  %6861 = vmatprep.subr.bf16.mxu1 %v10119_v10 }
 0x518   :  { %5449 = vmatprep.subr.bf16.mxu0 %v10119_v10 }
 0x51b   :  { %5450 = vmatpush1.bf16.msra.mxu0 %v10020_v58 }
 0x51c   :  { %6580 = vmatprep.subr.bf16.mxu0 %v10119_v10 }
 0x51d   :  { %4235 = vmatmul.mubr.bf16.gmra.mrb[24].mxu0 %v12153_v40  ;;  %5235 = vmatmul.mubr.bf16.gmra.mrb[28].mxu1 %v12458_v31  ;;  %v12479_v40 = vld [vmem:[#allocation3 + $0xa0] sm:$0xff] }
 0x51e   :  { %9398 = vmatprep.mubr.msk.bf16.mxu0 %vm28_vm0, %v12141_v49  ;;  %9484 = vmatprep.mubr.msk.bf16.mxu1 %vm28_vm0, %v12460_v38  ;;  %v12481_v49 = vld [vmem:[#allocation3 + $0xb8] sm:$0xff] }
 0x525   :  { %4243 = vmatmul.mubr.bf16.gmra.mrb[28].mxu0 %v12166_v24  ;;  %5243 = vmatmul.mubr.bf16.gmra.mrb[32].mxu1 %v12469_v45  ;;  %v12489_v24 = vld [vmem:[#allocation3 + $0xb0] sm:$0xff] }
 0x526   :  { %9399 = vmatprep.mubr.msk.bf16.mxu0 %vm28_vm0, %v12155_v41  ;;  %9485 = vmatprep.mubr.msk.bf16.mxu1 %vm28_vm0, %v12471_v15  ;;  %v12491_v41 = vld [vmem:[#allocation3 + $0xc8] sm:$0xff] }
 0x52d   :  { %4251 = vmatmul.mubr.bf16.gmra.mrb[32].mxu0 %v12179_v23  ;;  %5251 = vmatmul.mubr.bf16.gmra.mrb[36].mxu1 %v12479_v40  ;;  %v12499_v23 = vld [vmem:[#allocation3 + $0xc0] sm:$0xff] }
 0x52e   :  { %9400 = vmatprep.mubr.msk.bf16.mxu0 %vm28_vm0, %v12168_v14  ;;  %9486 = vmatprep.mubr.msk.bf16.mxu1 %vm28_vm0, %v12481_v49  ;;  %v12501_v14 = vld [vmem:[#allocation3 + $0xd8] sm:$0xff] }
 0x535   :  { %4259 = vmatmul.mubr.bf16.gmra.mrb[36].mxu0 %v12194_v37  ;;  %5259 = vmatmul.mubr.bf16.gmra.mrb[40].mxu1 %v12489_v24 }
 0x536   :  { %9401 = vmatprep.mubr.msk.bf16.mxu0 %vm28_vm0, %v12181_v20  ;;  %9487 = vmatprep.mubr.msk.bf16.mxu1 %vm28_vm0, %v12491_v41 }
 0x53d   :  { %4267 = vmatmul.mubr.bf16.gmra.mrb[40].mxu0 %v12209_v19  ;;  %5267 = vmatmul.mubr.bf16.gmra.mrb[44].mxu1 %v12499_v23 }
 0x53e   :  { %9402 = vmatprep.mubr.msk.bf16.mxu0 %vm28_vm0, %v12196_v22  ;;  %9488 = vmatprep.mubr.msk.bf16.mxu1 %vm28_vm0, %v12501_v14  ;;  %v12517_v22 = vld [vmem:[#allocation3 + $0xe8] sm:$0xff] }
 0x53f   :  { %v3569_v37 = vpop.f32.mrb[192].mxu0  ;;  %v3858_v43 = vpop.f32.mrb[196].mxu1 }
 0x540   :  { %v12510_v20 = vadd.f32 %v12192_v12, %v3569_v37  ;;  %v3571_v55 = vpop.f32.mrb[193].mxu0  ;;  %v3860_v6 = vpop.f32.mrb[197].mxu1 }
 0x541   :  { %v3572_v63 = vpop.f32.mrb[194].mxu0  ;;  %v3861_v21 = vpop.f32.mrb[198].mxu1 }
 0x542   :  { %v12513_v34 = vadd.f32 %v12203_v59, %v3572_v63  ;;  %v3574_v19 = vpop.f32.mrb[195].mxu0  ;;  %v3863_v42 = vpop.f32.mrb[199].mxu1  ;;  %v12545_v63 = vld [vmem:[#allocation3 + $0x108] sm:$0xff] }
 0x543   :  { %v4660_v19 = vld [vmem:[#allocation2 + $0x467] sm:$0xff]  ;;  %v4661_v42 = vld [vmem:[#allocation2 + $0x46f] sm:$0xff] }
 0x545   :  { %4275 = vmatmul.mubr.bf16.gmra.mrb[44].mxu0 %v12222_v3  ;;  %5275 = vmatmul.mubr.bf16.gmra.mrb[48].mxu1 %v12515_v4 }
 0x546   :  { %9403 = vmatprep.mubr.msk.bf16.mxu0 %vm28_vm0, %v12212_v18  ;;  %9489 = vmatprep.mubr.msk.bf16.mxu1 %vm28_vm0, %v12517_v22 }
 0x548   :  { %v3577_v12 = vpop.f32.mrb[196].mxu0  ;;  %v3866_v2 = vpop.f32.mrb[200].mxu1 }
 0x549   :  { %v12525_v59 = vadd.f32 %v3858_v43, %v3577_v12  ;;  %v3579_v50 = vpop.f32.mrb[197].mxu0  ;;  %v3868_v62 = vpop.f32.mrb[201].mxu1  ;;  %v12541_v43 = vld [vmem:[#allocation3 + $0xf0] sm:$0xff] }
 0x54a   :  { %v3580_v0 = vpop.f32.mrb[198].mxu0  ;;  %v3869_v26 = vpop.f32.mrb[202].mxu1  ;;  %v4679_v62 = vpack.c.bf16 %v4661_v42, %v4660_v19  ;;  %v12569_v19 = vld [vmem:[#allocation3 + $0x118] sm:$0xff] }
 0x54b   :  { %v12529_v51 = vadd.f32 %v3861_v21, %v3580_v0  ;;  %v3582_v3 = vpop.f32.mrb[199].mxu0  ;;  %v3871_v35 = vpop.f32.mrb[203].mxu1  ;;  %6347 = vst.msk [vmem:[#allocation3 + $0x118] sm:$0xff] %vm28_vm0, %v12279_v33 }
 0x54c   :  { %v4007_v3 = vld [vmem:[#allocation3 + $0x110] sm:$0xff] }
 0x54d   :  { %4283 = vmatmul.mubr.bf16.gmra.mrb[48].mxu0 %v12235_v5  ;;  %5283 = vmatmul.mubr.bf16.gmra.mrb[52].mxu1 %v12527_v36  ;;  %4697 = vst.msk [vmem:[#allocation3 + $0x110] sm:$0xff] %vm28_vm0, %v4679_v62 }
 0x54e   :  { %9404 = vmatprep.mubr.msk.bf16.mxu0 %vm28_vm0, %v12225_v52  ;;  %9490 = vmatprep.mubr.msk.bf16.mxu1 %vm28_vm0, %v12531_v46 }
 0x550   :  { %v3585_v18 = vpop.f32.mrb[200].mxu0  ;;  %v3874_v9 = vpop.f32.mrb[204].mxu1 }
 0x551   :  { %v12539_v61 = vadd.f32 %v3866_v2, %v3585_v18  ;;  %v3587_v13 = vpop.f32.mrb[201].mxu0  ;;  %v3876_v60 = vpop.f32.mrb[205].mxu1 }
 0x552   :  { %v3588_v58 = vpop.f32.mrb[202].mxu0  ;;  %v3877_v37 = vpop.f32.mrb[206].mxu1 }
 0x553   :  { %v12543_v55 = vadd.f32 %v3869_v26, %v3588_v58  ;;  %v3590_v5 = vpop.f32.mrb[203].mxu0  ;;  %v3879_v6 = vpop.f32.mrb[207].mxu1 }
 0x554   :  { %v4805_v13 = vpop.permute.xlu1 %4804 }
 0x555   :  { %4291 = vmatmul.mubr.bf16.gmra.mrb[52].mxu0 %v12249_v44  ;;  %5291 = vmatmul.mubr.bf16.gmra.mrb[56].mxu1 %v12541_v43  ;;  %v12555_v44 = vld [vmem:[#allocation3 + $0x100] sm:$0xff]  ;;  %4841 = vst.msk [vmem:[#allocation3 + $0x110] sm:$0xff] %vm337_vm1, %v4805_v13 }
 0x556   :  { %9405 = vmatprep.mubr.msk.bf16.mxu0 %vm28_vm0, %v12238_v48  ;;  %9491 = vmatprep.mubr.msk.bf16.mxu1 %vm28_vm0, %v12545_v63 }
 0x558   :  { %v3593_v52 = vpop.f32.mrb[204].mxu0  ;;  %v3882_v21 = vpop.f32.mrb[208].mxu1 }
 0x559   :  { %v12553_v12 = vadd.f32 %v3874_v9, %v3593_v52  ;;  %v3595_v2 = vpop.f32.mrb[205].mxu0  ;;  %v3884_v50 = vpop.f32.mrb[209].mxu1 }
 0x55a   :  { %v3596_v0 = vpop.f32.mrb[206].mxu0  ;;  %v3885_v26 = vpop.f32.mrb[210].mxu1 }
 0x55b   :  { %v12557_v35 = vadd.f32 %v3877_v37, %v3596_v0  ;;  %v3598_v48 = vpop.f32.mrb[207].mxu0  ;;  %v3887_v18 = vpop.f32.mrb[211].mxu1 }
 0x55c   :  { %v4914_v18 = vld [vmem:[#allocation3] sm:$0xff] }
 0x55d   :  { %4299 = vmatmul.mubr.bf16.gmra.mrb[56].mxu0 %v12267_v1  ;;  %5299 = vmatmul.mubr.bf16.gmra.mrb[60].mxu1 %v12555_v44 }
 0x55e   :  { %9406 = vmatprep.mubr.msk.bf16.mxu0 %vm28_vm0, %v12286_v16  ;;  %9556 = vmatprep.mubr.msk.bf16.mxu1 %vm28_vm0, %v12269_v7 }
 0x560   :  { %v3601_v9 = vpop.f32.mrb[208].mxu0  ;;  %v3890_v60 = vpop.f32.mrb[212].mxu1 }
 0x561   :  { %v12567_v58 = vadd.f32 %v3882_v21, %v3601_v9  ;;  %v3603_v37 = vpop.f32.mrb[209].mxu0  ;;  %v3892_v5 = vpop.f32.mrb[213].mxu1 }
 0x562   :  { %v3604_v6 = vpop.f32.mrb[210].mxu0  ;;  %v3893_v52 = vpop.f32.mrb[214].mxu1 }
 0x563   :  { %v12571_v1 = vadd.f32 %v3885_v26, %v3604_v6  ;;  %v3606_v42 = vpop.f32.mrb[211].mxu0  ;;  %v3895_v2 = vpop.f32.mrb[215].mxu1 }
 0x565   :  { %4307 = vmatmul.mubr.bf16.gmra.mrb[60].mxu0 %v4007_v3  ;;  %5797 = vmatmul.mubr.bf16.vlgmr.msra.gmra.mrb[64].mxu1 %v12295_v11 }
 0x566   :  { %9504 = vmatprep.mubr.msk.bf16.mxu0 %vm28_vm0, %v12310_v53  ;;  %9557 = vmatprep.mubr.msk.bf16.mxu1 %vm28_vm0, %v12302_v39 }
 0x568   :  { %v3609_v16 = vpop.f32.mrb[212].mxu0  ;;  %v3898_v21 = vpop.f32.mrb[216].mxu1 }
 0x569   :  { %v12580_v50 = vadd.f32 %v3890_v60, %v3609_v16  ;;  %v3611_v62 = vpop.f32.mrb[213].mxu0  ;;  %v3900_v0 = vpop.f32.mrb[217].mxu1 }
 0x56a   :  { %v3612_v26 = vpop.f32.mrb[214].mxu0  ;;  %v3901_v48 = vpop.f32.mrb[218].mxu1 }
 0x56b   :  { %v12582_v13 = vadd.f32 %v3893_v52, %v3612_v26  ;;  %v3614_v33 = vpop.f32.mrb[215].mxu0  ;;  %v3903_v3 = vpop.f32.mrb[219].mxu1 }
 0x56d   :  { %5460 = vmatmul.mubr.bf16.vlgmr.msra.gmra.mrb[64].mxu0 %v4914_v18  ;;  %5805 = vmatmul.mubr.bf16.gmra.mrb[68].mxu1 %v12327_v28 }
 0x56e   :  { %9505 = vmatprep.mubr.msk.bf16.mxu0 %vm28_vm0, %v12251_v56  ;;  %9558 = vmatprep.mubr.msk.bf16.mxu1 %vm28_vm0, %v12330_v29 }
 0x570   :  { %v3617_v53 = vpop.f32.mrb[216].mxu0  ;;  %v3906_v9 = vpop.f32.mrb[220].mxu1 }
 0x571   :  { %v12589_v60 = vadd.f32 %v3898_v21, %v3617_v53  ;;  %v3619_v37 = vpop.f32.mrb[217].mxu0  ;;  %v3908_v5 = vpop.f32.mrb[221].mxu1 }
 0x572   :  { %v3620_v6 = vpop.f32.mrb[218].mxu0  ;;  %v3909_v52 = vpop.f32.mrb[222].mxu1 }
 0x573   :  { %v12591_v42 = vadd.f32 %v3901_v48, %v3620_v6  ;;  %v3622_v2 = vpop.f32.mrb[219].mxu0  ;;  %v3911_v16 = vpop.f32.mrb[223].mxu1 }
 0x575   :  { %5468 = vmatmul.mubr.bf16.gmra.mrb[68].mxu0 %v12264_v57  ;;  %5813 = vmatmul.mubr.bf16.gmra.mrb[72].mxu1 %v12357_v32 }
 0x576   :  { %9506 = vmatprep.mubr.msk.bf16.mxu0 %vm28_vm0, %v12269_v7  ;;  %9559 = vmatprep.mubr.msk.bf16.mxu1 %vm28_vm0, %v12360_v8 }
 0x578   :  { %v3625_v56 = vpop.f32.mrb[220].mxu0  ;;  %v3914_v21 = vpop.f32.mrb[224].mxu1 }
 0x579   :  { %v12599_v62 = vadd.f32 %v3906_v9, %v3625_v56  ;;  %v3627_v0 = vpop.f32.mrb[221].mxu0  ;;  %v3916_v26 = vpop.f32.mrb[225].mxu1 }
 0x57a   :  { %v3628_v48 = vpop.f32.mrb[222].mxu0  ;;  %v3917_v18 = vpop.f32.mrb[226].mxu1 }
 0x57b   :  { %v12601_v33 = vadd.f32 %v3909_v52, %v3628_v48  ;;  %v3630_v3 = vpop.f32.mrb[223].mxu0  ;;  %v3919_v57 = vpop.f32.mrb[227].mxu1 }
 0x57d   :  { %5476 = vmatmul.mubr.bf16.gmra.mrb[72].mxu0 %v12295_v11  ;;  %5821 = vmatmul.mubr.bf16.gmra.mrb[76].mxu1 %v12386_v17 }
 0x57e   :  { %9507 = vmatprep.mubr.msk.bf16.mxu0 %vm28_vm0, %v12302_v39  ;;  %9560 = vmatprep.mubr.msk.bf16.mxu1 %vm28_vm0, %v12389_v30 }
 0x580   :  { %v3633_v7 = vpop.f32.mrb[224].mxu0  ;;  %v3922_v53 = vpop.f32.mrb[228].mxu1 }
 0x581   :  { %v12609_v9 = vadd.f32 %v3914_v21, %v3633_v7  ;;  %v3635_v37 = vpop.f32.mrb[225].mxu0  ;;  %v3924_v5 = vpop.f32.mrb[229].mxu1 }
 0x582   :  { %v3636_v6 = vpop.f32.mrb[226].mxu0  ;;  %v3925_v52 = vpop.f32.mrb[230].mxu1 }
 0x583   :  { %v12611_v2 = vadd.f32 %v3917_v18, %v3636_v6  ;;  %v3638_v16 = vpop.f32.mrb[227].mxu0  ;;  %v3927_v11 = vpop.f32.mrb[231].mxu1 }
 0x585   :  { %5484 = vmatmul.mubr.bf16.gmra.mrb[76].mxu0 %v12327_v28  ;;  %5829 = vmatmul.mubr.bf16.gmra.mrb[80].mxu1 %v12413_v54 }
 0x586   :  { %9508 = vmatprep.mubr.msk.bf16.mxu0 %vm28_vm0, %v12330_v29  ;;  %9561 = vmatprep.mubr.msk.bf16.mxu1 %vm28_vm0, %v12415_v47 }
 0x588   :  { %v3641_v39 = vpop.f32.mrb[228].mxu0  ;;  %v3930_v56 = vpop.f32.mrb[232].mxu1 }
 0x589   :  { %v12619_v21 = vadd.f32 %v3922_v53, %v3641_v39  ;;  %v3643_v0 = vpop.f32.mrb[229].mxu0  ;;  %v3932_v26 = vpop.f32.mrb[233].mxu1 }
 0x58a   :  { %v3644_v48 = vpop.f32.mrb[230].mxu0  ;;  %v3933_v18 = vpop.f32.mrb[234].mxu1 }
 0x58b   :  { %v12621_v3 = vadd.f32 %v3925_v52, %v3644_v48  ;;  %v3646_v57 = vpop.f32.mrb[231].mxu0  ;;  %v3935_v28 = vpop.f32.mrb[235].mxu1 }
 0x58d   :  { %5492 = vmatmul.mubr.bf16.gmra.mrb[80].mxu0 %v12357_v32  ;;  %5837 = vmatmul.mubr.bf16.gmra.mrb[84].mxu1 %v12439_v25 }
 0x58e   :  { %9509 = vmatprep.mubr.msk.bf16.mxu0 %vm28_vm0, %v12360_v8  ;;  %9562 = vmatprep.mubr.msk.bf16.mxu1 %vm28_vm0, %v12441_v27 }
 0x590   :  { %v3649_v29 = vpop.f32.mrb[232].mxu0  ;;  %v3938_v7 = vpop.f32.mrb[236].mxu1 }
 0x591   :  { %v12629_v53 = vadd.f32 %v3930_v56, %v3649_v29  ;;  %v3651_v37 = vpop.f32.mrb[233].mxu0  ;;  %v3940_v5 = vpop.f32.mrb[237].mxu1 }
 0x592   :  { %v3652_v6 = vpop.f32.mrb[234].mxu0  ;;  %v3941_v52 = vpop.f32.mrb[238].mxu1 }
 0x593   :  { %v12631_v16 = vadd.f32 %v3933_v18, %v3652_v6  ;;  %v3654_v11 = vpop.f32.mrb[235].mxu0  ;;  %v3943_v32 = vpop.f32.mrb[239].mxu1 }
 0x595   :  { %5500 = vmatmul.mubr.bf16.gmra.mrb[84].mxu0 %v12386_v17  ;;  %5845 = vmatmul.mubr.bf16.gmra.mrb[88].mxu1 %v12458_v31 }
 0x596   :  { %9510 = vmatprep.mubr.msk.bf16.mxu0 %vm28_vm0, %v12389_v30  ;;  %9563 = vmatprep.mubr.msk.bf16.mxu1 %vm28_vm0, %v12460_v38 }
 0x598   :  { %v3657_v8 = vpop.f32.mrb[236].mxu0  ;;  %v3946_v39 = vpop.f32.mrb[240].mxu1 }
 0x599   :  { %v12639_v56 = vadd.f32 %v3938_v7, %v3657_v8  ;;  %v3659_v0 = vpop.f32.mrb[237].mxu0  ;;  %v3948_v26 = vpop.f32.mrb[241].mxu1 }
 0x59a   :  { %v3660_v48 = vpop.f32.mrb[238].mxu0  ;;  %v3949_v18 = vpop.f32.mrb[242].mxu1 }
 0x59b   :  { %v12641_v57 = vadd.f32 %v3941_v52, %v3660_v48  ;;  %v3662_v28 = vpop.f32.mrb[239].mxu0  ;;  %v3951_v17 = vpop.f32.mrb[243].mxu1 }
 0x59d   :  { %5508 = vmatmul.mubr.bf16.gmra.mrb[88].mxu0 %v12413_v54  ;;  %5853 = vmatmul.mubr.bf16.gmra.mrb[92].mxu1 %v12469_v45 }
 0x59e   :  { %9511 = vmatprep.mubr.msk.bf16.mxu0 %vm28_vm0, %v12415_v47  ;;  %9564 = vmatprep.mubr.msk.bf16.mxu1 %vm28_vm0, %v12471_v15 }
 0x5a0   :  { %v3665_v30 = vpop.f32.mrb[240].mxu0  ;;  %v3954_v29 = vpop.f32.mrb[244].mxu1 }
 0x5a1   :  { %v12649_v7 = vadd.f32 %v3946_v39, %v3665_v30  ;;  %v3667_v37 = vpop.f32.mrb[241].mxu0  ;;  %v3956_v5 = vpop.f32.mrb[245].mxu1 }
 0x5a2   :  { %v3668_v6 = vpop.f32.mrb[242].mxu0  ;;  %v3957_v52 = vpop.f32.mrb[246].mxu1 }
 0x5a3   :  { %v12651_v11 = vadd.f32 %v3949_v18, %v3668_v6  ;;  %v3670_v32 = vpop.f32.mrb[243].mxu0  ;;  %v3959_v54 = vpop.f32.mrb[247].mxu1 }
 0x5a5   :  { %5516 = vmatmul.mubr.bf16.gmra.mrb[92].mxu0 %v12439_v25  ;;  %5861 = vmatmul.mubr.bf16.gmra.mrb[96].mxu1 %v12479_v40 }
 0x5a6   :  { %9512 = vmatprep.mubr.msk.bf16.mxu0 %vm28_vm0, %v12441_v27  ;;  %9565 = vmatprep.mubr.msk.bf16.mxu1 %vm28_vm0, %v12481_v49 }
 0x5a8   :  { %v3673_v47 = vpop.f32.mrb[244].mxu0  ;;  %v3962_v8 = vpop.f32.mrb[248].mxu1 }
 0x5a9   :  { %v12659_v39 = vadd.f32 %v3954_v29, %v3673_v47  ;;  %v3675_v0 = vpop.f32.mrb[245].mxu0  ;;  %v3964_v26 = vpop.f32.mrb[249].mxu1 }
 0x5aa   :  { %v3676_v48 = vpop.f32.mrb[246].mxu0  ;;  %v3965_v18 = vpop.f32.mrb[250].mxu1 }
 0x5ab   :  { %v12661_v28 = vadd.f32 %v3957_v52, %v3676_v48  ;;  %v3678_v17 = vpop.f32.mrb[247].mxu0  ;;  %v3967_v25 = vpop.f32.mrb[251].mxu1 }
 0x5ad   :  { %5524 = vmatmul.mubr.bf16.gmra.mrb[96].mxu0 %v12458_v31  ;;  %5869 = vmatmul.mubr.bf16.gmra.mrb[100].mxu1 %v12489_v24 }
 0x5ae   :  { %9513 = vmatprep.mubr.msk.bf16.mxu0 %vm28_vm0, %v12460_v38  ;;  %9566 = vmatprep.mubr.msk.bf16.mxu1 %vm28_vm0, %v12491_v41 }
 0x5b0   :  { %v3681_v27 = vpop.f32.mrb[248].mxu0  ;;  %v3970_v30 = vpop.f32.mrb[252].mxu1 }
 0x5b1   :  { %v12669_v29 = vadd.f32 %v3962_v8, %v3681_v27  ;;  %v3683_v37 = vpop.f32.mrb[249].mxu0  ;;  %v3972_v5 = vpop.f32.mrb[253].mxu1  ;;  %v12696_v27 = vld [vmem:[%s14348_s6] ss:$0 sm:$0xff] }
 0x5b2   :  { %v3684_v6 = vpop.f32.mrb[250].mxu0  ;;  %v3973_v52 = vpop.f32.mrb[254].mxu1 }
 0x5b3   :  { %v12671_v32 = vadd.f32 %v3965_v18, %v3684_v6  ;;  %v3686_v54 = vpop.f32.mrb[251].mxu0  ;;  %v3975_v31 = vpop.f32.mrb[255].mxu1 }
 0x5b5   :  { %5532 = vmatmul.mubr.bf16.gmra.mrb[100].mxu0 %v12469_v45  ;;  %5877 = vmatmul.mubr.bf16.gmra.mrb[104].mxu1 %v12499_v23 }
 0x5b6   :  { %9514 = vmatprep.mubr.msk.bf16.mxu0 %vm28_vm0, %v12471_v15  ;;  %9567 = vmatprep.mubr.msk.bf16.mxu1 %vm28_vm0, %v12501_v14 }
 0x5b8   :  { %v3689_v38 = vpop.f32.mrb[252].mxu0  ;;  %v12679_v47 = vpop.f32.mrb[0].mxu1 }
 0x5b9   :  { %v12681_v8 = vadd.f32 %v3970_v30, %v3689_v38  ;;  %v3691_v0 = vpop.f32.mrb[253].mxu0  ;;  %v5182_v26 = vpop.f32.mrb[1].mxu1 }
 0x5ba   :  { %v3692_v48 = vpop.f32.mrb[254].mxu0  ;;  %v12683_v18 = vpop.f32.mrb[2].mxu1  ;;  %v4418_v0 = vld [vmem:[%s14342_s0] sm:$0xff] }
 0x5bb   :  { %v12685_v17 = vadd.f32 %v3973_v52, %v3692_v48  ;;  %v3694_v45 = vpop.f32.mrb[255].mxu0  ;;  %v5185_v25 = vpop.f32.mrb[3].mxu1 }
 0x5bd   :  { %5540 = vmatmul.mubr.bf16.gmra.mrb[104].mxu0 %v12479_v40  ;;  %5885 = vmatmul.mubr.bf16.gmra.mrb[108].mxu1 %v12515_v4 }
 0x5be   :  { %9515 = vmatprep.mubr.msk.bf16.mxu0 %vm28_vm0, %v12481_v49  ;;  %9568 = vmatprep.mubr.msk.bf16.mxu1 %vm28_vm0, %v12517_v22 }
 0x5c0   :  { %v4188_v15 = vpop.f32.mrb[0].mxu0  ;;  %v12698_v30 = vpop.f32.mrb[4].mxu1 }
 0x5c1   :  { %v4315_v37 = vadd.f32 %v4188_v15, %v12510_v20  ;;  %v4190_v5 = vpop.f32.mrb[1].mxu0  ;;  %v5190_v40 = vpop.f32.mrb[5].mxu1  ;;  %v4419_v20 = vld [vmem:[%s14342_s0 + $0x8] sm:$0xff] }
 0x5c2   :  { %v4191_v6 = vpop.f32.mrb[2].mxu0  ;;  %v12701_v52 = vpop.f32.mrb[6].mxu1 }
 0x5c3   :  { %v4354_v49 = vadd.f32 %v12696_v27, %v4315_v37  ;;  %v4316_v54 = vadd.f32 %v4191_v6, %v12513_v34  ;;  %v4193_v31 = vpop.f32.mrb[3].mxu0  ;;  %v5193_v38 = vpop.f32.mrb[7].mxu1 }
 0x5c5   :  { %v4386_v26 = vmax.f32 %v4354_v49, 0.0  ;;  %v4355_v48 = vadd.f32 %v12696_v27, %v4316_v54  ;;  %5548 = vmatmul.mubr.bf16.gmra.mrb[108].mxu0 %v12489_v24  ;;  %5893 = vmatmul.mubr.bf16.gmra.mrb[112].mxu1 %v12527_v36 }
 0x5c6   :  { %9516 = vmatprep.mubr.msk.bf16.mxu0 %vm28_vm0, %v12491_v41  ;;  %9569 = vmatprep.mubr.msk.bf16.mxu1 %vm28_vm0, %v12531_v46 }
 0x5c7   :  { %v4450_v34 = vadd.f32 %v4418_v0, %v4386_v26  ;;  %v4387_v45 = vmax.f32 %v4355_v48, 0.0  ;;  %v4420_v0 = vld [vmem:[%s14342_s0 + $0x10] sm:$0xff]  ;;  %v4421_v48 = vld [vmem:[%s14342_s0 + $0x18] sm:$0xff] }
 0x5c8   :  { %v4196_v25 = vpop.f32.mrb[4].mxu0  ;;  %v12718_v15 = vpop.f32.mrb[8].mxu1 }
 0x5c9   :  { %4482 = vst.msk [vmem:[#allocation4] sm:$0xff] %vm28_vm0, %v4450_v34  ;;  %v4451_v24 = vadd.f32 %v4419_v20, %v4387_v45  ;;  %v4317_v37 = vadd.f32 %v4196_v25, %v12525_v59  ;;  %v4198_v5 = vpop.f32.mrb[5].mxu0  ;;  %v5198_v40 = vpop.f32.mrb[9].mxu1 }
 0x5ca   :  { %v4199_v6 = vpop.f32.mrb[6].mxu0  ;;  %v12722_v49 = vpop.f32.mrb[10].mxu1 }
 0x5cb   :  { %4483 = vst.msk [vmem:[#allocation4 + $0x8] sm:$0xff] %vm28_vm0, %v4451_v24  ;;  %v4356_v41 = vadd.f32 %v12696_v27, %v4317_v37  ;;  %v4318_v54 = vadd.f32 %v4199_v6, %v12529_v51  ;;  %v4201_v31 = vpop.f32.mrb[7].mxu0  ;;  %v5201_v38 = vpop.f32.mrb[11].mxu1 }
 0x5cc   :  { %v4423_v38 = vld [vmem:[%s14342_s0 + $0x28] sm:$0xff] }
 0x5cd   :  { %v4388_v26 = vmax.f32 %v4356_v41, 0.0  ;;  %v4357_v59 = vadd.f32 %v12696_v27, %v4318_v54  ;;  %5556 = vmatmul.mubr.bf16.gmra.mrb[112].mxu0 %v12499_v23  ;;  %5901 = vmatmul.mubr.bf16.gmra.mrb[116].mxu1 %v12541_v43  ;;  %v4422_v54 = vld [vmem:[%s14342_s0 + $0x20] sm:$0xff] }
 0x5ce   :  { %9517 = vmatprep.mubr.msk.bf16.mxu0 %vm28_vm0, %v12501_v14  ;;  %9570 = vmatprep.mubr.msk.bf16.mxu1 %vm28_vm0, %v12545_v63 }
 0x5cf   :  { %v4452_v51 = vadd.f32 %v4420_v0, %v4388_v26  ;;  %v4389_v20 = vmax.f32 %v4357_v59, 0.0 }
 0x5d0   :  { %v4204_v34 = vpop.f32.mrb[8].mxu0  ;;  %v12740_v45 = vpop.f32.mrb[12].mxu1 }
 0x5d1   :  { %4484 = vst.msk [vmem:[#allocation4 + $0x10] sm:$0xff] %vm28_vm0, %v4452_v51  ;;  %v4453_v23 = vadd.f32 %v4421_v48, %v4389_v20  ;;  %v4319_v25 = vadd.f32 %v4204_v34, %v12539_v61  ;;  %v4206_v24 = vpop.f32.mrb[9].mxu0  ;;  %v5206_v37 = vpop.f32.mrb[13].mxu1  ;;  %v10021_v20 = vld [vmem:[%s14345_s3 + $0x60] sm:$0xff]  }
 0x5d2   :  { %v4207_v5 = vpop.f32.mrb[10].mxu0  ;;  %v12744_v40 = vpop.f32.mrb[14].mxu1  ;;  %6581 = vmatpush1.bf16.msra.mxu0 %v10021_v20 }
 0x5d3   :  { %4485 = vst.msk [vmem:[#allocation4 + $0x18] sm:$0xff] %vm28_vm0, %v4453_v23  ;;  %v4358_v14 = vadd.f32 %v12696_v27, %v4319_v25  ;;  %v4320_v63 = vadd.f32 %v4207_v5, %v12543_v55  ;;  %v4209_v6 = vpop.f32.mrb[11].mxu0  ;;  %v5209_v41 = vpop.f32.mrb[15].mxu1  ;;  %6582 = vmatprep.subr.bf16.mxu0 %v10119_v10 }
 0x5d5   :  { %v4390_v31 = vmax.f32 %v4358_v14, 0.0  ;;  %v4359_v61 = vadd.f32 %v12696_v27, %v4320_v63  ;;  %5564 = vmatmul.mubr.bf16.gmra.mrb[116].mxu0 %v12515_v4  ;;  %5909 = vmatmul.mubr.bf16.gmra.mrb[120].mxu1 %v12555_v44  ;;  %v4425_v63 = vld [vmem:[%s14342_s0 + $0x38] sm:$0xff] }
 0x5d6   :  { %9518 = vmatprep.mubr.msk.bf16.mxu0 %vm28_vm0, %v12517_v22  ;;  %9571 = vmatprep.mubr.msk.bf16.mxu1 %vm28_vm0, %v12569_v19  ;;  %v5618_v19 = vld [vmem:[#allocation3 + $0x110] sm:$0xff] }
 0x5d7   :  { %v4454_v55 = vadd.f32 %v4422_v54, %v4390_v31  ;;  %v4391_v0 = vmax.f32 %v4359_v61, 0.0 }
 0x5d8   :  { %v4212_v26 = vpop.f32.mrb[12].mxu0  ;;  %v12762_v59 = vpop.f32.mrb[16].mxu1 }
 0x5d9   :  { %4486 = vst.msk [vmem:[#allocation4 + $0x20] sm:$0xff] %vm28_vm0, %v4454_v55  ;;  %v4455_v4 = vadd.f32 %v4423_v38, %v4391_v0  ;;  %v4321_v44 = vadd.f32 %v4212_v26, %v12553_v12  ;;  %v4214_v48 = vpop.f32.mrb[13].mxu0  ;;  %v5214_v51 = vpop.f32.mrb[17].mxu1  ;;  %v4424_v12 = vld [vmem:[%s14342_s0 + $0x30] sm:$0xff] }
 0x5da   :  { %v4215_v22 = vpop.f32.mrb[14].mxu0  ;;  %v12769_v34 = vpop.f32.mrb[18].mxu1  ;;  %v10022_v48 = vld [vmem:[%s14345_s3 + $0x68] sm:$0xff]  }
 0x5db   :  { %4487 = vst.msk [vmem:[#allocation4 + $0x28] sm:$0xff] %vm28_vm0, %v4455_v4  ;;  %v4360_v23 = vadd.f32 %v12696_v27, %v4321_v44  ;;  %v4322_v25 = vadd.f32 %v4215_v22, %v12557_v35  ;;  %v4217_v24 = vpop.f32.mrb[15].mxu0  ;;  %v5217_v37 = vpop.f32.mrb[19].mxu1  ;;  %v4427_v22 = vld [vmem:[%s14342_s0 + $0x48] sm:$0xff]  ;;  %6583 = vmatpush1.bf16.msra.mxu0 %v10022_v48 }
 0x5dc   :  { %6584 = vmatprep.subr.bf16.mxu0 %v10119_v10 }
 0x5dd   :  { %v4392_v5 = vmax.f32 %v4360_v23, 0.0  ;;  %v4361_v14 = vadd.f32 %v12696_v27, %v4322_v25  ;;  %5572 = vmatmul.mubr.bf16.gmra.mrb[120].mxu0 %v12527_v36  ;;  %5917 = vmatmul.mubr.bf16.gmra.mrb[124].mxu1 %v5618_v19 }
 0x5de   :  { %9519 = vmatprep.mubr.msk.bf16.mxu0 %vm28_vm0, %v12531_v46 }
 0x5df   :  { %v4456_v35 = vadd.f32 %v4424_v12, %v4392_v5  ;;  %v4393_v6 = vmax.f32 %v4361_v14, 0.0 }
 0x5e0   :  { %v4220_v41 = vpop.f32.mrb[16].mxu0  ;;  %v12785_v54 = vpop.f32.mrb[20].mxu1 }
 0x5e1   :  { %4488 = vst.msk [vmem:[#allocation4 + $0x30] sm:$0xff] %vm28_vm0, %v4456_v35  ;;  %v4457_v31 = vadd.f32 %v4425_v63, %v4393_v6  ;;  %v4323_v61 = vadd.f32 %v4220_v41, %v12567_v58  ;;  %v4222_v38 = vpop.f32.mrb[17].mxu0  ;;  %v5222_v36 = vpop.f32.mrb[21].mxu1  ;;  %v4426_v58 = vld [vmem:[%s14342_s0 + $0x40] sm:$0xff] }
 0x5e2   :  { %v4223_v55 = vpop.f32.mrb[18].mxu0  ;;  %v12789_v0 = vpop.f32.mrb[22].mxu1  ;;  %v4429_v36 = vld [vmem:[%s14342_s0 + $0x58] sm:$0xff] }
 0x5e3   :  { %4489 = vst.msk [vmem:[#allocation4 + $0x38] sm:$0xff] %vm28_vm0, %v4457_v31  ;;  %v4362_v26 = vadd.f32 %v12696_v27, %v4323_v61  ;;  %v4324_v46 = vadd.f32 %v4223_v55, %v12571_v1  ;;  %v4225_v4 = vpop.f32.mrb[19].mxu0  ;;  %v5225_v44 = vpop.f32.mrb[23].mxu1  ;;  %v10023_v31 = vld [vmem:[%s14345_s3 + $0x70] sm:$0xff]  }
 0x5e4   :  { %6585 = vmatpush1.bf16.msra.mxu0 %v10023_v31 }
 0x5e5   :  { %v4394_v51 = vmax.f32 %v4362_v26, 0.0  ;;  %v4363_v20 = vadd.f32 %v12696_v27, %v4324_v46  ;;  %5580 = vmatmul.mubr.bf16.gmra.mrb[124].mxu0 %v12541_v43  ;;  %6586 = vmatprep.subr.bf16.mxu0 %v10119_v10 }
 0x5e7   :  { %v4458_v1 = vadd.f32 %v4426_v58, %v4394_v51  ;;  %v4395_v19 = vmax.f32 %v4363_v20, 0.0 }
 0x5e8   :  { %v4228_v23 = vpop.f32.mrb[20].mxu0  ;;  %v12806_v25 = vpop.f32.mrb[24].mxu1 }
 0x5e9   :  { %4490 = vst.msk [vmem:[#allocation4 + $0x40] sm:$0xff] %vm28_vm0, %v4458_v1  ;;  %v4459_v24 = vadd.f32 %v4427_v22, %v4395_v19  ;;  %v4325_v37 = vadd.f32 %v4228_v23, %v12580_v50  ;;  %v4230_v12 = vpop.f32.mrb[21].mxu0  ;;  %v5230_v5 = vpop.f32.mrb[25].mxu1  ;;  %v4428_v50 = vld [vmem:[%s14342_s0 + $0x50] sm:$0xff] }
 0x5ea   :  { %v4231_v43 = vpop.f32.mrb[22].mxu0  ;;  %v12810_v14 = vpop.f32.mrb[26].mxu1  ;;  %v4431_v12 = vld [vmem:[%s14342_s0 + $0x68] sm:$0xff] }
 0x5eb   :  { %4491 = vst.msk [vmem:[#allocation4 + $0x48] sm:$0xff] %vm28_vm0, %v4459_v24  ;;  %v4364_v63 = vadd.f32 %v12696_v27, %v4325_v37  ;;  %v4326_v35 = vadd.f32 %v4231_v43, %v12582_v13  ;;  %v4233_v6 = vpop.f32.mrb[23].mxu0  ;;  %v5233_v41 = vpop.f32.mrb[27].mxu1  ;;  %v4430_v24 = vld [vmem:[%s14342_s0 + $0x60] sm:$0xff] }
 0x5ed   :  { %v4396_v61 = vmax.f32 %v4364_v63, 0.0  ;;  %v4365_v38 = vadd.f32 %v12696_v27, %v4326_v35 }
 0x5ef   :  { %v4460_v13 = vadd.f32 %v4428_v50, %v4396_v61  ;;  %v4397_v55 = vmax.f32 %v4365_v38, 0.0  ;;  %v10024_v50 = vld [vmem:[%s14345_s3 + $0x78] sm:$0xff]  }
 0x5f0   :  { %v4236_v26 = vpop.f32.mrb[24].mxu0  ;;  %v12826_v46 = vpop.f32.mrb[28].mxu1  ;;  %6587 = vmatpush1.bf16.msra.mxu0 %v10024_v50 }
 0x5f1   :  { %4492 = vst.msk [vmem:[#allocation4 + $0x50] sm:$0xff] %vm28_vm0, %v4460_v13  ;;  %v4461_v4 = vadd.f32 %v4429_v36, %v4397_v55  ;;  %v4327_v44 = vadd.f32 %v4236_v26, %v12589_v60  ;;  %v4238_v48 = vpop.f32.mrb[25].mxu0  ;;  %v5238_v58 = vpop.f32.mrb[29].mxu1  ;;  %6588 = vmatprep.subr.bf16.mxu0 %v10119_v10 }
 0x5f2   :  { %v4239_v51 = vpop.f32.mrb[26].mxu0  ;;  %v12830_v20 = vpop.f32.mrb[30].mxu1  ;;  %v4433_v48 = vld [vmem:[%s14342_s0 + $0x78] sm:$0xff] }
 0x5f3   :  { %4493 = vst.msk [vmem:[#allocation4 + $0x58] sm:$0xff] %vm28_vm0, %v4461_v4  ;;  %v4366_v22 = vadd.f32 %v12696_v27, %v4327_v44  ;;  %v4328_v1 = vadd.f32 %v4239_v51, %v12591_v42  ;;  %v4241_v19 = vpop.f32.mrb[27].mxu0  ;;  %v5241_v23 = vpop.f32.mrb[31].mxu1 }
 0x5f5   :  { %v4398_v37 = vmax.f32 %v4366_v22, 0.0  ;;  %v4367_v60 = vadd.f32 %v12696_v27, %v4328_v1 }
 0x5f7   :  { %v4462_v5 = vadd.f32 %v4430_v24, %v4398_v37  ;;  %v4399_v43 = vmax.f32 %v4367_v60, 0.0 }
 0x5f8   :  { %v4244_v63 = vpop.f32.mrb[28].mxu0  ;;  %v12842_v35 = vpop.f32.mrb[32].mxu1 }
 0x5f9   :  { %4494 = vst.msk [vmem:[#allocation4 + $0x60] sm:$0xff] %vm28_vm0, %v4462_v5  ;;  %v4463_v42 = vadd.f32 %v4431_v12, %v4399_v43  ;;  %v4329_v6 = vadd.f32 %v4244_v63, %v12599_v62  ;;  %v4246_v41 = vpop.f32.mrb[29].mxu0  ;;  %v5246_v31 = vpop.f32.mrb[33].mxu1  ;;  %v4432_v62 = vld [vmem:[%s14342_s0 + $0x70] sm:$0xff] }
 0x5fa   :  { %v4247_v61 = vpop.f32.mrb[30].mxu0  ;;  %v12849_v38 = vpop.f32.mrb[34].mxu1  ;;  %v4435_v31 = vld [vmem:[%s14342_s0 + $0x88] sm:$0xff] }
 0x5fb   :  { %4495 = vst.msk [vmem:[#allocation4 + $0x68] sm:$0xff] %vm28_vm0, %v4463_v42  ;;  %v4368_v36 = vadd.f32 %v12696_v27, %v4329_v6  ;;  %v4330_v13 = vadd.f32 %v4247_v61, %v12601_v33  ;;  %v4249_v55 = vpop.f32.mrb[31].mxu0  ;;  %v5249_v26 = vpop.f32.mrb[35].mxu1  ;;  %v10025_v42 = vld [vmem:[%s14345_s3 + $0x80] sm:$0xff]  }
 0x5fc   :  { %6589 = vmatpush1.bf16.msra.mxu0 %v10025_v42 }
 0x5fd   :  { %v4400_v4 = vmax.f32 %v4368_v36, 0.0  ;;  %v4369_v44 = vadd.f32 %v12696_v27, %v4330_v13  ;;  %6590 = vmatprep.subr.bf16.mxu0 %v10119_v10 }
 0x5ff   :  { %v4464_v58 = vadd.f32 %v4432_v62, %v4400_v4  ;;  %v4401_v51 = vmax.f32 %v4369_v44, 0.0 }
 0x600   :  { %v4252_v22 = vpop.f32.mrb[32].mxu0  ;;  %v12862_v33 = vpop.f32.mrb[36].mxu1 }
 0x601   :  { %4496 = vst.msk [vmem:[#allocation4 + $0x70] sm:$0xff] %vm28_vm0, %v4464_v58  ;;  %v4465_v1 = vadd.f32 %v4433_v48, %v4401_v51  ;;  %v4331_v19 = vadd.f32 %v4252_v22, %v12609_v9  ;;  %v4254_v23 = vpop.f32.mrb[33].mxu0  ;;  %v5254_v24 = vpop.f32.mrb[37].mxu1  ;;  %v4434_v9 = vld [vmem:[%s14342_s0 + $0x80] sm:$0xff] }
 0x602   :  { %v4255_v37 = vpop.f32.mrb[34].mxu0  ;;  %v12866_v60 = vpop.f32.mrb[38].mxu1  ;;  %v4437_v24 = vld [vmem:[%s14342_s0 + $0x98] sm:$0xff] }
 0x603   :  { %4497 = vst.msk [vmem:[#allocation4 + $0x78] sm:$0xff] %vm28_vm0, %v4465_v1  ;;  %v4370_v12 = vadd.f32 %v12696_v27, %v4331_v19  ;;  %v4332_v5 = vadd.f32 %v4255_v37, %v12611_v2  ;;  %v4257_v43 = vpop.f32.mrb[35].mxu0  ;;  %v5257_v63 = vpop.f32.mrb[39].mxu1  ;;  %v10026_v1 = vld [vmem:[%s14345_s3 + $0x88] sm:$0xff]  }
 0x604   :  { %6591 = vmatpush1.bf16.msra.mxu0 %v10026_v1 }
 0x605   :  { %v4402_v6 = vmax.f32 %v4370_v12, 0.0  ;;  %v4371_v41 = vadd.f32 %v12696_v27, %v4332_v5  ;;  %6592 = vmatprep.subr.bf16.mxu0 %v10119_v10 }
 0x607   :  { %v4466_v2 = vadd.f32 %v4434_v9, %v4402_v6  ;;  %v4403_v50 = vmax.f32 %v4371_v41, 0.0 }
 0x608   :  { %v4260_v61 = vpop.f32.mrb[36].mxu0  ;;  %v12882_v36 = vpop.f32.mrb[40].mxu1 }
 0x609   :  { %4498 = vst.msk [vmem:[#allocation4 + $0x80] sm:$0xff] %vm28_vm0, %v4466_v2  ;;  %v4467_v13 = vadd.f32 %v4435_v31, %v4403_v50  ;;  %v4333_v55 = vadd.f32 %v4260_v61, %v12619_v21  ;;  %v4262_v26 = vpop.f32.mrb[37].mxu0  ;;  %v5262_v62 = vpop.f32.mrb[41].mxu1  ;;  %v4436_v21 = vld [vmem:[%s14342_s0 + $0x90] sm:$0xff] }
 0x60a   :  { %v4263_v4 = vpop.f32.mrb[38].mxu0  ;;  %v12886_v44 = vpop.f32.mrb[42].mxu1  ;;  %v4439_v26 = vld [vmem:[%s14342_s0 + $0xa8] sm:$0xff] }
 0x60b   :  { %4499 = vst.msk [vmem:[#allocation4 + $0x88] sm:$0xff] %vm28_vm0, %v4467_v13  ;;  %v4372_v48 = vadd.f32 %v12696_v27, %v4333_v55  ;;  %v4334_v58 = vadd.f32 %v4263_v4, %v12621_v3  ;;  %v4265_v51 = vpop.f32.mrb[39].mxu0  ;;  %v5265_v22 = vpop.f32.mrb[43].mxu1  ;;  %v4438_v13 = vld [vmem:[%s14342_s0 + $0xa0] sm:$0xff] }
 0x60d   :  { %v4404_v19 = vmax.f32 %v4372_v48, 0.0  ;;  %v4373_v23 = vadd.f32 %v12696_v27, %v4334_v58 }
 0x60f   :  { %v4468_v3 = vadd.f32 %v4436_v21, %v4404_v19  ;;  %v4405_v37 = vmax.f32 %v4373_v23, 0.0  ;;  %v10027_v21 = vld [vmem:[%s14345_s3 + $0x90] sm:$0xff]  }
 0x610   :  { %v4268_v12 = vpop.f32.mrb[40].mxu0  ;;  %v12902_v5 = vpop.f32.mrb[44].mxu1  ;;  %6593 = vmatpush1.bf16.msra.mxu0 %v10027_v21 }
 0x611   :  { %4500 = vst.msk [vmem:[#allocation4 + $0x90] sm:$0xff] %vm28_vm0, %v4468_v3  ;;  %v4469_v43 = vadd.f32 %v4437_v24, %v4405_v37  ;;  %v4335_v63 = vadd.f32 %v4268_v12, %v12629_v53  ;;  %v4270_v42 = vpop.f32.mrb[41].mxu0  ;;  %v5270_v9 = vpop.f32.mrb[45].mxu1  ;;  %6594 = vmatprep.subr.bf16.mxu0 %v10119_v10 }
 0x612   :  { %v4271_v6 = vpop.f32.mrb[42].mxu0  ;;  %v12906_v41 = vpop.f32.mrb[46].mxu1  ;;  %v4441_v42 = vld [vmem:[%s14342_s0 + $0xb8] sm:$0xff] }
 0x613   :  { %4501 = vst.msk [vmem:[#allocation4 + $0x98] sm:$0xff] %vm28_vm0, %v4469_v43  ;;  %v4374_v31 = vadd.f32 %v12696_v27, %v4335_v63  ;;  %v4336_v2 = vadd.f32 %v4271_v6, %v12631_v16  ;;  %v4273_v50 = vpop.f32.mrb[43].mxu0  ;;  %v5273_v61 = vpop.f32.mrb[47].mxu1 }
 0x615   :  { %v4406_v55 = vmax.f32 %v4374_v31, 0.0  ;;  %v4375_v53 = vadd.f32 %v12696_v27, %v4336_v2 }
 0x617   :  { %v4470_v62 = vadd.f32 %v4438_v13, %v4406_v55  ;;  %v4407_v4 = vmax.f32 %v4375_v53, 0.0 }
 0x618   :  { %v4276_v48 = vpop.f32.mrb[44].mxu0  ;;  %v12918_v58 = vpop.f32.mrb[48].mxu1 }
 0x619   :  { %4502 = vst.msk [vmem:[#allocation4 + $0xa0] sm:$0xff] %vm28_vm0, %v4470_v62  ;;  %v4471_v16 = vadd.f32 %v4439_v26, %v4407_v4  ;;  %v4337_v51 = vadd.f32 %v4276_v48, %v12639_v56  ;;  %v4278_v22 = vpop.f32.mrb[45].mxu0  ;;  %v5278_v1 = vpop.f32.mrb[49].mxu1  ;;  %v4440_v56 = vld [vmem:[%s14342_s0 + $0xb0] sm:$0xff] }
 0x61a   :  { %v4279_v19 = vpop.f32.mrb[46].mxu0  ;;  %v12925_v23 = vpop.f32.mrb[50].mxu1  ;;  %v4443_v1 = vld [vmem:[%s14342_s0 + $0xc8] sm:$0xff] }
 0x61b   :  { %4503 = vst.msk [vmem:[#allocation4 + $0xa8] sm:$0xff] %vm28_vm0, %v4471_v16  ;;  %v4376_v24 = vadd.f32 %v12696_v27, %v4337_v51  ;;  %v4338_v3 = vadd.f32 %v4279_v19, %v12641_v57  ;;  %v4281_v37 = vpop.f32.mrb[47].mxu0  ;;  %v5281_v12 = vpop.f32.mrb[51].mxu1  ;;  %v10028_v16 = vld [vmem:[%s14345_s3 + $0x98] sm:$0xff]  }
 0x61c   :  { %6595 = vmatpush1.bf16.msra.mxu0 %v10028_v16 }
 0x61d   :  { %v4408_v43 = vmax.f32 %v4376_v24, 0.0  ;;  %v4377_v63 = vadd.f32 %v12696_v27, %v4338_v3  ;;  %6596 = vmatprep.subr.bf16.mxu0 %v10119_v10 }
 0x61f   :  { %v4472_v9 = vadd.f32 %v4440_v56, %v4408_v43  ;;  %v4409_v6 = vmax.f32 %v4377_v63, 0.0 }
 0x620   :  { %v4284_v31 = vpop.f32.mrb[48].mxu0  ;;  %v12938_v57 = vpop.f32.mrb[52].mxu1 }
 0x621   :  { %4504 = vst.msk [vmem:[#allocation4 + $0xb0] sm:$0xff] %vm28_vm0, %v4472_v9  ;;  %v4473_v2 = vadd.f32 %v4441_v42, %v4409_v6  ;;  %v4339_v50 = vadd.f32 %v4284_v31, %v12649_v7  ;;  %v4286_v61 = vpop.f32.mrb[49].mxu0  ;;  %v5286_v13 = vpop.f32.mrb[53].mxu1  ;;  %v4442_v7 = vld [vmem:[%s14342_s0 + $0xc0] sm:$0xff] }
 0x622   :  { %v4287_v55 = vpop.f32.mrb[50].mxu0  ;;  %v12942_v53 = vpop.f32.mrb[54].mxu1  ;;  %v4445_v13 = vld [vmem:[%s14342_s0 + $0xd8] sm:$0xff] }
 0x623   :  { %4505 = vst.msk [vmem:[#allocation4 + $0xb8] sm:$0xff] %vm28_vm0, %v4473_v2  ;;  %v4378_v26 = vadd.f32 %v12696_v27, %v4339_v50  ;;  %v4340_v62 = vadd.f32 %v4287_v55, %v12651_v11  ;;  %v4289_v4 = vpop.f32.mrb[51].mxu0  ;;  %v5289_v48 = vpop.f32.mrb[55].mxu1  ;;  %v10029_v2 = vld [vmem:[%s14345_s3 + $0xa0] sm:$0xff]  }
 0x624   :  { %6597 = vmatpush1.bf16.msra.mxu0 %v10029_v2 }
 0x625   :  { %v4410_v51 = vmax.f32 %v4378_v26, 0.0  ;;  %v4379_v22 = vadd.f32 %v12696_v27, %v4340_v62  ;;  %6598 = vmatprep.subr.bf16.mxu0 %v10119_v10 }
 0x627   :  { %v4474_v11 = vadd.f32 %v4442_v7, %v4410_v51  ;;  %v4411_v21 = vmax.f32 %v4379_v22, 0.0 }
 0x628   :  { %v4292_v19 = vpop.f32.mrb[52].mxu0  ;;  %v12958_v24 = vpop.f32.mrb[56].mxu1 }
 0x629   :  { %4506 = vst.msk [vmem:[#allocation4 + $0xc0] sm:$0xff] %vm28_vm0, %v4474_v11  ;;  %v4475_v3 = vadd.f32 %v4443_v1, %v4411_v21  ;;  %v4341_v37 = vadd.f32 %v4292_v19, %v12659_v39  ;;  %v4294_v12 = vpop.f32.mrb[53].mxu0  ;;  %v5294_v56 = vpop.f32.mrb[57].mxu1  ;;  %v4444_v39 = vld [vmem:[%s14342_s0 + $0xd0] sm:$0xff] }
 0x62a   :  { %v4295_v43 = vpop.f32.mrb[54].mxu0  ;;  %v12962_v63 = vpop.f32.mrb[58].mxu1  ;;  %v4447_v12 = vld [vmem:[%s14342_s0 + $0xe8] sm:$0xff] }
 0x62b   :  { %4507 = vst.msk [vmem:[#allocation4 + $0xc8] sm:$0xff] %vm28_vm0, %v4475_v3  ;;  %v4380_v42 = vadd.f32 %v12696_v27, %v4341_v37  ;;  %v4342_v9 = vadd.f32 %v4295_v43, %v12661_v28  ;;  %v4297_v6 = vpop.f32.mrb[55].mxu0  ;;  %v5297_v31 = vpop.f32.mrb[59].mxu1  ;;  %v4446_v3 = vld [vmem:[%s14342_s0 + $0xe0] sm:$0xff] }
 0x62d   :  { %v4412_v50 = vmax.f32 %v4380_v42, 0.0  ;;  %v4381_v61 = vadd.f32 %v12696_v27, %v4342_v9 }
 0x62f   :  { %v4476_v28 = vadd.f32 %v4444_v39, %v4412_v50  ;;  %v4413_v55 = vmax.f32 %v4381_v61, 0.0  ;;  %v10030_v39 = vld [vmem:[%s14345_s3 + $0xa8] sm:$0xff]  }
 0x630   :  { %v4300_v26 = vpop.f32.mrb[56].mxu0  ;;  %v12978_v62 = vpop.f32.mrb[60].mxu1  ;;  %6599 = vmatpush1.bf16.msra.mxu0 %v10030_v39 }
 0x631   :  { %4508 = vst.msk [vmem:[#allocation4 + $0xd0] sm:$0xff] %vm28_vm0, %v4476_v28  ;;  %v4477_v4 = vadd.f32 %v4445_v13, %v4413_v55  ;;  %v4343_v48 = vadd.f32 %v4300_v26, %v12669_v29  ;;  %v4302_v16 = vpop.f32.mrb[57].mxu0  ;;  %v5302_v7 = vpop.f32.mrb[61].mxu1  ;;  %6600 = vmatprep.subr.bf16.mxu0 %v10119_v10 }
 0x632   :  { %v4303_v51 = vpop.f32.mrb[58].mxu0  ;;  %v12982_v22 = vpop.f32.mrb[62].mxu1  ;;  %v4449_v16 = vld [vmem:[%s14342_s0 + $0xf8] sm:$0xff] }
 0x633   :  { %4509 = vst.msk [vmem:[#allocation4 + $0xd8] sm:$0xff] %vm28_vm0, %v4477_v4  ;;  %v4382_v1 = vadd.f32 %v12696_v27, %v4343_v48  ;;  %v4344_v11 = vadd.f32 %v4303_v51, %v12671_v32  ;;  %v4305_v21 = vpop.f32.mrb[59].mxu0  ;;  %v5305_v19 = vpop.f32.mrb[63].mxu1 }
 0x635   :  { %v4414_v37 = vmax.f32 %v4382_v1, 0.0  ;;  %v4383_v29 = vadd.f32 %v12696_v27, %v4344_v11 }
 0x637   :  { %v4478_v56 = vadd.f32 %v4446_v3, %v4414_v37  ;;  %v4415_v43 = vmax.f32 %v4383_v29, 0.0  ;;  %v13015_v37 = vld [vmem:[%s14344_s2] ss:$0 sm:$0xff] }
 0x638   :  { %v4308_v42 = vpop.f32.mrb[60].mxu0  ;;  %v5798_v9 = vpop.f32.mrb[64].mxu1 }
 0x639   :  { %4510 = vst.msk [vmem:[#allocation4 + $0xe0] sm:$0xff] %vm28_vm0, %v4478_v56  ;;  %v4479_v32 = vadd.f32 %v4447_v12, %v4415_v43  ;;  %v4345_v6 = vadd.f32 %v4308_v42, %v12681_v8  ;;  %v4310_v31 = vpop.f32.mrb[61].mxu0  ;;  %v5800_v2 = vpop.f32.mrb[65].mxu1  ;;  %v4448_v8 = vld [vmem:[%s14342_s0 + $0xf0] sm:$0xff] }
 0x63a   :  { %v4311_v50 = vpop.f32.mrb[62].mxu0  ;;  %v5801_v61 = vpop.f32.mrb[66].mxu1  ;;  %v10032_v31 = vld [vmem:[%s14345_s3 + $0xb8] sm:$0xff]  }
 0x63b   :  { %4511 = vst.msk [vmem:[#allocation4 + $0xe8] sm:$0xff] %vm28_vm0, %v4479_v32  ;;  %v4384_v13 = vadd.f32 %v12696_v27, %v4345_v6  ;;  %v4346_v28 = vadd.f32 %v4311_v50, %v12685_v17  ;;  %v4313_v55 = vpop.f32.mrb[63].mxu0  ;;  %v5803_v26 = vpop.f32.mrb[67].mxu1 }
 0x63d   :  { %v4416_v4 = vmax.f32 %v4384_v13, 0.0  ;;  %v4385_v48 = vadd.f32 %v12696_v27, %v4346_v28 }
 0x63f   :  { %v4480_v7 = vadd.f32 %v4448_v8, %v4416_v4  ;;  %v4417_v51 = vmax.f32 %v4385_v48, 0.0 }
 0x640   :  { %v5461_v1 = vpop.f32.mrb[64].mxu0  ;;  %v5806_v17 = vpop.f32.mrb[68].mxu1 }
 0x641   :  { %4512 = vst.msk [vmem:[#allocation4 + $0xf0] sm:$0xff] %vm28_vm0, %v4480_v7  ;;  %v4481_v11 = vadd.f32 %v4449_v16, %v4417_v51  ;;  %v5462_v21 = vadd.f32 %v5461_v1, %v12679_v47  ;;  %v5463_v19 = vpop.f32.mrb[65].mxu0  ;;  %v5808_v3 = vpop.f32.mrb[69].mxu1  ;;  %v10031_v47 = vld [vmem:[%s14345_s3 + $0xb0] sm:$0xff]  }
 0x642   :  { %v5464_v27 = vpop.f32.mrb[66].mxu0  ;;  %v5809_v29 = vpop.f32.mrb[70].mxu1  ;;  %6601 = vmatpush1.bf16.msra.mxu0 %v10031_v47 }
 0x643   :  { %4513 = vst.msk [vmem:[#allocation4 + $0xf8] sm:$0xff] %vm28_vm0, %v4481_v11  ;;  %v5925_v12 = vadd.f32 %v5798_v9, %v5462_v21  ;;  %v5465_v56 = vadd.f32 %v5464_v27, %v12683_v18  ;;  %v5466_v43 = vpop.f32.mrb[67].mxu0  ;;  %v5811_v42 = vpop.f32.mrb[71].mxu1  ;;  %6602 = vmatprep.subr.bf16.mxu0 %v10119_v10 }
 0x645   :  { %v5964_v32 = vadd.f32 %v13015_v37, %v5925_v12  ;;  %v5926_v6 = vadd.f32 %v5801_v61, %v5465_v56 }
 0x646   :  { %6603 = vmatpush1.bf16.msra.mxu0 %v10032_v31 }
 0x647   :  { %v5996_v2 = vmax.f32 %v5964_v32, 0.0  ;;  %v5965_v9 = vadd.f32 %v13015_v37, %v5926_v6  ;;  %7198 = vmatprep.subr.bf16.mxu0 %v10119_v10 }
 0x648   :  { %v5469_v18 = vpop.f32.mrb[68].mxu0  ;;  %v5814_v39 = vpop.f32.mrb[72].mxu1 }
 0x649   :  { %6028 = vst.msk [vmem:[#allocation2 + $0x268] sm:$0xff] %vm28_vm0, %v5996_v2  ;;  %v5997_v50 = vmax.f32 %v5965_v9, 0.0  ;;  %v5470_v13 = vadd.f32 %v5469_v18, %v12698_v30  ;;  %v5471_v28 = vpop.f32.mrb[69].mxu0  ;;  %v5816_v55 = vpop.f32.mrb[73].mxu1  ;;  %v10033_v30 = vld [vmem:[%s14345_s3] sm:$0xff]  }
 0x64a   :  { %v5472_v61 = vpop.f32.mrb[70].mxu0  ;;  %v5817_v26 = vpop.f32.mrb[74].mxu1  ;;  %6862 = vmatpush1.bf16.msra.mxu1 %v10033_v30  ;;  %v10035_v30 = vld [vmem:[%s14345_s3 + $0x8] sm:$0xff]  }
 0x64b   :  { %6029 = vst.msk [vmem:[#allocation2 + $0x270] sm:$0xff] %vm28_vm0, %v5997_v50  ;;  %v5927_v8 = vadd.f32 %v5806_v17, %v5470_v13  ;;  %v5473_v4 = vadd.f32 %v5472_v61, %v12701_v52  ;;  %v5474_v48 = vpop.f32.mrb[71].mxu0  ;;  %v5819_v16 = vpop.f32.mrb[75].mxu1  ;;  %6863 = vmatprep.subr.bf16.mxu1 %v10119_v10 }
 0x64d   :  { %v5966_v7 = vadd.f32 %v13015_v37, %v5927_v8  ;;  %v5928_v51 = vadd.f32 %v5809_v29, %v5473_v4 }
 0x64e   :  { %6864 = vmatpush1.bf16.msra.mxu1 %v10035_v30 }
 0x64f   :  { %v5998_v1 = vmax.f32 %v5966_v7, 0.0  ;;  %v5967_v11 = vadd.f32 %v13015_v37, %v5928_v51  ;;  %6865 = vmatprep.subr.bf16.mxu1 %v10119_v10 }
 0x650   :  { %v5477_v21 = vpop.f32.mrb[72].mxu0  ;;  %v5822_v19 = vpop.f32.mrb[76].mxu1  ;;  %v6134_v29 = vld [vmem:[#allocation2 + $0x268] sm:$0xff] }
 0x651   :  { %6030 = vst.msk [vmem:[#allocation2 + $0x288] sm:$0xff] %vm28_vm0, %v5998_v1  ;;  %v5999_v52 = vmax.f32 %v5967_v11, 0.0  ;;  %v5478_v17 = vadd.f32 %v5477_v21, %v12718_v15  ;;  %v5479_v3 = vpop.f32.mrb[73].mxu0  ;;  %v5824_v27 = vpop.f32.mrb[77].mxu1  ;;  %v6062_v50 = vld [vmem:[#allocation2 + $0x267] sm:$0xff] }
 0x652   :  { %v5480_v12 = vpop.f32.mrb[74].mxu0  ;;  %v5825_v56 = vpop.f32.mrb[78].mxu1  ;;  %v6135_v43 = vld [vmem:[#allocation2 + $0x270] sm:$0xff] }
 0x653   :  { %v6278_v42 = vld [vmem:[#allocation2 + $0x269] sm:$0xff]  ;;  %v6279_v47 = vld [vmem:[#allocation2 + $0x271] sm:$0xff]  ;;  %6031 = vst.msk [vmem:[#allocation2 + $0x290] sm:$0xff] %vm28_vm0, %v5999_v52  ;;  %v5929_v32 = vadd.f32 %v5814_v39, %v5478_v17  ;;  %v5481_v6 = vadd.f32 %v5480_v12, %v12722_v49  ;;  %v5482_v31 = vpop.f32.mrb[75].mxu0  ;;  %v5827_v2 = vpop.f32.mrb[79].mxu1  ;;  %v6169_v9 = vpack.c.bf16 %v6135_v43, %v6134_v29 }
 0x654   :  { %v6313_v18 = vpack.c.bf16 %v6279_v47, %v6278_v42  ;;  %v6063_v13 = vld [vmem:[#allocation2 + $0x26f] sm:$0xff] }
 0x655   :  { %v6097_v15 = vpack.c.bf16 %v6063_v13, %v6062_v50  ;;  %v5968_v28 = vadd.f32 %v13015_v37, %v5929_v32  ;;  %v5930_v55 = vadd.f32 %v5817_v26, %v5481_v6  ;;  %6206 = vrot.lane.b32.xlu0 %v6169_v9, %s10120_s26 }
 0x656   :  { %6331 = vst.msk [vmem:[#allocation3 + $0x18] sm:$0xff] %vm28_vm0, %v6313_v18 }
 0x657   :  { %6115 = vst.msk [vmem:[#allocation3 + $0x10] sm:$0xff] %vm28_vm0, %v6097_v15  ;;  %v6000_v61 = vmax.f32 %v5968_v28, 0.0  ;;  %v5969_v39 = vadd.f32 %v13015_v37, %v5930_v55  ;;  %v10037_v55 = vld [vmem:[%s14345_s3 + $0x10] sm:$0xff]  }
 0x658   :  { %v5485_v49 = vpop.f32.mrb[76].mxu0  ;;  %v5830_v8 = vpop.f32.mrb[80].mxu1  ;;  %v6136_v51 = vld [vmem:[#allocation2 + $0x288] sm:$0xff]  ;;  %6866 = vmatpush1.bf16.msra.mxu1 %v10037_v55 }
 0x659   :  { %6032 = vst.msk [vmem:[#allocation2 + $0x2a8] sm:$0xff] %vm28_vm0, %v6000_v61  ;;  %v6001_v4 = vmax.f32 %v5969_v39, 0.0  ;;  %v5486_v48 = vadd.f32 %v5485_v49, %v12740_v45  ;;  %v5487_v16 = vpop.f32.mrb[77].mxu0  ;;  %v5832_v7 = vpop.f32.mrb[81].mxu1  ;;  %v6064_v26 = vld [vmem:[#allocation2 + $0x287] sm:$0xff]  ;;  %6867 = vmatprep.subr.bf16.mxu1 %v10119_v10 }
 0x65a   :  { %v5488_v1 = vpop.f32.mrb[78].mxu0  ;;  %v5833_v11 = vpop.f32.mrb[82].mxu1  ;;  %v6137_v21 = vld [vmem:[#allocation2 + $0x290] sm:$0xff] }
 0x65b   :  { %v6065_v52 = vld [vmem:[#allocation2 + $0x28f] sm:$0xff]  ;;  %6033 = vst.msk [vmem:[#allocation2 + $0x2b0] sm:$0xff] %vm28_vm0, %v6001_v4  ;;  %v5931_v3 = vadd.f32 %v5822_v19, %v5486_v48  ;;  %v5489_v27 = vadd.f32 %v5488_v1, %v12744_v40  ;;  %v5490_v29 = vpop.f32.mrb[79].mxu0  ;;  %v5835_v45 = vpop.f32.mrb[83].mxu1  ;;  %v6170_v12 = vpack.c.bf16 %v6137_v21, %v6136_v51 }
 0x65c   :  { %v6280_v17 = vld [vmem:[#allocation2 + $0x289] sm:$0xff]  ;;  %v6098_v43 = vpack.c.bf16 %v6065_v52, %v6064_v26  ;;  %v6281_v42 = vld [vmem:[#allocation2 + $0x291] sm:$0xff] }
 0x65d   :  { %v6405_v47 = vld [vmem:[#allocation3 + $0x18] sm:$0xff]  ;;  %v6314_v32 = vpack.c.bf16 %v6281_v42, %v6280_v17  ;;  %v5970_v6 = vadd.f32 %v13015_v37, %v5931_v3  ;;  %v5932_v31 = vadd.f32 %v5825_v56, %v5489_v27  ;;  %6208 = vrot.lane.b32.xlu1 %v6170_v12, %s10120_s26 }
 0x65e   :  { %9609 = vmatprep.mubr.msk.bf16.mxu0 %vm28_vm0, %v6405_v47  ;;  %6116 = vst.msk [vmem:[#allocation3 + $0x20] sm:$0xff] %vm28_vm0, %v6098_v43  ;;  %v10039_v47 = vld [vmem:[%s14345_s3 + $0x18] sm:$0xff]  }
 0x65f   :  { %6332 = vst.msk [vmem:[#allocation3 + $0x28] sm:$0xff] %vm28_vm0, %v6314_v32  ;;  %v6002_v40 = vmax.f32 %v5970_v6, 0.0  ;;  %v5971_v19 = vadd.f32 %v13015_v37, %v5932_v31  ;;  %6868 = vmatpush1.bf16.msra.mxu1 %v10039_v47 }
 0x660   :  { %v5493_v2 = vpop.f32.mrb[80].mxu0  ;;  %v5838_v9 = vpop.f32.mrb[84].mxu1  ;;  %v6138_v15 = vld [vmem:[#allocation2 + $0x2a8] sm:$0xff]  ;;  %6869 = vmatprep.subr.bf16.mxu1 %v10119_v10 }
 0x661   :  { %6034 = vst.msk [vmem:[#allocation2 + $0x2c8] sm:$0xff] %vm28_vm0, %v6002_v40  ;;  %v6003_v18 = vmax.f32 %v5971_v19, 0.0  ;;  %v5494_v50 = vadd.f32 %v5493_v2, %v12762_v59  ;;  %v5495_v13 = vpop.f32.mrb[81].mxu0  ;;  %v5840_v56 = vpop.f32.mrb[85].mxu1  ;;  %v6066_v28 = vld [vmem:[#allocation2 + $0x2a7] sm:$0xff] }
 0x662   :  { %v5496_v61 = vpop.f32.mrb[82].mxu0  ;;  %v5841_v39 = vpop.f32.mrb[86].mxu1  ;;  %v6139_v49 = vld [vmem:[#allocation2 + $0x2b0] sm:$0xff] }
 0x663   :  { %v6067_v4 = vld [vmem:[#allocation2 + $0x2af] sm:$0xff]  ;;  %6035 = vst.msk [vmem:[#allocation2 + $0x2d0] sm:$0xff] %vm28_vm0, %v6003_v18  ;;  %v5933_v16 = vadd.f32 %v5830_v8, %v5494_v50  ;;  %v5497_v7 = vadd.f32 %v5496_v61, %v12769_v34  ;;  %v5498_v51 = vpop.f32.mrb[83].mxu0  ;;  %v5843_v59 = vpop.f32.mrb[87].mxu1  ;;  %v6171_v26 = vpack.c.bf16 %v6139_v49, %v6138_v15 }
 0x664   :  { %v6282_v48 = vld [vmem:[#allocation2 + $0x2a9] sm:$0xff]  ;;  %v6099_v30 = vpack.c.bf16 %v6067_v4, %v6066_v28  ;;  %v6283_v1 = vld [vmem:[#allocation2 + $0x2b1] sm:$0xff] }
 0x665   :  { %v6315_v21 = vpack.c.bf16 %v6283_v1, %v6282_v48  ;;  %v5972_v52 = vadd.f32 %v13015_v37, %v5933_v16  ;;  %v5934_v17 = vadd.f32 %v5833_v11, %v5497_v7  ;;  %6210 = vrot.lane.b32.xlu0 %v6171_v26, %s10120_s26 }
 0x666   :  { %6117 = vst.msk [vmem:[#allocation3 + $0x30] sm:$0xff] %vm28_vm0, %v6099_v30 }
 0x667   :  { %6333 = vst.msk [vmem:[#allocation3 + $0x38] sm:$0xff] %vm28_vm0, %v6315_v21  ;;  %v6004_v8 = vmax.f32 %v5972_v52, 0.0  ;;  %v5973_v34 = vadd.f32 %v13015_v37, %v5934_v17 }
 0x668   :  { %v5501_v3 = vpop.f32.mrb[84].mxu0  ;;  %v5846_v27 = vpop.f32.mrb[88].mxu1  ;;  %v6140_v42 = vld [vmem:[#allocation2 + $0x2c8] sm:$0xff] }
 0x669   :  { %6036 = vst.msk [vmem:[#allocation2 + $0x2e8] sm:$0xff] %vm28_vm0, %v6004_v8  ;;  %v6005_v29 = vmax.f32 %v5973_v34, 0.0  ;;  %v5502_v45 = vadd.f32 %v5501_v3, %v12785_v54  ;;  %v5503_v12 = vpop.f32.mrb[85].mxu0  ;;  %v5848_v43 = vpop.f32.mrb[89].mxu1  ;;  %v6068_v11 = vld [vmem:[#allocation2 + $0x2c7] sm:$0xff] }
 0x66a   :  { %v5504_v32 = vpop.f32.mrb[86].mxu0  ;;  %v5849_v6 = vpop.f32.mrb[90].mxu1  ;;  %v6141_v31 = vld [vmem:[#allocation2 + $0x2d0] sm:$0xff] }
 0x66b   :  { %v6069_v40 = vld [vmem:[#allocation2 + $0x2cf] sm:$0xff]  ;;  %6037 = vst.msk [vmem:[#allocation2 + $0x2f0] sm:$0xff] %vm28_vm0, %v6005_v29  ;;  %v5935_v2 = vadd.f32 %v5838_v9, %v5502_v45  ;;  %v5505_v18 = vadd.f32 %v5504_v32, %v12789_v0  ;;  %v5506_v50 = vpop.f32.mrb[87].mxu0  ;;  %v5851_v54 = vpop.f32.mrb[91].mxu1  ;;  %v6172_v13 = vpack.c.bf16 %v6141_v31, %v6140_v42 }
 0x66c   :  { %v6284_v19 = vld [vmem:[#allocation2 + $0x2c9] sm:$0xff]  ;;  %v6100_v56 = vpack.c.bf16 %v6069_v40, %v6068_v11  ;;  %v6285_v15 = vld [vmem:[#allocation2 + $0x2d1] sm:$0xff] }
 0x66d   :  { %v6316_v28 = vpack.c.bf16 %v6285_v15, %v6284_v19  ;;  %v5974_v55 = vadd.f32 %v13015_v37, %v5935_v2  ;;  %v5936_v61 = vadd.f32 %v5841_v39, %v5505_v18  ;;  %6212 = vrot.lane.b32.xlu1 %v6172_v13, %s10120_s26  ;;  %v10041_v18 = vld [vmem:[%s14345_s3 + $0x20] sm:$0xff]  }
 0x66e   :  { %6118 = vst.msk [vmem:[#allocation3 + $0x40] sm:$0xff] %vm28_vm0, %v6100_v56  ;;  %6870 = vmatpush1.bf16.msra.mxu1 %v10041_v18 }
 0x66f   :  { %6334 = vst.msk [vmem:[#allocation3 + $0x48] sm:$0xff] %vm28_vm0, %v6316_v28  ;;  %v6006_v9 = vmax.f32 %v5974_v55, 0.0  ;;  %v5975_v0 = vadd.f32 %v13015_v37, %v5936_v61  ;;  %6871 = vmatprep.subr.bf16.mxu1 %v10119_v10 }
 0x670   :  { %v5509_v49 = vpop.f32.mrb[88].mxu0  ;;  %v5854_v4 = vpop.f32.mrb[92].mxu1  ;;  %v6142_v59 = vld [vmem:[#allocation2 + $0x2e8] sm:$0xff] }
 0x671   :  { %6038 = vst.msk [vmem:[#allocation2 + $0x308] sm:$0xff] %vm28_vm0, %v6006_v9  ;;  %v6007_v48 = vmax.f32 %v5975_v0, 0.0  ;;  %v5510_v16 = vadd.f32 %v5509_v49, %v12806_v25  ;;  %v5511_v7 = vpop.f32.mrb[89].mxu0  ;;  %v5856_v51 = vpop.f32.mrb[93].mxu1  ;;  %v6070_v39 = vld [vmem:[#allocation2 + $0x2e7] sm:$0xff] }
 0x672   :  { %v5512_v26 = vpop.f32.mrb[90].mxu0  ;;  %v5857_v30 = vpop.f32.mrb[94].mxu1  ;;  %v6143_v1 = vld [vmem:[#allocation2 + $0x2f0] sm:$0xff] }
 0x673   :  { %v6071_v21 = vld [vmem:[#allocation2 + $0x2ef] sm:$0xff]  ;;  %6039 = vst.msk [vmem:[#allocation2 + $0x310] sm:$0xff] %vm28_vm0, %v6007_v48  ;;  %v5937_v17 = vadd.f32 %v5846_v27, %v5510_v16  ;;  %v5513_v8 = vadd.f32 %v5512_v26, %v12810_v14  ;;  %v5514_v34 = vpop.f32.mrb[91].mxu0  ;;  %v5859_v3 = vpop.f32.mrb[95].mxu1  ;;  %v6173_v29 = vpack.c.bf16 %v6143_v1, %v6142_v59 }
 0x674   :  { %v6286_v52 = vld [vmem:[#allocation2 + $0x2e9] sm:$0xff]  ;;  %v6101_v45 = vpack.c.bf16 %v6071_v21, %v6070_v39  ;;  %v6287_v12 = vld [vmem:[#allocation2 + $0x2f1] sm:$0xff] }
 0x675   :  { %v6317_v25 = vpack.c.bf16 %v6287_v12, %v6286_v52  ;;  %v5976_v43 = vadd.f32 %v13015_v37, %v5937_v17  ;;  %v5938_v42 = vadd.f32 %v5849_v6, %v5513_v8  ;;  %6214 = vrot.lane.b32.xlu0 %v6173_v29, %s10120_s26  ;;  %v10043_v17 = vld [vmem:[%s14345_s3 + $0x28] sm:$0xff]  }
 0x676   :  { %6119 = vst.msk [vmem:[#allocation3 + $0x50] sm:$0xff] %vm28_vm0, %v6101_v45  ;;  %6872 = vmatpush1.bf16.msra.mxu1 %v10043_v17 }
 0x677   :  { %6335 = vst.msk [vmem:[#allocation3 + $0x58] sm:$0xff] %vm28_vm0, %v6317_v25  ;;  %v6008_v11 = vmax.f32 %v5976_v43, 0.0  ;;  %v5977_v27 = vadd.f32 %v13015_v37, %v5938_v42  ;;  %6873 = vmatprep.subr.bf16.mxu1 %v10119_v10 }
 0x678   :  { %v5517_v47 = vpop.f32.mrb[92].mxu0  ;;  %v5862_v14 = vpop.f32.mrb[96].mxu1  ;;  %v6144_v2 = vld [vmem:[#allocation2 + $0x308] sm:$0xff] }
 0x679   :  { %6040 = vst.msk [vmem:[#allocation2 + $0x328] sm:$0xff] %vm28_vm0, %v6008_v11  ;;  %v6009_v32 = vmax.f32 %v5977_v27, 0.0  ;;  %v5518_v31 = vadd.f32 %v5517_v47, %v12826_v46  ;;  %v5519_v40 = vpop.f32.mrb[93].mxu0  ;;  %v5864_v19 = vpop.f32.mrb[97].mxu1  ;;  %v6072_v6 = vld [vmem:[#allocation2 + $0x307] sm:$0xff] }
 0x67a   :  { %v5520_v50 = vpop.f32.mrb[94].mxu0  ;;  %v5865_v54 = vpop.f32.mrb[98].mxu1  ;;  %v6145_v13 = vld [vmem:[#allocation2 + $0x310] sm:$0xff] }
 0x67b   :  { %v6073_v56 = vld [vmem:[#allocation2 + $0x30f] sm:$0xff]  ;;  %6041 = vst.msk [vmem:[#allocation2 + $0x330] sm:$0xff] %vm28_vm0, %v6009_v32  ;;  %v5939_v28 = vadd.f32 %v5854_v4, %v5518_v31  ;;  %v5521_v55 = vadd.f32 %v5520_v50, %v12830_v20  ;;  %v5522_v61 = vpop.f32.mrb[95].mxu0  ;;  %v5867_v46 = vpop.f32.mrb[99].mxu1  ;;  %v6174_v9 = vpack.c.bf16 %v6145_v13, %v6144_v2 }
 0x67c   :  { %v6288_v15 = vld [vmem:[#allocation2 + $0x309] sm:$0xff]  ;;  %v6102_v0 = vpack.c.bf16 %v6073_v56, %v6072_v6  ;;  %v6289_v49 = vld [vmem:[#allocation2 + $0x311] sm:$0xff] }
 0x67d   :  { %v6318_v48 = vpack.c.bf16 %v6289_v49, %v6288_v15  ;;  %v5978_v16 = vadd.f32 %v13015_v37, %v5939_v28  ;;  %v5940_v7 = vadd.f32 %v5857_v30, %v5521_v55  ;;  %6216 = vrot.lane.b32.xlu1 %v6174_v9, %s10120_s26  ;;  %v10045_v56 = vld [vmem:[%s14345_s3 + $0x30] sm:$0xff]  }
 0x67e   :  { %6120 = vst.msk [vmem:[#allocation3 + $0x60] sm:$0xff] %vm28_vm0, %v6102_v0  ;;  %6874 = vmatpush1.bf16.msra.mxu1 %v10045_v56 }
 0x67f   :  { %6336 = vst.msk [vmem:[#allocation3 + $0x68] sm:$0xff] %vm28_vm0, %v6318_v48  ;;  %v6010_v4 = vmax.f32 %v5978_v16, 0.0  ;;  %v5979_v20 = vadd.f32 %v13015_v37, %v5940_v7  ;;  %6875 = vmatprep.subr.bf16.mxu1 %v10119_v10 }
 0x680   :  { %v5525_v51 = vpop.f32.mrb[96].mxu0  ;;  %v5870_v59 = vpop.f32.mrb[100].mxu1  ;;  %v6146_v52 = vld [vmem:[#allocation2 + $0x328] sm:$0xff] }
 0x681   :  { %6042 = vst.msk [vmem:[#allocation2 + $0x348] sm:$0xff] %vm28_vm0, %v6010_v4  ;;  %v6011_v39 = vmax.f32 %v5979_v20, 0.0  ;;  %v5526_v26 = vadd.f32 %v5525_v51, %v12842_v35  ;;  %v5527_v1 = vpop.f32.mrb[97].mxu0  ;;  %v5872_v21 = vpop.f32.mrb[101].mxu1  ;;  %v6074_v30 = vld [vmem:[#allocation2 + $0x327] sm:$0xff] }
 0x682   :  { %v5528_v8 = vpop.f32.mrb[98].mxu0  ;;  %v5873_v34 = vpop.f32.mrb[102].mxu1  ;;  %v6147_v3 = vld [vmem:[#allocation2 + $0x330] sm:$0xff] }
 0x683   :  { %v6075_v29 = vld [vmem:[#allocation2 + $0x32f] sm:$0xff]  ;;  %6043 = vst.msk [vmem:[#allocation2 + $0x350] sm:$0xff] %vm28_vm0, %v6011_v39  ;;  %v5941_v12 = vadd.f32 %v5862_v14, %v5526_v26  ;;  %v5529_v25 = vadd.f32 %v5528_v8, %v12849_v38  ;;  %v5530_v43 = vpop.f32.mrb[99].mxu0  ;;  %v5875_v35 = vpop.f32.mrb[103].mxu1  ;;  %v6175_v42 = vpack.c.bf16 %v6147_v3, %v6146_v52 }
 0x684   :  { %v6290_v45 = vld [vmem:[#allocation2 + $0x329] sm:$0xff]  ;;  %v6103_v11 = vpack.c.bf16 %v6075_v29, %v6074_v30  ;;  %v6291_v27 = vld [vmem:[#allocation2 + $0x331] sm:$0xff] }
 0x685   :  { %v6319_v47 = vpack.c.bf16 %v6291_v27, %v6290_v45  ;;  %v5980_v32 = vadd.f32 %v13015_v37, %v5941_v12  ;;  %v5942_v31 = vadd.f32 %v5865_v54, %v5529_v25  ;;  %6218 = vrot.lane.b32.xlu0 %v6175_v42, %s10120_s26 }
 0x686   :  { %6121 = vst.msk [vmem:[#allocation3 + $0x70] sm:$0xff] %vm28_vm0, %v6103_v11 }
 0x687   :  { %6337 = vst.msk [vmem:[#allocation3 + $0x78] sm:$0xff] %vm28_vm0, %v6319_v47  ;;  %v6012_v14 = vmax.f32 %v5980_v32, 0.0  ;;  %v5981_v38 = vadd.f32 %v13015_v37, %v5942_v31 }
 0x688   :  { %v5533_v40 = vpop.f32.mrb[100].mxu0  ;;  %v5878_v19 = vpop.f32.mrb[104].mxu1  ;;  %v6148_v13 = vld [vmem:[#allocation2 + $0x348] sm:$0xff] }
 0x689   :  { %6044 = vst.msk [vmem:[#allocation2 + $0x368] sm:$0xff] %vm28_vm0, %v6012_v14  ;;  %v6013_v2 = vmax.f32 %v5981_v38, 0.0  ;;  %v5534_v6 = vadd.f32 %v5533_v40, %v12862_v33  ;;  %v5535_v18 = vpop.f32.mrb[101].mxu0  ;;  %v5880_v50 = vpop.f32.mrb[105].mxu1  ;;  %v6076_v54 = vld [vmem:[#allocation2 + $0x347] sm:$0xff] }
 0x68a   :  { %v5536_v15 = vpop.f32.mrb[102].mxu0  ;;  %v5881_v28 = vpop.f32.mrb[106].mxu1  ;;  %v6149_v55 = vld [vmem:[#allocation2 + $0x350] sm:$0xff] }
 0x68b   :  { %v6077_v61 = vld [vmem:[#allocation2 + $0x34f] sm:$0xff]  ;;  %6045 = vst.msk [vmem:[#allocation2 + $0x370] sm:$0xff] %vm28_vm0, %v6013_v2  ;;  %v5943_v9 = vadd.f32 %v5870_v59, %v5534_v6  ;;  %v5537_v0 = vadd.f32 %v5536_v15, %v12866_v60  ;;  %v5538_v49 = vpop.f32.mrb[103].mxu0  ;;  %v5883_v33 = vpop.f32.mrb[107].mxu1  ;;  %v6176_v48 = vpack.c.bf16 %v6149_v55, %v6148_v13 }
 0x68c   :  { %v6292_v46 = vld [vmem:[#allocation2 + $0x349] sm:$0xff]  ;;  %v6104_v16 = vpack.c.bf16 %v6077_v61, %v6076_v54  ;;  %v6293_v7 = vld [vmem:[#allocation2 + $0x351] sm:$0xff] }
 0x68d   :  { %v6320_v4 = vpack.c.bf16 %v6293_v7, %v6292_v46  ;;  %v5982_v20 = vadd.f32 %v13015_v37, %v5943_v9  ;;  %v5944_v51 = vadd.f32 %v5873_v34, %v5537_v0  ;;  %6220 = vrot.lane.b32.xlu1 %v6176_v48, %s10120_s26  ;;  %v10047_v54 = vld [vmem:[%s14345_s3 + $0x38] sm:$0xff]  }
 0x68e   :  { %6122 = vst.msk [vmem:[#allocation3 + $0x80] sm:$0xff] %vm28_vm0, %v6104_v16  ;;  %6876 = vmatpush1.bf16.msra.mxu1 %v10047_v54 }
 0x68f   :  { %6338 = vst.msk [vmem:[#allocation3 + $0x88] sm:$0xff] %vm28_vm0, %v6320_v4  ;;  %v6014_v59 = vmax.f32 %v5982_v20, 0.0  ;;  %v5983_v60 = vadd.f32 %v13015_v37, %v5944_v51  ;;  %6877 = vmatprep.subr.bf16.mxu1 %v10119_v10 }
 0x690   :  { %v5541_v39 = vpop.f32.mrb[104].mxu0  ;;  %v5886_v26 = vpop.f32.mrb[108].mxu1  ;;  %v6150_v17 = vld [vmem:[#allocation2 + $0x368] sm:$0xff] }
 0x691   :  { %6046 = vst.msk [vmem:[#allocation2 + $0x388] sm:$0xff] %vm28_vm0, %v6014_v59  ;;  %v6015_v1 = vmax.f32 %v5983_v60, 0.0  ;;  %v5542_v21 = vadd.f32 %v5541_v39, %v12882_v36  ;;  %v5543_v52 = vpop.f32.mrb[105].mxu0  ;;  %v5888_v30 = vpop.f32.mrb[109].mxu1  ;;  %v6078_v8 = vld [vmem:[#allocation2 + $0x367] sm:$0xff] }
 0x692   :  { %v5544_v34 = vpop.f32.mrb[106].mxu0  ;;  %v5889_v3 = vpop.f32.mrb[110].mxu1  ;;  %v6151_v29 = vld [vmem:[#allocation2 + $0x370] sm:$0xff]  ;;  %v10049_v30 = vld [vmem:[%s14345_s3 + $0x40] sm:$0xff]  }
 0x693   :  { %v6079_v45 = vld [vmem:[#allocation2 + $0x36f] sm:$0xff]  ;;  %6047 = vst.msk [vmem:[#allocation2 + $0x390] sm:$0xff] %vm28_vm0, %v6015_v1  ;;  %v5945_v25 = vadd.f32 %v5878_v19, %v5542_v21  ;;  %v5545_v43 = vadd.f32 %v5544_v34, %v12886_v44  ;;  %v5546_v35 = vpop.f32.mrb[107].mxu0  ;;  %v5891_v42 = vpop.f32.mrb[111].mxu1  ;;  %v6177_v11 = vpack.c.bf16 %v6151_v29, %v6150_v17  ;;  %6878 = vmatpush1.bf16.msra.mxu1 %v10049_v30 }
 0x694   :  { %v6294_v12 = vld [vmem:[#allocation2 + $0x369] sm:$0xff]  ;;  %v6105_v27 = vpack.c.bf16 %v6079_v45, %v6078_v8  ;;  %v6295_v47 = vld [vmem:[#allocation2 + $0x371] sm:$0xff]  ;;  %6879 = vmatprep.subr.bf16.mxu1 %v10119_v10 }
 0x695   :  { %v6321_v36 = vpack.c.bf16 %v6295_v47, %v6294_v12  ;;  %v5984_v32 = vadd.f32 %v13015_v37, %v5945_v25  ;;  %v5946_v31 = vadd.f32 %v5881_v28, %v5545_v43  ;;  %6222 = vrot.lane.b32.xlu0 %v6177_v11, %s10120_s26 }
 0x696   :  { %6123 = vst.msk [vmem:[#allocation3 + $0x90] sm:$0xff] %vm28_vm0, %v6105_v27 }
 0x697   :  { %6339 = vst.msk [vmem:[#allocation3 + $0x98] sm:$0xff] %vm28_vm0, %v6321_v36  ;;  %v6016_v14 = vmax.f32 %v5984_v32, 0.0  ;;  %v5985_v38 = vadd.f32 %v13015_v37, %v5946_v31 }
 0x698   :  { %v5549_v40 = vpop.f32.mrb[108].mxu0  ;;  %v5894_v44 = vpop.f32.mrb[112].mxu1  ;;  %v6152_v50 = vld [vmem:[#allocation2 + $0x388] sm:$0xff] }
 0x699   :  { %6048 = vst.msk [vmem:[#allocation2 + $0x3a8] sm:$0xff] %vm28_vm0, %v6016_v14  ;;  %v6017_v19 = vmax.f32 %v5985_v38, 0.0  ;;  %v5550_v2 = vadd.f32 %v5549_v40, %v12902_v5  ;;  %v5551_v6 = vpop.f32.mrb[109].mxu0  ;;  %v5896_v18 = vpop.f32.mrb[113].mxu1  ;;  %v6080_v13 = vld [vmem:[#allocation2 + $0x387] sm:$0xff] }
 0x69a   :  { %v5552_v56 = vpop.f32.mrb[110].mxu0  ;;  %v5897_v15 = vpop.f32.mrb[114].mxu1  ;;  %v6153_v28 = vld [vmem:[#allocation2 + $0x390] sm:$0xff]  ;;  %v10051_v6 = vld [vmem:[%s14345_s3 + $0x48] sm:$0xff]  }
 0x69b   :  { %v6081_v55 = vld [vmem:[#allocation2 + $0x38f] sm:$0xff]  ;;  %6049 = vst.msk [vmem:[#allocation2 + $0x3b0] sm:$0xff] %vm28_vm0, %v6017_v19  ;;  %v5947_v46 = vadd.f32 %v5886_v26, %v5550_v2  ;;  %v5553_v9 = vadd.f32 %v5552_v56, %v12906_v41  ;;  %v5554_v0 = vpop.f32.mrb[111].mxu0  ;;  %v5899_v5 = vpop.f32.mrb[115].mxu1  ;;  %v6178_v49 = vpack.c.bf16 %v6153_v28, %v6152_v50  ;;  %6880 = vmatpush1.bf16.msra.mxu1 %v10051_v6 }
 0x69c   :  { %v6296_v61 = vld [vmem:[#allocation2 + $0x389] sm:$0xff]  ;;  %v6106_v33 = vpack.c.bf16 %v6081_v55, %v6080_v13  ;;  %v6297_v48 = vld [vmem:[#allocation2 + $0x391] sm:$0xff]  ;;  %6881 = vmatprep.subr.bf16.mxu1 %v10119_v10 }
 0x69d   :  { %v6322_v16 = vpack.c.bf16 %v6297_v48, %v6296_v61  ;;  %v5986_v7 = vadd.f32 %v13015_v37, %v5947_v46  ;;  %v5948_v4 = vadd.f32 %v5889_v3, %v5553_v9  ;;  %6224 = vrot.lane.b32.xlu1 %v6178_v49, %s10120_s26  ;;  %v6061_v6 = vld [vmem:[#allocation2 + $0x24f] sm:$0xff] }
 0x69e   :  { %6124 = vst.msk [vmem:[#allocation3 + $0xa0] sm:$0xff] %vm28_vm0, %v6106_v33 }
 0x69f   :  { %6340 = vst.msk [vmem:[#allocation3 + $0xa8] sm:$0xff] %vm28_vm0, %v6322_v16  ;;  %v6018_v20 = vmax.f32 %v5986_v7, 0.0  ;;  %v5987_v41 = vadd.f32 %v13015_v37, %v5948_v4 }
 0x6a0   :  { %v5557_v51 = vpop.f32.mrb[112].mxu0  ;;  %v5902_v59 = vpop.f32.mrb[116].mxu1  ;;  %v6154_v21 = vld [vmem:[#allocation2 + $0x3a8] sm:$0xff] }
 0x6a1   :  { %6050 = vst.msk [vmem:[#allocation2 + $0x3c8] sm:$0xff] %vm28_vm0, %v6018_v20  ;;  %v6019_v60 = vmax.f32 %v5987_v41, 0.0  ;;  %v5558_v39 = vadd.f32 %v5557_v51, %v12918_v58  ;;  %v5559_v26 = vpop.f32.mrb[113].mxu0  ;;  %v5904_v1 = vpop.f32.mrb[117].mxu1  ;;  %v6082_v52 = vld [vmem:[#allocation2 + $0x3a7] sm:$0xff] }
 0x6a2   :  { %v5560_v17 = vpop.f32.mrb[114].mxu0  ;;  %v5905_v8 = vpop.f32.mrb[118].mxu1  ;;  %v6155_v34 = vld [vmem:[#allocation2 + $0x3b0] sm:$0xff] }
 0x6a3   :  { %v6083_v3 = vld [vmem:[#allocation2 + $0x3af] sm:$0xff]  ;;  %6051 = vst.msk [vmem:[#allocation2 + $0x3d0] sm:$0xff] %vm28_vm0, %v6019_v60  ;;  %v5949_v45 = vadd.f32 %v5894_v44, %v5558_v39  ;;  %v5561_v12 = vadd.f32 %v5560_v17, %v12925_v23  ;;  %v5562_v25 = vpop.f32.mrb[115].mxu0  ;;  %v5907_v58 = vpop.f32.mrb[119].mxu1  ;;  %v6179_v43 = vpack.c.bf16 %v6155_v34, %v6154_v21 }
 0x6a4   :  { %v6298_v29 = vld [vmem:[#allocation2 + $0x3a9] sm:$0xff]  ;;  %v6107_v35 = vpack.c.bf16 %v6083_v3, %v6082_v52  ;;  %v6299_v42 = vld [vmem:[#allocation2 + $0x3b1] sm:$0xff] }
 0x6a5   :  { %v6323_v11 = vpack.c.bf16 %v6299_v42, %v6298_v29  ;;  %v5988_v27 = vadd.f32 %v13015_v37, %v5949_v45  ;;  %v5950_v47 = vadd.f32 %v5897_v15, %v5561_v12  ;;  %6226 = vrot.lane.b32.xlu0 %v6179_v43, %s10120_s26 }
 0x6a6   :  { %6125 = vst.msk [vmem:[#allocation3 + $0xb0] sm:$0xff] %vm28_vm0, %v6107_v35 }
 0x6a7   :  { %6341 = vst.msk [vmem:[#allocation3 + $0xb8] sm:$0xff] %vm28_vm0, %v6323_v11  ;;  %v6020_v36 = vmax.f32 %v5988_v27, 0.0  ;;  %v5989_v23 = vadd.f32 %v13015_v37, %v5950_v47  ;;  %v10053_v47 = vld [vmem:[%s14345_s3 + $0x50] sm:$0xff]  }
 0x6a8   :  { %v5565_v32 = vpop.f32.mrb[116].mxu0  ;;  %v5910_v31 = vpop.f32.mrb[120].mxu1  ;;  %v6156_v19 = vld [vmem:[#allocation2 + $0x3c8] sm:$0xff]  ;;  %6882 = vmatpush1.bf16.msra.mxu1 %v10053_v47 }
 0x6a9   :  { %6052 = vst.msk [vmem:[#allocation2 + $0x3e8] sm:$0xff] %vm28_vm0, %v6020_v36  ;;  %v6021_v14 = vmax.f32 %v5989_v23, 0.0  ;;  %v5566_v38 = vadd.f32 %v5565_v32, %v12938_v57  ;;  %v5567_v40 = vpop.f32.mrb[117].mxu0  ;;  %v5912_v44 = vpop.f32.mrb[121].mxu1  ;;  %v6084_v2 = vld [vmem:[#allocation2 + $0x3c7] sm:$0xff]  ;;  %6883 = vmatprep.subr.bf16.mxu1 %v10119_v10 }
 0x6aa   :  { %v5568_v18 = vpop.f32.mrb[118].mxu0  ;;  %v5913_v50 = vpop.f32.mrb[122].mxu1  ;;  %v6157_v13 = vld [vmem:[#allocation2 + $0x3d0] sm:$0xff]  ;;  %v6060_v36 = vld [vmem:[#allocation2 + $0x247] sm:$0xff] }
 0x6ab   :  { %v6085_v54 = vld [vmem:[#allocation2 + $0x3cf] sm:$0xff]  ;;  %6053 = vst.msk [vmem:[#allocation2 + $0x3f0] sm:$0xff] %vm28_vm0, %v6021_v14  ;;  %v5951_v15 = vadd.f32 %v5902_v59, %v5566_v38  ;;  %v5569_v28 = vadd.f32 %v5568_v18, %v12942_v53  ;;  %v5570_v55 = vpop.f32.mrb[119].mxu0  ;;  %v5915_v57 = vpop.f32.mrb[123].mxu1  ;;  %v6180_v61 = vpack.c.bf16 %v6157_v13, %v6156_v19 }
 0x6ac   :  { %v6300_v56 = vld [vmem:[#allocation2 + $0x3c9] sm:$0xff]  ;;  %v6108_v46 = vpack.c.bf16 %v6085_v54, %v6084_v2  ;;  %v6301_v9 = vld [vmem:[#allocation2 + $0x3d1] sm:$0xff] }
 0x6ad   :  { %v6324_v0 = vpack.c.bf16 %v6301_v9, %v6300_v56  ;;  %v5990_v5 = vadd.f32 %v13015_v37, %v5951_v15  ;;  %v5952_v49 = vadd.f32 %v5905_v8, %v5569_v28  ;;  %6228 = vrot.lane.b32.xlu1 %v6180_v61, %s10120_s26  ;;  %v6132_v28 = vld [vmem:[#allocation2 + $0x248] sm:$0xff]  ;;  %v6133_v55 = vld [vmem:[#allocation2 + $0x250] sm:$0xff]  ;;  %v10055_v61 = vld [vmem:[%s14345_s3 + $0x58] sm:$0xff]  }
 0x6ae   :  { %6126 = vst.msk [vmem:[#allocation3 + $0xc0] sm:$0xff] %vm28_vm0, %v6108_v46  ;;  %v6349_v9 = vld [vmem:[#allocation3 + $0x8] sm:$0xff]  ;;  %6884 = vmatpush1.bf16.msra.mxu1 %v10055_v61 }
 0x6af   :  { %6342 = vst.msk [vmem:[#allocation3 + $0xc8] sm:$0xff] %vm28_vm0, %v6324_v0  ;;  %v6022_v33 = vmax.f32 %v5990_v5, 0.0  ;;  %v5991_v53 = vadd.f32 %v13015_v37, %v5952_v49  ;;  %v7710_v0 = vld [vmem:[#allocation2 + $0x249] sm:$0xff]  ;;  %v7711_v5 = vld [vmem:[#allocation2 + $0x251] sm:$0xff]  ;;  %9637 = vmatprep.mubr.msk.bf16.mxu1 %vm28_vm0, %v6349_v9  ;;  %8014 = vmatprep.subr.bf16.mxu1 %v10119_v10 }
 0x6b0   :  { %v5573_v48 = vpop.f32.mrb[120].mxu0  ;;  %v5918_v16 = vpop.f32.mrb[124].mxu1  ;;  %v6158_v41 = vld [vmem:[#allocation2 + $0x3e8] sm:$0xff] }
 0x6b1   :  { %6054 = vst.msk [vmem:[#allocation2 + $0x408] sm:$0xff] %vm28_vm0, %v6022_v33  ;;  %v6023_v7 = vmax.f32 %v5991_v53, 0.0  ;;  %v5574_v4 = vadd.f32 %v5573_v48, %v12958_v24  ;;  %v5575_v20 = vpop.f32.mrb[121].mxu0  ;;  %v5920_v51 = vpop.f32.mrb[125].mxu1  ;;  %v6086_v59 = vld [vmem:[#allocation2 + $0x3e7] sm:$0xff] }
 0x6b2   :  { %v5576_v60 = vpop.f32.mrb[122].mxu0  ;;  %v6159_v39 = vld [vmem:[#allocation2 + $0x3f0] sm:$0xff]  ;;  %v5921_v26 = vpop.f32.mrb[126].mxu1  ;;  %v6168_v20 = vpack.c.bf16 %v6133_v55, %v6132_v28  ;;  %v13263_v47 = vld [vmem:[#allocation3 + $0x48] sm:$0xff] }
 0x6b3   :  { %v6087_v1 = vld [vmem:[#allocation2 + $0x3ef] sm:$0xff]  ;;  %6055 = vst.msk [vmem:[#allocation2 + $0x410] sm:$0xff] %vm28_vm0, %v6023_v7  ;;  %v5953_v52 = vadd.f32 %v5910_v31, %v5574_v4  ;;  %v5577_v30 = vadd.f32 %v5576_v60, %v12962_v63  ;;  %v5578_v17 = vpop.f32.mrb[123].mxu0  ;;  %v6181_v8 = vpack.c.bf16 %v6159_v39, %v6158_v41  ;;  %v5923_v34 = vpop.f32.mrb[127].mxu1 }
 0x6b4   :  { %v6302_v21 = vld [vmem:[#allocation2 + $0x3e9] sm:$0xff]  ;;  %v6109_v3 = vpack.c.bf16 %v6087_v1, %v6086_v59  ;;  %v6303_v29 = vld [vmem:[#allocation2 + $0x3f1] sm:$0xff]  ;;  %v10034_v34 = vld [vmem:[%s14345_s3 + $0xc0] sm:$0xff]  }
 0x6b5   :  { %v6325_v24 = vpack.c.bf16 %v6303_v29, %v6302_v21  ;;  %v5992_v45 = vadd.f32 %v13015_v37, %v5953_v52  ;;  %v5954_v12 = vadd.f32 %v5913_v50, %v5577_v30  ;;  %6230 = vrot.lane.b32.xlu0 %v6181_v8, %s10120_s26  ;;  %v6096_v50 = vpack.c.bf16 %v6061_v6, %v6060_v36  ;;  %v6166_v30 = vld [vmem:[#allocation2 + $0x468] sm:$0xff]  ;;  %v6167_v17 = vld [vmem:[#allocation2 + $0x470] sm:$0xff] }
 0x6b6   :  { %6127 = vst.msk [vmem:[#allocation3 + $0xd0] sm:$0xff] %vm28_vm0, %v6109_v3  ;;  %v6185_v3 = vpack.c.bf16 %v6167_v17, %v6166_v30  ;;  %v10044_v36 = vld [vmem:[%s14345_s3 + $0xe8] sm:$0xff]   ;;  %v10054_v6 = vld [vmem:[%s14345_s3 + $0x110] sm:$0xff]  }
 0x6b7   :  { %6343 = vst.msk [vmem:[#allocation3 + $0xd8] sm:$0xff] %vm28_vm0, %v6325_v24  ;;  %v6024_v25 = vmax.f32 %v5992_v45, 0.0  ;;  %v5993_v58 = vadd.f32 %v13015_v37, %v5954_v12  ;;  %6114 = vst.msk [vmem:[#allocation3] sm:$0xff] %vm28_vm0, %v6096_v50  ;;  %v13230_v45 = vld [vmem:[#allocation3 + $0x28] sm:$0xff] }
 0x6b8   :  { %v5581_v43 = vpop.f32.mrb[124].mxu0  ;;  %v6160_v63 = vld [vmem:[#allocation2 + $0x408] sm:$0xff] }
 0x6b9   :  { %6056 = vst.msk [vmem:[#allocation2 + $0x428] sm:$0xff] %vm28_vm0, %v6024_v25  ;;  %v6025_v35 = vmax.f32 %v5993_v58, 0.0  ;;  %v5582_v42 = vadd.f32 %v5581_v43, %v12978_v62  ;;  %v5583_v11 = vpop.f32.mrb[125].mxu0  ;;  %v6088_v27 = vld [vmem:[#allocation2 + $0x407] sm:$0xff]  ;;  %v10038_v25 = vld [vmem:[%s14345_s3 + $0xd0] sm:$0xff]  }
 0x6ba   :  { %v5584_v23 = vpop.f32.mrb[126].mxu0  ;;  %v6161_v32 = vld [vmem:[#allocation2 + $0x410] sm:$0xff]  ;;  %v10036_v12 = vld [vmem:[%s14345_s3 + $0xc8] sm:$0xff]  }
 0x6bb   :  { %v6089_v31 = vld [vmem:[#allocation2 + $0x40f] sm:$0xff]  ;;  %6057 = vst.msk [vmem:[#allocation2 + $0x430] sm:$0xff] %vm28_vm0, %v6025_v35  ;;  %v5955_v38 = vadd.f32 %v5918_v16, %v5582_v42  ;;  %v5585_v40 = vadd.f32 %v5584_v23, %v12982_v22  ;;  %v5586_v44 = vpop.f32.mrb[127].mxu0  ;;  %v6182_v19 = vpack.c.bf16 %v6161_v32, %v6160_v63  ;;  %v13247_v63 = vld [vmem:[#allocation3 + $0x38] sm:$0xff]  ;;  %v10042_v42 = vld [vmem:[%s14345_s3 + $0xe0] sm:$0xff]  }
 0x6bc   :  { %v6304_v14 = vld [vmem:[#allocation2 + $0x409] sm:$0xff]  ;;  %v6110_v2 = vpack.c.bf16 %v6089_v31, %v6088_v27  ;;  %v6305_v62 = vld [vmem:[#allocation2 + $0x411] sm:$0xff] }
 0x6bd   :  { %v6326_v18 = vpack.c.bf16 %v6305_v62, %v6304_v14  ;;  %v5994_v13 = vadd.f32 %v13015_v37, %v5955_v38  ;;  %v5956_v54 = vadd.f32 %v5921_v26, %v5585_v40  ;;  %6232 = vrot.lane.b32.xlu1 %v6182_v19, %s10120_s26  ;;  %v10040_v35 = vld [vmem:[%s14345_s3 + $0xd8] sm:$0xff]   ;;  %v10046_v23 = vld [vmem:[%s14345_s3 + $0xf0] sm:$0xff]   ;;  %v10050_v40 = vld [vmem:[%s14345_s3 + $0x100] sm:$0xff]  }
 0x6be   :  { %6128 = vst.msk [vmem:[#allocation3 + $0xe0] sm:$0xff] %vm28_vm0, %v6110_v2  ;;  %v13279_v14 = vld [vmem:[#allocation3 + $0x58] sm:$0xff]  ;;  %v13295_v2 = vld [vmem:[#allocation3 + $0x68] sm:$0xff] }
 0x6bf   :  { %6344 = vst.msk [vmem:[#allocation3 + $0xe8] sm:$0xff] %vm28_vm0, %v6326_v18  ;;  %v6026_v22 = vmax.f32 %v5994_v13, 0.0  ;;  %v5995_v56 = vadd.f32 %v13015_v37, %v5956_v54  ;;  %v7746_v37 = vpack.c.bf16 %v7711_v5, %v7710_v0  ;;  %v10048_v38 = vld [vmem:[%s14345_s3 + $0xf8] sm:$0xff]   ;;  %v10052_v62 = vld [vmem:[%s14345_s3 + $0x108] sm:$0xff]  }
 0x6c0   :  { %v6162_v15 = vld [vmem:[#allocation2 + $0x428] sm:$0xff]  ;;  %v13311_v13 = vld [vmem:[#allocation3 + $0x78] sm:$0xff] }
 0x6c1   :  { %v6090_v57 = vld [vmem:[#allocation2 + $0x427] sm:$0xff]  ;;  %6058 = vst.msk [vmem:[#allocation2 + $0x448] sm:$0xff] %vm28_vm0, %v6026_v22  ;;  %v6027_v46 = vmax.f32 %v5995_v56, 0.0  ;;  %7764 = vst.msk [vmem:[#allocation3 + $0x8] sm:$0xff] %vm28_vm0, %v7746_v37  ;;  %v10056_v54 = vld [vmem:[%s14345_s3 + $0x118] sm:$0xff]  }
 0x6c2   :  { %v6163_v49 = vld [vmem:[#allocation2 + $0x430] sm:$0xff]  ;;  %v13340_v9 = vld [vmem:[#allocation3 + $0xa8] sm:$0xff] }
 0x6c3   :  { %v6091_v33 = vld [vmem:[#allocation2 + $0x42f] sm:$0xff]  ;;  %6059 = vst.msk [vmem:[#allocation2 + $0x450] sm:$0xff] %vm28_vm0, %v6027_v46  ;;  %v6183_v48 = vpack.c.bf16 %v6163_v49, %v6162_v15  ;;  %v13348_v49 = vld [vmem:[#allocation3 + $0xb8] sm:$0xff] }
 0x6c4   :  { %v6306_v53 = vld [vmem:[#allocation2 + $0x429] sm:$0xff]  ;;  %v6111_v16 = vpack.c.bf16 %v6091_v33, %v6090_v57  ;;  %v6307_v7 = vld [vmem:[#allocation2 + $0x431] sm:$0xff] }
 0x6c5   :  { %v6327_v4 = vpack.c.bf16 %v6307_v7, %v6306_v53  ;;  %6234 = vrot.lane.b32.xlu0 %v6183_v48, %s10120_s26  ;;  %v13324_v15 = vld [vmem:[#allocation3 + $0x88] sm:$0xff]  ;;  %v13332_v57 = vld [vmem:[#allocation3 + $0x98] sm:$0xff] }
 0x6c6   :  { %6129 = vst.msk [vmem:[#allocation3 + $0xf0] sm:$0xff] %vm28_vm0, %v6111_v16  ;;  %v13356_v37 = vld [vmem:[#allocation3 + $0xc8] sm:$0xff]  ;;  %v13364_v7 = vld [vmem:[#allocation3 + $0xd8] sm:$0xff] }
 0x6c7   :  { %6345 = vst.msk [vmem:[#allocation3 + $0xf8] sm:$0xff] %vm28_vm0, %v6327_v4  ;;  %v6207_v41 = vpop.permute.xlu0 %6206 }
 0x6c8   :  { %6259 = vst.msk [vmem:[#allocation3 + $0x10] sm:$0xff] %vm337_vm1, %v6207_v41  ;;  %v6164_v51 = vld [vmem:[#allocation2 + $0x448] sm:$0xff] }
 0x6c9   :  { %6204 = vrot.lane.b32.xlu0 %v6168_v20, %s10120_s26  ;;  %v6092_v59 = vld [vmem:[#allocation2 + $0x447] sm:$0xff] }
 0x6ca   :  { %v6165_v60 = vld [vmem:[#allocation2 + $0x450] sm:$0xff]  ;;  %v13372_v41 = vld [vmem:[#allocation3 + $0xe8] sm:$0xff] }
 0x6cb   :  { %v6093_v39 = vld [vmem:[#allocation2 + $0x44f] sm:$0xff]  ;;  %v6184_v1 = vpack.c.bf16 %v6165_v60, %v6164_v51 }
 0x6cc   :  { %v6308_v26 = vld [vmem:[#allocation2 + $0x449] sm:$0xff]  ;;  %v6112_v21 = vpack.c.bf16 %v6093_v39, %v6092_v59  ;;  %v6309_v52 = vld [vmem:[#allocation2 + $0x451] sm:$0xff] }
 0x6cd   :  { %v6328_v8 = vpack.c.bf16 %v6309_v52, %v6308_v26  ;;  %6236 = vrot.lane.b32.xlu1 %v6184_v1, %s10120_s26  ;;  %v6094_v26 = vld [vmem:[#allocation2 + $0x467] sm:$0xff]  ;;  %v6095_v1 = vld [vmem:[#allocation2 + $0x46f] sm:$0xff] }
 0x6ce   :  { %6130 = vst.msk [vmem:[#allocation3 + $0x100] sm:$0xff] %vm28_vm0, %v6112_v21  ;;  %v13380_v60 = vld [vmem:[#allocation3 + $0xf8] sm:$0xff]  ;;  %v6113_v21 = vpack.c.bf16 %v6095_v1, %v6094_v26  ;;  %v10063_v26 = vld [vmem:[%s14347_s5 + $0x90] sm:$0xff]  }
 0x6cf   :  { %6346 = vst.msk [vmem:[#allocation3 + $0x108] sm:$0xff] %vm28_vm0, %v6328_v8  ;;  %v6209_v29 = vpop.permute.xlu1 %6208  ;;  %v13226_v24 = vld [vmem:[#allocation3 + $0x10] sm:$0xff] }
 0x6d0   :  { %6260 = vst.msk [vmem:[#allocation3 + $0x20] sm:$0xff] %vm337_vm1, %v6209_v29  ;;  %6613 = vmatmul.mubr.bf16.vlgmr.msra.gmra.mrb[128].mxu0 %v13226_v24  ;;  %v7744_v29 = vld [vmem:[#allocation2 + $0x469] sm:$0xff] }
 0x6d1   :  { %7199 = vmatpush1.bf16.msra.mxu0 %v10034_v34  ;;  %9610 = vmatprep.mubr.msk.bf16.mxu0 %vm28_vm0, %v13230_v45  ;;  %6131 = vst.msk [vmem:[#allocation3 + $0x110] sm:$0xff] %vm28_vm0, %v6113_v21  ;;  %v6351_v34 = vld [vmem:[#allocation3 + $0x18] sm:$0xff] }
 0x6d2   :  { %7200 = vmatprep.subr.bf16.mxu0 %v10119_v10  ;;  %6238 = vrot.lane.b32.xlu1 %v6185_v3, %s10120_s26 }
 0x6d5   :  { %7201 = vmatpush1.bf16.msra.mxu0 %v10036_v12  ;;  %v7745_v12 = vld [vmem:[#allocation2 + $0x471] sm:$0xff] }
 0x6d6   :  { %7202 = vmatprep.subr.bf16.mxu0 %v10119_v10  ;;  %v13389_v17 = vld [vmem:[#allocation3 + $0x108] sm:$0xff] }
 0x6d7   :  { %v6211_v58 = vpop.permute.xlu0 %6210  ;;  %v13243_v43 = vld [vmem:[#allocation3 + $0x20] sm:$0xff] }
 0x6d8   :  { %6261 = vst.msk [vmem:[#allocation3 + $0x30] sm:$0xff] %vm337_vm1, %v6211_v58  ;;  %6621 = vmatmul.mubr.bf16.gmra.mrb[132].mxu0 %v13243_v43  ;;  %v7763_v58 = vpack.c.bf16 %v7745_v12, %v7744_v29 }
 0x6d9   :  { %9611 = vmatprep.mubr.msk.bf16.mxu0 %vm28_vm0, %v13247_v63  ;;  %7203 = vmatpush1.bf16.msra.mxu0 %v10038_v25 }
 0x6da   :  { %7204 = vmatprep.subr.bf16.mxu0 %v10119_v10 }
 0x6dd   :  { %7205 = vmatpush1.bf16.msra.mxu0 %v10040_v35  ;;  %v13399_v35 = vld [vmem:[#allocation3 + $0x118] sm:$0xff] }
 0x6de   :  { %7206 = vmatprep.subr.bf16.mxu0 %v10119_v10  ;;  %7781 = vst.msk [vmem:[#allocation3 + $0x118] sm:$0xff] %vm28_vm0, %v7763_v58 }
 0x6df   :  { %v6213_v11 = vpop.permute.xlu1 %6212  ;;  %v13259_v27 = vld [vmem:[#allocation3 + $0x30] sm:$0xff] }
 0x6e0   :  { %6262 = vst.msk [vmem:[#allocation3 + $0x40] sm:$0xff] %vm337_vm1, %v6213_v11  ;;  %6629 = vmatmul.mubr.bf16.gmra.mrb[136].mxu0 %v13259_v27 }
 0x6e1   :  { %9612 = vmatprep.mubr.msk.bf16.mxu0 %vm28_vm0, %v13263_v47  ;;  %7207 = vmatpush1.bf16.msra.mxu0 %v10042_v42 }
 0x6e2   :  { %7208 = vmatprep.subr.bf16.mxu0 %v10119_v10 }
 0x6e5   :  { %7209 = vmatpush1.bf16.msra.mxu0 %v10044_v36 }
 0x6e6   :  { %7210 = vmatprep.subr.bf16.mxu0 %v10119_v10 }
 0x6e7   :  { %v6215_v32 = vpop.permute.xlu0 %6214  ;;  %v13275_v31 = vld [vmem:[#allocation3 + $0x40] sm:$0xff] }
 0x6e8   :  { %6263 = vst.msk [vmem:[#allocation3 + $0x50] sm:$0xff] %vm337_vm1, %v6215_v32  ;;  %6637 = vmatmul.mubr.bf16.gmra.mrb[140].mxu0 %v13275_v31  ;;  %v10057_v32 = vld [vmem:[%s14347_s5 + $0x60] sm:$0xff]  }
 0x6e9   :  { %9613 = vmatprep.mubr.msk.bf16.mxu0 %vm28_vm0, %v13279_v14  ;;  %7211 = vmatpush1.bf16.msra.mxu0 %v10046_v23 }
 0x6ea   :  { %7212 = vmatprep.subr.bf16.mxu0 %v10119_v10 }
 0x6ed   :  { %7213 = vmatpush1.bf16.msra.mxu0 %v10048_v38 }
 0x6ee   :  { %7214 = vmatprep.subr.bf16.mxu0 %v10119_v10 }
 0x6ef   :  { %v6217_v44 = vpop.permute.xlu1 %6216  ;;  %v13291_v19 = vld [vmem:[#allocation3 + $0x50] sm:$0xff] }
 0x6f0   :  { %6264 = vst.msk [vmem:[#allocation3 + $0x60] sm:$0xff] %vm337_vm1, %v6217_v44  ;;  %6645 = vmatmul.mubr.bf16.gmra.mrb[144].mxu0 %v13291_v19 }
 0x6f1   :  { %9614 = vmatprep.mubr.msk.bf16.mxu0 %vm28_vm0, %v13295_v2  ;;  %7215 = vmatpush1.bf16.msra.mxu0 %v10050_v40 }
 0x6f2   :  { %7216 = vmatprep.subr.bf16.mxu0 %v10119_v10 }
 0x6f5   :  { %7217 = vmatpush1.bf16.msra.mxu0 %v10052_v62 }
 0x6f6   :  { %7218 = vmatprep.subr.bf16.mxu0 %v10119_v10 }
 0x6f7   :  { %v6219_v18 = vpop.permute.xlu0 %6218  ;;  %v13307_v50 = vld [vmem:[#allocation3 + $0x60] sm:$0xff] }
 0x6f8   :  { %6265 = vst.msk [vmem:[#allocation3 + $0x70] sm:$0xff] %vm337_vm1, %v6219_v18  ;;  %6653 = vmatmul.mubr.bf16.gmra.mrb[148].mxu0 %v13307_v50 }
 0x6f9   :  { %9615 = vmatprep.mubr.msk.bf16.mxu0 %vm28_vm0, %v13311_v13  ;;  %7219 = vmatpush1.bf16.msra.mxu0 %v10054_v6 }
 0x6fa   :  { %7220 = vmatprep.subr.bf16.mxu0 %v10119_v10 }
 0x6fd   :  { %7221 = vmatpush1.bf16.msra.mxu0 %v10056_v54 }
 0x6fe   :  { %8295 = vmatprep.subr.bf16.mxu0 %v10119_v10 }
 0x6ff   :  { %v6221_v22 = vpop.permute.xlu1 %6220  ;;  %v13320_v56 = vld [vmem:[#allocation3 + $0x70] sm:$0xff] }
 0x700   :  { %6266 = vst.msk [vmem:[#allocation3 + $0x80] sm:$0xff] %vm337_vm1, %v6221_v22  ;;  %6661 = vmatmul.mubr.bf16.gmra.mrb[152].mxu0 %v13320_v56 }
 0x701   :  { %9616 = vmatprep.mubr.msk.bf16.mxu0 %vm28_vm0, %v13324_v15 }
 0x707   :  { %v6223_v28 = vpop.permute.xlu0 %6222  ;;  %v13328_v55 = vld [vmem:[#allocation3 + $0x80] sm:$0xff] }
 0x708   :  { %6267 = vst.msk [vmem:[#allocation3 + $0x90] sm:$0xff] %vm337_vm1, %v6223_v28  ;;  %6669 = vmatmul.mubr.bf16.gmra.mrb[156].mxu0 %v13328_v55 }
 0x709   :  { %9617 = vmatprep.mubr.msk.bf16.mxu0 %vm28_vm0, %v13332_v57 }
 0x70f   :  { %v6225_v61 = vpop.permute.xlu1 %6224  ;;  %v13336_v46 = vld [vmem:[#allocation3 + $0x90] sm:$0xff] }
 0x710   :  { %6268 = vst.msk [vmem:[#allocation3 + $0xa0] sm:$0xff] %vm337_vm1, %v6225_v61  ;;  %6677 = vmatmul.mubr.bf16.gmra.mrb[160].mxu0 %v13336_v46  ;;  %v10060_v61 = vld [vmem:[%s14347_s5 + $0x78] sm:$0xff]  }
 0x711   :  { %9618 = vmatprep.mubr.msk.bf16.mxu0 %vm28_vm0, %v13340_v9 }
 0x717   :  { %v6227_v0 = vpop.permute.xlu0 %6226  ;;  %v13344_v5 = vld [vmem:[#allocation3 + $0xa0] sm:$0xff] }
 0x718   :  { %6269 = vst.msk [vmem:[#allocation3 + $0xb0] sm:$0xff] %vm337_vm1, %v6227_v0  ;;  %6685 = vmatmul.mubr.bf16.gmra.mrb[164].mxu0 %v13344_v5 }
 0x719   :  { %9619 = vmatprep.mubr.msk.bf16.mxu0 %vm28_vm0, %v13348_v49 }
 0x71f   :  { %v6229_v33 = vpop.permute.xlu1 %6228  ;;  %v13352_v53 = vld [vmem:[#allocation3 + $0xb0] sm:$0xff] }
 0x720   :  { %6270 = vst.msk [vmem:[#allocation3 + $0xc0] sm:$0xff] %vm337_vm1, %v6229_v33  ;;  %6693 = vmatmul.mubr.bf16.gmra.mrb[168].mxu0 %v13352_v53 }
 0x721   :  { %9620 = vmatprep.mubr.msk.bf16.mxu0 %vm28_vm0, %v13356_v37 }
 0x727   :  { %v6231_v48 = vpop.permute.xlu0 %6230  ;;  %v13360_v16 = vld [vmem:[#allocation3 + $0xc0] sm:$0xff] }
 0x728   :  { %6271 = vst.msk [vmem:[#allocation3 + $0xd0] sm:$0xff] %vm337_vm1, %v6231_v48  ;;  %6701 = vmatmul.mubr.bf16.gmra.mrb[172].mxu0 %v13360_v16 }
 0x729   :  { %9621 = vmatprep.mubr.msk.bf16.mxu0 %vm28_vm0, %v13364_v7 }
 0x72f   :  { %v6233_v4 = vpop.permute.xlu1 %6232  ;;  %v13368_v20 = vld [vmem:[#allocation3 + $0xd0] sm:$0xff] }
 0x730   :  { %6272 = vst.msk [vmem:[#allocation3 + $0xe0] sm:$0xff] %vm337_vm1, %v6233_v4  ;;  %6709 = vmatmul.mubr.bf16.gmra.mrb[176].mxu0 %v13368_v20 }
 0x731   :  { %9622 = vmatprep.mubr.msk.bf16.mxu0 %vm28_vm0, %v13372_v41 }
 0x737   :  { %v6235_v51 = vpop.permute.xlu0 %6234  ;;  %v13376_v59 = vld [vmem:[#allocation3 + $0xe0] sm:$0xff] }
 0x738   :  { %6273 = vst.msk [vmem:[#allocation3 + $0xf0] sm:$0xff] %vm337_vm1, %v6235_v51  ;;  %6717 = vmatmul.mubr.bf16.gmra.mrb[180].mxu0 %v13376_v59 }
 0x739   :  { %9623 = vmatprep.mubr.msk.bf16.mxu0 %vm28_vm0, %v13380_v60 }
 0x73b   :  { %v6205_v39 = vpop.permute.xlu0 %6204 }
 0x73c   :  { %6258 = vst.msk [vmem:[#allocation3] sm:$0xff] %vm337_vm1, %v6205_v39 }
 0x73f   :  { %v6237_v52 = vpop.permute.xlu1 %6236  ;;  %v13385_v30 = vld [vmem:[#allocation3 + $0xf0] sm:$0xff] }
 0x740   :  { %6274 = vst.msk [vmem:[#allocation3 + $0x100] sm:$0xff] %vm337_vm1, %v6237_v52  ;;  %6725 = vmatmul.mubr.bf16.gmra.mrb[184].mxu0 %v13385_v30 }
 0x741   :  { %9624 = vmatprep.mubr.msk.bf16.mxu0 %vm28_vm0, %v13389_v17 }
 0x743   :  { %v6348_v8 = vld [vmem:[#allocation3] sm:$0xff] }
 0x744   :  { %6894 = vmatmul.mubr.bf16.vlgmr.msra.gmra.mrb[128].mxu1 %v6348_v8  ;;  %v6239_v3 = vpop.permute.xlu1 %6238 }
 0x745   :  { %9638 = vmatprep.mubr.msk.bf16.mxu1 %vm28_vm0, %v6351_v34  ;;  %6275 = vst.msk [vmem:[#allocation3 + $0x110] sm:$0xff] %vm337_vm1, %v6239_v3  ;;  %8015 = vmatpush1.bf16.msra.mxu1 %v10057_v32  ;;  %v10064_v34 = vld [vmem:[%s14347_s5 + $0x98] sm:$0xff]   ;;  %v10066_v32 = vld [vmem:[%s14347_s5 + $0xa8] sm:$0xff]  }
 0x746   :  { %8016 = vmatprep.subr.bf16.mxu1 %v10119_v10 }
 0x747   :  { %v13396_v25 = vld [vmem:[#allocation3 + $0x100] sm:$0xff] }
 0x748   :  { %6733 = vmatmul.mubr.bf16.gmra.mrb[188].mxu0 %v13396_v25 }
 0x749   :  { %9689 = vmatprep.mubr.msk.bf16.mxu0 %vm28_vm0, %v13230_v45 }
 0x74c   :  { %6902 = vmatmul.mubr.bf16.gmra.mrb[132].mxu1 %v13226_v24 }
 0x74d   :  { %9639 = vmatprep.mubr.msk.bf16.mxu1 %vm28_vm0, %v13230_v45 }
 0x750   :  { %7231 = vmatmul.mubr.bf16.vlgmr.msra.gmra.mrb[192].mxu0 %v13243_v43 }
 0x751   :  { %9690 = vmatprep.mubr.msk.bf16.mxu0 %vm28_vm0, %v13247_v63 }
 0x754   :  { %6910 = vmatmul.mubr.bf16.gmra.mrb[136].mxu1 %v13243_v43 }
 0x755   :  { %9640 = vmatprep.mubr.msk.bf16.mxu1 %vm28_vm0, %v13247_v63 }
 0x758   :  { %7239 = vmatmul.mubr.bf16.gmra.mrb[196].mxu0 %v13259_v27 }
 0x759   :  { %9691 = vmatprep.mubr.msk.bf16.mxu0 %vm28_vm0, %v13263_v47 }
 0x75c   :  { %6918 = vmatmul.mubr.bf16.gmra.mrb[140].mxu1 %v13259_v27 }
 0x75d   :  { %9641 = vmatprep.mubr.msk.bf16.mxu1 %vm28_vm0, %v13263_v47 }
 0x760   :  { %7247 = vmatmul.mubr.bf16.gmra.mrb[200].mxu0 %v13275_v31 }
 0x761   :  { %9692 = vmatprep.mubr.msk.bf16.mxu0 %vm28_vm0, %v13279_v14 }
 0x764   :  { %6926 = vmatmul.mubr.bf16.gmra.mrb[144].mxu1 %v13275_v31 }
 0x765   :  { %9642 = vmatprep.mubr.msk.bf16.mxu1 %vm28_vm0, %v13279_v14 }
 0x768   :  { %7255 = vmatmul.mubr.bf16.gmra.mrb[204].mxu0 %v13291_v19 }
 0x769   :  { %9693 = vmatprep.mubr.msk.bf16.mxu0 %vm28_vm0, %v13295_v2 }
 0x76c   :  { %6934 = vmatmul.mubr.bf16.gmra.mrb[148].mxu1 %v13291_v19 }
 0x76d   :  { %9643 = vmatprep.mubr.msk.bf16.mxu1 %vm28_vm0, %v13295_v2  ;;  %v10058_v2 = vld [vmem:[%s14347_s5 + $0x68] sm:$0xff]  }
 0x76e   :  { %8017 = vmatpush1.bf16.msra.mxu1 %v10058_v2 }
 0x76f   :  { %8018 = vmatprep.subr.bf16.mxu1 %v10119_v10 }
 0x770   :  { %7263 = vmatmul.mubr.bf16.gmra.mrb[208].mxu0 %v13307_v50 }
 0x771   :  { %9694 = vmatprep.mubr.msk.bf16.mxu0 %vm28_vm0, %v13311_v13 }
 0x774   :  { %6942 = vmatmul.mubr.bf16.gmra.mrb[152].mxu1 %v13307_v50  ;;  %v7052_v50 = vld [vmem:[#allocation3 + $0x110] sm:$0xff] }
 0x775   :  { %9644 = vmatprep.mubr.msk.bf16.mxu1 %vm28_vm0, %v13311_v13 }
 0x778   :  { %7271 = vmatmul.mubr.bf16.gmra.mrb[212].mxu0 %v13320_v56 }
 0x779   :  { %9695 = vmatprep.mubr.msk.bf16.mxu0 %vm28_vm0, %v13324_v15 }
 0x77c   :  { %6950 = vmatmul.mubr.bf16.gmra.mrb[156].mxu1 %v13320_v56  ;;  %v10059_v56 = vld [vmem:[%s14347_s5 + $0x70] sm:$0xff]  }
 0x77d   :  { %9645 = vmatprep.mubr.msk.bf16.mxu1 %vm28_vm0, %v13324_v15  ;;  %8019 = vmatpush1.bf16.msra.mxu1 %v10059_v56 }
 0x77e   :  { %8020 = vmatprep.subr.bf16.mxu1 %v10119_v10 }
 0x780   :  { %7279 = vmatmul.mubr.bf16.gmra.mrb[216].mxu0 %v13328_v55 }
 0x781   :  { %9696 = vmatprep.mubr.msk.bf16.mxu0 %vm28_vm0, %v13332_v57  ;;  %8021 = vmatpush1.bf16.msra.mxu1 %v10060_v61 }
 0x782   :  { %8022 = vmatprep.subr.bf16.mxu1 %v10119_v10 }
 0x784   :  { %6958 = vmatmul.mubr.bf16.gmra.mrb[160].mxu1 %v13328_v55 }
 0x785   :  { %9646 = vmatprep.mubr.msk.bf16.mxu1 %vm28_vm0, %v13332_v57 }
 0x788   :  { %7287 = vmatmul.mubr.bf16.gmra.mrb[220].mxu0 %v13336_v46 }
 0x789   :  { %9697 = vmatprep.mubr.msk.bf16.mxu0 %vm28_vm0, %v13340_v9 }
 0x78c   :  { %6966 = vmatmul.mubr.bf16.gmra.mrb[164].mxu1 %v13336_v46 }
 0x78d   :  { %9647 = vmatprep.mubr.msk.bf16.mxu1 %vm28_vm0, %v13340_v9 }
 0x790   :  { %7295 = vmatmul.mubr.bf16.gmra.mrb[224].mxu0 %v13344_v5 }
 0x791   :  { %9698 = vmatprep.mubr.msk.bf16.mxu0 %vm28_vm0, %v13348_v49 }
 0x794   :  { %6974 = vmatmul.mubr.bf16.gmra.mrb[168].mxu1 %v13344_v5 }
 0x795   :  { %9648 = vmatprep.mubr.msk.bf16.mxu1 %vm28_vm0, %v13348_v49 }
 0x798   :  { %7303 = vmatmul.mubr.bf16.gmra.mrb[228].mxu0 %v13352_v53 }
 0x799   :  { %9699 = vmatprep.mubr.msk.bf16.mxu0 %vm28_vm0, %v13356_v37 }
 0x79c   :  { %6982 = vmatmul.mubr.bf16.gmra.mrb[172].mxu1 %v13352_v53  ;;  %v10061_v53 = vld [vmem:[%s14347_s5 + $0x80] sm:$0xff]  }
 0x79d   :  { %9649 = vmatprep.mubr.msk.bf16.mxu1 %vm28_vm0, %v13356_v37  ;;  %8023 = vmatpush1.bf16.msra.mxu1 %v10061_v53 }
 0x79e   :  { %8024 = vmatprep.subr.bf16.mxu1 %v10119_v10 }
 0x7a0   :  { %7311 = vmatmul.mubr.bf16.gmra.mrb[232].mxu0 %v13360_v16 }
 0x7a1   :  { %9700 = vmatprep.mubr.msk.bf16.mxu0 %vm28_vm0, %v13364_v7 }
 0x7a3   :  { %v13470_v24 = vpop.f32.mrb[128].mxu0 }
 0x7a4   :  { %v6616_v45 = vpop.f32.mrb[129].mxu0  ;;  %6990 = vmatmul.mubr.bf16.gmra.mrb[176].mxu1 %v13360_v16 }
 0x7a5   :  { %v13473_v43 = vpop.f32.mrb[130].mxu0  ;;  %9650 = vmatprep.mubr.msk.bf16.mxu1 %vm28_vm0, %v13364_v7  ;;  %v10065_v45 = vld [vmem:[%s14347_s5 + $0xa0] sm:$0xff]  }
 0x7a6   :  { %v6619_v63 = vpop.f32.mrb[131].mxu0 }
 0x7a8   :  { %7319 = vmatmul.mubr.bf16.gmra.mrb[236].mxu0 %v13368_v20 }
 0x7a9   :  { %9701 = vmatprep.mubr.msk.bf16.mxu0 %vm28_vm0, %v13372_v41 }
 0x7ab   :  { %v13480_v42 = vpop.f32.mrb[132].mxu0 }
 0x7ac   :  { %v6624_v11 = vpop.f32.mrb[133].mxu0  ;;  %6998 = vmatmul.mubr.bf16.gmra.mrb[180].mxu1 %v13368_v20 }
 0x7ad   :  { %v13483_v27 = vpop.f32.mrb[134].mxu0  ;;  %9651 = vmatprep.mubr.msk.bf16.mxu1 %vm28_vm0, %v13372_v41  ;;  %v10062_v41 = vld [vmem:[%s14347_s5 + $0x88] sm:$0xff]  }
 0x7ae   :  { %v6627_v47 = vpop.f32.mrb[135].mxu0  ;;  %8025 = vmatpush1.bf16.msra.mxu1 %v10062_v41 }
 0x7af   :  { %8026 = vmatprep.subr.bf16.mxu1 %v10119_v10 }
 0x7b0   :  { %7327 = vmatmul.mubr.bf16.gmra.mrb[240].mxu0 %v13376_v59 }
 0x7b1   :  { %9702 = vmatprep.mubr.msk.bf16.mxu0 %vm28_vm0, %v13380_v60 }
 0x7b2   :  { %8027 = vmatpush1.bf16.msra.mxu1 %v10063_v26 }
 0x7b3   :  { %v13490_v36 = vpop.f32.mrb[136].mxu0  ;;  %8028 = vmatprep.subr.bf16.mxu1 %v10119_v10 }
 0x7b4   :  { %v6632_v23 = vpop.f32.mrb[137].mxu0  ;;  %7006 = vmatmul.mubr.bf16.gmra.mrb[184].mxu1 %v13376_v59 }
 0x7b5   :  { %v13496_v31 = vpop.f32.mrb[138].mxu0  ;;  %9652 = vmatprep.mubr.msk.bf16.mxu1 %vm28_vm0, %v13380_v60 }
 0x7b6   :  { %v6635_v14 = vpop.f32.mrb[139].mxu0  ;;  %8029 = vmatpush1.bf16.msra.mxu1 %v10064_v34 }
 0x7b7   :  { %8030 = vmatprep.subr.bf16.mxu1 %v10119_v10 }
 0x7b8   :  { %7335 = vmatmul.mubr.bf16.gmra.mrb[244].mxu0 %v13385_v30 }
 0x7b9   :  { %9703 = vmatprep.mubr.msk.bf16.mxu0 %vm28_vm0, %v13389_v17 }
 0x7ba   :  { %8031 = vmatpush1.bf16.msra.mxu1 %v10065_v45 }
 0x7bb   :  { %v13504_v38 = vpop.f32.mrb[140].mxu0  ;;  %8032 = vmatprep.subr.bf16.mxu1 %v10119_v10 }
 0x7bc   :  { %v6640_v40 = vpop.f32.mrb[141].mxu0  ;;  %7014 = vmatmul.mubr.bf16.gmra.mrb[188].mxu1 %v13385_v30 }
 0x7bd   :  { %v13507_v44 = vpop.f32.mrb[142].mxu0 }
 0x7be   :  { %v6643_v19 = vpop.f32.mrb[143].mxu0  ;;  %8033 = vmatpush1.bf16.msra.mxu1 %v10066_v32 }
 0x7bf   :  { %8034 = vmatprep.subr.bf16.mxu1 %v10119_v10 }
 0x7c0   :  { %7343 = vmatmul.mubr.bf16.gmra.mrb[248].mxu0 %v13396_v25 }
 0x7c1   :  { %9704 = vmatprep.mubr.msk.bf16.mxu0 %vm28_vm0, %v13399_v35 }
 0x7c3   :  { %v13515_v62 = vpop.f32.mrb[144].mxu0 }
 0x7c4   :  { %v6648_v6 = vpop.f32.mrb[145].mxu0 }
 0x7c5   :  { %v13517_v18 = vpop.f32.mrb[146].mxu0 }
 0x7c6   :  { %v6651_v13 = vpop.f32.mrb[147].mxu0 }
 0x7c8   :  { %7351 = vmatmul.mubr.bf16.gmra.mrb[252].mxu0 %v7052_v50 }
 0x7cb   :  { %v13520_v54 = vpop.f32.mrb[148].mxu0 }
 0x7cc   :  { %v6656_v22 = vpop.f32.mrb[149].mxu0 }
 0x7cd   :  { %v13525_v15 = vpop.f32.mrb[150].mxu0 }
 0x7ce   :  { %v6659_v28 = vpop.f32.mrb[151].mxu0 }
 0x7d3   :  { %v13528_v55 = vpop.f32.mrb[152].mxu0 }
 0x7d4   :  { %v6664_v57 = vpop.f32.mrb[153].mxu0 }
 0x7d5   :  { %v13533_v46 = vpop.f32.mrb[154].mxu0 }
 0x7d6   :  { %v6667_v9 = vpop.f32.mrb[155].mxu0 }
 0x7db   :  { %v13536_v0 = vpop.f32.mrb[156].mxu0 }
 0x7dc   :  { %v6672_v5 = vpop.f32.mrb[157].mxu0 }
 0x7dd   :  { %v13538_v49 = vpop.f32.mrb[158].mxu0 }
 0x7de   :  { %v6675_v33 = vpop.f32.mrb[159].mxu0 }
 0x7e3   :  { %v13543_v37 = vpop.f32.mrb[160].mxu0 }
 0x7e4   :  { %v6680_v48 = vpop.f32.mrb[161].mxu0 }
 0x7e5   :  { %v13545_v16 = vpop.f32.mrb[162].mxu0 }
 0x7e6   :  { %v6683_v7 = vpop.f32.mrb[163].mxu0 }
 0x7eb   :  { %v13548_v4 = vpop.f32.mrb[164].mxu0 }
 0x7ec   :  { %v6688_v20 = vpop.f32.mrb[165].mxu0 }
 0x7ed   :  { %v13553_v51 = vpop.f32.mrb[166].mxu0  ;;  %v13606_v20 = vld [vmem:[%s14346_s4] ss:$0 sm:$0xff] }
 0x7ee   :  { %v6691_v59 = vpop.f32.mrb[167].mxu0 }
 0x7f3   :  { %v13556_v60 = vpop.f32.mrb[168].mxu0 }
 0x7f4   :  { %v6696_v39 = vpop.f32.mrb[169].mxu0 }
 0x7f5   :  { %v13561_v1 = vpop.f32.mrb[170].mxu0 }
 0x7f6   :  { %v6699_v21 = vpop.f32.mrb[171].mxu0 }
 0x7f7   :  { %v10068_v21 = vld [vmem:[%s14347_s5 + $0xb8] sm:$0xff]  }
 0x7fb   :  { %v13564_v52 = vpop.f32.mrb[172].mxu0 }
 0x7fc   :  { %v6704_v30 = vpop.f32.mrb[173].mxu0 }
 0x7fd   :  { %v13566_v17 = vpop.f32.mrb[174].mxu0 }
 0x7fe   :  { %v6707_v8 = vpop.f32.mrb[175].mxu0 }
 0x803   :  { %v13571_v3 = vpop.f32.mrb[176].mxu0 }
 0x804   :  { %v6712_v29 = vpop.f32.mrb[177].mxu0 }
 0x805   :  { %v13573_v12 = vpop.f32.mrb[178].mxu0 }
 0x806   :  { %v6715_v25 = vpop.f32.mrb[179].mxu0 }
 0x80b   :  { %v13576_v58 = vpop.f32.mrb[180].mxu0 }
 0x80c   :  { %v6720_v35 = vpop.f32.mrb[181].mxu0 }
 0x80d   :  { %v13581_v63 = vpop.f32.mrb[182].mxu0 }
 0x80e   :  { %v6723_v11 = vpop.f32.mrb[183].mxu0 }
 0x813   :  { %v13584_v47 = vpop.f32.mrb[184].mxu0 }
 0x814   :  { %v6728_v23 = vpop.f32.mrb[185].mxu0 }
 0x815   :  { %v13589_v14 = vpop.f32.mrb[186].mxu0 }
 0x816   :  { %v6731_v40 = vpop.f32.mrb[187].mxu0 }
 0x817   :  { %v6895_v19 = vpop.f32.mrb[128].mxu1 }
 0x818   :  { %v6896_v2 = vadd.f32 %v6895_v19, %v13470_v24  ;;  %v6897_v6 = vpop.f32.mrb[129].mxu1  ;;  %v10067_v24 = vld [vmem:[%s14347_s5 + $0xb0] sm:$0xff]  }
 0x819   :  { %v6898_v50 = vpop.f32.mrb[130].mxu1  ;;  %8035 = vmatpush1.bf16.msra.mxu1 %v10067_v24 }
 0x81a   :  { %v6899_v13 = vadd.f32 %v6898_v50, %v13473_v43  ;;  %v6900_v22 = vpop.f32.mrb[131].mxu1  ;;  %8036 = vmatprep.subr.bf16.mxu1 %v10119_v10 }
 0x81b   :  { %v13594_v56 = vpop.f32.mrb[188].mxu0 }
 0x81c   :  { %v6736_v28 = vpop.f32.mrb[189].mxu0 }
 0x81d   :  { %v13596_v57 = vpop.f32.mrb[190].mxu0  ;;  %8037 = vmatpush1.bf16.msra.mxu1 %v10068_v21 }
 0x81e   :  { %v6739_v61 = vpop.f32.mrb[191].mxu0  ;;  %8632 = vmatprep.subr.bf16.mxu1 %v10119_v10 }
 0x81f   :  { %v6903_v9 = vpop.f32.mrb[132].mxu1 }
 0x820   :  { %v6904_v5 = vadd.f32 %v6903_v9, %v13480_v42  ;;  %v6905_v33 = vpop.f32.mrb[133].mxu1 }
 0x821   :  { %v6906_v53 = vpop.f32.mrb[134].mxu1 }
 0x822   :  { %v6907_v48 = vadd.f32 %v6906_v53, %v13483_v27  ;;  %v6908_v7 = vpop.f32.mrb[135].mxu1 }
 0x823   :  { %v7232_v43 = vpop.f32.mrb[192].mxu0 }
 0x824   :  { %v7359_v41 = vadd.f32 %v7232_v43, %v6896_v2  ;;  %v7234_v59 = vpop.f32.mrb[193].mxu0 }
 0x825   :  { %v7235_v39 = vpop.f32.mrb[194].mxu0 }
 0x826   :  { %v7398_v42 = vadd.f32 %v13606_v20, %v7359_v41  ;;  %v7360_v27 = vadd.f32 %v7235_v39, %v6899_v13  ;;  %v7237_v26 = vpop.f32.mrb[195].mxu0  ;;  %v10069_v13 = vld [vmem:[%s14347_s5] sm:$0xff]  }
 0x827   :  { %v6911_v30 = vpop.f32.mrb[136].mxu1  ;;  %8296 = vmatpush1.bf16.msra.mxu0 %v10069_v13 }
 0x828   :  { %v7430_v8 = vmax.f32 %v7398_v42, 0.0  ;;  %v7399_v34 = vadd.f32 %v13606_v20, %v7360_v27  ;;  %v6912_v29 = vadd.f32 %v6911_v30, %v13490_v36  ;;  %v6913_v25 = vpop.f32.mrb[137].mxu1  ;;  %8297 = vmatprep.subr.bf16.mxu0 %v10119_v10 }
 0x829   :  { %v6914_v35 = vpop.f32.mrb[138].mxu1 }
 0x82a   :  { %7462 = vst.msk [vmem:[#allocation2 + $0x268] sm:$0xff] %vm28_vm0, %v7430_v8  ;;  %v7431_v45 = vmax.f32 %v7399_v34, 0.0  ;;  %v6915_v11 = vadd.f32 %v6914_v35, %v13496_v31  ;;  %v6916_v23 = vpop.f32.mrb[139].mxu1 }
 0x82b   :  { %v7240_v32 = vpop.f32.mrb[196].mxu0 }
 0x82c   :  { %7463 = vst.msk [vmem:[#allocation2 + $0x270] sm:$0xff] %vm28_vm0, %v7431_v45  ;;  %v7361_v40 = vadd.f32 %v7240_v32, %v6904_v5  ;;  %v7242_v19 = vpop.f32.mrb[197].mxu0 }
 0x82d   :  { %v7243_v2 = vpop.f32.mrb[198].mxu0 }
 0x82e   :  { %v7400_v6 = vadd.f32 %v13606_v20, %v7361_v40  ;;  %v7362_v36 = vadd.f32 %v7243_v2, %v6907_v48  ;;  %v7245_v50 = vpop.f32.mrb[199].mxu0 }
 0x82f   :  { %v6919_v22 = vpop.f32.mrb[140].mxu1  ;;  %v10071_v50 = vld [vmem:[%s14347_s5 + $0x8] sm:$0xff]  }
 0x830   :  { %v7432_v28 = vmax.f32 %v7400_v6, 0.0  ;;  %v7401_v61 = vadd.f32 %v13606_v20, %v7362_v36  ;;  %v6920_v31 = vadd.f32 %v6919_v22, %v13504_v38  ;;  %v6921_v9 = vpop.f32.mrb[141].mxu1  ;;  %8298 = vmatpush1.bf16.msra.mxu0 %v10071_v50 }
 0x831   :  { %v6922_v33 = vpop.f32.mrb[142].mxu1  ;;  %v7568_v7 = vld [vmem:[#allocation2 + $0x268] sm:$0xff]  ;;  %8299 = vmatprep.subr.bf16.mxu0 %v10119_v10 }
 0x832   :  { %7464 = vst.msk [vmem:[#allocation2 + $0x288] sm:$0xff] %vm28_vm0, %v7432_v28  ;;  %v7433_v5 = vmax.f32 %v7401_v61, 0.0  ;;  %v6923_v53 = vadd.f32 %v6922_v33, %v13507_v44  ;;  %v6924_v48 = vpop.f32.mrb[143].mxu1  ;;  %v7496_v26 = vld [vmem:[#allocation2 + $0x267] sm:$0xff] }
 0x833   :  { %v7248_v24 = vpop.f32.mrb[200].mxu0  ;;  %v7569_v43 = vld [vmem:[#allocation2 + $0x270] sm:$0xff] }
 0x834   :  { %v7712_v41 = vld [vmem:[#allocation2 + $0x269] sm:$0xff]  ;;  %v7713_v59 = vld [vmem:[#allocation2 + $0x271] sm:$0xff]  ;;  %7465 = vst.msk [vmem:[#allocation2 + $0x290] sm:$0xff] %vm28_vm0, %v7433_v5  ;;  %v7363_v39 = vadd.f32 %v7248_v24, %v6912_v29  ;;  %v7250_v38 = vpop.f32.mrb[201].mxu0  ;;  %v7603_v42 = vpack.c.bf16 %v7569_v43, %v7568_v7 }
 0x835   :  { %v7747_v27 = vpack.c.bf16 %v7713_v59, %v7712_v41  ;;  %v7497_v21 = vld [vmem:[#allocation2 + $0x26f] sm:$0xff]  ;;  %v7251_v30 = vpop.f32.mrb[202].mxu0 }
 0x836   :  { %v7531_v8 = vpack.c.bf16 %v7497_v21, %v7496_v26  ;;  %v7402_v34 = vadd.f32 %v13606_v20, %v7363_v39  ;;  %v7364_v25 = vadd.f32 %v7251_v30, %v6915_v11  ;;  %v7253_v44 = vpop.f32.mrb[203].mxu0  ;;  %7640 = vrot.lane.b32.xlu0 %v7603_v42, %s10120_s26 }
 0x837   :  { %7765 = vst.msk [vmem:[#allocation3 + $0x18] sm:$0xff] %vm28_vm0, %v7747_v27  ;;  %v6927_v35 = vpop.f32.mrb[144].mxu1 }
 0x838   :  { %7549 = vst.msk [vmem:[#allocation3 + $0x10] sm:$0xff] %vm28_vm0, %v7531_v8  ;;  %v7434_v45 = vmax.f32 %v7402_v34, 0.0  ;;  %v7403_v29 = vadd.f32 %v13606_v20, %v7364_v25  ;;  %v6928_v23 = vadd.f32 %v6927_v35, %v13515_v62  ;;  %v6929_v32 = vpop.f32.mrb[145].mxu1  ;;  %v10073_v25 = vld [vmem:[%s14347_s5 + $0x10] sm:$0xff]  }
 0x839   :  { %v6930_v40 = vpop.f32.mrb[146].mxu1  ;;  %v7570_v6 = vld [vmem:[#allocation2 + $0x288] sm:$0xff]  ;;  %8300 = vmatpush1.bf16.msra.mxu0 %v10073_v25 }
 0x83a   :  { %7466 = vst.msk [vmem:[#allocation2 + $0x2a8] sm:$0xff] %vm28_vm0, %v7434_v45  ;;  %v7435_v19 = vmax.f32 %v7403_v29, 0.0  ;;  %v6931_v11 = vadd.f32 %v6930_v40, %v13517_v18  ;;  %v6932_v2 = vpop.f32.mrb[147].mxu1  ;;  %v7498_v36 = vld [vmem:[#allocation2 + $0x287] sm:$0xff]  ;;  %8301 = vmatprep.subr.bf16.mxu0 %v10119_v10 }
 0x83b   :  { %v7256_v13 = vpop.f32.mrb[204].mxu0  ;;  %v7571_v22 = vld [vmem:[#allocation2 + $0x290] sm:$0xff] }
 0x83c   :  { %v7499_v28 = vld [vmem:[#allocation2 + $0x28f] sm:$0xff]  ;;  %7467 = vst.msk [vmem:[#allocation2 + $0x2b0] sm:$0xff] %vm28_vm0, %v7435_v19  ;;  %v7365_v62 = vadd.f32 %v7256_v13, %v6920_v31  ;;  %v7258_v9 = vpop.f32.mrb[205].mxu0  ;;  %v7604_v33 = vpack.c.bf16 %v7571_v22, %v7570_v6 }
 0x83d   :  { %v7714_v61 = vld [vmem:[#allocation2 + $0x289] sm:$0xff]  ;;  %v7532_v5 = vpack.c.bf16 %v7499_v28, %v7498_v36  ;;  %v7715_v48 = vld [vmem:[#allocation2 + $0x291] sm:$0xff]  ;;  %v7259_v18 = vpop.f32.mrb[206].mxu0 }
 0x83e   :  { %v7839_v7 = vld [vmem:[#allocation3 + $0x18] sm:$0xff]  ;;  %v7748_v24 = vpack.c.bf16 %v7715_v48, %v7714_v61  ;;  %v7404_v43 = vadd.f32 %v13606_v20, %v7365_v62  ;;  %v7366_v41 = vadd.f32 %v7259_v18, %v6923_v53  ;;  %v7261_v59 = vpop.f32.mrb[207].mxu0  ;;  %7642 = vrot.lane.b32.xlu1 %v7604_v33, %s10120_s26 }
 0x83f   :  { %9742 = vmatprep.mubr.msk.bf16.mxu1 %vm28_vm0, %v7839_v7  ;;  %7550 = vst.msk [vmem:[#allocation3 + $0x20] sm:$0xff] %vm28_vm0, %v7532_v5  ;;  %v6935_v31 = vpop.f32.mrb[148].mxu1  ;;  %v10075_v7 = vld [vmem:[%s14347_s5 + $0x18] sm:$0xff]  }
 0x840   :  { %7766 = vst.msk [vmem:[#allocation3 + $0x28] sm:$0xff] %vm28_vm0, %v7748_v24  ;;  %v7436_v39 = vmax.f32 %v7404_v43, 0.0  ;;  %v7405_v38 = vadd.f32 %v13606_v20, %v7366_v41  ;;  %v6936_v42 = vadd.f32 %v6935_v31, %v13520_v54  ;;  %v6937_v27 = vpop.f32.mrb[149].mxu1  ;;  %8302 = vmatpush1.bf16.msra.mxu0 %v10075_v7 }
 0x841   :  { %v6938_v26 = vpop.f32.mrb[150].mxu1  ;;  %v7572_v8 = vld [vmem:[#allocation2 + $0x2a8] sm:$0xff]  ;;  %8303 = vmatprep.subr.bf16.mxu0 %v10119_v10 }
 0x842   :  { %7468 = vst.msk [vmem:[#allocation2 + $0x2c8] sm:$0xff] %vm28_vm0, %v7436_v39  ;;  %v7437_v53 = vmax.f32 %v7405_v38, 0.0  ;;  %v6939_v21 = vadd.f32 %v6938_v26, %v13525_v15  ;;  %v6940_v30 = vpop.f32.mrb[151].mxu1  ;;  %v7500_v34 = vld [vmem:[#allocation2 + $0x2a7] sm:$0xff] }
 0x843   :  { %v7264_v44 = vpop.f32.mrb[208].mxu0  ;;  %v7573_v35 = vld [vmem:[#allocation2 + $0x2b0] sm:$0xff] }
 0x844   :  { %v7501_v45 = vld [vmem:[#allocation2 + $0x2af] sm:$0xff]  ;;  %7469 = vst.msk [vmem:[#allocation2 + $0x2d0] sm:$0xff] %vm28_vm0, %v7437_v53  ;;  %v7367_v54 = vadd.f32 %v7264_v44, %v6928_v23  ;;  %v7266_v32 = vpop.f32.mrb[209].mxu0  ;;  %v7605_v40 = vpack.c.bf16 %v7573_v35, %v7572_v8 }
 0x845   :  { %v7716_v29 = vld [vmem:[#allocation2 + $0x2a9] sm:$0xff]  ;;  %v7533_v19 = vpack.c.bf16 %v7501_v45, %v7500_v34  ;;  %v7717_v2 = vld [vmem:[#allocation2 + $0x2b1] sm:$0xff]  ;;  %v7267_v15 = vpop.f32.mrb[210].mxu0 }
 0x846   :  { %v7749_v6 = vpack.c.bf16 %v7717_v2, %v7716_v29  ;;  %v7406_v36 = vadd.f32 %v13606_v20, %v7367_v54  ;;  %v7368_v50 = vadd.f32 %v7267_v15, %v6931_v11  ;;  %v7269_v13 = vpop.f32.mrb[211].mxu0  ;;  %7644 = vrot.lane.b32.xlu0 %v7605_v40, %s10120_s26 }
 0x847   :  { %7551 = vst.msk [vmem:[#allocation3 + $0x30] sm:$0xff] %vm28_vm0, %v7533_v19  ;;  %v6943_v22 = vpop.f32.mrb[152].mxu1 }
 0x848   :  { %7767 = vst.msk [vmem:[#allocation3 + $0x38] sm:$0xff] %vm28_vm0, %v7749_v6  ;;  %v7438_v23 = vmax.f32 %v7406_v36, 0.0  ;;  %v7407_v28 = vadd.f32 %v13606_v20, %v7368_v50  ;;  %v6944_v61 = vadd.f32 %v6943_v22, %v13528_v55  ;;  %v6945_v62 = vpop.f32.mrb[153].mxu1 }
 0x849   :  { %v6946_v9 = vpop.f32.mrb[154].mxu1  ;;  %v7574_v48 = vld [vmem:[#allocation2 + $0x2c8] sm:$0xff] }
 0x84a   :  { %7470 = vst.msk [vmem:[#allocation2 + $0x2e8] sm:$0xff] %vm28_vm0, %v7438_v23  ;;  %v7439_v33 = vmax.f32 %v7407_v28, 0.0  ;;  %v6947_v11 = vadd.f32 %v6946_v9, %v13533_v46  ;;  %v6948_v5 = vpop.f32.mrb[155].mxu1  ;;  %v7502_v18 = vld [vmem:[#allocation2 + $0x2c7] sm:$0xff] }
 0x84b   :  { %v7272_v24 = vpop.f32.mrb[212].mxu0  ;;  %v7575_v43 = vld [vmem:[#allocation2 + $0x2d0] sm:$0xff] }
 0x84c   :  { %v7503_v41 = vld [vmem:[#allocation2 + $0x2cf] sm:$0xff]  ;;  %7471 = vst.msk [vmem:[#allocation2 + $0x2f0] sm:$0xff] %vm28_vm0, %v7439_v33  ;;  %v7369_v55 = vadd.f32 %v7272_v24, %v6936_v42  ;;  %v7274_v31 = vpop.f32.mrb[213].mxu0  ;;  %v7606_v39 = vpack.c.bf16 %v7575_v43, %v7574_v48 }
 0x84d   :  { %v7718_v59 = vld [vmem:[#allocation2 + $0x2c9] sm:$0xff]  ;;  %v7534_v38 = vpack.c.bf16 %v7503_v41, %v7502_v18  ;;  %v7719_v27 = vld [vmem:[#allocation2 + $0x2d1] sm:$0xff]  ;;  %v7275_v46 = vpop.f32.mrb[214].mxu0 }
 0x84e   :  { %v7750_v26 = vpack.c.bf16 %v7719_v27, %v7718_v59  ;;  %v7408_v53 = vadd.f32 %v13606_v20, %v7369_v55  ;;  %v7370_v30 = vadd.f32 %v7275_v46, %v6939_v21  ;;  %v7277_v8 = vpop.f32.mrb[215].mxu0  ;;  %7646 = vrot.lane.b32.xlu1 %v7606_v39, %s10120_s26  ;;  %v10077_v55 = vld [vmem:[%s14347_s5 + $0x20] sm:$0xff]  }
 0x84f   :  { %7552 = vst.msk [vmem:[#allocation3 + $0x40] sm:$0xff] %vm28_vm0, %v7534_v38  ;;  %v6951_v34 = vpop.f32.mrb[156].mxu1  ;;  %8304 = vmatpush1.bf16.msra.mxu0 %v10077_v55 }
 0x850   :  { %7768 = vst.msk [vmem:[#allocation3 + $0x48] sm:$0xff] %vm28_vm0, %v7750_v26  ;;  %v7440_v42 = vmax.f32 %v7408_v53, 0.0  ;;  %v7409_v25 = vadd.f32 %v13606_v20, %v7370_v30  ;;  %v6952_v44 = vadd.f32 %v6951_v34, %v13536_v0  ;;  %v6953_v35 = vpop.f32.mrb[157].mxu1  ;;  %8305 = vmatprep.subr.bf16.mxu0 %v10119_v10 }
 0x851   :  { %v6954_v45 = vpop.f32.mrb[158].mxu1  ;;  %v7576_v32 = vld [vmem:[#allocation2 + $0x2e8] sm:$0xff] }
 0x852   :  { %7472 = vst.msk [vmem:[#allocation2 + $0x308] sm:$0xff] %vm28_vm0, %v7440_v42  ;;  %v7441_v29 = vmax.f32 %v7409_v25, 0.0  ;;  %v6955_v21 = vadd.f32 %v6954_v45, %v13538_v49  ;;  %v6956_v54 = vpop.f32.mrb[159].mxu1  ;;  %v7504_v40 = vld [vmem:[#allocation2 + $0x2e7] sm:$0xff] }
 0x853   :  { %v7280_v19 = vpop.f32.mrb[216].mxu0  ;;  %v7577_v2 = vld [vmem:[#allocation2 + $0x2f0] sm:$0xff] }
 0x854   :  { %v7505_v15 = vld [vmem:[#allocation2 + $0x2ef] sm:$0xff]  ;;  %7473 = vst.msk [vmem:[#allocation2 + $0x310] sm:$0xff] %vm28_vm0, %v7441_v29  ;;  %v7371_v36 = vadd.f32 %v7280_v19, %v6944_v61  ;;  %v7282_v50 = vpop.f32.mrb[217].mxu0  ;;  %v7607_v13 = vpack.c.bf16 %v7577_v2, %v7576_v32 }
 0x855   :  { %v7720_v6 = vld [vmem:[#allocation2 + $0x2e9] sm:$0xff]  ;;  %v7535_v0 = vpack.c.bf16 %v7505_v15, %v7504_v40  ;;  %v7721_v22 = vld [vmem:[#allocation2 + $0x2f1] sm:$0xff]  ;;  %v7283_v23 = vpop.f32.mrb[218].mxu0 }
 0x856   :  { %v7751_v28 = vpack.c.bf16 %v7721_v22, %v7720_v6  ;;  %v7410_v62 = vadd.f32 %v13606_v20, %v7371_v36  ;;  %v7372_v9 = vadd.f32 %v7283_v23, %v6947_v11  ;;  %v7285_v49 = vpop.f32.mrb[219].mxu0  ;;  %7648 = vrot.lane.b32.xlu0 %v7607_v13, %s10120_s26  ;;  %v10079_v6 = vld [vmem:[%s14347_s5 + $0x28] sm:$0xff]  }
 0x857   :  { %7553 = vst.msk [vmem:[#allocation3 + $0x50] sm:$0xff] %vm28_vm0, %v7535_v0  ;;  %v6959_v33 = vpop.f32.mrb[160].mxu1  ;;  %8306 = vmatpush1.bf16.msra.mxu0 %v10079_v6 }
 0x858   :  { %7769 = vst.msk [vmem:[#allocation3 + $0x58] sm:$0xff] %vm28_vm0, %v7751_v28  ;;  %v7442_v5 = vmax.f32 %v7410_v62, 0.0  ;;  %v7411_v61 = vadd.f32 %v13606_v20, %v7372_v9  ;;  %v6960_v48 = vadd.f32 %v6959_v33, %v13543_v37  ;;  %v6961_v18 = vpop.f32.mrb[161].mxu1  ;;  %8307 = vmatprep.subr.bf16.mxu0 %v10119_v10 }
 0x859   :  { %v6962_v7 = vpop.f32.mrb[162].mxu1  ;;  %v7578_v41 = vld [vmem:[#allocation2 + $0x308] sm:$0xff] }
 0x85a   :  { %7474 = vst.msk [vmem:[#allocation2 + $0x328] sm:$0xff] %vm28_vm0, %v7442_v5  ;;  %v7443_v24 = vmax.f32 %v7411_v61, 0.0  ;;  %v6963_v11 = vadd.f32 %v6962_v7, %v13545_v16  ;;  %v6964_v43 = vpop.f32.mrb[163].mxu1  ;;  %v7506_v59 = vld [vmem:[#allocation2 + $0x307] sm:$0xff] }
 0x85b   :  { %v7288_v31 = vpop.f32.mrb[220].mxu0  ;;  %v7579_v39 = vld [vmem:[#allocation2 + $0x310] sm:$0xff] }
 0x85c   :  { %v7507_v38 = vld [vmem:[#allocation2 + $0x30f] sm:$0xff]  ;;  %7475 = vst.msk [vmem:[#allocation2 + $0x330] sm:$0xff] %vm28_vm0, %v7443_v24  ;;  %v7373_v37 = vadd.f32 %v7288_v31, %v6952_v44  ;;  %v7290_v46 = vpop.f32.mrb[221].mxu0  ;;  %v7608_v26 = vpack.c.bf16 %v7579_v39, %v7578_v41 }
 0x85d   :  { %v7722_v27 = vld [vmem:[#allocation2 + $0x309] sm:$0xff]  ;;  %v7536_v53 = vpack.c.bf16 %v7507_v38, %v7506_v59  ;;  %v7723_v30 = vld [vmem:[#allocation2 + $0x311] sm:$0xff]  ;;  %v7291_v16 = vpop.f32.mrb[222].mxu0 }
 0x85e   :  { %v7752_v8 = vpack.c.bf16 %v7723_v30, %v7722_v27  ;;  %v7412_v34 = vadd.f32 %v13606_v20, %v7373_v37  ;;  %v7374_v42 = vadd.f32 %v7291_v16, %v6955_v21  ;;  %v7293_v25 = vpop.f32.mrb[223].mxu0  ;;  %7650 = vrot.lane.b32.xlu1 %v7608_v26, %s10120_s26  ;;  %v10081_v39 = vld [vmem:[%s14347_s5 + $0x30] sm:$0xff]  }
 0x85f   :  { %7554 = vst.msk [vmem:[#allocation3 + $0x60] sm:$0xff] %vm28_vm0, %v7536_v53  ;;  %v6967_v35 = vpop.f32.mrb[164].mxu1  ;;  %8308 = vmatpush1.bf16.msra.mxu0 %v10081_v39 }
 0x860   :  { %7770 = vst.msk [vmem:[#allocation3 + $0x68] sm:$0xff] %vm28_vm0, %v7752_v8  ;;  %v7444_v44 = vmax.f32 %v7412_v34, 0.0  ;;  %v7413_v45 = vadd.f32 %v13606_v20, %v7374_v42  ;;  %v6968_v29 = vadd.f32 %v6967_v35, %v13548_v4  ;;  %v6969_v54 = vpop.f32.mrb[165].mxu1  ;;  %8309 = vmatprep.subr.bf16.mxu0 %v10119_v10 }
 0x861   :  { %v6970_v32 = vpop.f32.mrb[166].mxu1  ;;  %v7580_v2 = vld [vmem:[#allocation2 + $0x328] sm:$0xff] }
 0x862   :  { %7476 = vst.msk [vmem:[#allocation2 + $0x348] sm:$0xff] %vm28_vm0, %v7444_v44  ;;  %v7445_v40 = vmax.f32 %v7413_v45, 0.0  ;;  %v6971_v21 = vadd.f32 %v6970_v32, %v13553_v51  ;;  %v6972_v19 = vpop.f32.mrb[167].mxu1  ;;  %v7508_v15 = vld [vmem:[#allocation2 + $0x327] sm:$0xff] }
 0x863   :  { %v7296_v36 = vpop.f32.mrb[224].mxu0  ;;  %v7581_v50 = vld [vmem:[#allocation2 + $0x330] sm:$0xff] }
 0x864   :  { %v7509_v13 = vld [vmem:[#allocation2 + $0x32f] sm:$0xff]  ;;  %7477 = vst.msk [vmem:[#allocation2 + $0x350] sm:$0xff] %vm28_vm0, %v7445_v40  ;;  %v7375_v4 = vadd.f32 %v7296_v36, %v6960_v48  ;;  %v7298_v22 = vpop.f32.mrb[225].mxu0  ;;  %v7609_v23 = vpack.c.bf16 %v7581_v50, %v7580_v2 }
 0x865   :  { %v7724_v0 = vld [vmem:[#allocation2 + $0x329] sm:$0xff]  ;;  %v7537_v28 = vpack.c.bf16 %v7509_v13, %v7508_v15  ;;  %v7725_v62 = vld [vmem:[#allocation2 + $0x331] sm:$0xff]  ;;  %v7299_v51 = vpop.f32.mrb[226].mxu0 }
 0x866   :  { %v7753_v9 = vpack.c.bf16 %v7725_v62, %v7724_v0  ;;  %v7414_v49 = vadd.f32 %v13606_v20, %v7375_v4  ;;  %v7376_v33 = vadd.f32 %v7299_v51, %v6963_v11  ;;  %v7301_v5 = vpop.f32.mrb[227].mxu0  ;;  %7652 = vrot.lane.b32.xlu0 %v7609_v23, %s10120_s26 }
 0x867   :  { %7555 = vst.msk [vmem:[#allocation3 + $0x70] sm:$0xff] %vm28_vm0, %v7537_v28  ;;  %v6975_v61 = vpop.f32.mrb[168].mxu1 }
 0x868   :  { %7771 = vst.msk [vmem:[#allocation3 + $0x78] sm:$0xff] %vm28_vm0, %v7753_v9  ;;  %v7446_v48 = vmax.f32 %v7414_v49, 0.0  ;;  %v7415_v18 = vadd.f32 %v13606_v20, %v7376_v33  ;;  %v6976_v7 = vadd.f32 %v6975_v61, %v13556_v60  ;;  %v6977_v24 = vpop.f32.mrb[169].mxu1 }
 0x869   :  { %v6978_v43 = vpop.f32.mrb[170].mxu1  ;;  %v7582_v55 = vld [vmem:[#allocation2 + $0x348] sm:$0xff] }
 0x86a   :  { %7478 = vst.msk [vmem:[#allocation2 + $0x368] sm:$0xff] %vm28_vm0, %v7446_v48  ;;  %v7447_v41 = vmax.f32 %v7415_v18, 0.0  ;;  %v6979_v11 = vadd.f32 %v6978_v43, %v13561_v1  ;;  %v6980_v59 = vpop.f32.mrb[171].mxu1  ;;  %v7510_v31 = vld [vmem:[#allocation2 + $0x347] sm:$0xff] }
 0x86b   :  { %v7304_v38 = vpop.f32.mrb[228].mxu0  ;;  %v7583_v27 = vld [vmem:[#allocation2 + $0x350] sm:$0xff]  ;;  %v10083_v59 = vld [vmem:[%s14347_s5 + $0x38] sm:$0xff]  }
 0x86c   :  { %v7511_v37 = vld [vmem:[#allocation2 + $0x34f] sm:$0xff]  ;;  %7479 = vst.msk [vmem:[#allocation2 + $0x370] sm:$0xff] %vm28_vm0, %v7447_v41  ;;  %v7377_v60 = vadd.f32 %v7304_v38, %v6968_v29  ;;  %v7306_v26 = vpop.f32.mrb[229].mxu0  ;;  %v7610_v53 = vpack.c.bf16 %v7583_v27, %v7582_v55  ;;  %8310 = vmatpush1.bf16.msra.mxu0 %v10083_v59 }
 0x86d   :  { %v7726_v46 = vld [vmem:[#allocation2 + $0x349] sm:$0xff]  ;;  %v7538_v30 = vpack.c.bf16 %v7511_v37, %v7510_v31  ;;  %v7727_v16 = vld [vmem:[#allocation2 + $0x351] sm:$0xff]  ;;  %v7307_v1 = vpop.f32.mrb[230].mxu0  ;;  %8311 = vmatprep.subr.bf16.mxu0 %v10119_v10 }
 0x86e   :  { %v7754_v8 = vpack.c.bf16 %v7727_v16, %v7726_v46  ;;  %v7416_v34 = vadd.f32 %v13606_v20, %v7377_v60  ;;  %v7378_v42 = vadd.f32 %v7307_v1, %v6971_v21  ;;  %v7309_v25 = vpop.f32.mrb[231].mxu0  ;;  %7654 = vrot.lane.b32.xlu1 %v7610_v53, %s10120_s26 }
 0x86f   :  { %7556 = vst.msk [vmem:[#allocation3 + $0x80] sm:$0xff] %vm28_vm0, %v7538_v30  ;;  %v6983_v35 = vpop.f32.mrb[172].mxu1 }
 0x870   :  { %7772 = vst.msk [vmem:[#allocation3 + $0x88] sm:$0xff] %vm28_vm0, %v7754_v8  ;;  %v7448_v44 = vmax.f32 %v7416_v34, 0.0  ;;  %v7417_v45 = vadd.f32 %v13606_v20, %v7378_v42  ;;  %v6984_v29 = vadd.f32 %v6983_v35, %v13564_v52  ;;  %v6985_v54 = vpop.f32.mrb[173].mxu1 }
 0x871   :  { %v6986_v32 = vpop.f32.mrb[174].mxu1  ;;  %v7584_v2 = vld [vmem:[#allocation2 + $0x368] sm:$0xff] }
 0x872   :  { %7480 = vst.msk [vmem:[#allocation2 + $0x388] sm:$0xff] %vm28_vm0, %v7448_v44  ;;  %v7449_v40 = vmax.f32 %v7417_v45, 0.0  ;;  %v6987_v21 = vadd.f32 %v6986_v32, %v13566_v17  ;;  %v6988_v19 = vpop.f32.mrb[175].mxu1  ;;  %v7512_v15 = vld [vmem:[#allocation2 + $0x367] sm:$0xff] }
 0x873   :  { %v7312_v6 = vpop.f32.mrb[232].mxu0  ;;  %v7585_v36 = vld [vmem:[#allocation2 + $0x370] sm:$0xff] }
 0x874   :  { %v7513_v50 = vld [vmem:[#allocation2 + $0x36f] sm:$0xff]  ;;  %7481 = vst.msk [vmem:[#allocation2 + $0x390] sm:$0xff] %vm28_vm0, %v7449_v40  ;;  %v7379_v0 = vadd.f32 %v7312_v6, %v6976_v7  ;;  %v7314_v4 = vpop.f32.mrb[233].mxu0  ;;  %v7611_v22 = vpack.c.bf16 %v7585_v36, %v7584_v2  ;;  %v10085_v40 = vld [vmem:[%s14347_s5 + $0x40] sm:$0xff]  }
 0x875   :  { %v7728_v13 = vld [vmem:[#allocation2 + $0x369] sm:$0xff]  ;;  %v7539_v52 = vpack.c.bf16 %v7513_v50, %v7512_v15  ;;  %v7729_v23 = vld [vmem:[#allocation2 + $0x371] sm:$0xff]  ;;  %v7315_v28 = vpop.f32.mrb[234].mxu0  ;;  %8312 = vmatpush1.bf16.msra.mxu0 %v10085_v40 }
 0x876   :  { %v7755_v62 = vpack.c.bf16 %v7729_v23, %v7728_v13  ;;  %v7418_v51 = vadd.f32 %v13606_v20, %v7379_v0  ;;  %v7380_v9 = vadd.f32 %v7315_v28, %v6979_v11  ;;  %v7317_v17 = vpop.f32.mrb[235].mxu0  ;;  %7656 = vrot.lane.b32.xlu0 %v7611_v22, %s10120_s26  ;;  %8313 = vmatprep.subr.bf16.mxu0 %v10119_v10 }
 0x877   :  { %7557 = vst.msk [vmem:[#allocation3 + $0x90] sm:$0xff] %vm28_vm0, %v7539_v52  ;;  %v6991_v49 = vpop.f32.mrb[176].mxu1 }
 0x878   :  { %7773 = vst.msk [vmem:[#allocation3 + $0x98] sm:$0xff] %vm28_vm0, %v7755_v62  ;;  %v7450_v33 = vmax.f32 %v7418_v51, 0.0  ;;  %v7419_v5 = vadd.f32 %v13606_v20, %v7380_v9  ;;  %v6992_v61 = vadd.f32 %v6991_v49, %v13571_v3  ;;  %v6993_v48 = vpop.f32.mrb[177].mxu1 }
 0x879   :  { %v6994_v18 = vpop.f32.mrb[178].mxu1  ;;  %v7586_v41 = vld [vmem:[#allocation2 + $0x388] sm:$0xff] }
 0x87a   :  { %7482 = vst.msk [vmem:[#allocation2 + $0x3a8] sm:$0xff] %vm28_vm0, %v7450_v33  ;;  %v7451_v7 = vmax.f32 %v7419_v5, 0.0  ;;  %v6995_v24 = vadd.f32 %v6994_v18, %v13573_v12  ;;  %v6996_v43 = vpop.f32.mrb[179].mxu1  ;;  %v7514_v11 = vld [vmem:[#allocation2 + $0x387] sm:$0xff] }
 0x87b   :  { %v7320_v55 = vpop.f32.mrb[236].mxu0  ;;  %v7587_v31 = vld [vmem:[#allocation2 + $0x390] sm:$0xff]  ;;  %v10087_v18 = vld [vmem:[%s14347_s5 + $0x48] sm:$0xff]  }
 0x87c   :  { %v7515_v39 = vld [vmem:[#allocation2 + $0x38f] sm:$0xff]  ;;  %7483 = vst.msk [vmem:[#allocation2 + $0x3b0] sm:$0xff] %vm28_vm0, %v7451_v7  ;;  %v7381_v3 = vadd.f32 %v7320_v55, %v6984_v29  ;;  %v7322_v27 = vpop.f32.mrb[237].mxu0  ;;  %v7612_v37 = vpack.c.bf16 %v7587_v31, %v7586_v41  ;;  %8314 = vmatpush1.bf16.msra.mxu0 %v10087_v18 }
 0x87d   :  { %v7730_v38 = vld [vmem:[#allocation2 + $0x389] sm:$0xff]  ;;  %v7540_v46 = vpack.c.bf16 %v7515_v39, %v7514_v11  ;;  %v7731_v60 = vld [vmem:[#allocation2 + $0x391] sm:$0xff]  ;;  %v7323_v12 = vpop.f32.mrb[238].mxu0  ;;  %8315 = vmatprep.subr.bf16.mxu0 %v10119_v10 }
 0x87e   :  { %v7756_v26 = vpack.c.bf16 %v7731_v60, %v7730_v38  ;;  %v7420_v53 = vadd.f32 %v13606_v20, %v7381_v3  ;;  %v7382_v30 = vadd.f32 %v7323_v12, %v6987_v21  ;;  %v7325_v16 = vpop.f32.mrb[239].mxu0  ;;  %7658 = vrot.lane.b32.xlu1 %v7612_v37, %s10120_s26 }
 0x87f   :  { %7558 = vst.msk [vmem:[#allocation3 + $0xa0] sm:$0xff] %vm28_vm0, %v7540_v46  ;;  %v6999_v1 = vpop.f32.mrb[180].mxu1 }
 0x880   :  { %7774 = vst.msk [vmem:[#allocation3 + $0xa8] sm:$0xff] %vm28_vm0, %v7756_v26  ;;  %v7452_v8 = vmax.f32 %v7420_v53, 0.0  ;;  %v7421_v34 = vadd.f32 %v13606_v20, %v7382_v30  ;;  %v7000_v42 = vadd.f32 %v6999_v1, %v13576_v58  ;;  %v7001_v25 = vpop.f32.mrb[181].mxu1 }
 0x881   :  { %v7002_v35 = vpop.f32.mrb[182].mxu1  ;;  %v7588_v54 = vld [vmem:[#allocation2 + $0x3a8] sm:$0xff] }
 0x882   :  { %7484 = vst.msk [vmem:[#allocation2 + $0x3c8] sm:$0xff] %vm28_vm0, %v7452_v8  ;;  %v7453_v44 = vmax.f32 %v7421_v34, 0.0  ;;  %v7003_v45 = vadd.f32 %v7002_v35, %v13581_v63  ;;  %v7004_v29 = vpop.f32.mrb[183].mxu1  ;;  %v7516_v32 = vld [vmem:[#allocation2 + $0x3a7] sm:$0xff] }
 0x883   :  { %v7328_v21 = vpop.f32.mrb[240].mxu0  ;;  %v7589_v19 = vld [vmem:[#allocation2 + $0x3b0] sm:$0xff] }
 0x884   :  { %v7517_v2 = vld [vmem:[#allocation2 + $0x3af] sm:$0xff]  ;;  %7485 = vst.msk [vmem:[#allocation2 + $0x3d0] sm:$0xff] %vm28_vm0, %v7453_v44  ;;  %v7383_v58 = vadd.f32 %v7328_v21, %v6992_v61  ;;  %v7330_v6 = vpop.f32.mrb[241].mxu0  ;;  %v7613_v36 = vpack.c.bf16 %v7589_v19, %v7588_v54 }
 0x885   :  { %v7732_v15 = vld [vmem:[#allocation2 + $0x3a9] sm:$0xff]  ;;  %v7541_v50 = vpack.c.bf16 %v7517_v2, %v7516_v32  ;;  %v7733_v13 = vld [vmem:[#allocation2 + $0x3b1] sm:$0xff]  ;;  %v7331_v63 = vpop.f32.mrb[242].mxu0 }
 0x886   :  { %v7757_v0 = vpack.c.bf16 %v7733_v13, %v7732_v15  ;;  %v7422_v4 = vadd.f32 %v13606_v20, %v7383_v58  ;;  %v7384_v22 = vadd.f32 %v7331_v63, %v6995_v24  ;;  %v7333_v52 = vpop.f32.mrb[243].mxu0  ;;  %7660 = vrot.lane.b32.xlu0 %v7613_v36, %s10120_s26  ;;  %v10089_v13 = vld [vmem:[%s14347_s5 + $0x50] sm:$0xff]   ;;  %v7494_v63 = vld [vmem:[#allocation2 + $0x247] sm:$0xff] }
 0x887   :  { %7559 = vst.msk [vmem:[#allocation3 + $0xb0] sm:$0xff] %vm28_vm0, %v7541_v50  ;;  %v7007_v23 = vpop.f32.mrb[184].mxu1  ;;  %8316 = vmatpush1.bf16.msra.mxu0 %v10089_v13  ;;  %v10082_v13 = vld [vmem:[%s14347_s5 + $0xf0] sm:$0xff]  }
 0x888   :  { %7775 = vst.msk [vmem:[#allocation3 + $0xb8] sm:$0xff] %vm28_vm0, %v7757_v0  ;;  %v7454_v28 = vmax.f32 %v7422_v4, 0.0  ;;  %v7423_v62 = vadd.f32 %v13606_v20, %v7384_v22  ;;  %v7008_v51 = vadd.f32 %v7007_v23, %v13584_v47  ;;  %v7009_v9 = vpop.f32.mrb[185].mxu1  ;;  %v7495_v0 = vld [vmem:[#allocation2 + $0x24f] sm:$0xff]  ;;  %8317 = vmatprep.subr.bf16.mxu0 %v10119_v10 }
 0x889   :  { %v7010_v17 = vpop.f32.mrb[186].mxu1  ;;  %v7590_v61 = vld [vmem:[#allocation2 + $0x3c8] sm:$0xff] }
 0x88a   :  { %7486 = vst.msk [vmem:[#allocation2 + $0x3e8] sm:$0xff] %vm28_vm0, %v7454_v28  ;;  %v7455_v49 = vmax.f32 %v7423_v62, 0.0  ;;  %v7011_v33 = vadd.f32 %v7010_v17, %v13589_v14  ;;  %v7012_v5 = vpop.f32.mrb[187].mxu1  ;;  %v7518_v48 = vld [vmem:[#allocation2 + $0x3c7] sm:$0xff]  ;;  %v7530_v28 = vpack.c.bf16 %v7495_v0, %v7494_v63 }
 0x88b   :  { %v7336_v7 = vpop.f32.mrb[244].mxu0  ;;  %v7591_v24 = vld [vmem:[#allocation2 + $0x3d0] sm:$0xff] }
 0x88c   :  { %v7519_v43 = vld [vmem:[#allocation2 + $0x3cf] sm:$0xff]  ;;  %7487 = vst.msk [vmem:[#allocation2 + $0x3f0] sm:$0xff] %vm28_vm0, %v7455_v49  ;;  %v7385_v47 = vadd.f32 %v7336_v7, %v7000_v42  ;;  %v7338_v11 = vpop.f32.mrb[245].mxu0  ;;  %v7614_v59 = vpack.c.bf16 %v7591_v24, %v7590_v61  ;;  %7548 = vst.msk [vmem:[#allocation3] sm:$0xff] %vm28_vm0, %v7530_v28 }
 0x88d   :  { %v7734_v41 = vld [vmem:[#allocation2 + $0x3c9] sm:$0xff]  ;;  %v7542_v55 = vpack.c.bf16 %v7519_v43, %v7518_v48  ;;  %v7735_v31 = vld [vmem:[#allocation2 + $0x3d1] sm:$0xff]  ;;  %v7339_v14 = vpop.f32.mrb[246].mxu0 }
 0x88e   :  { %v7758_v39 = vpack.c.bf16 %v7735_v31, %v7734_v41  ;;  %v7424_v38 = vadd.f32 %v13606_v20, %v7385_v47  ;;  %v7386_v3 = vadd.f32 %v7339_v14, %v7003_v45  ;;  %v7341_v27 = vpop.f32.mrb[247].mxu0  ;;  %7662 = vrot.lane.b32.xlu1 %v7614_v59, %s10120_s26  ;;  %v7566_v43 = vld [vmem:[#allocation2 + $0x248] sm:$0xff]  ;;  %v7567_v41 = vld [vmem:[#allocation2 + $0x250] sm:$0xff]  ;;  %v10091_v47 = vld [vmem:[%s14347_s5 + $0x58] sm:$0xff]  }
 0x88f   :  { %7560 = vst.msk [vmem:[#allocation3 + $0xc0] sm:$0xff] %vm28_vm0, %v7542_v55  ;;  %v7015_v37 = vpop.f32.mrb[188].mxu1  ;;  %v7783_v31 = vld [vmem:[#allocation3 + $0x8] sm:$0xff]  ;;  %8318 = vmatpush1.bf16.msra.mxu0 %v10091_v47 }
 0x890   :  { %7776 = vst.msk [vmem:[#allocation3 + $0xc8] sm:$0xff] %vm28_vm0, %v7758_v39  ;;  %v7456_v46 = vmax.f32 %v7424_v38, 0.0  ;;  %v7425_v60 = vadd.f32 %v13606_v20, %v7386_v3  ;;  %v7016_v12 = vadd.f32 %v7015_v37, %v13594_v56  ;;  %v7017_v26 = vpop.f32.mrb[189].mxu1  ;;  %9770 = vmatprep.mubr.msk.bf16.mxu0 %vm28_vm0, %v7783_v31  ;;  %v13921_v47 = vld [vmem:[#allocation3 + $0xa8] sm:$0xff] }
 0x891   :  { %v7018_v53 = vpop.f32.mrb[190].mxu1  ;;  %v7592_v8 = vld [vmem:[#allocation2 + $0x3e8] sm:$0xff] }
 0x892   :  { %7488 = vst.msk [vmem:[#allocation2 + $0x408] sm:$0xff] %vm28_vm0, %v7456_v46  ;;  %v7457_v30 = vmax.f32 %v7425_v60, 0.0  ;;  %v7019_v16 = vadd.f32 %v7018_v53, %v13596_v57  ;;  %v7020_v1 = vpop.f32.mrb[191].mxu1  ;;  %v7520_v34 = vld [vmem:[#allocation2 + $0x3e7] sm:$0xff]  ;;  %v7602_v46 = vpack.c.bf16 %v7567_v41, %v7566_v43 }
 0x893   :  { %v7344_v42 = vpop.f32.mrb[248].mxu0  ;;  %v7593_v25 = vld [vmem:[#allocation2 + $0x3f0] sm:$0xff] }
 0x894   :  { %v7521_v35 = vld [vmem:[#allocation2 + $0x3ef] sm:$0xff]  ;;  %7489 = vst.msk [vmem:[#allocation2 + $0x410] sm:$0xff] %vm28_vm0, %v7457_v30  ;;  %v7387_v45 = vadd.f32 %v7344_v42, %v7008_v51  ;;  %v7346_v29 = vpop.f32.mrb[249].mxu0  ;;  %v7615_v54 = vpack.c.bf16 %v7593_v25, %v7592_v8 }
 0x895   :  { %v7736_v44 = vld [vmem:[#allocation2 + $0x3e9] sm:$0xff]  ;;  %v7543_v56 = vpack.c.bf16 %v7521_v35, %v7520_v34  ;;  %v7737_v32 = vld [vmem:[#allocation2 + $0x3f1] sm:$0xff]  ;;  %v7347_v40 = vpop.f32.mrb[250].mxu0 }
 0x896   :  { %v7759_v21 = vpack.c.bf16 %v7737_v32, %v7736_v44  ;;  %v7426_v19 = vadd.f32 %v13606_v20, %v7387_v45  ;;  %v7388_v2 = vadd.f32 %v7347_v40, %v7011_v33  ;;  %v7349_v57 = vpop.f32.mrb[251].mxu0  ;;  %7664 = vrot.lane.b32.xlu0 %v7615_v54, %s10120_s26  ;;  %v7600_v42 = vld [vmem:[#allocation2 + $0x468] sm:$0xff]  ;;  %v7601_v25 = vld [vmem:[#allocation2 + $0x470] sm:$0xff]  ;;  %v10070_v44 = vld [vmem:[%s14347_s5 + $0xc0] sm:$0xff]  }
 0x897   :  { %7561 = vst.msk [vmem:[#allocation3 + $0xd0] sm:$0xff] %vm28_vm0, %v7543_v56  ;;  %v7619_v45 = vpack.c.bf16 %v7601_v25, %v7600_v42  ;;  %v13812_v56 = vld [vmem:[#allocation3 + $0x28] sm:$0xff]  ;;  %v10074_v40 = vld [vmem:[%s14347_s5 + $0xd0] sm:$0xff]   ;;  %v10076_v57 = vld [vmem:[%s14347_s5 + $0xd8] sm:$0xff]  }
 0x898   :  { %7777 = vst.msk [vmem:[#allocation3 + $0xd8] sm:$0xff] %vm28_vm0, %v7759_v21  ;;  %v7458_v15 = vmax.f32 %v7426_v19, 0.0  ;;  %v7427_v58 = vadd.f32 %v13606_v20, %v7388_v2  ;;  %v10072_v32 = vld [vmem:[%s14347_s5 + $0xc8] sm:$0xff]   ;;  %v13829_v2 = vld [vmem:[#allocation3 + $0x38] sm:$0xff] }
 0x899   :  { %v7594_v6 = vld [vmem:[#allocation2 + $0x408] sm:$0xff] }
 0x89a   :  { %v7522_v36 = vld [vmem:[#allocation2 + $0x407] sm:$0xff]  ;;  %7490 = vst.msk [vmem:[#allocation2 + $0x428] sm:$0xff] %vm28_vm0, %v7458_v15  ;;  %v7459_v50 = vmax.f32 %v7427_v58, 0.0 }
 0x89b   :  { %v7352_v4 = vpop.f32.mrb[252].mxu0  ;;  %v7595_v22 = vld [vmem:[#allocation2 + $0x410] sm:$0xff]  ;;  %v10078_v15 = vld [vmem:[%s14347_s5 + $0xe0] sm:$0xff]  }
 0x89c   :  { %v7523_v52 = vld [vmem:[#allocation2 + $0x40f] sm:$0xff]  ;;  %7491 = vst.msk [vmem:[#allocation2 + $0x430] sm:$0xff] %vm28_vm0, %v7459_v50  ;;  %v7389_v62 = vadd.f32 %v7352_v4, %v7016_v12  ;;  %v7354_v51 = vpop.f32.mrb[253].mxu0  ;;  %v7616_v9 = vpack.c.bf16 %v7595_v22, %v7594_v6  ;;  %v13861_v4 = vld [vmem:[#allocation3 + $0x58] sm:$0xff] }
 0x89d   :  { %v7738_v23 = vld [vmem:[#allocation2 + $0x409] sm:$0xff]  ;;  %v7544_v17 = vpack.c.bf16 %v7523_v52, %v7522_v36  ;;  %v7739_v49 = vld [vmem:[#allocation2 + $0x411] sm:$0xff]  ;;  %v7355_v33 = vpop.f32.mrb[254].mxu0  ;;  %v10086_v52 = vld [vmem:[%s14347_s5 + $0x100] sm:$0xff]  }
 0x89e   :  { %v7760_v5 = vpack.c.bf16 %v7739_v49, %v7738_v23  ;;  %v7428_v61 = vadd.f32 %v13606_v20, %v7389_v62  ;;  %v7390_v48 = vadd.f32 %v7355_v33, %v7019_v16  ;;  %v7357_v18 = vpop.f32.mrb[255].mxu0  ;;  %7666 = vrot.lane.b32.xlu1 %v7616_v9, %s10120_s26  ;;  %v13845_v36 = vld [vmem:[#allocation3 + $0x48] sm:$0xff]  ;;  %v10084_v22 = vld [vmem:[%s14347_s5 + $0xf8] sm:$0xff]   ;;  %v10090_v9 = vld [vmem:[%s14347_s5 + $0x110] sm:$0xff]  }
 0x89f   :  { %7562 = vst.msk [vmem:[#allocation3 + $0xe0] sm:$0xff] %vm28_vm0, %v7544_v17  ;;  %v10080_v50 = vld [vmem:[%s14347_s5 + $0xe8] sm:$0xff]   ;;  %v13893_v33 = vld [vmem:[#allocation3 + $0x78] sm:$0xff] }
 0x8a0   :  { %7778 = vst.msk [vmem:[#allocation3 + $0xe8] sm:$0xff] %vm28_vm0, %v7760_v5  ;;  %v7460_v7 = vmax.f32 %v7428_v61, 0.0  ;;  %v7429_v24 = vadd.f32 %v13606_v20, %v7390_v48  ;;  %v13877_v62 = vld [vmem:[#allocation3 + $0x68] sm:$0xff]  ;;  %v10092_v5 = vld [vmem:[%s14347_s5 + $0x118] sm:$0xff]  }
 0x8a1   :  { %v7596_v59 = vld [vmem:[#allocation2 + $0x428] sm:$0xff] }
 0x8a2   :  { %7492 = vst.msk [vmem:[#allocation2 + $0x448] sm:$0xff] %vm28_vm0, %v7460_v7  ;;  %v7461_v11 = vmax.f32 %v7429_v24, 0.0  ;;  %v7524_v55 = vld [vmem:[#allocation2 + $0x427] sm:$0xff] }
 0x8a3   :  { %v7597_v14 = vld [vmem:[#allocation2 + $0x430] sm:$0xff]  ;;  %v10088_v51 = vld [vmem:[%s14347_s5 + $0x108] sm:$0xff]  }
 0x8a4   :  { %v7525_v39 = vld [vmem:[#allocation2 + $0x42f] sm:$0xff]  ;;  %7493 = vst.msk [vmem:[#allocation2 + $0x450] sm:$0xff] %vm28_vm0, %v7461_v11  ;;  %v7617_v20 = vpack.c.bf16 %v7597_v14, %v7596_v59 }
 0x8a5   :  { %v7740_v38 = vld [vmem:[#allocation2 + $0x429] sm:$0xff]  ;;  %v7545_v3 = vpack.c.bf16 %v7525_v39, %v7524_v55  ;;  %v7741_v27 = vld [vmem:[#allocation2 + $0x431] sm:$0xff] }
 0x8a6   :  { %v7761_v37 = vpack.c.bf16 %v7741_v27, %v7740_v38  ;;  %7668 = vrot.lane.b32.xlu0 %v7617_v20, %s10120_s26  ;;  %v13905_v18 = vld [vmem:[#allocation3 + $0x88] sm:$0xff]  ;;  %v13929_v55 = vld [vmem:[#allocation3 + $0xb8] sm:$0xff] }
 0x8a7   :  { %7563 = vst.msk [vmem:[#allocation3 + $0xf0] sm:$0xff] %vm28_vm0, %v7545_v3  ;;  %v13937_v39 = vld [vmem:[#allocation3 + $0xc8] sm:$0xff]  ;;  %v13945_v3 = vld [vmem:[#allocation3 + $0xd8] sm:$0xff] }
 0x8a8   :  { %7779 = vst.msk [vmem:[#allocation3 + $0xf8] sm:$0xff] %vm28_vm0, %v7761_v37  ;;  %v7641_v60 = vpop.permute.xlu0 %7640 }
 0x8a9   :  { %7693 = vst.msk [vmem:[#allocation3 + $0x10] sm:$0xff] %vm337_vm1, %v7641_v60  ;;  %v7598_v12 = vld [vmem:[#allocation2 + $0x448] sm:$0xff] }
 0x8aa   :  { %7638 = vrot.lane.b32.xlu0 %v7602_v46, %s10120_s26  ;;  %v7526_v26 = vld [vmem:[#allocation2 + $0x447] sm:$0xff] }
 0x8ab   :  { %v7599_v53 = vld [vmem:[#allocation2 + $0x450] sm:$0xff]  ;;  %v13953_v46 = vld [vmem:[#allocation3 + $0xe8] sm:$0xff] }
 0x8ac   :  { %v7527_v30 = vld [vmem:[#allocation2 + $0x44f] sm:$0xff]  ;;  %v7618_v1 = vpack.c.bf16 %v7599_v53, %v7598_v12 }
 0x8ad   :  { %v7742_v16 = vld [vmem:[#allocation2 + $0x449] sm:$0xff]  ;;  %v7546_v8 = vpack.c.bf16 %v7527_v30, %v7526_v26  ;;  %v7743_v34 = vld [vmem:[#allocation2 + $0x451] sm:$0xff] }
 0x8ae   :  { %v7762_v35 = vpack.c.bf16 %v7743_v34, %v7742_v16  ;;  %7670 = vrot.lane.b32.xlu1 %v7618_v1, %s10120_s26  ;;  %v7528_v30 = vld [vmem:[#allocation2 + $0x467] sm:$0xff]  ;;  %v7529_v16 = vld [vmem:[#allocation2 + $0x46f] sm:$0xff] }
 0x8af   :  { %7564 = vst.msk [vmem:[#allocation3 + $0x100] sm:$0xff] %vm28_vm0, %v7546_v8  ;;  %v13961_v26 = vld [vmem:[#allocation3 + $0xf8] sm:$0xff]  ;;  %v7547_v1 = vpack.c.bf16 %v7529_v16, %v7528_v30 }
 0x8b0   :  { %7780 = vst.msk [vmem:[#allocation3 + $0x108] sm:$0xff] %vm28_vm0, %v7762_v35  ;;  %v7643_v29 = vpop.permute.xlu1 %7642  ;;  %v13808_v54 = vld [vmem:[#allocation3 + $0x10] sm:$0xff]  ;;  %v7785_v35 = vld [vmem:[#allocation3 + $0x18] sm:$0xff] }
 0x8b1   :  { %7694 = vst.msk [vmem:[#allocation3 + $0x20] sm:$0xff] %vm337_vm1, %v7643_v29  ;;  %8047 = vmatmul.mubr.bf16.vlgmr.msra.gmra.mrb[192].mxu1 %v13808_v54 }
 0x8b2   :  { %8633 = vmatpush1.bf16.msra.mxu1 %v10070_v44  ;;  %9743 = vmatprep.mubr.msk.bf16.mxu1 %vm28_vm0, %v13812_v56  ;;  %7565 = vst.msk [vmem:[#allocation3 + $0x110] sm:$0xff] %vm28_vm0, %v7547_v1 }
 0x8b3   :  { %8634 = vmatprep.subr.bf16.mxu1 %v10119_v10  ;;  %7672 = vrot.lane.b32.xlu1 %v7619_v45, %s10120_s26 }
 0x8b6   :  { %8635 = vmatpush1.bf16.msra.mxu1 %v10072_v32 }
 0x8b7   :  { %8636 = vmatprep.subr.bf16.mxu1 %v10119_v10  ;;  %v13970_v42 = vld [vmem:[#allocation3 + $0x108] sm:$0xff] }
 0x8b8   :  { %v7645_v21 = vpop.permute.xlu0 %7644  ;;  %v13825_v19 = vld [vmem:[#allocation3 + $0x20] sm:$0xff] }
 0x8b9   :  { %7695 = vst.msk [vmem:[#allocation3 + $0x30] sm:$0xff] %vm337_vm1, %v7645_v21  ;;  %8055 = vmatmul.mubr.bf16.gmra.mrb[196].mxu1 %v13825_v19 }
 0x8ba   :  { %9744 = vmatprep.mubr.msk.bf16.mxu1 %vm28_vm0, %v13829_v2  ;;  %8637 = vmatpush1.bf16.msra.mxu1 %v10074_v40 }
 0x8bb   :  { %8638 = vmatprep.subr.bf16.mxu1 %v10119_v10 }
 0x8be   :  { %8639 = vmatpush1.bf16.msra.mxu1 %v10076_v57 }
 0x8bf   :  { %8640 = vmatprep.subr.bf16.mxu1 %v10119_v10 }
 0x8c0   :  { %v7647_v58 = vpop.permute.xlu1 %7646  ;;  %v13841_v6 = vld [vmem:[#allocation3 + $0x30] sm:$0xff] }
 0x8c1   :  { %7696 = vst.msk [vmem:[#allocation3 + $0x40] sm:$0xff] %vm337_vm1, %v7647_v58  ;;  %8063 = vmatmul.mubr.bf16.gmra.mrb[200].mxu1 %v13841_v6 }
 0x8c2   :  { %9745 = vmatprep.mubr.msk.bf16.mxu1 %vm28_vm0, %v13845_v36  ;;  %8641 = vmatpush1.bf16.msra.mxu1 %v10078_v15 }
 0x8c3   :  { %8642 = vmatprep.subr.bf16.mxu1 %v10119_v10 }
 0x8c6   :  { %8643 = vmatpush1.bf16.msra.mxu1 %v10080_v50 }
 0x8c7   :  { %8644 = vmatprep.subr.bf16.mxu1 %v10119_v10 }
 0x8c8   :  { %v7649_v63 = vpop.permute.xlu0 %7648  ;;  %v13857_v0 = vld [vmem:[#allocation3 + $0x40] sm:$0xff] }
 0x8c9   :  { %7697 = vst.msk [vmem:[#allocation3 + $0x50] sm:$0xff] %vm337_vm1, %v7649_v63  ;;  %8071 = vmatmul.mubr.bf16.gmra.mrb[204].mxu1 %v13857_v0 }
 0x8ca   :  { %9746 = vmatprep.mubr.msk.bf16.mxu1 %vm28_vm0, %v13861_v4  ;;  %8645 = vmatpush1.bf16.msra.mxu1 %v10082_v13 }
 0x8cb   :  { %8646 = vmatprep.subr.bf16.mxu1 %v10119_v10 }
 0x8ce   :  { %8647 = vmatpush1.bf16.msra.mxu1 %v10084_v22 }
 0x8cf   :  { %8648 = vmatprep.subr.bf16.mxu1 %v10119_v10 }
 0x8d0   :  { %v7651_v23 = vpop.permute.xlu1 %7650  ;;  %v13873_v28 = vld [vmem:[#allocation3 + $0x50] sm:$0xff] }
 0x8d1   :  { %7698 = vst.msk [vmem:[#allocation3 + $0x60] sm:$0xff] %vm337_vm1, %v7651_v23  ;;  %8079 = vmatmul.mubr.bf16.gmra.mrb[208].mxu1 %v13873_v28 }
 0x8d2   :  { %9747 = vmatprep.mubr.msk.bf16.mxu1 %vm28_vm0, %v13877_v62  ;;  %8649 = vmatpush1.bf16.msra.mxu1 %v10086_v52 }
 0x8d3   :  { %8650 = vmatprep.subr.bf16.mxu1 %v10119_v10 }
 0x8d6   :  { %8651 = vmatpush1.bf16.msra.mxu1 %v10088_v51 }
 0x8d7   :  { %8652 = vmatprep.subr.bf16.mxu1 %v10119_v10 }
 0x8d8   :  { %v7653_v17 = vpop.permute.xlu0 %7652  ;;  %v13889_v49 = vld [vmem:[#allocation3 + $0x60] sm:$0xff] }
 0x8d9   :  { %7699 = vst.msk [vmem:[#allocation3 + $0x70] sm:$0xff] %vm337_vm1, %v7653_v17  ;;  %8087 = vmatmul.mubr.bf16.gmra.mrb[212].mxu1 %v13889_v49 }
 0x8da   :  { %9748 = vmatprep.mubr.msk.bf16.mxu1 %vm28_vm0, %v13893_v33  ;;  %8653 = vmatpush1.bf16.msra.mxu1 %v10090_v9 }
 0x8db   :  { %8654 = vmatprep.subr.bf16.mxu1 %v10119_v10  ;;  %v13913_v10 = vld [vmem:[#allocation3 + $0x98] sm:$0xff] }
 0x8de   :  { %8655 = vmatpush1.bf16.msra.mxu1 %v10092_v5 }
 0x8e0   :  { %v7655_v61 = vpop.permute.xlu1 %7654  ;;  %v13901_v48 = vld [vmem:[#allocation3 + $0x70] sm:$0xff] }
 0x8e1   :  { %7700 = vst.msk [vmem:[#allocation3 + $0x80] sm:$0xff] %vm337_vm1, %v7655_v61  ;;  %8095 = vmatmul.mubr.bf16.gmra.mrb[216].mxu1 %v13901_v48 }
 0x8e2   :  { %9749 = vmatprep.mubr.msk.bf16.mxu1 %vm28_vm0, %v13905_v18 }
 0x8e8   :  { %v7657_v7 = vpop.permute.xlu0 %7656  ;;  %v13909_v24 = vld [vmem:[#allocation3 + $0x80] sm:$0xff] }
 0x8e9   :  { %7701 = vst.msk [vmem:[#allocation3 + $0x90] sm:$0xff] %vm337_vm1, %v7657_v7  ;;  %8103 = vmatmul.mubr.bf16.gmra.mrb[220].mxu1 %v13909_v24 }
 0x8ea   :  { %9750 = vmatprep.mubr.msk.bf16.mxu1 %vm28_vm0, %v13913_v10 }
 0x8f0   :  { %v7659_v43 = vpop.permute.xlu1 %7658  ;;  %v13917_v41 = vld [vmem:[#allocation3 + $0x90] sm:$0xff] }
 0x8f1   :  { %7702 = vst.msk [vmem:[#allocation3 + $0xa0] sm:$0xff] %vm337_vm1, %v7659_v43  ;;  %8111 = vmatmul.mubr.bf16.gmra.mrb[224].mxu1 %v13917_v41 }
 0x8f2   :  { %9751 = vmatprep.mubr.msk.bf16.mxu1 %vm28_vm0, %v13921_v47 }
 0x8f8   :  { %v7661_v11 = vpop.permute.xlu0 %7660  ;;  %v13925_v59 = vld [vmem:[#allocation3 + $0xa0] sm:$0xff] }
 0x8f9   :  { %7703 = vst.msk [vmem:[#allocation3 + $0xb0] sm:$0xff] %vm337_vm1, %v7661_v11  ;;  %8119 = vmatmul.mubr.bf16.gmra.mrb[228].mxu1 %v13925_v59 }
 0x8fa   :  { %9752 = vmatprep.mubr.msk.bf16.mxu1 %vm28_vm0, %v13929_v55 }
 0x900   :  { %v7663_v31 = vpop.permute.xlu1 %7662  ;;  %v13933_v14 = vld [vmem:[#allocation3 + $0xb0] sm:$0xff] }
 0x901   :  { %7704 = vst.msk [vmem:[#allocation3 + $0xc0] sm:$0xff] %vm337_vm1, %v7663_v31  ;;  %8127 = vmatmul.mubr.bf16.gmra.mrb[232].mxu1 %v13933_v14 }
 0x902   :  { %9753 = vmatprep.mubr.msk.bf16.mxu1 %vm28_vm0, %v13937_v39 }
 0x908   :  { %v7665_v38 = vpop.permute.xlu0 %7664  ;;  %v13941_v20 = vld [vmem:[#allocation3 + $0xc0] sm:$0xff] }
 0x909   :  { %7705 = vst.msk [vmem:[#allocation3 + $0xd0] sm:$0xff] %vm337_vm1, %v7665_v38  ;;  %8135 = vmatmul.mubr.bf16.gmra.mrb[236].mxu1 %v13941_v20 }
 0x90a   :  { %9754 = vmatprep.mubr.msk.bf16.mxu1 %vm28_vm0, %v13945_v3 }
 0x910   :  { %v7667_v27 = vpop.permute.xlu1 %7666  ;;  %v13949_v37 = vld [vmem:[#allocation3 + $0xd0] sm:$0xff] }
 0x911   :  { %7706 = vst.msk [vmem:[#allocation3 + $0xe0] sm:$0xff] %vm337_vm1, %v7667_v27  ;;  %8143 = vmatmul.mubr.bf16.gmra.mrb[240].mxu1 %v13949_v37 }
 0x912   :  { %9755 = vmatprep.mubr.msk.bf16.mxu1 %vm28_vm0, %v13953_v46 }
 0x918   :  { %v7669_v60 = vpop.permute.xlu0 %7668  ;;  %v13957_v12 = vld [vmem:[#allocation3 + $0xe0] sm:$0xff] }
 0x919   :  { %7707 = vst.msk [vmem:[#allocation3 + $0xf0] sm:$0xff] %vm337_vm1, %v7669_v60  ;;  %8151 = vmatmul.mubr.bf16.gmra.mrb[244].mxu1 %v13957_v12 }
 0x91a   :  { %9756 = vmatprep.mubr.msk.bf16.mxu1 %vm28_vm0, %v13961_v26 }
 0x91c   :  { %v7639_v53 = vpop.permute.xlu0 %7638 }
 0x91d   :  { %7692 = vst.msk [vmem:[#allocation3] sm:$0xff] %vm337_vm1, %v7639_v53 }
 0x920   :  { %v7671_v8 = vpop.permute.xlu1 %7670  ;;  %v13966_v34 = vld [vmem:[#allocation3 + $0xf0] sm:$0xff] }
 0x921   :  { %7708 = vst.msk [vmem:[#allocation3 + $0x100] sm:$0xff] %vm337_vm1, %v7671_v8  ;;  %8159 = vmatmul.mubr.bf16.gmra.mrb[248].mxu1 %v13966_v34 }
 0x922   :  { %9757 = vmatprep.mubr.msk.bf16.mxu1 %vm28_vm0, %v13970_v42 }
 0x924   :  { %v7782_v25 = vld [vmem:[#allocation3] sm:$0xff] }
 0x925   :  { %8328 = vmatmul.mubr.bf16.vlgmr.msra.gmra.mrb[0].mxu0 %v7782_v25  ;;  %v7673_v44 = vpop.permute.xlu1 %7672 }
 0x926   :  { %9771 = vmatprep.mubr.msk.bf16.mxu0 %vm28_vm0, %v7785_v35  ;;  %7709 = vst.msk [vmem:[#allocation3 + $0x110] sm:$0xff] %vm337_vm1, %v7673_v44 }
 0x928   :  { %v13977_v45 = vld [vmem:[#allocation3 + $0x100] sm:$0xff] }
 0x929   :  { %8167 = vmatmul.mubr.bf16.gmra.mrb[252].mxu1 %v13977_v45 }
 0x92a   :  { %9822 = vmatprep.mubr.msk.bf16.mxu1 %vm28_vm0, %v13812_v56 }
 0x92d   :  { %8336 = vmatmul.mubr.bf16.gmra.mrb[4].mxu0 %v13808_v54  ;;  %v8486_v23 = vld [vmem:[#allocation3 + $0x110] sm:$0xff] }
 0x92e   :  { %9772 = vmatprep.mubr.msk.bf16.mxu0 %vm28_vm0, %v13812_v56 }
 0x931   :  { %8665 = vmatmul.mubr.bf16.vlgmr.msra.gmra.mrb[0].mxu1 %v13825_v19 }
 0x932   :  { %9823 = vmatprep.mubr.msk.bf16.mxu1 %vm28_vm0, %v13829_v2 }
 0x935   :  { %8344 = vmatmul.mubr.bf16.gmra.mrb[8].mxu0 %v13825_v19 }
 0x936   :  { %9773 = vmatprep.mubr.msk.bf16.mxu0 %vm28_vm0, %v13829_v2 }
 0x939   :  { %8673 = vmatmul.mubr.bf16.gmra.mrb[4].mxu1 %v13841_v6 }
 0x93a   :  { %9824 = vmatprep.mubr.msk.bf16.mxu1 %vm28_vm0, %v13845_v36 }
 0x93d   :  { %8352 = vmatmul.mubr.bf16.gmra.mrb[12].mxu0 %v13841_v6 }
 0x93e   :  { %9774 = vmatprep.mubr.msk.bf16.mxu0 %vm28_vm0, %v13845_v36 }
 0x941   :  { %8681 = vmatmul.mubr.bf16.gmra.mrb[8].mxu1 %v13857_v0 }
 0x942   :  { %9825 = vmatprep.mubr.msk.bf16.mxu1 %vm28_vm0, %v13861_v4 }
 0x945   :  { %8360 = vmatmul.mubr.bf16.gmra.mrb[16].mxu0 %v13857_v0  ;;  %v8487_v0 = vld [vmem:[#allocation3 + $0x118] sm:$0xff] }
 0x946   :  { %9775 = vmatprep.mubr.msk.bf16.mxu0 %vm28_vm0, %v13861_v4 }
 0x949   :  { %8689 = vmatmul.mubr.bf16.gmra.mrb[12].mxu1 %v13873_v28 }
 0x94a   :  { %9826 = vmatprep.mubr.msk.bf16.mxu1 %vm28_vm0, %v13877_v62 }
 0x94d   :  { %8368 = vmatmul.mubr.bf16.gmra.mrb[20].mxu0 %v13873_v28 }
 0x94e   :  { %9776 = vmatprep.mubr.msk.bf16.mxu0 %vm28_vm0, %v13877_v62 }
 0x951   :  { %8697 = vmatmul.mubr.bf16.gmra.mrb[16].mxu1 %v13889_v49 }
 0x952   :  { %9827 = vmatprep.mubr.msk.bf16.mxu1 %vm28_vm0, %v13893_v33 }
 0x955   :  { %8376 = vmatmul.mubr.bf16.gmra.mrb[24].mxu0 %v13889_v49 }
 0x956   :  { %9777 = vmatprep.mubr.msk.bf16.mxu0 %vm28_vm0, %v13893_v33 }
 0x959   :  { %8705 = vmatmul.mubr.bf16.gmra.mrb[20].mxu1 %v13901_v48 }
 0x95a   :  { %9828 = vmatprep.mubr.msk.bf16.mxu1 %vm28_vm0, %v13905_v18 }
 0x95d   :  { %8384 = vmatmul.mubr.bf16.gmra.mrb[28].mxu0 %v13901_v48 }
 0x95e   :  { %9778 = vmatprep.mubr.msk.bf16.mxu0 %vm28_vm0, %v13905_v18 }
 0x961   :  { %8713 = vmatmul.mubr.bf16.gmra.mrb[24].mxu1 %v13909_v24 }
 0x962   :  { %9829 = vmatprep.mubr.msk.bf16.mxu1 %vm28_vm0, %v13913_v10 }
 0x965   :  { %8392 = vmatmul.mubr.bf16.gmra.mrb[32].mxu0 %v13909_v24 }
 0x966   :  { %9779 = vmatprep.mubr.msk.bf16.mxu0 %vm28_vm0, %v13913_v10 }
 0x969   :  { %8721 = vmatmul.mubr.bf16.gmra.mrb[28].mxu1 %v13917_v41 }
 0x96a   :  { %9830 = vmatprep.mubr.msk.bf16.mxu1 %vm28_vm0, %v13921_v47 }
 0x96d   :  { %8400 = vmatmul.mubr.bf16.gmra.mrb[36].mxu0 %v13917_v41 }
 0x96e   :  { %9780 = vmatprep.mubr.msk.bf16.mxu0 %vm28_vm0, %v13921_v47 }
 0x971   :  { %8729 = vmatmul.mubr.bf16.gmra.mrb[32].mxu1 %v13925_v59 }
 0x972   :  { %9831 = vmatprep.mubr.msk.bf16.mxu1 %vm28_vm0, %v13929_v55 }
 0x975   :  { %8408 = vmatmul.mubr.bf16.gmra.mrb[40].mxu0 %v13925_v59 }
 0x976   :  { %9781 = vmatprep.mubr.msk.bf16.mxu0 %vm28_vm0, %v13929_v55 }
 0x979   :  { %8737 = vmatmul.mubr.bf16.gmra.mrb[36].mxu1 %v13933_v14 }
 0x97a   :  { %9832 = vmatprep.mubr.msk.bf16.mxu1 %vm28_vm0, %v13937_v39 }
 0x97d   :  { %8416 = vmatmul.mubr.bf16.gmra.mrb[44].mxu0 %v13933_v14 }
 0x97e   :  { %9782 = vmatprep.mubr.msk.bf16.mxu0 %vm28_vm0, %v13937_v39 }
 0x981   :  { %8745 = vmatmul.mubr.bf16.gmra.mrb[40].mxu1 %v13941_v20 }
 0x982   :  { %9833 = vmatprep.mubr.msk.bf16.mxu1 %vm28_vm0, %v13945_v3 }
 0x984   :  { %v14048_v29 = vpop.f32.mrb[192].mxu1 }
 0x985   :  { %v8050_v54 = vpop.f32.mrb[193].mxu1  ;;  %8424 = vmatmul.mubr.bf16.gmra.mrb[48].mxu0 %v13941_v20 }
 0x986   :  { %v14051_v56 = vpop.f32.mrb[194].mxu1  ;;  %9783 = vmatprep.mubr.msk.bf16.mxu0 %vm28_vm0, %v13945_v3 }
 0x987   :  { %v8053_v32 = vpop.f32.mrb[195].mxu1 }
 0x989   :  { %8753 = vmatmul.mubr.bf16.gmra.mrb[44].mxu1 %v13949_v37 }
 0x98a   :  { %9834 = vmatprep.mubr.msk.bf16.mxu1 %vm28_vm0, %v13953_v46 }
 0x98c   :  { %v14058_v40 = vpop.f32.mrb[196].mxu1 }
 0x98d   :  { %v8058_v21 = vpop.f32.mrb[197].mxu1  ;;  %8432 = vmatmul.mubr.bf16.gmra.mrb[52].mxu0 %v13949_v37 }
 0x98e   :  { %v14061_v19 = vpop.f32.mrb[198].mxu1  ;;  %9784 = vmatprep.mubr.msk.bf16.mxu0 %vm28_vm0, %v13953_v46 }
 0x98f   :  { %v8061_v2 = vpop.f32.mrb[199].mxu1 }
 0x991   :  { %8761 = vmatmul.mubr.bf16.gmra.mrb[48].mxu1 %v13957_v12 }
 0x992   :  { %9835 = vmatprep.mubr.msk.bf16.mxu1 %vm28_vm0, %v13961_v26 }
 0x994   :  { %v14068_v57 = vpop.f32.mrb[200].mxu1 }
 0x995   :  { %v8066_v15 = vpop.f32.mrb[201].mxu1  ;;  %8440 = vmatmul.mubr.bf16.gmra.mrb[56].mxu0 %v13957_v12 }
 0x996   :  { %v14071_v58 = vpop.f32.mrb[202].mxu1  ;;  %9785 = vmatprep.mubr.msk.bf16.mxu0 %vm28_vm0, %v13961_v26 }
 0x997   :  { %v8069_v6 = vpop.f32.mrb[203].mxu1 }
 0x999   :  { %8769 = vmatmul.mubr.bf16.gmra.mrb[52].mxu1 %v13966_v34 }
 0x99a   :  { %9836 = vmatprep.mubr.msk.bf16.mxu1 %vm28_vm0, %v13970_v42 }
 0x99c   :  { %v14078_v36 = vpop.f32.mrb[204].mxu1 }
 0x99d   :  { %v8074_v50 = vpop.f32.mrb[205].mxu1  ;;  %8448 = vmatmul.mubr.bf16.gmra.mrb[60].mxu0 %v13966_v34 }
 0x99e   :  { %v14081_v13 = vpop.f32.mrb[206].mxu1 }
 0x99f   :  { %v8077_v63 = vpop.f32.mrb[207].mxu1 }
 0x9a1   :  { %8777 = vmatmul.mubr.bf16.gmra.mrb[56].mxu1 %v13977_v45 }
 0x9a2   :  { %9837 = vmatprep.mubr.msk.bf16.mxu1 %vm28_vm0, %v8487_v0 }
 0x9a4   :  { %v14085_v4 = vpop.f32.mrb[208].mxu1 }
 0x9a5   :  { %v8082_v22 = vpop.f32.mrb[209].mxu1 }
 0x9a6   :  { %v14087_v52 = vpop.f32.mrb[210].mxu1 }
 0x9a7   :  { %v8085_v28 = vpop.f32.mrb[211].mxu1 }
 0x9a9   :  { %8785 = vmatmul.mubr.bf16.gmra.mrb[60].mxu1 %v8486_v23 }
 0x9ac   :  { %v14089_v62 = vpop.f32.mrb[212].mxu1 }
 0x9ad   :  { %v8090_v51 = vpop.f32.mrb[213].mxu1 }
 0x9ae   :  { %v14091_v9 = vpop.f32.mrb[214].mxu1 }
 0x9af   :  { %v8093_v17 = vpop.f32.mrb[215].mxu1 }
 0x9b4   :  { %v14093_v49 = vpop.f32.mrb[216].mxu1 }
 0x9b5   :  { %v8098_v33 = vpop.f32.mrb[217].mxu1 }
 0x9b6   :  { %v14095_v5 = vpop.f32.mrb[218].mxu1 }
 0x9b7   :  { %v8101_v61 = vpop.f32.mrb[219].mxu1 }
 0x9bc   :  { %v14097_v48 = vpop.f32.mrb[220].mxu1 }
 0x9bd   :  { %v8106_v18 = vpop.f32.mrb[221].mxu1 }
 0x9be   :  { %v14099_v7 = vpop.f32.mrb[222].mxu1 }
 0x9bf   :  { %v8109_v24 = vpop.f32.mrb[223].mxu1 }
 0x9c4   :  { %v14101_v10 = vpop.f32.mrb[224].mxu1 }
 0x9c5   :  { %v8114_v43 = vpop.f32.mrb[225].mxu1 }
 0x9c6   :  { %v14103_v41 = vpop.f32.mrb[226].mxu1 }
 0x9c7   :  { %v8117_v47 = vpop.f32.mrb[227].mxu1 }
 0x9cc   :  { %v14105_v11 = vpop.f32.mrb[228].mxu1 }
 0x9cd   :  { %v8122_v59 = vpop.f32.mrb[229].mxu1 }
 0x9ce   :  { %v14107_v55 = vpop.f32.mrb[230].mxu1 }
 0x9cf   :  { %v8125_v31 = vpop.f32.mrb[231].mxu1 }
 0x9d4   :  { %v14109_v14 = vpop.f32.mrb[232].mxu1 }
 0x9d5   :  { %v8130_v39 = vpop.f32.mrb[233].mxu1 }
 0x9d6   :  { %v14111_v38 = vpop.f32.mrb[234].mxu1 }
 0x9d7   :  { %v8133_v20 = vpop.f32.mrb[235].mxu1 }
 0x9dc   :  { %v14113_v3 = vpop.f32.mrb[236].mxu1 }
 0x9dd   :  { %v8138_v27 = vpop.f32.mrb[237].mxu1 }
 0x9de   :  { %v14115_v37 = vpop.f32.mrb[238].mxu1  ;;  %v9840_v27 = vld [vmem:[%s14342_s0 + $0x108] sm:$0xff] }
 0x9df   :  { %v8141_v46 = vpop.f32.mrb[239].mxu1 }
 0x9e4   :  { %v14117_v60 = vpop.f32.mrb[240].mxu1 }
 0x9e5   :  { %v8146_v12 = vpop.f32.mrb[241].mxu1 }
 0x9e6   :  { %v14119_v26 = vpop.f32.mrb[242].mxu1 }
 0x9e7   :  { %v8149_v53 = vpop.f32.mrb[243].mxu1 }
 0x9ec   :  { %v14121_v30 = vpop.f32.mrb[244].mxu1 }
 0x9ed   :  { %v8154_v16 = vpop.f32.mrb[245].mxu1 }
 0x9ee   :  { %v14123_v1 = vpop.f32.mrb[246].mxu1 }
 0x9ef   :  { %v8157_v8 = vpop.f32.mrb[247].mxu1 }
 0x9f4   :  { %v14125_v34 = vpop.f32.mrb[248].mxu1 }
 0x9f5   :  { %v8162_v42 = vpop.f32.mrb[249].mxu1 }
 0x9f6   :  { %v14127_v25 = vpop.f32.mrb[250].mxu1 }
 0x9f7   :  { %v8165_v35 = vpop.f32.mrb[251].mxu1 }
 0x9f8   :  { %v8329_v44 = vpop.f32.mrb[0].mxu0 }
 0x9f9   :  { %v8330_v45 = vadd.f32 %v8329_v44, %v14048_v29  ;;  %v8331_v54 = vpop.f32.mrb[1].mxu0 }
 0x9fa   :  { %v8332_v32 = vpop.f32.mrb[2].mxu0 }
 0x9fb   :  { %v8333_v21 = vadd.f32 %v8332_v32, %v14051_v56  ;;  %v8334_v2 = vpop.f32.mrb[3].mxu0  ;;  %v14140_v56 = vld [vmem:[%s14348_s6] ss:$0 sm:$0xff] }
 0x9fc   :  { %v14131_v15 = vpop.f32.mrb[252].mxu1  ;;  %v9841_v2 = vld [vmem:[%s14342_s0 + $0x110] sm:$0xff] }
 0x9fd   :  { %v8170_v6 = vpop.f32.mrb[253].mxu1 }
 0x9fe   :  { %v14133_v50 = vpop.f32.mrb[254].mxu1 }
 0x9ff   :  { %v8173_v63 = vpop.f32.mrb[255].mxu1 }
 0xa00   :  { %v8337_v0 = vpop.f32.mrb[4].mxu0 }
 0xa01   :  { %v8338_v22 = vadd.f32 %v8337_v0, %v14058_v40  ;;  %v8339_v23 = vpop.f32.mrb[5].mxu0  ;;  %v9839_v40 = vld [vmem:[%s14342_s0 + $0x100] sm:$0xff] }
 0xa02   :  { %v8340_v28 = vpop.f32.mrb[6].mxu0 }
 0xa03   :  { %v8341_v51 = vadd.f32 %v8340_v28, %v14061_v19  ;;  %v8342_v17 = vpop.f32.mrb[7].mxu0 }
 0xa04   :  { %v8666_v29 = vpop.f32.mrb[0].mxu1 }
 0xa05   :  { %v8793_v33 = vadd.f32 %v8666_v29, %v8330_v45  ;;  %v8668_v61 = vpop.f32.mrb[1].mxu1 }
 0xa06   :  { %v8669_v18 = vpop.f32.mrb[2].mxu1 }
 0xa07   :  { %v8832_v24 = vadd.f32 %v14140_v56, %v8793_v33  ;;  %v8794_v43 = vadd.f32 %v8669_v18, %v8333_v21  ;;  %v8671_v47 = vpop.f32.mrb[3].mxu1 }
 0xa08   :  { %v8345_v59 = vpop.f32.mrb[8].mxu0 }
 0xa09   :  { %v8864_v19 = vmax.f32 %v8832_v24, 0.0  ;;  %v8833_v31 = vadd.f32 %v14140_v56, %v8794_v43  ;;  %v8346_v39 = vadd.f32 %v8345_v59, %v14068_v57  ;;  %v8347_v20 = vpop.f32.mrb[9].mxu0 }
 0xa0a   :  { %v8348_v46 = vpop.f32.mrb[10].mxu0 }
 0xa0b   :  { %v8928_v12 = vadd.f32 %v9839_v40, %v8864_v19  ;;  %v8865_v53 = vmax.f32 %v8833_v31, 0.0  ;;  %v8349_v16 = vadd.f32 %v8348_v46, %v14071_v58  ;;  %v8350_v8 = vpop.f32.mrb[11].mxu0  ;;  %v9843_v19 = vld [vmem:[%s14342_s0 + $0x120] sm:$0xff] }
 0xa0c   :  { %v8674_v42 = vpop.f32.mrb[4].mxu1 }
 0xa0d   :  { %8961 = vst.msk [vmem:[#allocation4 + $0x100] sm:$0xff] %vm28_vm0, %v8928_v12  ;;  %v8929_v35 = vadd.f32 %v9840_v27, %v8865_v53  ;;  %v8795_v44 = vadd.f32 %v8674_v42, %v8338_v22  ;;  %v8676_v45 = vpop.f32.mrb[5].mxu1  ;;  %v9842_v22 = vld [vmem:[%s14342_s0 + $0x118] sm:$0xff] }
 0xa0e   :  { %v8677_v54 = vpop.f32.mrb[6].mxu1 }
 0xa0f   :  { %8962 = vst.msk [vmem:[#allocation4 + $0x108] sm:$0xff] %vm28_vm0, %v8929_v35  ;;  %v8834_v57 = vadd.f32 %v14140_v56, %v8795_v44  ;;  %v8796_v32 = vadd.f32 %v8677_v54, %v8341_v51  ;;  %v8679_v21 = vpop.f32.mrb[7].mxu1 }
 0xa10   :  { %v8353_v6 = vpop.f32.mrb[12].mxu0 }
 0xa11   :  { %v8866_v58 = vmax.f32 %v8834_v57, 0.0  ;;  %v8835_v63 = vadd.f32 %v14140_v56, %v8796_v32  ;;  %v8354_v0 = vadd.f32 %v8353_v6, %v14078_v36  ;;  %v8355_v23 = vpop.f32.mrb[13].mxu0 }
 0xa12   :  { %v8356_v28 = vpop.f32.mrb[14].mxu0 }
 0xa13   :  { %v8930_v17 = vadd.f32 %v9841_v2, %v8866_v58  ;;  %v8867_v29 = vmax.f32 %v8835_v63, 0.0  ;;  %v8357_v51 = vadd.f32 %v8356_v28, %v14081_v13  ;;  %v8358_v33 = vpop.f32.mrb[15].mxu0  ;;  %v9845_v2 = vld [vmem:[%s14342_s0 + $0x130] sm:$0xff] }
 0xa14   :  { %v8682_v61 = vpop.f32.mrb[8].mxu1 }
 0xa15   :  { %8963 = vst.msk [vmem:[#allocation4 + $0x110] sm:$0xff] %vm28_vm0, %v8930_v17  ;;  %v8931_v18 = vadd.f32 %v9842_v22, %v8867_v29  ;;  %v8797_v24 = vadd.f32 %v8682_v61, %v8346_v39  ;;  %v8684_v43 = vpop.f32.mrb[9].mxu1  ;;  %v9844_v39 = vld [vmem:[%s14342_s0 + $0x128] sm:$0xff] }
 0xa16   :  { %v8685_v47 = vpop.f32.mrb[10].mxu1 }
 0xa17   :  { %8964 = vst.msk [vmem:[#allocation4 + $0x118] sm:$0xff] %vm28_vm0, %v8931_v18  ;;  %v8836_v36 = vadd.f32 %v14140_v56, %v8797_v24  ;;  %v8798_v40 = vadd.f32 %v8685_v47, %v8349_v16  ;;  %v8687_v59 = vpop.f32.mrb[11].mxu1 }
 0xa18   :  { %v8361_v31 = vpop.f32.mrb[16].mxu0 }
 0xa19   :  { %v8868_v13 = vmax.f32 %v8836_v36, 0.0  ;;  %v8837_v20 = vadd.f32 %v14140_v56, %v8798_v40  ;;  %v8362_v27 = vadd.f32 %v8361_v31, %v14085_v4  ;;  %v8363_v46 = vpop.f32.mrb[17].mxu0  ;;  %v9847_v40 = vld [vmem:[%s14342_s0 + $0x140] sm:$0xff] }
 0xa1a   :  { %v8364_v12 = vpop.f32.mrb[18].mxu0 }
 0xa1b   :  { %v8932_v53 = vadd.f32 %v9843_v19, %v8868_v13  ;;  %v8869_v8 = vmax.f32 %v8837_v20, 0.0  ;;  %v8365_v16 = vadd.f32 %v8364_v12, %v14087_v52  ;;  %v8366_v42 = vpop.f32.mrb[19].mxu0  ;;  %v9848_v20 = vld [vmem:[%s14342_s0 + $0x148] sm:$0xff] }
 0xa1c   :  { %v8690_v35 = vpop.f32.mrb[12].mxu1 }
 0xa1d   :  { %8965 = vst.msk [vmem:[#allocation4 + $0x120] sm:$0xff] %vm28_vm0, %v8932_v53  ;;  %v8933_v44 = vadd.f32 %v9844_v39, %v8869_v8  ;;  %v8799_v45 = vadd.f32 %v8690_v35, %v8354_v0  ;;  %v8692_v54 = vpop.f32.mrb[13].mxu1  ;;  %v9846_v0 = vld [vmem:[%s14342_s0 + $0x138] sm:$0xff] }
 0xa1e   :  { %v8693_v57 = vpop.f32.mrb[14].mxu1 }
 0xa1f   :  { %8966 = vst.msk [vmem:[#allocation4 + $0x128] sm:$0xff] %vm28_vm0, %v8933_v44  ;;  %v8838_v4 = vadd.f32 %v14140_v56, %v8799_v45  ;;  %v8800_v32 = vadd.f32 %v8693_v57, %v8357_v51  ;;  %v8695_v21 = vpop.f32.mrb[15].mxu1  ;;  %v9849_v57 = vld [vmem:[%s14342_s0 + $0x150] sm:$0xff] }
 0xa20   :  { %v8369_v6 = vpop.f32.mrb[20].mxu0 }
 0xa21   :  { %v8870_v52 = vmax.f32 %v8838_v4, 0.0  ;;  %v8839_v58 = vadd.f32 %v14140_v56, %v8800_v32  ;;  %v8370_v63 = vadd.f32 %v8369_v6, %v14089_v62  ;;  %v8371_v23 = vpop.f32.mrb[21].mxu0  ;;  %v9850_v6 = vld [vmem:[%s14342_s0 + $0x158] sm:$0xff] }
 0xa22   :  { %v8372_v22 = vpop.f32.mrb[22].mxu0 }
 0xa23   :  { %v8934_v28 = vadd.f32 %v9845_v2, %v8870_v52  ;;  %v8871_v17 = vmax.f32 %v8839_v58, 0.0  ;;  %v8373_v29 = vadd.f32 %v8372_v22, %v14091_v9  ;;  %v8374_v51 = vpop.f32.mrb[23].mxu0 }
 0xa24   :  { %v8698_v33 = vpop.f32.mrb[16].mxu1 }
 0xa25   :  { %8967 = vst.msk [vmem:[#allocation4 + $0x130] sm:$0xff] %vm28_vm0, %v8934_v28  ;;  %v8935_v61 = vadd.f32 %v9846_v0, %v8871_v17  ;;  %v8801_v18 = vadd.f32 %v8698_v33, %v8362_v27  ;;  %v8700_v24 = vpop.f32.mrb[17].mxu1 }
 0xa26   :  { %v8701_v43 = vpop.f32.mrb[18].mxu1 }
 0xa27   :  { %8968 = vst.msk [vmem:[#allocation4 + $0x138] sm:$0xff] %vm28_vm0, %v8935_v61  ;;  %v8840_v62 = vadd.f32 %v14140_v56, %v8801_v18  ;;  %v8802_v47 = vadd.f32 %v8701_v43, %v8365_v16  ;;  %v8703_v36 = vpop.f32.mrb[19].mxu1  ;;  %v9851_v18 = vld [vmem:[%s14342_s0 + $0x160] sm:$0xff] }
 0xa28   :  { %v8377_v59 = vpop.f32.mrb[24].mxu0  ;;  %v9852_v36 = vld [vmem:[%s14342_s0 + $0x168] sm:$0xff] }
 0xa29   :  { %v8872_v9 = vmax.f32 %v8840_v62, 0.0  ;;  %v8841_v19 = vadd.f32 %v14140_v56, %v8802_v47  ;;  %v8378_v31 = vadd.f32 %v8377_v59, %v14093_v49  ;;  %v8379_v13 = vpop.f32.mrb[25].mxu0 }
 0xa2a   :  { %v8380_v27 = vpop.f32.mrb[26].mxu0 }
 0xa2b   :  { %v8936_v46 = vadd.f32 %v9847_v40, %v8872_v9  ;;  %v8873_v39 = vmax.f32 %v8841_v19, 0.0  ;;  %v8381_v12 = vadd.f32 %v8380_v27, %v14095_v5  ;;  %v8382_v53 = vpop.f32.mrb[27].mxu0 }
 0xa2c   :  { %v8706_v8 = vpop.f32.mrb[20].mxu1 }
 0xa2d   :  { %8969 = vst.msk [vmem:[#allocation4 + $0x140] sm:$0xff] %vm28_vm0, %v8936_v46  ;;  %v8937_v16 = vadd.f32 %v9848_v20, %v8873_v39  ;;  %v8803_v42 = vadd.f32 %v8706_v8, %v8370_v63  ;;  %v8708_v35 = vpop.f32.mrb[21].mxu1  ;;  %v9853_v8 = vld [vmem:[%s14342_s0 + $0x170] sm:$0xff] }
 0xa2e   :  { %v8709_v44 = vpop.f32.mrb[22].mxu1 }
 0xa2f   :  { %8970 = vst.msk [vmem:[#allocation4 + $0x148] sm:$0xff] %vm28_vm0, %v8937_v16  ;;  %v8842_v49 = vadd.f32 %v14140_v56, %v8803_v42  ;;  %v8804_v45 = vadd.f32 %v8709_v44, %v8373_v29  ;;  %v8711_v54 = vpop.f32.mrb[23].mxu1 }
 0xa30   :  { %v8385_v4 = vpop.f32.mrb[28].mxu0 }
 0xa31   :  { %v8874_v5 = vmax.f32 %v8842_v49, 0.0  ;;  %v8843_v32 = vadd.f32 %v14140_v56, %v8804_v45  ;;  %v8386_v21 = vadd.f32 %v8385_v4, %v14097_v48  ;;  %v8387_v2 = vpop.f32.mrb[29].mxu0  ;;  %v9854_v49 = vld [vmem:[%s14342_s0 + $0x178] sm:$0xff] }
 0xa32   :  { %v8388_v52 = vpop.f32.mrb[30].mxu0 }
 0xa33   :  { %v8938_v58 = vadd.f32 %v9849_v57, %v8874_v5  ;;  %v8875_v63 = vmax.f32 %v8843_v32, 0.0  ;;  %v8389_v23 = vadd.f32 %v8388_v52, %v14099_v7  ;;  %v8390_v0 = vpop.f32.mrb[31].mxu0 }
 0xa34   :  { %v8714_v22 = vpop.f32.mrb[24].mxu1 }
 0xa35   :  { %8971 = vst.msk [vmem:[#allocation4 + $0x150] sm:$0xff] %vm28_vm0, %v8938_v58  ;;  %v8939_v28 = vadd.f32 %v9850_v6, %v8875_v63  ;;  %v8805_v17 = vadd.f32 %v8714_v22, %v8378_v31  ;;  %v8716_v29 = vpop.f32.mrb[25].mxu1 }
 0xa36   :  { %v8717_v51 = vpop.f32.mrb[26].mxu1  ;;  %v9856_v29 = vld [vmem:[%s14342_s0 + $0x188] sm:$0xff] }
 0xa37   :  { %8972 = vst.msk [vmem:[#allocation4 + $0x158] sm:$0xff] %vm28_vm0, %v8939_v28  ;;  %v8844_v48 = vadd.f32 %v14140_v56, %v8805_v17  ;;  %v8806_v33 = vadd.f32 %v8717_v51, %v8381_v12  ;;  %v8719_v61 = vpop.f32.mrb[27].mxu1 }
 0xa38   :  { %v8393_v24 = vpop.f32.mrb[32].mxu0 }
 0xa39   :  { %v8876_v7 = vmax.f32 %v8844_v48, 0.0  ;;  %v8845_v43 = vadd.f32 %v14140_v56, %v8806_v33  ;;  %v8394_v62 = vadd.f32 %v8393_v24, %v14101_v10  ;;  %v8395_v47 = vpop.f32.mrb[33].mxu0 }
 0xa3a   :  { %v8396_v40 = vpop.f32.mrb[34].mxu0 }
 0xa3b   :  { %v8940_v59 = vadd.f32 %v9851_v18, %v8876_v7  ;;  %v8877_v9 = vmax.f32 %v8845_v43, 0.0  ;;  %v8397_v19 = vadd.f32 %v8396_v40, %v14103_v41  ;;  %v8398_v31 = vpop.f32.mrb[35].mxu0 }
 0xa3c   :  { %v8722_v13 = vpop.f32.mrb[28].mxu1 }
 0xa3d   :  { %8973 = vst.msk [vmem:[#allocation4 + $0x160] sm:$0xff] %vm28_vm0, %v8940_v59  ;;  %v8941_v20 = vadd.f32 %v9852_v36, %v8877_v9  ;;  %v8807_v27 = vadd.f32 %v8722_v13, %v8386_v21  ;;  %v8724_v46 = vpop.f32.mrb[29].mxu1  ;;  %v9857_v59 = vld [vmem:[%s14342_s0 + $0x190] sm:$0xff] }
 0xa3e   :  { %v8725_v39 = vpop.f32.mrb[30].mxu1 }
 0xa3f   :  { %8974 = vst.msk [vmem:[#allocation4 + $0x168] sm:$0xff] %vm28_vm0, %v8941_v20  ;;  %v8846_v10 = vadd.f32 %v14140_v56, %v8807_v27  ;;  %v8808_v12 = vadd.f32 %v8725_v39, %v8389_v23  ;;  %v8727_v53 = vpop.f32.mrb[31].mxu1  ;;  %v9855_v23 = vld [vmem:[%s14342_s0 + $0x180] sm:$0xff]  ;;  %v9858_v20 = vld [vmem:[%s14342_s0 + $0x198] sm:$0xff] }
 0xa40   :  { %v8401_v16 = vpop.f32.mrb[36].mxu0 }
 0xa41   :  { %v8878_v41 = vmax.f32 %v8846_v10, 0.0  ;;  %v8847_v42 = vadd.f32 %v14140_v56, %v8808_v12  ;;  %v8402_v35 = vadd.f32 %v8401_v16, %v14105_v11  ;;  %v8403_v44 = vpop.f32.mrb[37].mxu0 }
 0xa42   :  { %v8404_v45 = vpop.f32.mrb[38].mxu0 }
 0xa43   :  { %v8942_v54 = vadd.f32 %v9853_v8, %v8878_v41  ;;  %v8879_v57 = vmax.f32 %v8847_v42, 0.0  ;;  %v8405_v4 = vadd.f32 %v8404_v45, %v14107_v55  ;;  %v8406_v5 = vpop.f32.mrb[39].mxu0 }
 0xa44   :  { %v8730_v32 = vpop.f32.mrb[32].mxu1  ;;  %v9860_v5 = vld [vmem:[%s14342_s0 + $0x1a8] sm:$0xff] }
 0xa45   :  { %8975 = vst.msk [vmem:[#allocation4 + $0x170] sm:$0xff] %vm28_vm0, %v8942_v54  ;;  %v8943_v21 = vadd.f32 %v9854_v49, %v8879_v57  ;;  %v8809_v2 = vadd.f32 %v8730_v32, %v8394_v62  ;;  %v8732_v6 = vpop.f32.mrb[33].mxu1  ;;  %v9859_v49 = vld [vmem:[%s14342_s0 + $0x1a0] sm:$0xff] }
 0xa46   :  { %v8733_v52 = vpop.f32.mrb[34].mxu1 }
 0xa47   :  { %8976 = vst.msk [vmem:[#allocation4 + $0x178] sm:$0xff] %vm28_vm0, %v8943_v21  ;;  %v8848_v11 = vadd.f32 %v14140_v56, %v8809_v2  ;;  %v8810_v58 = vadd.f32 %v8733_v52, %v8397_v19  ;;  %v8735_v63 = vpop.f32.mrb[35].mxu1 }
 0xa48   :  { %v8409_v0 = vpop.f32.mrb[40].mxu0 }
 0xa49   :  { %v8880_v55 = vmax.f32 %v8848_v11, 0.0  ;;  %v8849_v22 = vadd.f32 %v14140_v56, %v8810_v58  ;;  %v8410_v28 = vadd.f32 %v8409_v0, %v14109_v14  ;;  %v8411_v17 = vpop.f32.mrb[41].mxu0 }
 0xa4a   :  { %v8412_v51 = vpop.f32.mrb[42].mxu0 }
 0xa4b   :  { %v8944_v48 = vadd.f32 %v9855_v23, %v8880_v55  ;;  %v8881_v33 = vmax.f32 %v8849_v22, 0.0  ;;  %v8413_v61 = vadd.f32 %v8412_v51, %v14111_v38  ;;  %v8414_v18 = vpop.f32.mrb[43].mxu0 }
 0xa4c   :  { %v8738_v24 = vpop.f32.mrb[36].mxu1 }
 0xa4d   :  { %8977 = vst.msk [vmem:[#allocation4 + $0x180] sm:$0xff] %vm28_vm0, %v8944_v48  ;;  %v8945_v7 = vadd.f32 %v9856_v29, %v8881_v33  ;;  %v8811_v43 = vadd.f32 %v8738_v24, %v8402_v35  ;;  %v8740_v62 = vpop.f32.mrb[37].mxu1  ;;  %v9862_v33 = vld [vmem:[%s14342_s0 + $0x1b8] sm:$0xff] }
 0xa4e   :  { %v8741_v47 = vpop.f32.mrb[38].mxu1 }
 0xa4f   :  { %8978 = vst.msk [vmem:[#allocation4 + $0x188] sm:$0xff] %vm28_vm0, %v8945_v7  ;;  %v8850_v14 = vadd.f32 %v14140_v56, %v8811_v43  ;;  %v8812_v36 = vadd.f32 %v8741_v47, %v8405_v4  ;;  %v8743_v40 = vpop.f32.mrb[39].mxu1 }
 0xa50   :  { %v8417_v9 = vpop.f32.mrb[44].mxu0 }
 0xa51   :  { %v8882_v38 = vmax.f32 %v8850_v14, 0.0  ;;  %v8851_v19 = vadd.f32 %v14140_v56, %v8812_v36  ;;  %v8418_v31 = vadd.f32 %v8417_v9, %v14113_v3  ;;  %v8419_v13 = vpop.f32.mrb[45].mxu0 }
 0xa52   :  { %v8420_v27 = vpop.f32.mrb[46].mxu0 }
 0xa53   :  { %v8946_v46 = vadd.f32 %v9857_v59, %v8882_v38  ;;  %v8883_v39 = vmax.f32 %v8851_v19, 0.0  ;;  %v8421_v10 = vadd.f32 %v8420_v27, %v14115_v37  ;;  %v8422_v12 = vpop.f32.mrb[47].mxu0  ;;  %v9863_v38 = vld [vmem:[%s14342_s0 + $0x1c0] sm:$0xff]  ;;  %v9864_v27 = vld [vmem:[%s14342_s0 + $0x1c8] sm:$0xff] }
 0xa54   :  { %v8746_v53 = vpop.f32.mrb[40].mxu1 }
 0xa55   :  { %8979 = vst.msk [vmem:[#allocation4 + $0x190] sm:$0xff] %vm28_vm0, %v8946_v46  ;;  %v8947_v8 = vadd.f32 %v9858_v20, %v8883_v39  ;;  %v8813_v16 = vadd.f32 %v8746_v53, %v8410_v28  ;;  %v8748_v41 = vpop.f32.mrb[41].mxu1  ;;  %v9861_v28 = vld [vmem:[%s14342_s0 + $0x1b0] sm:$0xff] }
 0xa56   :  { %v8749_v42 = vpop.f32.mrb[42].mxu1 }
 0xa57   :  { %8980 = vst.msk [vmem:[#allocation4 + $0x198] sm:$0xff] %vm28_vm0, %v8947_v8  ;;  %v8852_v3 = vadd.f32 %v14140_v56, %v8813_v16  ;;  %v8814_v35 = vadd.f32 %v8749_v42, %v8413_v61  ;;  %v8751_v44 = vpop.f32.mrb[43].mxu1 }
 0xa58   :  { %v8425_v45 = vpop.f32.mrb[48].mxu0 }
 0xa59   :  { %v8884_v37 = vmax.f32 %v8852_v3, 0.0  ;;  %v8853_v54 = vadd.f32 %v14140_v56, %v8814_v35  ;;  %v8426_v57 = vadd.f32 %v8425_v45, %v14117_v60  ;;  %v8427_v4 = vpop.f32.mrb[49].mxu0 }
 0xa5a   :  { %v8428_v32 = vpop.f32.mrb[50].mxu0  ;;  %v9866_v4 = vld [vmem:[%s14342_s0 + $0x1d8] sm:$0xff] }
 0xa5b   :  { %v8948_v21 = vadd.f32 %v9859_v49, %v8884_v37  ;;  %v8885_v2 = vmax.f32 %v8853_v54, 0.0  ;;  %v8429_v6 = vadd.f32 %v8428_v32, %v14119_v26  ;;  %v8430_v52 = vpop.f32.mrb[51].mxu0  ;;  %v9865_v49 = vld [vmem:[%s14342_s0 + $0x1d0] sm:$0xff] }
 0xa5c   :  { %v8754_v11 = vpop.f32.mrb[44].mxu1 }
 0xa5d   :  { %8981 = vst.msk [vmem:[#allocation4 + $0x1a0] sm:$0xff] %vm28_vm0, %v8948_v21  ;;  %v8949_v58 = vadd.f32 %v9860_v5, %v8885_v2  ;;  %v8815_v63 = vadd.f32 %v8754_v11, %v8418_v31  ;;  %v8756_v23 = vpop.f32.mrb[45].mxu1 }
 0xa5e   :  { %v8757_v0 = vpop.f32.mrb[46].mxu1 }
 0xa5f   :  { %8982 = vst.msk [vmem:[#allocation4 + $0x1a8] sm:$0xff] %vm28_vm0, %v8949_v58  ;;  %v8854_v60 = vadd.f32 %v14140_v56, %v8815_v63  ;;  %v8816_v55 = vadd.f32 %v8757_v0, %v8421_v10  ;;  %v8759_v22 = vpop.f32.mrb[47].mxu1 }
 0xa60   :  { %v8433_v17 = vpop.f32.mrb[52].mxu0 }
 0xa61   :  { %v8886_v26 = vmax.f32 %v8854_v60, 0.0  ;;  %v8855_v29 = vadd.f32 %v14140_v56, %v8816_v55  ;;  %v8434_v51 = vadd.f32 %v8433_v17, %v14121_v30  ;;  %v8435_v48 = vpop.f32.mrb[53].mxu0  ;;  %v9867_v55 = vld [vmem:[%s14342_s0 + $0x1e0] sm:$0xff] }
 0xa62   :  { %v8436_v61 = vpop.f32.mrb[54].mxu0 }
 0xa63   :  { %v8950_v18 = vadd.f32 %v9861_v28, %v8886_v26  ;;  %v8887_v24 = vmax.f32 %v8855_v29, 0.0  ;;  %v8437_v7 = vadd.f32 %v8436_v61, %v14123_v1  ;;  %v8438_v43 = vpop.f32.mrb[55].mxu0  ;;  %v9868_v28 = vld [vmem:[%s14342_s0 + $0x1e8] sm:$0xff] }
 0xa64   :  { %v8762_v62 = vpop.f32.mrb[48].mxu1  ;;  %v9869_v43 = vld [vmem:[%s14342_s0 + $0x1f0] sm:$0xff] }
 0xa65   :  { %8983 = vst.msk [vmem:[#allocation4 + $0x1b0] sm:$0xff] %vm28_vm0, %v8950_v18  ;;  %v8951_v47 = vadd.f32 %v9862_v33, %v8887_v24  ;;  %v8817_v14 = vadd.f32 %v8762_v62, %v8426_v57  ;;  %v8764_v36 = vpop.f32.mrb[49].mxu1 }
 0xa66   :  { %v8765_v40 = vpop.f32.mrb[50].mxu1 }
 0xa67   :  { %8984 = vst.msk [vmem:[#allocation4 + $0x1b8] sm:$0xff] %vm28_vm0, %v8951_v47  ;;  %v8856_v30 = vadd.f32 %v14140_v56, %v8817_v14  ;;  %v8818_v59 = vadd.f32 %v8765_v40, %v8429_v6  ;;  %v8767_v9 = vpop.f32.mrb[51].mxu1  ;;  %v9870_v14 = vld [vmem:[%s14342_s0 + $0x1f8] sm:$0xff] }
 0xa68   :  { %v8441_v19 = vpop.f32.mrb[56].mxu0 }
 0xa69   :  { %v8888_v1 = vmax.f32 %v8856_v30, 0.0  ;;  %v8857_v31 = vadd.f32 %v14140_v56, %v8818_v59  ;;  %v8442_v13 = vadd.f32 %v8441_v19, %v14125_v34  ;;  %v8443_v20 = vpop.f32.mrb[57].mxu0 }
 0xa6a   :  { %v8444_v46 = vpop.f32.mrb[58].mxu0 }
 0xa6b   :  { %v8952_v39 = vadd.f32 %v9863_v38, %v8888_v1  ;;  %v8889_v10 = vmax.f32 %v8857_v31, 0.0  ;;  %v8445_v12 = vadd.f32 %v8444_v46, %v14127_v25  ;;  %v8446_v53 = vpop.f32.mrb[59].mxu0 }
 0xa6c   :  { %v8770_v8 = vpop.f32.mrb[52].mxu1 }
 0xa6d   :  { %8985 = vst.msk [vmem:[#allocation4 + $0x1c0] sm:$0xff] %vm28_vm0, %v8952_v39  ;;  %v8953_v16 = vadd.f32 %v9864_v27, %v8889_v10  ;;  %v8819_v41 = vadd.f32 %v8770_v8, %v8434_v51  ;;  %v8772_v42 = vpop.f32.mrb[53].mxu1 }
 0xa6e   :  { %v8773_v3 = vpop.f32.mrb[54].mxu1 }
 0xa6f   :  { %8986 = vst.msk [vmem:[#allocation4 + $0x1c8] sm:$0xff] %vm28_vm0, %v8953_v16  ;;  %v8858_v34 = vadd.f32 %v14140_v56, %v8819_v41  ;;  %v8820_v35 = vadd.f32 %v8773_v3, %v8437_v7  ;;  %v8775_v44 = vpop.f32.mrb[55].mxu1 }
 0xa70   :  { %v8449_v45 = vpop.f32.mrb[60].mxu0 }
 0xa71   :  { %v8890_v25 = vmax.f32 %v8858_v34, 0.0  ;;  %v8859_v37 = vadd.f32 %v14140_v56, %v8820_v35  ;;  %v8450_v54 = vadd.f32 %v8449_v45, %v14131_v15  ;;  %v8451_v57 = vpop.f32.mrb[61].mxu0 }
 0xa72   :  { %v8452_v5 = vpop.f32.mrb[62].mxu0 }
 0xa73   :  { %v8954_v32 = vadd.f32 %v9865_v49, %v8890_v25  ;;  %v8891_v21 = vmax.f32 %v8859_v37, 0.0  ;;  %v8453_v2 = vadd.f32 %v8452_v5, %v14133_v50  ;;  %v8454_v6 = vpop.f32.mrb[63].mxu0 }
 0xa74   :  { %v8778_v52 = vpop.f32.mrb[56].mxu1 }
 0xa75   :  { %8987 = vst.msk [vmem:[#allocation4 + $0x1d0] sm:$0xff] %vm28_vm0, %v8954_v32  ;;  %v8955_v11 = vadd.f32 %v9866_v4, %v8891_v21  ;;  %v8821_v58 = vadd.f32 %v8778_v52, %v8442_v13  ;;  %v8780_v63 = vpop.f32.mrb[57].mxu1 }
 0xa76   :  { %v8781_v23 = vpop.f32.mrb[58].mxu1 }
 0xa77   :  { %8988 = vst.msk [vmem:[#allocation4 + $0x1d8] sm:$0xff] %vm28_vm0, %v8955_v11  ;;  %v8860_v15 = vadd.f32 %v14140_v56, %v8821_v58  ;;  %v8822_v0 = vadd.f32 %v8781_v23, %v8445_v12  ;;  %v8783_v60 = vpop.f32.mrb[59].mxu1 }
 0xa79   :  { %v8892_v22 = vmax.f32 %v8860_v15, 0.0  ;;  %v8861_v50 = vadd.f32 %v14140_v56, %v8822_v0 }
 0xa7b   :  { %v8956_v17 = vadd.f32 %v9867_v55, %v8892_v22  ;;  %v8893_v26 = vmax.f32 %v8861_v50, 0.0 }
 0xa7c   :  { %v8786_v29 = vpop.f32.mrb[60].mxu1 }
 0xa7d   :  { %8989 = vst.msk [vmem:[#allocation4 + $0x1e0] sm:$0xff] %vm28_vm0, %v8956_v17  ;;  %v8957_v51 = vadd.f32 %v9868_v28, %v8893_v26  ;;  %v8823_v48 = vadd.f32 %v8786_v29, %v8450_v54  ;;  %v8788_v33 = vpop.f32.mrb[61].mxu1 }
 0xa7e   :  { %v8789_v61 = vpop.f32.mrb[62].mxu1 }
 0xa7f   :  { %8990 = vst.msk [vmem:[#allocation4 + $0x1e8] sm:$0xff] %vm28_vm0, %v8957_v51  ;;  %v8862_v18 = vadd.f32 %v14140_v56, %v8823_v48  ;;  %v8824_v24 = vadd.f32 %v8789_v61, %v8453_v2  ;;  %v8791_v7 = vpop.f32.mrb[63].mxu1 }
 0xa81   :  { %v8894_v62 = vmax.f32 %v8862_v18, 0.0  ;;  %v8863_v47 = vadd.f32 %v14140_v56, %v8824_v24 }
 0xa83   :  { %v8958_v36 = vadd.f32 %v9869_v43, %v8894_v62  ;;  %v8895_v40 = vmax.f32 %v8863_v47, 0.0 }
 0xa85   :  { %8991 = vst.msk [vmem:[#allocation4 + $0x1f0] sm:$0xff] %vm28_vm0, %v8958_v36  ;;  %v8959_v30 = vadd.f32 %v9870_v14, %v8895_v40 }
 0xa87   :  { %8992 = vst.msk [vmem:[#allocation4 + $0x1f8] sm:$0xff] %vm28_vm0, %v8959_v30 }
 0xa88   :  { %10105 = shalt.err (!%p10102_p4)
}
 0xa89   :  { %s10106_s0 = scalar_lea.hbm %s14349_s7, 8192 }
 0xa8a   :  { %p10107_p5 = scmp.ne.s32.totalorder %s14349_s7, %s10106_s0  ;;  %p10110_p6 = scmp.lt.u32.totalorder %s10106_s0, %s14349_s7 }
 0xa8c   :  { %p10112_p7 = pnand %p10110_p6, %p10107_p5 }
 0xa8e   :  { %10115 = shalt.err (!%p10112_p7)
}
 0xa8f   :  { %s10122_s10 = smov 128   ;;  %s10123_s11 = smov 8  }
 0xa90   :  { %9004 = dma.vmem_to_hbm [thread:$0]  %s8999_s1, 8192, %s14349_s7, [#allocation5], %s10122_s10, %s10122_s10, %s10123_s11  }
 0xa91   :  { %10116 = dma.done.wait [#allocation5], 8192  }
 0xa92   :  { %10117 = vsyncadd [#allocation5], 4294959104 }
 0xa93   :  { %9008 = vsyncpa [#allocation5], 1 }

</bundles_post_ra>
